<compile_context>
chip_gen: v7x
topology: tpu7x:2x2x1
jax: 0.10.0
libtpu: 0.0.40
codegen_flags: <defaults>
</compile_context>

<pallas_src>
import jax
import jax.numpy as jnp
from jax.experimental import pallas as pl
from jax.experimental.pallas import tpu as pltpu

CHANNEL = 12

# (kh, kw, ph, pw) for conv2..conv5 (conv1's im2col is built in the wrapper).
CONV_GEOM = [(4, 1, 2, 0), (2, 2, 0, 0), (3, 3, 1, 1), (4, 4, 2, 2)]


def _canvas_plan(n_batch):
    """Per-conv (conv2..conv5) padded-canvas geometry.

    Each conv's input is stored as a zero-padded (N, Hp, Wp, 128) canvas
    flattened to rows, with `slop` extra trailing rows so every tap's shifted
    view `canvas[delta : delta + rows]` stays in-bounds.
    """
    h, w = 4, 5  # spatial dims of conv1's output
    plan = []
    for kh, kw, ph, pw in CONV_GEOM:
        hp, wp = h + 2 * ph, w + 2 * pw
        ho, wo = hp - kh + 1, wp - kw + 1
        rows = n_batch * hp * wp
        slop = (kh - 1) * wp + (kw - 1)
        plan.append(dict(kh=kh, kw=kw, ph=ph, pw=pw, hp=hp, wp=wp,
                         ho=ho, wo=wo, rows=rows, canvas=rows + slop))
        h, w = ho, wo
    return plan


# --------------------------------------------------------------------------
# Fused conv stack: 5 convs (+bias+ReLU) in one kernel, VMEM-resident,
# tap-accumulation formulation (no per-row im2col scatter).
# --------------------------------------------------------------------------
def _make_conv_stack_kernel(n_batch):
    plan = _canvas_plan(n_batch)

    def scatter(y, src_img, src_wp, ho, wo, dst_ref, dst_img, dst_wp, ph, pw):
        # Copy the valid (ho x wo) output rows of each image from `y` into the
        # destination canvas at its padded offsets: one contiguous wo-row
        # slice per (n, oh)  ->  N*Ho copies total.
        for n in range(n_batch):
            for oh in range(ho):
                src = n * src_img + oh * src_wp
                dst = n * dst_img + (oh + ph) * dst_wp + pw
                dst_ref[dst:dst + wo, :] = y[src:src + wo, :]

    def kernel(x1_ref, w1_ref, b1_ref, w2_ref, b2_ref, w3_ref, b3_ref,
               w4_ref, b4_ref, w5_ref, b5_ref, o_ref,
               pad2_ref, pad3_ref, pad4_ref, pad5_ref, dense_ref):
        pads = [pad2_ref, pad3_ref, pad4_ref, pad5_ref]
        wrefs = [w2_ref, w3_ref, w4_ref, w5_ref]
        brefs = [b2_ref, b3_ref, b4_ref, b5_ref]

        # Zero every padded canvas once: border rows implement the convs' zero
        # padding; slop rows only ever feed output rows that are discarded.
        for p in pads:
            p[...] = jnp.zeros(p.shape, p.dtype)

        # conv1: wrapper-built im2col (N*20, 48) -> single matmul (+bias, ReLU).
        y = jnp.maximum(
            jnp.dot(x1_ref[...], w1_ref[...],
                    preferred_element_type=jnp.float32) + b1_ref[...], 0.0)
        # conv1 output layout: dense rows n*20 + h*5 + w  (H=4, W=5).
        src_img, src_wp, ho, wo = 20, 5, 4, 5

        # conv2..conv5: tap accumulation on the zero-padded canvas.  For tap
        # (i, j) the shifted input is a single static row-slice of the canvas,
        # so each conv is kh*kw matmuls + adds (MXU work identical to the
        # fused-K matmul, no im2col gather).
        for li, cfg in enumerate(plan):
            pad_ref = pads[li]
            kh, kw, wp = cfg["kh"], cfg["kw"], cfg["wp"]
            rows = cfg["rows"]
            dst_img = cfg["hp"] * cfg["wp"]

            # Previous conv's valid rows -> this conv's padded canvas.
            scatter(y, src_img, src_wp, ho, wo,
                    pad_ref, dst_img, wp, cfg["ph"], cfg["pw"])

            acc = None
            for i in range(kh):
                for j in range(kw):
                    t = i * kw + j
                    delta = i * wp + j
                    xs = pad_ref[delta:delta + rows, :]            # shifted view
                    wt = wrefs[li][t * 128:(t + 1) * 128, :]       # tap weights
                    part = jnp.dot(xs, wt, preferred_element_type=jnp.float32)
                    acc = part if acc is None else acc + part
            y = jnp.maximum(acc + brefs[li][...], 0.0)

            src_img, src_wp = dst_img, wp
            ho, wo = cfg["ho"], cfg["wo"]

        # conv5 valid rows -> dense (N*25, 128) f32 scratch, then one aligned
        # full-tile bf16 cast+store (rows = n*25 + oh*5 + ow).
        scatter(y, src_img, src_wp, ho, wo, dense_ref, ho * wo, wo, 0, 0)
        o_ref[...] = dense_ref[...].astype(o_ref.dtype)

    return kernel


def conv_stack(x1_col, conv_w, conv_b, n_batch):
    m_out = n_batch * 25
    args, in_specs = [x1_col], [pl.BlockSpec(x1_col.shape, lambda i: (0, 0))]
    for wgt, bias in zip(conv_w, conv_b):
        args += [wgt, bias]
        in_specs += [pl.BlockSpec(wgt.shape, lambda i: (0, 0)),
                     pl.BlockSpec(bias.shape, lambda i: (0, 0))]
    plan = _canvas_plan(n_batch)
    scratch = [pltpu.VMEM((cfg["canvas"], 128), jnp.float32) for cfg in plan]
    scratch.append(pltpu.VMEM((m_out, 128), jnp.float32))   # dense f32 out
    return pl.pallas_call(
        _make_conv_stack_kernel(n_batch),
        out_shape=jax.ShapeDtypeStruct((m_out, 128), jnp.bfloat16),
        grid=(1,),
        in_specs=in_specs,
        out_specs=pl.BlockSpec((m_out, 128), lambda i: (0, 0)),
        scratch_shapes=scratch,
        compiler_params=pltpu.CompilerParams(
            dimension_semantics=("arbitrary",)),
    )(*args)


# --------------------------------------------------------------------------
# Fully fused FC head: out = relu(relu(x@W1+b1) @ W2 + b2) @ W3 + b3
# One pallas_call tiled over FC1 output columns (accumulator axis).
# --------------------------------------------------------------------------
def fc_fused_kernel(x_ref, w1_ref, b1_ref, w2_ref, b2_ref, w3_ref, b3_ref,
                    o_ref, acc_ref):
    j = pl.program_id(0)

    @pl.when(j == 0)
    def _():
        acc_ref[...] = jnp.zeros_like(acc_ref)

    # FC1 column tile (+bias, ReLU) feeds the matching W2 row tile.
    h1 = jnp.dot(x_ref[...], w1_ref[...],
                 preferred_element_type=jnp.float32) + b1_ref[...]
    h1 = jnp.maximum(h1, 0.0).astype(jnp.bfloat16)
    acc_ref[...] += jnp.dot(h1, w2_ref[...],
                            preferred_element_type=jnp.float32)

    @pl.when(j == pl.num_programs(0) - 1)
    def _():
        h2 = jnp.maximum(acc_ref[...] + b2_ref[...], 0.0).astype(jnp.bfloat16)
        o_ref[...] = (jnp.dot(h2, w3_ref[...],
                              preferred_element_type=jnp.float32)
                      + b3_ref[...])


def fc_fused(x, w1, b1, w2, b2, w3, b3, tn=512):
    n, k = x.shape
    n1, n2, nout = w1.shape[1], w2.shape[1], w3.shape[1]
    assert n1 % tn == 0 and w2.shape[0] == n1
    return pl.pallas_call(
        fc_fused_kernel,
        out_shape=jax.ShapeDtypeStruct((n, nout), jnp.float32),
        grid=(n1 // tn,),
        in_specs=[pl.BlockSpec((n, k), lambda j: (0, 0)),
                  pl.BlockSpec((k, tn), lambda j: (0, j)),
                  pl.BlockSpec((1, tn), lambda j: (0, j)),
                  pl.BlockSpec((tn, n2), lambda j: (j, 0)),
                  pl.BlockSpec((1, n2), lambda j: (0, 0)),
                  pl.BlockSpec((n2, nout), lambda j: (0, 0)),
                  pl.BlockSpec((1, nout), lambda j: (0, 0))],
        out_specs=pl.BlockSpec((n, nout), lambda j: (0, 0)),
        scratch_shapes=[pltpu.VMEM((n, n2), jnp.float32)],
        compiler_params=pltpu.CompilerParams(
            dimension_semantics=("arbitrary",)),
    )(x, w1, b1, w2, b2, w3, b3)


# --------------------------------------------------------------------------
# Parameters: PyTorch-shaped raw params + one-time offline folding.
# --------------------------------------------------------------------------
def init_params(key):
    keys = iter(jax.random.split(key, 32))

    def nrm(shape, s=0.05):
        return (s * jax.random.normal(next(keys), shape)).astype(jnp.float32)

    conv_cfg = [  # (cout, cin, kh, kw)
        (64, CHANNEL, 1, 4), (128, 64, 4, 1), (128, 128, 2, 2),
        (128, 128, 3, 3), (128, 128, 4, 4)]
    convs = [dict(w=nrm((co, ci, kh, kw)), b=nrm((co,)))
             for co, ci, kh, kw in conv_cfg]

    def bn(f):
        return dict(gamma=(1.0 + nrm((f,))).astype(jnp.float32),
                    beta=nrm((f,)), mean=nrm((f,)),
                    var=(1.0 + jnp.abs(nrm((f,)))).astype(jnp.float32))

    fc_cfg = [(128 * 5 * 5, 2048), (2048, 256), (256, 4)]
    fcs = [dict(bn=bn(fi), w=nrm((fo, fi)), b=nrm((fo,))) for fi, fo in fc_cfg]
    return dict(convs=convs, fcs=fcs)


def prepare_params(params, eps=1e-5):
    """One-time offline folding: im2col conv weights (conv1 Cout / conv2 Cin
    zero-padded to 128), inference BN folded into pre-transposed bf16 FC
    weights, FC1 rows permuted to the kernel's NHWC flatten order."""
    conv_w, conv_b = [], []
    for idx, c in enumerate(params["convs"]):
        w = c["w"]                                   # (Cout, Cin, kh, kw)
        cout, cin, kh, kw = w.shape
        wt = jnp.transpose(w, (2, 3, 1, 0))          # (kh, kw, Cin, Cout)
        b = c["b"]
        if idx == 0:                                 # pad Cout 64 -> 128
            wt = jnp.pad(wt, ((0, 0), (0, 0), (0, 0), (0, 128 - cout)))
            b = jnp.pad(b, ((0, 128 - cout),))
            cout = 128
        if idx == 1:                                 # pad Cin 64 -> 128
            wt = jnp.pad(wt, ((0, 0), (0, 0), (0, 128 - cin), (0, 0)))
            cin = 128
        conv_w.append(wt.reshape(kh * kw * cin, cout).astype(jnp.float32))
        conv_b.append(b.reshape(1, cout).astype(jnp.float32))

    fc_w, fc_b = [], []
    for i, f in enumerate(params["fcs"]):
        bnp = f["bn"]
        scale = bnp["gamma"] / jnp.sqrt(bnp["var"] + eps)
        shift = bnp["beta"] - bnp["mean"] * scale
        wt = jnp.transpose(f["w"])                   # (K, Nout), pre-transposed
        wf = wt * scale[:, None]                     # fold BN scale into rows
        bf = f["b"] + shift @ wt                     # fold BN shift into bias
        if i == 0:
            # PyTorch flatten order is c*25 + p (NCHW); kernel emits p*128 + c.
            kidx = jnp.arange(wf.shape[0])
            perm = (kidx % 128) * 25 + (kidx // 128)
            wf = wf[perm]
        fc_w.append(wf.astype(jnp.bfloat16))
        fc_b.append(bf.reshape(1, -1).astype(jnp.float32))
    return dict(conv_w=conv_w, conv_b=conv_b, fc_w=fc_w, fc_b=fc_b)


# --------------------------------------------------------------------------
# Forward pass.
# --------------------------------------------------------------------------
def _conv1_im2col(x_nchw):
    """im2col for conv1 (kernel (1,4), padding (0,2)): (N,12,4,4) -> (N*20, 48)."""
    x = jnp.transpose(x_nchw, (0, 2, 3, 1))                  # NHWC (N,4,4,12)
    xp = jnp.pad(x, ((0, 0), (0, 0), (2, 2), (0, 0)))        # (N,4,8,12)
    col = jnp.concatenate([xp[:, :, j:j + 5, :] for j in range(4)], axis=-1)
    return col.reshape(-1, 4 * CHANNEL)                      # rows = n*20+h*5+w


def simplenet_forward(x_nchw, p):
    n = x_nchw.shape[0]
    x1 = _conv1_im2col(x_nchw)
    conv_out = conv_stack(x1, p["conv_w"], p["conv_b"], n)   # (N*25, 128) bf16
    x = conv_out.reshape(n, 25 * 128)      # NHWC flatten; order folded into FC1
    return fc_fused(x, p["fc_w"][0], p["fc_b"][0],
                    p["fc_w"][1], p["fc_b"][1],
                    p["fc_w"][2], p["fc_b"][2])


if __name__ == "__main__":
    N = 2
    k_x, k_p = jax.random.split(jax.random.PRNGKey(0))
    x_nchw = jax.random.normal(k_x, (N, CHANNEL, 4, 4), dtype=jnp.float32)
    params = init_params(k_p)
    prepped = prepare_params(params)   # one-time offline param folding

    fwd = jax.jit(simplenet_forward)
    out = jax.block_until_ready(fwd(x_nchw, prepped))
    assert out.shape == (N, 4), out.shape
    assert out.dtype == jnp.float32
    assert bool(jnp.all(jnp.isfinite(out)))
    print("KERNEL_OK")
</pallas_src>

<mosaic_0001>
module attributes {stable_mosaic.version = 11 : i64} {
  func.func @kernel(%arg0: i32, %arg1: memref<40x48xf32, #tpu.memory_space<vmem>>, %arg2: memref<48x128xf32, #tpu.memory_space<vmem>>, %arg3: memref<1x128xf32, #tpu.memory_space<vmem>>, %arg4: memref<512x128xf32, #tpu.memory_space<vmem>>, %arg5: memref<1x128xf32, #tpu.memory_space<vmem>>, %arg6: memref<512x128xf32, #tpu.memory_space<vmem>>, %arg7: memref<1x128xf32, #tpu.memory_space<vmem>>, %arg8: memref<1152x128xf32, #tpu.memory_space<vmem>>, %arg9: memref<1x128xf32, #tpu.memory_space<vmem>>, %arg10: memref<2048x128xf32, #tpu.memory_space<vmem>>, %arg11: memref<1x128xf32, #tpu.memory_space<vmem>>, %arg12: memref<50x128xbf16, #tpu.memory_space<vmem>>, %arg13: memref<95x128xf32, #tpu.memory_space<vmem>>, %arg14: memref<56x128xf32, #tpu.memory_space<vmem>>, %arg15: memref<86x128xf32, #tpu.memory_space<vmem>>, %arg16: memref<155x128xf32, #tpu.memory_space<vmem>>, %arg17: memref<50x128xf32, #tpu.memory_space<vmem>>) attributes {dimension_semantics = [#tpu.dimension_semantics<arbitrary>], iteration_bounds = array<i64: 1>, scalar_prefetch = 0 : i64, scratch_operands = 5 : i64, tpu.core_type = #tpu.core_type<tc>, window_params = [{pipeline_mode = #tpu.pipeline_mode<synchronous>, transform_indices = @transform_0, window_bounds = array<i64: 40, 48>}, {pipeline_mode = #tpu.pipeline_mode<synchronous>, transform_indices = @transform_1, window_bounds = array<i64: 48, 128>}, {pipeline_mode = #tpu.pipeline_mode<synchronous>, transform_indices = @transform_2, window_bounds = array<i64: 1, 128>}, {pipeline_mode = #tpu.pipeline_mode<synchronous>, transform_indices = @transform_3, window_bounds = array<i64: 512, 128>}, {pipeline_mode = #tpu.pipeline_mode<synchronous>, transform_indices = @transform_4, window_bounds = array<i64: 1, 128>}, {pipeline_mode = #tpu.pipeline_mode<synchronous>, transform_indices = @transform_5, window_bounds = array<i64: 512, 128>}, {pipeline_mode = #tpu.pipeline_mode<synchronous>, transform_indices = @transform_6, window_bounds = array<i64: 1, 128>}, {pipeline_mode = #tpu.pipeline_mode<synchronous>, transform_indices = @transform_7, window_bounds = array<i64: 1152, 128>}, {pipeline_mode = #tpu.pipeline_mode<synchronous>, transform_indices = @transform_8, window_bounds = array<i64: 1, 128>}, {pipeline_mode = #tpu.pipeline_mode<synchronous>, transform_indices = @transform_9, window_bounds = array<i64: 2048, 128>}, {pipeline_mode = #tpu.pipeline_mode<synchronous>, transform_indices = @transform_10, window_bounds = array<i64: 1, 128>}, {pipeline_mode = #tpu.pipeline_mode<synchronous>, transform_indices = @transform_11, window_bounds = array<i64: 50, 128>}]} {
    %cst = arith.constant 0.000000e+00 : f32
    %0 = vector.broadcast %cst : f32 to vector<95x128xf32>
    %c0 = arith.constant 0 : index
    %c0_0 = arith.constant 0 : index
    %1 = vector.load %arg13[%c0, %c0_0] : memref<95x128xf32, #tpu.memory_space<vmem>>, vector<95x128xf32>
    tpu.vector_store %arg13[%c0, %c0_0], %0 {strides = array<i32>} : memref<95x128xf32, #tpu.memory_space<vmem>>, vector<95x128xf32>,
    %cst_1 = arith.constant 0.000000e+00 : f32
    %2 = vector.broadcast %cst_1 : f32 to vector<56x128xf32>
    %c0_2 = arith.constant 0 : index
    %c0_3 = arith.constant 0 : index
    %3 = vector.load %arg14[%c0_2, %c0_3] : memref<56x128xf32, #tpu.memory_space<vmem>>, vector<56x128xf32>
    tpu.vector_store %arg14[%c0_2, %c0_3], %2 {strides = array<i32>} : memref<56x128xf32, #tpu.memory_space<vmem>>, vector<56x128xf32>,
    %cst_4 = arith.constant 0.000000e+00 : f32
    %4 = vector.broadcast %cst_4 : f32 to vector<86x128xf32>
    %c0_5 = arith.constant 0 : index
    %c0_6 = arith.constant 0 : index
    %5 = vector.load %arg15[%c0_5, %c0_6] : memref<86x128xf32, #tpu.memory_space<vmem>>, vector<86x128xf32>
    tpu.vector_store %arg15[%c0_5, %c0_6], %4 {strides = array<i32>} : memref<86x128xf32, #tpu.memory_space<vmem>>, vector<86x128xf32>,
    %cst_7 = arith.constant 0.000000e+00 : f32
    %6 = vector.broadcast %cst_7 : f32 to vector<155x128xf32>
    %c0_8 = arith.constant 0 : index
    %c0_9 = arith.constant 0 : index
    %7 = vector.load %arg16[%c0_8, %c0_9] : memref<155x128xf32, #tpu.memory_space<vmem>>, vector<155x128xf32>
    tpu.vector_store %arg16[%c0_8, %c0_9], %6 {strides = array<i32>} : memref<155x128xf32, #tpu.memory_space<vmem>>, vector<155x128xf32>,
    %c0_10 = arith.constant 0 : index
    %c0_11 = arith.constant 0 : index
    %8 = vector.load %arg1[%c0_10, %c0_11] : memref<40x48xf32, #tpu.memory_space<vmem>>, vector<40x48xf32>
    %c0_12 = arith.constant 0 : index
    %c0_13 = arith.constant 0 : index
    %9 = vector.load %arg2[%c0_12, %c0_13] : memref<48x128xf32, #tpu.memory_space<vmem>>, vector<48x128xf32>
    %cst_14 = arith.constant dense<0.000000e+00> : vector<40x128xf32>
    %10 = tpu.matmul %8, %9, %cst_14 {dimension_numbers = #tpu.dot_dimension_numbers<[1], [0], [0], [1], [0, 0, 1, 1], [], []>} : vector<40x48xf32>, vector<48x128xf32>, vector<40x128xf32> -> vector<40x128xf32>
    %c0_15 = arith.constant 0 : index
    %c0_16 = arith.constant 0 : index
    %11 = vector.load %arg3[%c0_15, %c0_16] : memref<1x128xf32, #tpu.memory_space<vmem>>, vector<1x128xf32>
    %12 = vector.broadcast %11 : vector<1x128xf32> to vector<40x128xf32>
    %13 = arith.addf %10, %12 : vector<40x128xf32>
    %cst_17 = arith.constant 0.000000e+00 : f32
    %14 = vector.broadcast %cst_17 : f32 to vector<40x128xf32>
    %15 = arith.maximumf %13, %14 : vector<40x128xf32>
    %16 = vector.extract_strided_slice %15 {offsets = [0, 0], sizes = [5, 128], strides = [1, 1]} : vector<40x128xf32> to vector<5x128xf32>
    %c10 = arith.constant 10 : index
    %c0_18 = arith.constant 0 : index
    %17 = vector.load %arg13[%c10, %c0_18] : memref<95x128xf32, #tpu.memory_space<vmem>>, vector<5x128xf32>
    tpu.vector_store %arg13[%c10, %c0_18], %16 {strides = array<i32>} : memref<95x128xf32, #tpu.memory_space<vmem>>, vector<5x128xf32>,
    %18 = vector.extract_strided_slice %15 {offsets = [5, 0], sizes = [5, 128], strides = [1, 1]} : vector<40x128xf32> to vector<5x128xf32>
    %c15 = arith.constant 15 : index
    %c0_19 = arith.constant 0 : index
    %19 = vector.load %arg13[%c15, %c0_19] : memref<95x128xf32, #tpu.memory_space<vmem>>, vector<5x128xf32>
    tpu.vector_store %arg13[%c15, %c0_19], %18 {strides = array<i32>} : memref<95x128xf32, #tpu.memory_space<vmem>>, vector<5x128xf32>,
    %20 = vector.extract_strided_slice %15 {offsets = [10, 0], sizes = [5, 128], strides = [1, 1]} : vector<40x128xf32> to vector<5x128xf32>
    %c20 = arith.constant 20 : index
    %c0_20 = arith.constant 0 : index
    %21 = vector.load %arg13[%c20, %c0_20] : memref<95x128xf32, #tpu.memory_space<vmem>>, vector<5x128xf32>
    tpu.vector_store %arg13[%c20, %c0_20], %20 {strides = array<i32>} : memref<95x128xf32, #tpu.memory_space<vmem>>, vector<5x128xf32>,
    %22 = vector.extract_strided_slice %15 {offsets = [15, 0], sizes = [5, 128], strides = [1, 1]} : vector<40x128xf32> to vector<5x128xf32>
    %c25 = arith.constant 25 : index
    %c0_21 = arith.constant 0 : index
    %23 = vector.load %arg13[%c25, %c0_21] : memref<95x128xf32, #tpu.memory_space<vmem>>, vector<5x128xf32>
    tpu.vector_store %arg13[%c25, %c0_21], %22 {strides = array<i32>} : memref<95x128xf32, #tpu.memory_space<vmem>>, vector<5x128xf32>,
    %24 = vector.extract_strided_slice %15 {offsets = [20, 0], sizes = [5, 128], strides = [1, 1]} : vector<40x128xf32> to vector<5x128xf32>
    %c50 = arith.constant 50 : index
    %c0_22 = arith.constant 0 : index
    %25 = vector.load %arg13[%c50, %c0_22] : memref<95x128xf32, #tpu.memory_space<vmem>>, vector<5x128xf32>
    tpu.vector_store %arg13[%c50, %c0_22], %24 {strides = array<i32>} : memref<95x128xf32, #tpu.memory_space<vmem>>, vector<5x128xf32>,
    %26 = vector.extract_strided_slice %15 {offsets = [25, 0], sizes = [5, 128], strides = [1, 1]} : vector<40x128xf32> to vector<5x128xf32>
    %c55 = arith.constant 55 : index
    %c0_23 = arith.constant 0 : index
    %27 = vector.load %arg13[%c55, %c0_23] : memref<95x128xf32, #tpu.memory_space<vmem>>, vector<5x128xf32>
    tpu.vector_store %arg13[%c55, %c0_23], %26 {strides = array<i32>} : memref<95x128xf32, #tpu.memory_space<vmem>>, vector<5x128xf32>,
    %28 = vector.extract_strided_slice %15 {offsets = [30, 0], sizes = [5, 128], strides = [1, 1]} : vector<40x128xf32> to vector<5x128xf32>
    %c60 = arith.constant 60 : index
    %c0_24 = arith.constant 0 : index
    %29 = vector.load %arg13[%c60, %c0_24] : memref<95x128xf32, #tpu.memory_space<vmem>>, vector<5x128xf32>
    tpu.vector_store %arg13[%c60, %c0_24], %28 {strides = array<i32>} : memref<95x128xf32, #tpu.memory_space<vmem>>, vector<5x128xf32>,
    %30 = vector.extract_strided_slice %15 {offsets = [35, 0], sizes = [5, 128], strides = [1, 1]} : vector<40x128xf32> to vector<5x128xf32>
    %c65 = arith.constant 65 : index
    %c0_25 = arith.constant 0 : index
    %31 = vector.load %arg13[%c65, %c0_25] : memref<95x128xf32, #tpu.memory_space<vmem>>, vector<5x128xf32>
    tpu.vector_store %arg13[%c65, %c0_25], %30 {strides = array<i32>} : memref<95x128xf32, #tpu.memory_space<vmem>>, vector<5x128xf32>,
    %c0_26 = arith.constant 0 : index
    %c0_27 = arith.constant 0 : index
    %32 = vector.load %arg13[%c0_26, %c0_27] : memref<95x128xf32, #tpu.memory_space<vmem>>, vector<80x128xf32>
    %c0_28 = arith.constant 0 : index
    %c0_29 = arith.constant 0 : index
    %33 = vector.load %arg4[%c0_28, %c0_29] : memref<512x128xf32, #tpu.memory_space<vmem>>, vector<128x128xf32>
    %cst_30 = arith.constant dense<0.000000e+00> : vector<80x128xf32>
    %34 = tpu.matmul %32, %33, %cst_30 {dimension_numbers = #tpu.dot_dimension_numbers<[1], [0], [0], [1], [0, 0, 1, 1], [], []>} : vector<80x128xf32>, vector<128x128xf32>, vector<80x128xf32> -> vector<80x128xf32>
    %c5 = arith.constant 5 : index
    %c0_31 = arith.constant 0 : index
    %35 = vector.load %arg13[%c5, %c0_31] : memref<95x128xf32, #tpu.memory_space<vmem>>, vector<80x128xf32>
    %c128 = arith.constant 128 : index
    %c0_32 = arith.constant 0 : index
    %36 = vector.load %arg4[%c128, %c0_32] : memref<512x128xf32, #tpu.memory_space<vmem>>, vector<128x128xf32>
    %cst_33 = arith.constant dense<0.000000e+00> : vector<80x128xf32>
    %37 = tpu.matmul %35, %36, %cst_33 {dimension_numbers = #tpu.dot_dimension_numbers<[1], [0], [0], [1], [0, 0, 1, 1], [], []>} : vector<80x128xf32>, vector<128x128xf32>, vector<80x128xf32> -> vector<80x128xf32>
    %38 = arith.addf %34, %37 : vector<80x128xf32>
    %c10_34 = arith.constant 10 : index
    %c0_35 = arith.constant 0 : index
    %39 = vector.load %arg13[%c10_34, %c0_35] : memref<95x128xf32, #tpu.memory_space<vmem>>, vector<80x128xf32>
    %c256 = arith.constant 256 : index
    %c0_36 = arith.constant 0 : index
    %40 = vector.load %arg4[%c256, %c0_36] : memref<512x128xf32, #tpu.memory_space<vmem>>, vector<128x128xf32>
    %cst_37 = arith.constant dense<0.000000e+00> : vector<80x128xf32>
    %41 = tpu.matmul %39, %40, %cst_37 {dimension_numbers = #tpu.dot_dimension_numbers<[1], [0], [0], [1], [0, 0, 1, 1], [], []>} : vector<80x128xf32>, vector<128x128xf32>, vector<80x128xf32> -> vector<80x128xf32>
    %42 = arith.addf %38, %41 : vector<80x128xf32>
    %c15_38 = arith.constant 15 : index
    %c0_39 = arith.constant 0 : index
    %43 = vector.load %arg13[%c15_38, %c0_39] : memref<95x128xf32, #tpu.memory_space<vmem>>, vector<80x128xf32>
    %c384 = arith.constant 384 : index
    %c0_40 = arith.constant 0 : index
    %44 = vector.load %arg4[%c384, %c0_40] : memref<512x128xf32, #tpu.memory_space<vmem>>, vector<128x128xf32>
    %cst_41 = arith.constant dense<0.000000e+00> : vector<80x128xf32>
    %45 = tpu.matmul %43, %44, %cst_41 {dimension_numbers = #tpu.dot_dimension_numbers<[1], [0], [0], [1], [0, 0, 1, 1], [], []>} : vector<80x128xf32>, vector<128x128xf32>, vector<80x128xf32> -> vector<80x128xf32>
    %46 = arith.addf %42, %45 : vector<80x128xf32>
    %c0_42 = arith.constant 0 : index
    %c0_43 = arith.constant 0 : index
    %47 = vector.load %arg5[%c0_42, %c0_43] : memref<1x128xf32, #tpu.memory_space<vmem>>, vector<1x128xf32>
    %48 = vector.broadcast %47 : vector<1x128xf32> to vector<80x128xf32>
    %49 = arith.addf %46, %48 : vector<80x128xf32>
    %cst_44 = arith.constant 0.000000e+00 : f32
    %50 = vector.broadcast %cst_44 : f32 to vector<80x128xf32>
    %51 = arith.maximumf %49, %50 : vector<80x128xf32>
    %52 = vector.extract_strided_slice %51 {offsets = [0, 0], sizes = [5, 128], strides = [1, 1]} : vector<80x128xf32> to vector<5x128xf32>
    %c0_45 = arith.constant 0 : index
    %c0_46 = arith.constant 0 : index
    %53 = vector.load %arg14[%c0_45, %c0_46] : memref<56x128xf32, #tpu.memory_space<vmem>>, vector<5x128xf32>
    tpu.vector_store %arg14[%c0_45, %c0_46], %52 {strides = array<i32>} : memref<56x128xf32, #tpu.memory_space<vmem>>, vector<5x128xf32>,
    %54 = vector.extract_strided_slice %51 {offsets = [5, 0], sizes = [5, 128], strides = [1, 1]} : vector<80x128xf32> to vector<5x128xf32>
    %c5_47 = arith.constant 5 : index
    %c0_48 = arith.constant 0 : index
    %55 = vector.load %arg14[%c5_47, %c0_48] : memref<56x128xf32, #tpu.memory_space<vmem>>, vector<5x128xf32>
    tpu.vector_store %arg14[%c5_47, %c0_48], %54 {strides = array<i32>} : memref<56x128xf32, #tpu.memory_space<vmem>>, vector<5x128xf32>,
    %56 = vector.extract_strided_slice %51 {offsets = [10, 0], sizes = [5, 128], strides = [1, 1]} : vector<80x128xf32> to vector<5x128xf32>
    %c10_49 = arith.constant 10 : index
    %c0_50 = arith.constant 0 : index
    %57 = vector.load %arg14[%c10_49, %c0_50] : memref<56x128xf32, #tpu.memory_space<vmem>>, vector<5x128xf32>
    tpu.vector_store %arg14[%c10_49, %c0_50], %56 {strides = array<i32>} : memref<56x128xf32, #tpu.memory_space<vmem>>, vector<5x128xf32>,
    %58 = vector.extract_strided_slice %51 {offsets = [15, 0], sizes = [5, 128], strides = [1, 1]} : vector<80x128xf32> to vector<5x128xf32>
    %c15_51 = arith.constant 15 : index
    %c0_52 = arith.constant 0 : index
    %59 = vector.load %arg14[%c15_51, %c0_52] : memref<56x128xf32, #tpu.memory_space<vmem>>, vector<5x128xf32>
    tpu.vector_store %arg14[%c15_51, %c0_52], %58 {strides = array<i32>} : memref<56x128xf32, #tpu.memory_space<vmem>>, vector<5x128xf32>,
    %60 = vector.extract_strided_slice %51 {offsets = [20, 0], sizes = [5, 128], strides = [1, 1]} : vector<80x128xf32> to vector<5x128xf32>
    %c20_53 = arith.constant 20 : index
    %c0_54 = arith.constant 0 : index
    %61 = vector.load %arg14[%c20_53, %c0_54] : memref<56x128xf32, #tpu.memory_space<vmem>>, vector<5x128xf32>
    tpu.vector_store %arg14[%c20_53, %c0_54], %60 {strides = array<i32>} : memref<56x128xf32, #tpu.memory_space<vmem>>, vector<5x128xf32>,
    %62 = vector.extract_strided_slice %51 {offsets = [40, 0], sizes = [5, 128], strides = [1, 1]} : vector<80x128xf32> to vector<5x128xf32>
    %c25_55 = arith.constant 25 : index
    %c0_56 = arith.constant 0 : index
    %63 = vector.load %arg14[%c25_55, %c0_56] : memref<56x128xf32, #tpu.memory_space<vmem>>, vector<5x128xf32>
    tpu.vector_store %arg14[%c25_55, %c0_56], %62 {strides = array<i32>} : memref<56x128xf32, #tpu.memory_space<vmem>>, vector<5x128xf32>,
    %64 = vector.extract_strided_slice %51 {offsets = [45, 0], sizes = [5, 128], strides = [1, 1]} : vector<80x128xf32> to vector<5x128xf32>
    %c30 = arith.constant 30 : index
    %c0_57 = arith.constant 0 : index
    %65 = vector.load %arg14[%c30, %c0_57] : memref<56x128xf32, #tpu.memory_space<vmem>>, vector<5x128xf32>
    tpu.vector_store %arg14[%c30, %c0_57], %64 {strides = array<i32>} : memref<56x128xf32, #tpu.memory_space<vmem>>, vector<5x128xf32>,
    %66 = vector.extract_strided_slice %51 {offsets = [50, 0], sizes = [5, 128], strides = [1, 1]} : vector<80x128xf32> to vector<5x128xf32>
    %c35 = arith.constant 35 : index
    %c0_58 = arith.constant 0 : index
    %67 = vector.load %arg14[%c35, %c0_58] : memref<56x128xf32, #tpu.memory_space<vmem>>, vector<5x128xf32>
    tpu.vector_store %arg14[%c35, %c0_58], %66 {strides = array<i32>} : memref<56x128xf32, #tpu.memory_space<vmem>>, vector<5x128xf32>,
    %68 = vector.extract_strided_slice %51 {offsets = [55, 0], sizes = [5, 128], strides = [1, 1]} : vector<80x128xf32> to vector<5x128xf32>
    %c40 = arith.constant 40 : index
    %c0_59 = arith.constant 0 : index
    %69 = vector.load %arg14[%c40, %c0_59] : memref<56x128xf32, #tpu.memory_space<vmem>>, vector<5x128xf32>
    tpu.vector_store %arg14[%c40, %c0_59], %68 {strides = array<i32>} : memref<56x128xf32, #tpu.memory_space<vmem>>, vector<5x128xf32>,
    %70 = vector.extract_strided_slice %51 {offsets = [60, 0], sizes = [5, 128], strides = [1, 1]} : vector<80x128xf32> to vector<5x128xf32>
    %c45 = arith.constant 45 : index
    %c0_60 = arith.constant 0 : index
    %71 = vector.load %arg14[%c45, %c0_60] : memref<56x128xf32, #tpu.memory_space<vmem>>, vector<5x128xf32>
    tpu.vector_store %arg14[%c45, %c0_60], %70 {strides = array<i32>} : memref<56x128xf32, #tpu.memory_space<vmem>>, vector<5x128xf32>,
    %c0_61 = arith.constant 0 : index
    %c0_62 = arith.constant 0 : index
    %72 = vector.load %arg14[%c0_61, %c0_62] : memref<56x128xf32, #tpu.memory_space<vmem>>, vector<50x128xf32>
    %c0_63 = arith.constant 0 : index
    %c0_64 = arith.constant 0 : index
    %73 = vector.load %arg6[%c0_63, %c0_64] : memref<512x128xf32, #tpu.memory_space<vmem>>, vector<128x128xf32>
    %cst_65 = arith.constant dense<0.000000e+00> : vector<50x128xf32>
    %74 = tpu.matmul %72, %73, %cst_65 {dimension_numbers = #tpu.dot_dimension_numbers<[1], [0], [0], [1], [0, 0, 1, 1], [], []>} : vector<50x128xf32>, vector<128x128xf32>, vector<50x128xf32> -> vector<50x128xf32>
    %c1 = arith.constant 1 : index
    %c0_66 = arith.constant 0 : index
    %75 = vector.load %arg14[%c1, %c0_66] : memref<56x128xf32, #tpu.memory_space<vmem>>, vector<50x128xf32>
    %c128_67 = arith.constant 128 : index
    %c0_68 = arith.constant 0 : index
    %76 = vector.load %arg6[%c128_67, %c0_68] : memref<512x128xf32, #tpu.memory_space<vmem>>, vector<128x128xf32>
    %cst_69 = arith.constant dense<0.000000e+00> : vector<50x128xf32>
    %77 = tpu.matmul %75, %76, %cst_69 {dimension_numbers = #tpu.dot_dimension_numbers<[1], [0], [0], [1], [0, 0, 1, 1], [], []>} : vector<50x128xf32>, vector<128x128xf32>, vector<50x128xf32> -> vector<50x128xf32>
    %78 = arith.addf %74, %77 : vector<50x128xf32>
    %c5_70 = arith.constant 5 : index
    %c0_71 = arith.constant 0 : index
    %79 = vector.load %arg14[%c5_70, %c0_71] : memref<56x128xf32, #tpu.memory_space<vmem>>, vector<50x128xf32>
    %c256_72 = arith.constant 256 : index
    %c0_73 = arith.constant 0 : index
    %80 = vector.load %arg6[%c256_72, %c0_73] : memref<512x128xf32, #tpu.memory_space<vmem>>, vector<128x128xf32>
    %cst_74 = arith.constant dense<0.000000e+00> : vector<50x128xf32>
    %81 = tpu.matmul %79, %80, %cst_74 {dimension_numbers = #tpu.dot_dimension_numbers<[1], [0], [0], [1], [0, 0, 1, 1], [], []>} : vector<50x128xf32>, vector<128x128xf32>, vector<50x128xf32> -> vector<50x128xf32>
    %82 = arith.addf %78, %81 : vector<50x128xf32>
    %c6 = arith.constant 6 : index
    %c0_75 = arith.constant 0 : index
    %83 = vector.load %arg14[%c6, %c0_75] : memref<56x128xf32, #tpu.memory_space<vmem>>, vector<50x128xf32>
    %c384_76 = arith.constant 384 : index
    %c0_77 = arith.constant 0 : index
    %84 = vector.load %arg6[%c384_76, %c0_77] : memref<512x128xf32, #tpu.memory_space<vmem>>, vector<128x128xf32>
    %cst_78 = arith.constant dense<0.000000e+00> : vector<50x128xf32>
    %85 = tpu.matmul %83, %84, %cst_78 {dimension_numbers = #tpu.dot_dimension_numbers<[1], [0], [0], [1], [0, 0, 1, 1], [], []>} : vector<50x128xf32>, vector<128x128xf32>, vector<50x128xf32> -> vector<50x128xf32>
    %86 = arith.addf %82, %85 : vector<50x128xf32>
    %c0_79 = arith.constant 0 : index
    %c0_80 = arith.constant 0 : index
    %87 = vector.load %arg7[%c0_79, %c0_80] : memref<1x128xf32, #tpu.memory_space<vmem>>, vector<1x128xf32>
    %88 = vector.broadcast %87 : vector<1x128xf32> to vector<50x128xf32>
    %89 = arith.addf %86, %88 : vector<50x128xf32>
    %cst_81 = arith.constant 0.000000e+00 : f32
    %90 = vector.broadcast %cst_81 : f32 to vector<50x128xf32>
    %91 = arith.maximumf %89, %90 : vector<50x128xf32>
    %92 = vector.extract_strided_slice %91 {offsets = [0, 0], sizes = [4, 128], strides = [1, 1]} : vector<50x128xf32> to vector<4x128xf32>
    %c7 = arith.constant 7 : index
    %c0_82 = arith.constant 0 : index
    %93 = vector.load %arg15[%c7, %c0_82] : memref<86x128xf32, #tpu.memory_space<vmem>>, vector<4x128xf32>
    tpu.vector_store %arg15[%c7, %c0_82], %92 {strides = array<i32>} : memref<86x128xf32, #tpu.memory_space<vmem>>, vector<4x128xf32>,
    %94 = vector.extract_strided_slice %91 {offsets = [5, 0], sizes = [4, 128], strides = [1, 1]} : vector<50x128xf32> to vector<4x128xf32>
    %c13 = arith.constant 13 : index
    %c0_83 = arith.constant 0 : index
    %95 = vector.load %arg15[%c13, %c0_83] : memref<86x128xf32, #tpu.memory_space<vmem>>, vector<4x128xf32>
    tpu.vector_store %arg15[%c13, %c0_83], %94 {strides = array<i32>} : memref<86x128xf32, #tpu.memory_space<vmem>>, vector<4x128xf32>,
    %96 = vector.extract_strided_slice %91 {offsets = [10, 0], sizes = [4, 128], strides = [1, 1]} : vector<50x128xf32> to vector<4x128xf32>
    %c19 = arith.constant 19 : index
    %c0_84 = arith.constant 0 : index
    %97 = vector.load %arg15[%c19, %c0_84] : memref<86x128xf32, #tpu.memory_space<vmem>>, vector<4x128xf32>
    tpu.vector_store %arg15[%c19, %c0_84], %96 {strides = array<i32>} : memref<86x128xf32, #tpu.memory_space<vmem>>, vector<4x128xf32>,
    %98 = vector.extract_strided_slice %91 {offsets = [15, 0], sizes = [4, 128], strides = [1, 1]} : vector<50x128xf32> to vector<4x128xf32>
    %c25_85 = arith.constant 25 : index
    %c0_86 = arith.constant 0 : index
    %99 = vector.load %arg15[%c25_85, %c0_86] : memref<86x128xf32, #tpu.memory_space<vmem>>, vector<4x128xf32>
    tpu.vector_store %arg15[%c25_85, %c0_86], %98 {strides = array<i32>} : memref<86x128xf32, #tpu.memory_space<vmem>>, vector<4x128xf32>,
    %100 = vector.extract_strided_slice %91 {offsets = [25, 0], sizes = [4, 128], strides = [1, 1]} : vector<50x128xf32> to vector<4x128xf32>
    %c43 = arith.constant 43 : index
    %c0_87 = arith.constant 0 : index
    %101 = vector.load %arg15[%c43, %c0_87] : memref<86x128xf32, #tpu.memory_space<vmem>>, vector<4x128xf32>
    tpu.vector_store %arg15[%c43, %c0_87], %100 {strides = array<i32>} : memref<86x128xf32, #tpu.memory_space<vmem>>, vector<4x128xf32>,
    %102 = vector.extract_strided_slice %91 {offsets = [30, 0], sizes = [4, 128], strides = [1, 1]} : vector<50x128xf32> to vector<4x128xf32>
    %c49 = arith.constant 49 : index
    %c0_88 = arith.constant 0 : index
    %103 = vector.load %arg15[%c49, %c0_88] : memref<86x128xf32, #tpu.memory_space<vmem>>, vector<4x128xf32>
    tpu.vector_store %arg15[%c49, %c0_88], %102 {strides = array<i32>} : memref<86x128xf32, #tpu.memory_space<vmem>>, vector<4x128xf32>,
    %104 = vector.extract_strided_slice %91 {offsets = [35, 0], sizes = [4, 128], strides = [1, 1]} : vector<50x128xf32> to vector<4x128xf32>
    %c55_89 = arith.constant 55 : index
    %c0_90 = arith.constant 0 : index
    %105 = vector.load %arg15[%c55_89, %c0_90] : memref<86x128xf32, #tpu.memory_space<vmem>>, vector<4x128xf32>
    tpu.vector_store %arg15[%c55_89, %c0_90], %104 {strides = array<i32>} : memref<86x128xf32, #tpu.memory_space<vmem>>, vector<4x128xf32>,
    %106 = vector.extract_strided_slice %91 {offsets = [40, 0], sizes = [4, 128], strides = [1, 1]} : vector<50x128xf32> to vector<4x128xf32>
    %c61 = arith.constant 61 : index
    %c0_91 = arith.constant 0 : index
    %107 = vector.load %arg15[%c61, %c0_91] : memref<86x128xf32, #tpu.memory_space<vmem>>, vector<4x128xf32>
    tpu.vector_store %arg15[%c61, %c0_91], %106 {strides = array<i32>} : memref<86x128xf32, #tpu.memory_space<vmem>>, vector<4x128xf32>,
    %c0_92 = arith.constant 0 : index
    %c0_93 = arith.constant 0 : index
    %108 = vector.load %arg15[%c0_92, %c0_93] : memref<86x128xf32, #tpu.memory_space<vmem>>, vector<72x128xf32>
    %c0_94 = arith.constant 0 : index
    %c0_95 = arith.constant 0 : index
    %109 = vector.load %arg8[%c0_94, %c0_95] : memref<1152x128xf32, #tpu.memory_space<vmem>>, vector<128x128xf32>
    %cst_96 = arith.constant dense<0.000000e+00> : vector<72x128xf32>
    %110 = tpu.matmul %108, %109, %cst_96 {dimension_numbers = #tpu.dot_dimension_numbers<[1], [0], [0], [1], [0, 0, 1, 1], [], []>} : vector<72x128xf32>, vector<128x128xf32>, vector<72x128xf32> -> vector<72x128xf32>
    %c1_97 = arith.constant 1 : index
    %c0_98 = arith.constant 0 : index
    %111 = vector.load %arg15[%c1_97, %c0_98] : memref<86x128xf32, #tpu.memory_space<vmem>>, vector<72x128xf32>
    %c128_99 = arith.constant 128 : index
    %c0_100 = arith.constant 0 : index
    %112 = vector.load %arg8[%c128_99, %c0_100] : memref<1152x128xf32, #tpu.memory_space<vmem>>, vector<128x128xf32>
    %cst_101 = arith.constant dense<0.000000e+00> : vector<72x128xf32>
    %113 = tpu.matmul %111, %112, %cst_101 {dimension_numbers = #tpu.dot_dimension_numbers<[1], [0], [0], [1], [0, 0, 1, 1], [], []>} : vector<72x128xf32>, vector<128x128xf32>, vector<72x128xf32> -> vector<72x128xf32>
    %114 = arith.addf %110, %113 : vector<72x128xf32>
    %c2 = arith.constant 2 : index
    %c0_102 = arith.constant 0 : index
    %115 = vector.load %arg15[%c2, %c0_102] : memref<86x128xf32, #tpu.memory_space<vmem>>, vector<72x128xf32>
    %c256_103 = arith.constant 256 : index
    %c0_104 = arith.constant 0 : index
    %116 = vector.load %arg8[%c256_103, %c0_104] : memref<1152x128xf32, #tpu.memory_space<vmem>>, vector<128x128xf32>
    %cst_105 = arith.constant dense<0.000000e+00> : vector<72x128xf32>
    %117 = tpu.matmul %115, %116, %cst_105 {dimension_numbers = #tpu.dot_dimension_numbers<[1], [0], [0], [1], [0, 0, 1, 1], [], []>} : vector<72x128xf32>, vector<128x128xf32>, vector<72x128xf32> -> vector<72x128xf32>
    %118 = arith.addf %114, %117 : vector<72x128xf32>
    %c6_106 = arith.constant 6 : index
    %c0_107 = arith.constant 0 : index
    %119 = vector.load %arg15[%c6_106, %c0_107] : memref<86x128xf32, #tpu.memory_space<vmem>>, vector<72x128xf32>
    %c384_108 = arith.constant 384 : index
    %c0_109 = arith.constant 0 : index
    %120 = vector.load %arg8[%c384_108, %c0_109] : memref<1152x128xf32, #tpu.memory_space<vmem>>, vector<128x128xf32>
    %cst_110 = arith.constant dense<0.000000e+00> : vector<72x128xf32>
    %121 = tpu.matmul %119, %120, %cst_110 {dimension_numbers = #tpu.dot_dimension_numbers<[1], [0], [0], [1], [0, 0, 1, 1], [], []>} : vector<72x128xf32>, vector<128x128xf32>, vector<72x128xf32> -> vector<72x128xf32>
    %122 = arith.addf %118, %121 : vector<72x128xf32>
    %c7_111 = arith.constant 7 : index
    %c0_112 = arith.constant 0 : index
    %123 = vector.load %arg15[%c7_111, %c0_112] : memref<86x128xf32, #tpu.memory_space<vmem>>, vector<72x128xf32>
    %c512 = arith.constant 512 : index
    %c0_113 = arith.constant 0 : index
    %124 = vector.load %arg8[%c512, %c0_113] : memref<1152x128xf32, #tpu.memory_space<vmem>>, vector<128x128xf32>
    %cst_114 = arith.constant dense<0.000000e+00> : vector<72x128xf32>
    %125 = tpu.matmul %123, %124, %cst_114 {dimension_numbers = #tpu.dot_dimension_numbers<[1], [0], [0], [1], [0, 0, 1, 1], [], []>} : vector<72x128xf32>, vector<128x128xf32>, vector<72x128xf32> -> vector<72x128xf32>
    %126 = arith.addf %122, %125 : vector<72x128xf32>
    %c8 = arith.constant 8 : index
    %c0_115 = arith.constant 0 : index
    %127 = vector.load %arg15[%c8, %c0_115] : memref<86x128xf32, #tpu.memory_space<vmem>>, vector<72x128xf32>
    %c640 = arith.constant 640 : index
    %c0_116 = arith.constant 0 : index
    %128 = vector.load %arg8[%c640, %c0_116] : memref<1152x128xf32, #tpu.memory_space<vmem>>, vector<128x128xf32>
    %cst_117 = arith.constant dense<0.000000e+00> : vector<72x128xf32>
    %129 = tpu.matmul %127, %128, %cst_117 {dimension_numbers = #tpu.dot_dimension_numbers<[1], [0], [0], [1], [0, 0, 1, 1], [], []>} : vector<72x128xf32>, vector<128x128xf32>, vector<72x128xf32> -> vector<72x128xf32>
    %130 = arith.addf %126, %129 : vector<72x128xf32>
    %c12 = arith.constant 12 : index
    %c0_118 = arith.constant 0 : index
    %131 = vector.load %arg15[%c12, %c0_118] : memref<86x128xf32, #tpu.memory_space<vmem>>, vector<72x128xf32>
    %c768 = arith.constant 768 : index
    %c0_119 = arith.constant 0 : index
    %132 = vector.load %arg8[%c768, %c0_119] : memref<1152x128xf32, #tpu.memory_space<vmem>>, vector<128x128xf32>
    %cst_120 = arith.constant dense<0.000000e+00> : vector<72x128xf32>
    %133 = tpu.matmul %131, %132, %cst_120 {dimension_numbers = #tpu.dot_dimension_numbers<[1], [0], [0], [1], [0, 0, 1, 1], [], []>} : vector<72x128xf32>, vector<128x128xf32>, vector<72x128xf32> -> vector<72x128xf32>
    %134 = arith.addf %130, %133 : vector<72x128xf32>
    %c13_121 = arith.constant 13 : index
    %c0_122 = arith.constant 0 : index
    %135 = vector.load %arg15[%c13_121, %c0_122] : memref<86x128xf32, #tpu.memory_space<vmem>>, vector<72x128xf32>
    %c896 = arith.constant 896 : index
    %c0_123 = arith.constant 0 : index
    %136 = vector.load %arg8[%c896, %c0_123] : memref<1152x128xf32, #tpu.memory_space<vmem>>, vector<128x128xf32>
    %cst_124 = arith.constant dense<0.000000e+00> : vector<72x128xf32>
    %137 = tpu.matmul %135, %136, %cst_124 {dimension_numbers = #tpu.dot_dimension_numbers<[1], [0], [0], [1], [0, 0, 1, 1], [], []>} : vector<72x128xf32>, vector<128x128xf32>, vector<72x128xf32> -> vector<72x128xf32>
    %138 = arith.addf %134, %137 : vector<72x128xf32>
    %c14 = arith.constant 14 : index
    %c0_125 = arith.constant 0 : index
    %139 = vector.load %arg15[%c14, %c0_125] : memref<86x128xf32, #tpu.memory_space<vmem>>, vector<72x128xf32>
    %c1024 = arith.constant 1024 : index
    %c0_126 = arith.constant 0 : index
    %140 = vector.load %arg8[%c1024, %c0_126] : memref<1152x128xf32, #tpu.memory_space<vmem>>, vector<128x128xf32>
    %cst_127 = arith.constant dense<0.000000e+00> : vector<72x128xf32>
    %141 = tpu.matmul %139, %140, %cst_127 {dimension_numbers = #tpu.dot_dimension_numbers<[1], [0], [0], [1], [0, 0, 1, 1], [], []>} : vector<72x128xf32>, vector<128x128xf32>, vector<72x128xf32> -> vector<72x128xf32>
    %142 = arith.addf %138, %141 : vector<72x128xf32>
    %c0_128 = arith.constant 0 : index
    %c0_129 = arith.constant 0 : index
    %143 = vector.load %arg9[%c0_128, %c0_129] : memref<1x128xf32, #tpu.memory_space<vmem>>, vector<1x128xf32>
    %144 = vector.broadcast %143 : vector<1x128xf32> to vector<72x128xf32>
    %145 = arith.addf %142, %144 : vector<72x128xf32>
    %cst_130 = arith.constant 0.000000e+00 : f32
    %146 = vector.broadcast %cst_130 : f32 to vector<72x128xf32>
    %147 = arith.maximumf %145, %146 : vector<72x128xf32>
    %148 = vector.extract_strided_slice %147 {offsets = [0, 0], sizes = [4, 128], strides = [1, 1]} : vector<72x128xf32> to vector<4x128xf32>
    %c18 = arith.constant 18 : index
    %c0_131 = arith.constant 0 : index
    %149 = vector.load %arg16[%c18, %c0_131] : memref<155x128xf32, #tpu.memory_space<vmem>>, vector<4x128xf32>
    tpu.vector_store %arg16[%c18, %c0_131], %148 {strides = array<i32>} : memref<155x128xf32, #tpu.memory_space<vmem>>, vector<4x128xf32>,
    %150 = vector.extract_strided_slice %147 {offsets = [6, 0], sizes = [4, 128], strides = [1, 1]} : vector<72x128xf32> to vector<4x128xf32>
    %c26 = arith.constant 26 : index
    %c0_132 = arith.constant 0 : index
    %151 = vector.load %arg16[%c26, %c0_132] : memref<155x128xf32, #tpu.memory_space<vmem>>, vector<4x128xf32>
    tpu.vector_store %arg16[%c26, %c0_132], %150 {strides = array<i32>} : memref<155x128xf32, #tpu.memory_space<vmem>>, vector<4x128xf32>,
    %152 = vector.extract_strided_slice %147 {offsets = [12, 0], sizes = [4, 128], strides = [1, 1]} : vector<72x128xf32> to vector<4x128xf32>
    %c34 = arith.constant 34 : index
    %c0_133 = arith.constant 0 : index
    %153 = vector.load %arg16[%c34, %c0_133] : memref<155x128xf32, #tpu.memory_space<vmem>>, vector<4x128xf32>
    tpu.vector_store %arg16[%c34, %c0_133], %152 {strides = array<i32>} : memref<155x128xf32, #tpu.memory_space<vmem>>, vector<4x128xf32>,
    %154 = vector.extract_strided_slice %147 {offsets = [18, 0], sizes = [4, 128], strides = [1, 1]} : vector<72x128xf32> to vector<4x128xf32>
    %c42 = arith.constant 42 : index
    %c0_134 = arith.constant 0 : index
    %155 = vector.load %arg16[%c42, %c0_134] : memref<155x128xf32, #tpu.memory_space<vmem>>, vector<4x128xf32>
    tpu.vector_store %arg16[%c42, %c0_134], %154 {strides = array<i32>} : memref<155x128xf32, #tpu.memory_space<vmem>>, vector<4x128xf32>,
    %156 = vector.extract_strided_slice %147 {offsets = [36, 0], sizes = [4, 128], strides = [1, 1]} : vector<72x128xf32> to vector<4x128xf32>
    %c82 = arith.constant 82 : index
    %c0_135 = arith.constant 0 : index
    %157 = vector.load %arg16[%c82, %c0_135] : memref<155x128xf32, #tpu.memory_space<vmem>>, vector<4x128xf32>
    tpu.vector_store %arg16[%c82, %c0_135], %156 {strides = array<i32>} : memref<155x128xf32, #tpu.memory_space<vmem>>, vector<4x128xf32>,
    %158 = vector.extract_strided_slice %147 {offsets = [42, 0], sizes = [4, 128], strides = [1, 1]} : vector<72x128xf32> to vector<4x128xf32>
    %c90 = arith.constant 90 : index
    %c0_136 = arith.constant 0 : index
    %159 = vector.load %arg16[%c90, %c0_136] : memref<155x128xf32, #tpu.memory_space<vmem>>, vector<4x128xf32>
    tpu.vector_store %arg16[%c90, %c0_136], %158 {strides = array<i32>} : memref<155x128xf32, #tpu.memory_space<vmem>>, vector<4x128xf32>,
    %160 = vector.extract_strided_slice %147 {offsets = [48, 0], sizes = [4, 128], strides = [1, 1]} : vector<72x128xf32> to vector<4x128xf32>
    %c98 = arith.constant 98 : index
    %c0_137 = arith.constant 0 : index
    %161 = vector.load %arg16[%c98, %c0_137] : memref<155x128xf32, #tpu.memory_space<vmem>>, vector<4x128xf32>
    tpu.vector_store %arg16[%c98, %c0_137], %160 {strides = array<i32>} : memref<155x128xf32, #tpu.memory_space<vmem>>, vector<4x128xf32>,
    %162 = vector.extract_strided_slice %147 {offsets = [54, 0], sizes = [4, 128], strides = [1, 1]} : vector<72x128xf32> to vector<4x128xf32>
    %c106 = arith.constant 106 : index
    %c0_138 = arith.constant 0 : index
    %163 = vector.load %arg16[%c106, %c0_138] : memref<155x128xf32, #tpu.memory_space<vmem>>, vector<4x128xf32>
    tpu.vector_store %arg16[%c106, %c0_138], %162 {strides = array<i32>} : memref<155x128xf32, #tpu.memory_space<vmem>>, vector<4x128xf32>,
    %c0_139 = arith.constant 0 : index
    %c0_140 = arith.constant 0 : index
    %164 = vector.load %arg16[%c0_139, %c0_140] : memref<155x128xf32, #tpu.memory_space<vmem>>, vector<128x128xf32>
    %c0_141 = arith.constant 0 : index
    %c0_142 = arith.constant 0 : index
    %165 = vector.load %arg10[%c0_141, %c0_142] : memref<2048x128xf32, #tpu.memory_space<vmem>>, vector<128x128xf32>
    %cst_143 = arith.constant dense<0.000000e+00> : vector<128x128xf32>
    %166 = tpu.matmul %164, %165, %cst_143 {dimension_numbers = #tpu.dot_dimension_numbers<[1], [0], [0], [1], [0, 0, 1, 1], [], []>} : vector<128x128xf32>, vector<128x128xf32>, vector<128x128xf32> -> vector<128x128xf32>
    %c1_144 = arith.constant 1 : index
    %c0_145 = arith.constant 0 : index
    %167 = vector.load %arg16[%c1_144, %c0_145] : memref<155x128xf32, #tpu.memory_space<vmem>>, vector<128x128xf32>
    %c128_146 = arith.constant 128 : index
    %c0_147 = arith.constant 0 : index
    %168 = vector.load %arg10[%c128_146, %c0_147] : memref<2048x128xf32, #tpu.memory_space<vmem>>, vector<128x128xf32>
    %cst_148 = arith.constant dense<0.000000e+00> : vector<128x128xf32>
    %169 = tpu.matmul %167, %168, %cst_148 {dimension_numbers = #tpu.dot_dimension_numbers<[1], [0], [0], [1], [0, 0, 1, 1], [], []>} : vector<128x128xf32>, vector<128x128xf32>, vector<128x128xf32> -> vector<128x128xf32>
    %170 = arith.addf %166, %169 : vector<128x128xf32>
    %c2_149 = arith.constant 2 : index
    %c0_150 = arith.constant 0 : index
    %171 = vector.load %arg16[%c2_149, %c0_150] : memref<155x128xf32, #tpu.memory_space<vmem>>, vector<128x128xf32>
    %c256_151 = arith.constant 256 : index
    %c0_152 = arith.constant 0 : index
    %172 = vector.load %arg10[%c256_151, %c0_152] : memref<2048x128xf32, #tpu.memory_space<vmem>>, vector<128x128xf32>
    %cst_153 = arith.constant dense<0.000000e+00> : vector<128x128xf32>
    %173 = tpu.matmul %171, %172, %cst_153 {dimension_numbers = #tpu.dot_dimension_numbers<[1], [0], [0], [1], [0, 0, 1, 1], [], []>} : vector<128x128xf32>, vector<128x128xf32>, vector<128x128xf32> -> vector<128x128xf32>
    %174 = arith.addf %170, %173 : vector<128x128xf32>
    %c3 = arith.constant 3 : index
    %c0_154 = arith.constant 0 : index
    %175 = vector.load %arg16[%c3, %c0_154] : memref<155x128xf32, #tpu.memory_space<vmem>>, vector<128x128xf32>
    %c384_155 = arith.constant 384 : index
    %c0_156 = arith.constant 0 : index
    %176 = vector.load %arg10[%c384_155, %c0_156] : memref<2048x128xf32, #tpu.memory_space<vmem>>, vector<128x128xf32>
    %cst_157 = arith.constant dense<0.000000e+00> : vector<128x128xf32>
    %177 = tpu.matmul %175, %176, %cst_157 {dimension_numbers = #tpu.dot_dimension_numbers<[1], [0], [0], [1], [0, 0, 1, 1], [], []>} : vector<128x128xf32>, vector<128x128xf32>, vector<128x128xf32> -> vector<128x128xf32>
    %178 = arith.addf %174, %177 : vector<128x128xf32>
    %c8_158 = arith.constant 8 : index
    %c0_159 = arith.constant 0 : index
    %179 = vector.load %arg16[%c8_158, %c0_159] : memref<155x128xf32, #tpu.memory_space<vmem>>, vector<128x128xf32>
    %c512_160 = arith.constant 512 : index
    %c0_161 = arith.constant 0 : index
    %180 = vector.load %arg10[%c512_160, %c0_161] : memref<2048x128xf32, #tpu.memory_space<vmem>>, vector<128x128xf32>
    %cst_162 = arith.constant dense<0.000000e+00> : vector<128x128xf32>
    %181 = tpu.matmul %179, %180, %cst_162 {dimension_numbers = #tpu.dot_dimension_numbers<[1], [0], [0], [1], [0, 0, 1, 1], [], []>} : vector<128x128xf32>, vector<128x128xf32>, vector<128x128xf32> -> vector<128x128xf32>
    %182 = arith.addf %178, %181 : vector<128x128xf32>
    %c9 = arith.constant 9 : index
    %c0_163 = arith.constant 0 : index
    %183 = vector.load %arg16[%c9, %c0_163] : memref<155x128xf32, #tpu.memory_space<vmem>>, vector<128x128xf32>
    %c640_164 = arith.constant 640 : index
    %c0_165 = arith.constant 0 : index
    %184 = vector.load %arg10[%c640_164, %c0_165] : memref<2048x128xf32, #tpu.memory_space<vmem>>, vector<128x128xf32>
    %cst_166 = arith.constant dense<0.000000e+00> : vector<128x128xf32>
    %185 = tpu.matmul %183, %184, %cst_166 {dimension_numbers = #tpu.dot_dimension_numbers<[1], [0], [0], [1], [0, 0, 1, 1], [], []>} : vector<128x128xf32>, vector<128x128xf32>, vector<128x128xf32> -> vector<128x128xf32>
    %186 = arith.addf %182, %185 : vector<128x128xf32>
    %c10_167 = arith.constant 10 : index
    %c0_168 = arith.constant 0 : index
    %187 = vector.load %arg16[%c10_167, %c0_168] : memref<155x128xf32, #tpu.memory_space<vmem>>, vector<128x128xf32>
    %c768_169 = arith.constant 768 : index
    %c0_170 = arith.constant 0 : index
    %188 = vector.load %arg10[%c768_169, %c0_170] : memref<2048x128xf32, #tpu.memory_space<vmem>>, vector<128x128xf32>
    %cst_171 = arith.constant dense<0.000000e+00> : vector<128x128xf32>
    %189 = tpu.matmul %187, %188, %cst_171 {dimension_numbers = #tpu.dot_dimension_numbers<[1], [0], [0], [1], [0, 0, 1, 1], [], []>} : vector<128x128xf32>, vector<128x128xf32>, vector<128x128xf32> -> vector<128x128xf32>
    %190 = arith.addf %186, %189 : vector<128x128xf32>
    %c11 = arith.constant 11 : index
    %c0_172 = arith.constant 0 : index
    %191 = vector.load %arg16[%c11, %c0_172] : memref<155x128xf32, #tpu.memory_space<vmem>>, vector<128x128xf32>
    %c896_173 = arith.constant 896 : index
    %c0_174 = arith.constant 0 : index
    %192 = vector.load %arg10[%c896_173, %c0_174] : memref<2048x128xf32, #tpu.memory_space<vmem>>, vector<128x128xf32>
    %cst_175 = arith.constant dense<0.000000e+00> : vector<128x128xf32>
    %193 = tpu.matmul %191, %192, %cst_175 {dimension_numbers = #tpu.dot_dimension_numbers<[1], [0], [0], [1], [0, 0, 1, 1], [], []>} : vector<128x128xf32>, vector<128x128xf32>, vector<128x128xf32> -> vector<128x128xf32>
    %194 = arith.addf %190, %193 : vector<128x128xf32>
    %c16 = arith.constant 16 : index
    %c0_176 = arith.constant 0 : index
    %195 = vector.load %arg16[%c16, %c0_176] : memref<155x128xf32, #tpu.memory_space<vmem>>, vector<128x128xf32>
    %c1024_177 = arith.constant 1024 : index
    %c0_178 = arith.constant 0 : index
    %196 = vector.load %arg10[%c1024_177, %c0_178] : memref<2048x128xf32, #tpu.memory_space<vmem>>, vector<128x128xf32>
    %cst_179 = arith.constant dense<0.000000e+00> : vector<128x128xf32>
    %197 = tpu.matmul %195, %196, %cst_179 {dimension_numbers = #tpu.dot_dimension_numbers<[1], [0], [0], [1], [0, 0, 1, 1], [], []>} : vector<128x128xf32>, vector<128x128xf32>, vector<128x128xf32> -> vector<128x128xf32>
    %198 = arith.addf %194, %197 : vector<128x128xf32>
    %c17 = arith.constant 17 : index
    %c0_180 = arith.constant 0 : index
    %199 = vector.load %arg16[%c17, %c0_180] : memref<155x128xf32, #tpu.memory_space<vmem>>, vector<128x128xf32>
    %c1152 = arith.constant 1152 : index
    %c0_181 = arith.constant 0 : index
    %200 = vector.load %arg10[%c1152, %c0_181] : memref<2048x128xf32, #tpu.memory_space<vmem>>, vector<128x128xf32>
    %cst_182 = arith.constant dense<0.000000e+00> : vector<128x128xf32>
    %201 = tpu.matmul %199, %200, %cst_182 {dimension_numbers = #tpu.dot_dimension_numbers<[1], [0], [0], [1], [0, 0, 1, 1], [], []>} : vector<128x128xf32>, vector<128x128xf32>, vector<128x128xf32> -> vector<128x128xf32>
    %202 = arith.addf %198, %201 : vector<128x128xf32>
    %c18_183 = arith.constant 18 : index
    %c0_184 = arith.constant 0 : index
    %203 = vector.load %arg16[%c18_183, %c0_184] : memref<155x128xf32, #tpu.memory_space<vmem>>, vector<128x128xf32>
    %c1280 = arith.constant 1280 : index
    %c0_185 = arith.constant 0 : index
    %204 = vector.load %arg10[%c1280, %c0_185] : memref<2048x128xf32, #tpu.memory_space<vmem>>, vector<128x128xf32>
    %cst_186 = arith.constant dense<0.000000e+00> : vector<128x128xf32>
    %205 = tpu.matmul %203, %204, %cst_186 {dimension_numbers = #tpu.dot_dimension_numbers<[1], [0], [0], [1], [0, 0, 1, 1], [], []>} : vector<128x128xf32>, vector<128x128xf32>, vector<128x128xf32> -> vector<128x128xf32>
    %206 = arith.addf %202, %205 : vector<128x128xf32>
    %c19_187 = arith.constant 19 : index
    %c0_188 = arith.constant 0 : index
    %207 = vector.load %arg16[%c19_187, %c0_188] : memref<155x128xf32, #tpu.memory_space<vmem>>, vector<128x128xf32>
    %c1408 = arith.constant 1408 : index
    %c0_189 = arith.constant 0 : index
    %208 = vector.load %arg10[%c1408, %c0_189] : memref<2048x128xf32, #tpu.memory_space<vmem>>, vector<128x128xf32>
    %cst_190 = arith.constant dense<0.000000e+00> : vector<128x128xf32>
    %209 = tpu.matmul %207, %208, %cst_190 {dimension_numbers = #tpu.dot_dimension_numbers<[1], [0], [0], [1], [0, 0, 1, 1], [], []>} : vector<128x128xf32>, vector<128x128xf32>, vector<128x128xf32> -> vector<128x128xf32>
    %210 = arith.addf %206, %209 : vector<128x128xf32>
    %c24 = arith.constant 24 : index
    %c0_191 = arith.constant 0 : index
    %211 = vector.load %arg16[%c24, %c0_191] : memref<155x128xf32, #tpu.memory_space<vmem>>, vector<128x128xf32>
    %c1536 = arith.constant 1536 : index
    %c0_192 = arith.constant 0 : index
    %212 = vector.load %arg10[%c1536, %c0_192] : memref<2048x128xf32, #tpu.memory_space<vmem>>, vector<128x128xf32>
    %cst_193 = arith.constant dense<0.000000e+00> : vector<128x128xf32>
    %213 = tpu.matmul %211, %212, %cst_193 {dimension_numbers = #tpu.dot_dimension_numbers<[1], [0], [0], [1], [0, 0, 1, 1], [], []>} : vector<128x128xf32>, vector<128x128xf32>, vector<128x128xf32> -> vector<128x128xf32>
    %214 = arith.addf %210, %213 : vector<128x128xf32>
    %c25_194 = arith.constant 25 : index
    %c0_195 = arith.constant 0 : index
    %215 = vector.load %arg16[%c25_194, %c0_195] : memref<155x128xf32, #tpu.memory_space<vmem>>, vector<128x128xf32>
    %c1664 = arith.constant 1664 : index
    %c0_196 = arith.constant 0 : index
    %216 = vector.load %arg10[%c1664, %c0_196] : memref<2048x128xf32, #tpu.memory_space<vmem>>, vector<128x128xf32>
    %cst_197 = arith.constant dense<0.000000e+00> : vector<128x128xf32>
    %217 = tpu.matmul %215, %216, %cst_197 {dimension_numbers = #tpu.dot_dimension_numbers<[1], [0], [0], [1], [0, 0, 1, 1], [], []>} : vector<128x128xf32>, vector<128x128xf32>, vector<128x128xf32> -> vector<128x128xf32>
    %218 = arith.addf %214, %217 : vector<128x128xf32>
    %c26_198 = arith.constant 26 : index
    %c0_199 = arith.constant 0 : index
    %219 = vector.load %arg16[%c26_198, %c0_199] : memref<155x128xf32, #tpu.memory_space<vmem>>, vector<128x128xf32>
    %c1792 = arith.constant 1792 : index
    %c0_200 = arith.constant 0 : index
    %220 = vector.load %arg10[%c1792, %c0_200] : memref<2048x128xf32, #tpu.memory_space<vmem>>, vector<128x128xf32>
    %cst_201 = arith.constant dense<0.000000e+00> : vector<128x128xf32>
    %221 = tpu.matmul %219, %220, %cst_201 {dimension_numbers = #tpu.dot_dimension_numbers<[1], [0], [0], [1], [0, 0, 1, 1], [], []>} : vector<128x128xf32>, vector<128x128xf32>, vector<128x128xf32> -> vector<128x128xf32>
    %222 = arith.addf %218, %221 : vector<128x128xf32>
    %c27 = arith.constant 27 : index
    %c0_202 = arith.constant 0 : index
    %223 = vector.load %arg16[%c27, %c0_202] : memref<155x128xf32, #tpu.memory_space<vmem>>, vector<128x128xf32>
    %c1920 = arith.constant 1920 : index
    %c0_203 = arith.constant 0 : index
    %224 = vector.load %arg10[%c1920, %c0_203] : memref<2048x128xf32, #tpu.memory_space<vmem>>, vector<128x128xf32>
    %cst_204 = arith.constant dense<0.000000e+00> : vector<128x128xf32>
    %225 = tpu.matmul %223, %224, %cst_204 {dimension_numbers = #tpu.dot_dimension_numbers<[1], [0], [0], [1], [0, 0, 1, 1], [], []>} : vector<128x128xf32>, vector<128x128xf32>, vector<128x128xf32> -> vector<128x128xf32>
    %226 = arith.addf %222, %225 : vector<128x128xf32>
    %c0_205 = arith.constant 0 : index
    %c0_206 = arith.constant 0 : index
    %227 = vector.load %arg11[%c0_205, %c0_206] : memref<1x128xf32, #tpu.memory_space<vmem>>, vector<1x128xf32>
    %228 = vector.broadcast %227 : vector<1x128xf32> to vector<128x128xf32>
    %229 = arith.addf %226, %228 : vector<128x128xf32>
    %cst_207 = arith.constant 0.000000e+00 : f32
    %230 = vector.broadcast %cst_207 : f32 to vector<128x128xf32>
    %231 = arith.maximumf %229, %230 : vector<128x128xf32>
    %232 = vector.extract_strided_slice %231 {offsets = [0, 0], sizes = [5, 128], strides = [1, 1]} : vector<128x128xf32> to vector<5x128xf32>
    %c0_208 = arith.constant 0 : index
    %c0_209 = arith.constant 0 : index
    %233 = vector.load %arg17[%c0_208, %c0_209] : memref<50x128xf32, #tpu.memory_space<vmem>>, vector<5x128xf32>
    tpu.vector_store %arg17[%c0_208, %c0_209], %232 {strides = array<i32>} : memref<50x128xf32, #tpu.memory_space<vmem>>, vector<5x128xf32>,
    %234 = vector.extract_strided_slice %231 {offsets = [8, 0], sizes = [5, 128], strides = [1, 1]} : vector<128x128xf32> to vector<5x128xf32>
    %c5_210 = arith.constant 5 : index
    %c0_211 = arith.constant 0 : index
    %235 = vector.load %arg17[%c5_210, %c0_211] : memref<50x128xf32, #tpu.memory_space<vmem>>, vector<5x128xf32>
    tpu.vector_store %arg17[%c5_210, %c0_211], %234 {strides = array<i32>} : memref<50x128xf32, #tpu.memory_space<vmem>>, vector<5x128xf32>,
    %236 = vector.extract_strided_slice %231 {offsets = [16, 0], sizes = [5, 128], strides = [1, 1]} : vector<128x128xf32> to vector<5x128xf32>
    %c10_212 = arith.constant 10 : index
    %c0_213 = arith.constant 0 : index
    %237 = vector.load %arg17[%c10_212, %c0_213] : memref<50x128xf32, #tpu.memory_space<vmem>>, vector<5x128xf32>
    tpu.vector_store %arg17[%c10_212, %c0_213], %236 {strides = array<i32>} : memref<50x128xf32, #tpu.memory_space<vmem>>, vector<5x128xf32>,
    %238 = vector.extract_strided_slice %231 {offsets = [24, 0], sizes = [5, 128], strides = [1, 1]} : vector<128x128xf32> to vector<5x128xf32>
    %c15_214 = arith.constant 15 : index
    %c0_215 = arith.constant 0 : index
    %239 = vector.load %arg17[%c15_214, %c0_215] : memref<50x128xf32, #tpu.memory_space<vmem>>, vector<5x128xf32>
    tpu.vector_store %arg17[%c15_214, %c0_215], %238 {strides = array<i32>} : memref<50x128xf32, #tpu.memory_space<vmem>>, vector<5x128xf32>,
    %240 = vector.extract_strided_slice %231 {offsets = [32, 0], sizes = [5, 128], strides = [1, 1]} : vector<128x128xf32> to vector<5x128xf32>
    %c20_216 = arith.constant 20 : index
    %c0_217 = arith.constant 0 : index
    %241 = vector.load %arg17[%c20_216, %c0_217] : memref<50x128xf32, #tpu.memory_space<vmem>>, vector<5x128xf32>
    tpu.vector_store %arg17[%c20_216, %c0_217], %240 {strides = array<i32>} : memref<50x128xf32, #tpu.memory_space<vmem>>, vector<5x128xf32>,
    %242 = vector.extract_strided_slice %231 {offsets = [64, 0], sizes = [5, 128], strides = [1, 1]} : vector<128x128xf32> to vector<5x128xf32>
    %c25_218 = arith.constant 25 : index
    %c0_219 = arith.constant 0 : index
    %243 = vector.load %arg17[%c25_218, %c0_219] : memref<50x128xf32, #tpu.memory_space<vmem>>, vector<5x128xf32>
    tpu.vector_store %arg17[%c25_218, %c0_219], %242 {strides = array<i32>} : memref<50x128xf32, #tpu.memory_space<vmem>>, vector<5x128xf32>,
    %244 = vector.extract_strided_slice %231 {offsets = [72, 0], sizes = [5, 128], strides = [1, 1]} : vector<128x128xf32> to vector<5x128xf32>
    %c30_220 = arith.constant 30 : index
    %c0_221 = arith.constant 0 : index
    %245 = vector.load %arg17[%c30_220, %c0_221] : memref<50x128xf32, #tpu.memory_space<vmem>>, vector<5x128xf32>
    tpu.vector_store %arg17[%c30_220, %c0_221], %244 {strides = array<i32>} : memref<50x128xf32, #tpu.memory_space<vmem>>, vector<5x128xf32>,
    %246 = vector.extract_strided_slice %231 {offsets = [80, 0], sizes = [5, 128], strides = [1, 1]} : vector<128x128xf32> to vector<5x128xf32>
    %c35_222 = arith.constant 35 : index
    %c0_223 = arith.constant 0 : index
    %247 = vector.load %arg17[%c35_222, %c0_223] : memref<50x128xf32, #tpu.memory_space<vmem>>, vector<5x128xf32>
    tpu.vector_store %arg17[%c35_222, %c0_223], %246 {strides = array<i32>} : memref<50x128xf32, #tpu.memory_space<vmem>>, vector<5x128xf32>,
    %248 = vector.extract_strided_slice %231 {offsets = [88, 0], sizes = [5, 128], strides = [1, 1]} : vector<128x128xf32> to vector<5x128xf32>
    %c40_224 = arith.constant 40 : index
    %c0_225 = arith.constant 0 : index
    %249 = vector.load %arg17[%c40_224, %c0_225] : memref<50x128xf32, #tpu.memory_space<vmem>>, vector<5x128xf32>
    tpu.vector_store %arg17[%c40_224, %c0_225], %248 {strides = array<i32>} : memref<50x128xf32, #tpu.memory_space<vmem>>, vector<5x128xf32>,
    %250 = vector.extract_strided_slice %231 {offsets = [96, 0], sizes = [5, 128], strides = [1, 1]} : vector<128x128xf32> to vector<5x128xf32>
    %c45_226 = arith.constant 45 : index
    %c0_227 = arith.constant 0 : index
    %251 = vector.load %arg17[%c45_226, %c0_227] : memref<50x128xf32, #tpu.memory_space<vmem>>, vector<5x128xf32>
    tpu.vector_store %arg17[%c45_226, %c0_227], %250 {strides = array<i32>} : memref<50x128xf32, #tpu.memory_space<vmem>>, vector<5x128xf32>,
    %c0_228 = arith.constant 0 : index
    %c0_229 = arith.constant 0 : index
    %252 = vector.load %arg17[%c0_228, %c0_229] : memref<50x128xf32, #tpu.memory_space<vmem>>, vector<50x128xf32>
    %253 = arith.truncf %252 : vector<50x128xf32> to vector<50x128xbf16>
    %c0_230 = arith.constant 0 : index
    %c0_231 = arith.constant 0 : index
    %254 = vector.load %arg12[%c0_230, %c0_231] : memref<50x128xbf16, #tpu.memory_space<vmem>>, vector<50x128xbf16>
    tpu.vector_store %arg12[%c0_230, %c0_231], %253 {strides = array<i32>} : memref<50x128xbf16, #tpu.memory_space<vmem>>, vector<50x128xbf16>,
    return
  }
  func.func @transform_0(%arg0: i32) -> (i32, i32) {
    %c0_i32 = arith.constant 0 : i32
    %c0_i32_0 = arith.constant 0 : i32
    %c0_i32_1 = arith.constant 0 : i32
    return %c0_i32, %c0_i32_0 : i32, i32
  }
  func.func @transform_1(%arg0: i32) -> (i32, i32) {
    %c0_i32 = arith.constant 0 : i32
    %c0_i32_0 = arith.constant 0 : i32
    %c0_i32_1 = arith.constant 0 : i32
    return %c0_i32, %c0_i32_0 : i32, i32
  }
  func.func @transform_2(%arg0: i32) -> (i32, i32) {
    %c0_i32 = arith.constant 0 : i32
    %c0_i32_0 = arith.constant 0 : i32
    %c0_i32_1 = arith.constant 0 : i32
    return %c0_i32, %c0_i32_0 : i32, i32
  }
  func.func @transform_3(%arg0: i32) -> (i32, i32) {
    %c0_i32 = arith.constant 0 : i32
    %c0_i32_0 = arith.constant 0 : i32
    %c0_i32_1 = arith.constant 0 : i32
    return %c0_i32, %c0_i32_0 : i32, i32
  }
  func.func @transform_4(%arg0: i32) -> (i32, i32) {
    %c0_i32 = arith.constant 0 : i32
    %c0_i32_0 = arith.constant 0 : i32
    %c0_i32_1 = arith.constant 0 : i32
    return %c0_i32, %c0_i32_0 : i32, i32
  }
  func.func @transform_5(%arg0: i32) -> (i32, i32) {
    %c0_i32 = arith.constant 0 : i32
    %c0_i32_0 = arith.constant 0 : i32
    %c0_i32_1 = arith.constant 0 : i32
    return %c0_i32, %c0_i32_0 : i32, i32
  }
  func.func @transform_6(%arg0: i32) -> (i32, i32) {
    %c0_i32 = arith.constant 0 : i32
    %c0_i32_0 = arith.constant 0 : i32
    %c0_i32_1 = arith.constant 0 : i32
    return %c0_i32, %c0_i32_0 : i32, i32
  }
  func.func @transform_7(%arg0: i32) -> (i32, i32) {
    %c0_i32 = arith.constant 0 : i32
    %c0_i32_0 = arith.constant 0 : i32
    %c0_i32_1 = arith.constant 0 : i32
    return %c0_i32, %c0_i32_0 : i32, i32
  }
  func.func @transform_8(%arg0: i32) -> (i32, i32) {
    %c0_i32 = arith.constant 0 : i32
    %c0_i32_0 = arith.constant 0 : i32
    %c0_i32_1 = arith.constant 0 : i32
    return %c0_i32, %c0_i32_0 : i32, i32
  }
  func.func @transform_9(%arg0: i32) -> (i32, i32) {
    %c0_i32 = arith.constant 0 : i32
    %c0_i32_0 = arith.constant 0 : i32
    %c0_i32_1 = arith.constant 0 : i32
    return %c0_i32, %c0_i32_0 : i32, i32
  }
  func.func @transform_10(%arg0: i32) -> (i32, i32) {
    %c0_i32 = arith.constant 0 : i32
    %c0_i32_0 = arith.constant 0 : i32
    %c0_i32_1 = arith.constant 0 : i32
    return %c0_i32, %c0_i32_0 : i32, i32
  }
  func.func @transform_11(%arg0: i32) -> (i32, i32) {
    %c0_i32 = arith.constant 0 : i32
    %c0_i32_0 = arith.constant 0 : i32
    %c0_i32_1 = arith.constant 0 : i32
    return %c0_i32, %c0_i32_0 : i32, i32
  }
}

module attributes {stable_mosaic.version = 11 : i64} {
  func.func @fc_fused_kernel(%arg0: i32, %arg1: memref<2x3200xbf16, #tpu.memory_space<vmem>>, %arg2: memref<3200x512xbf16, #tpu.memory_space<vmem>>, %arg3: memref<1x512xf32, #tpu.memory_space<vmem>>, %arg4: memref<512x256xbf16, #tpu.memory_space<vmem>>, %arg5: memref<1x256xf32, #tpu.memory_space<vmem>>, %arg6: memref<256x4xbf16, #tpu.memory_space<vmem>>, %arg7: memref<1x4xf32, #tpu.memory_space<vmem>>, %arg8: memref<2x4xf32, #tpu.memory_space<vmem>>, %arg9: memref<2x256xf32, #tpu.memory_space<vmem>>) attributes {dimension_semantics = [#tpu.dimension_semantics<arbitrary>], iteration_bounds = array<i64: 4>, scalar_prefetch = 0 : i64, scratch_operands = 1 : i64, tpu.core_type = #tpu.core_type<tc>, window_params = [{pipeline_mode = #tpu.pipeline_mode<synchronous>, transform_indices = @transform_0, window_bounds = array<i64: 2, 3200>}, {transform_indices = @transform_1, window_bounds = array<i64: 3200, 512>}, {transform_indices = @transform_2, window_bounds = array<i64: 1, 512>}, {transform_indices = @transform_3, window_bounds = array<i64: 512, 256>}, {pipeline_mode = #tpu.pipeline_mode<synchronous>, transform_indices = @transform_4, window_bounds = array<i64: 1, 256>}, {pipeline_mode = #tpu.pipeline_mode<synchronous>, transform_indices = @transform_5, window_bounds = array<i64: 256, 4>}, {pipeline_mode = #tpu.pipeline_mode<synchronous>, transform_indices = @transform_6, window_bounds = array<i64: 1, 4>}, {pipeline_mode = #tpu.pipeline_mode<synchronous>, transform_indices = @transform_7, window_bounds = array<i64: 2, 4>}]} {
    %c0_i32 = arith.constant 0 : i32
    %0 = arith.cmpi eq, %arg0, %c0_i32 : i32
    %1 = arith.extui %0 : i1 to i32
    %c0_i32_0 = arith.constant 0 : i32
    %2 = arith.cmpi ne, %1, %c0_i32_0 : i32
    scf.if %2 {
      %cst_15 = arith.constant 0.000000e+00 : f32
      %20 = vector.broadcast %cst_15 : f32 to vector<2x256xf32>
      %c0_16 = arith.constant 0 : index
      %c0_17 = arith.constant 0 : index
      %21 = vector.load %arg9[%c0_16, %c0_17] : memref<2x256xf32, #tpu.memory_space<vmem>>, vector<2x256xf32>
      tpu.vector_store %arg9[%c0_16, %c0_17], %20 {strides = array<i32>} : memref<2x256xf32, #tpu.memory_space<vmem>>, vector<2x256xf32>,
    } else {
    }
    %c0 = arith.constant 0 : index
    %c0_1 = arith.constant 0 : index
    %3 = vector.load %arg1[%c0, %c0_1] : memref<2x3200xbf16, #tpu.memory_space<vmem>>, vector<2x3200xbf16>
    %c0_2 = arith.constant 0 : index
    %c0_3 = arith.constant 0 : index
    %4 = vector.load %arg2[%c0_2, %c0_3] : memref<3200x512xbf16, #tpu.memory_space<vmem>>, vector<3200x512xbf16>
    %cst = arith.constant dense<0.000000e+00> : vector<2x512xf32>
    %5 = tpu.matmul %3, %4, %cst {dimension_numbers = #tpu.dot_dimension_numbers<[1], [0], [0], [1], [0, 0, 1, 1], [], []>} : vector<2x3200xbf16>, vector<3200x512xbf16>, vector<2x512xf32> -> vector<2x512xf32>
    %c0_4 = arith.constant 0 : index
    %c0_5 = arith.constant 0 : index
    %6 = vector.load %arg3[%c0_4, %c0_5] : memref<1x512xf32, #tpu.memory_space<vmem>>, vector<1x512xf32>
    %7 = vector.broadcast %6 : vector<1x512xf32> to vector<2x512xf32>
    %8 = arith.addf %5, %7 : vector<2x512xf32>
    %cst_6 = arith.constant 0.000000e+00 : f32
    %9 = vector.broadcast %cst_6 : f32 to vector<2x512xf32>
    %10 = arith.maximumf %8, %9 : vector<2x512xf32>
    %11 = arith.truncf %10 : vector<2x512xf32> to vector<2x512xbf16>
    %c0_7 = arith.constant 0 : index
    %c0_8 = arith.constant 0 : index
    %12 = vector.load %arg9[%c0_7, %c0_8] : memref<2x256xf32, #tpu.memory_space<vmem>>, vector<2x256xf32>
    %c0_9 = arith.constant 0 : index
    %c0_10 = arith.constant 0 : index
    %13 = vector.load %arg4[%c0_9, %c0_10] : memref<512x256xbf16, #tpu.memory_space<vmem>>, vector<512x256xbf16>
    %cst_11 = arith.constant dense<0.000000e+00> : vector<2x256xf32>
    %14 = tpu.matmul %11, %13, %cst_11 {dimension_numbers = #tpu.dot_dimension_numbers<[1], [0], [0], [1], [0, 0, 1, 1], [], []>} : vector<2x512xbf16>, vector<512x256xbf16>, vector<2x256xf32> -> vector<2x256xf32>
    %15 = arith.addf %12, %14 : vector<2x256xf32>
    %c0_12 = arith.constant 0 : index
    %c0_13 = arith.constant 0 : index
    %16 = vector.load %arg9[%c0_12, %c0_13] : memref<2x256xf32, #tpu.memory_space<vmem>>, vector<2x256xf32>
    tpu.vector_store %arg9[%c0_12, %c0_13], %15 {strides = array<i32>} : memref<2x256xf32, #tpu.memory_space<vmem>>, vector<2x256xf32>,
    %c3_i32 = arith.constant 3 : i32
    %17 = arith.cmpi eq, %arg0, %c3_i32 : i32
    %18 = arith.extui %17 : i1 to i32
    %c0_i32_14 = arith.constant 0 : i32
    %19 = arith.cmpi ne, %18, %c0_i32_14 : i32
    scf.if %19 {
      %c0_15 = arith.constant 0 : index
      %c0_16 = arith.constant 0 : index
      %20 = vector.load %arg9[%c0_15, %c0_16] : memref<2x256xf32, #tpu.memory_space<vmem>>, vector<2x256xf32>
      %c0_17 = arith.constant 0 : index
      %c0_18 = arith.constant 0 : index
      %21 = vector.load %arg5[%c0_17, %c0_18] : memref<1x256xf32, #tpu.memory_space<vmem>>, vector<1x256xf32>
      %22 = vector.broadcast %21 : vector<1x256xf32> to vector<2x256xf32>
      %23 = arith.addf %20, %22 : vector<2x256xf32>
      %cst_19 = arith.constant 0.000000e+00 : f32
      %24 = vector.broadcast %cst_19 : f32 to vector<2x256xf32>
      %25 = arith.maximumf %23, %24 : vector<2x256xf32>
      %26 = arith.truncf %25 : vector<2x256xf32> to vector<2x256xbf16>
      %c0_20 = arith.constant 0 : index
      %c0_21 = arith.constant 0 : index
      %27 = vector.load %arg6[%c0_20, %c0_21] : memref<256x4xbf16, #tpu.memory_space<vmem>>, vector<256x4xbf16>
      %cst_22 = arith.constant dense<0.000000e+00> : vector<2x4xf32>
      %28 = tpu.matmul %26, %27, %cst_22 {dimension_numbers = #tpu.dot_dimension_numbers<[1], [0], [0], [1], [0, 0, 1, 1], [], []>} : vector<2x256xbf16>, vector<256x4xbf16>, vector<2x4xf32> -> vector<2x4xf32>
      %c0_23 = arith.constant 0 : index
      %c0_24 = arith.constant 0 : index
      %29 = vector.load %arg7[%c0_23, %c0_24] : memref<1x4xf32, #tpu.memory_space<vmem>>, vector<1x4xf32>
      %30 = vector.broadcast %29 : vector<1x4xf32> to vector<2x4xf32>
      %31 = arith.addf %28, %30 : vector<2x4xf32>
      %c0_25 = arith.constant 0 : index
      %c0_26 = arith.constant 0 : index
      %32 = vector.load %arg8[%c0_25, %c0_26] : memref<2x4xf32, #tpu.memory_space<vmem>>, vector<2x4xf32>
      tpu.vector_store %arg8[%c0_25, %c0_26], %31 {strides = array<i32>} : memref<2x4xf32, #tpu.memory_space<vmem>>, vector<2x4xf32>,
    } else {
    }
    return
  }
  func.func @transform_0(%arg0: i32) -> (i32, i32) {
    %c0_i32 = arith.constant 0 : i32
    %c0_i32_0 = arith.constant 0 : i32
    %c0_i32_1 = arith.constant 0 : i32
    return %c0_i32, %c0_i32_0 : i32, i32
  }
  func.func @transform_1(%arg0: i32) -> (i32, i32) {
    %c0_i32 = arith.constant 0 : i32
    %c0_i32_0 = arith.constant 0 : i32
    return %c0_i32, %arg0 : i32, i32
  }
  func.func @transform_2(%arg0: i32) -> (i32, i32) {
    %c0_i32 = arith.constant 0 : i32
    %c0_i32_0 = arith.constant 0 : i32
    return %c0_i32, %arg0 : i32, i32
  }
  func.func @transform_3(%arg0: i32) -> (i32, i32) {
    %c0_i32 = arith.constant 0 : i32
    %c0_i32_0 = arith.constant 0 : i32
    return %arg0, %c0_i32 : i32, i32
  }
  func.func @transform_4(%arg0: i32) -> (i32, i32) {
    %c0_i32 = arith.constant 0 : i32
    %c0_i32_0 = arith.constant 0 : i32
    %c0_i32_1 = arith.constant 0 : i32
    return %c0_i32, %c0_i32_0 : i32, i32
  }
  func.func @transform_5(%arg0: i32) -> (i32, i32) {
    %c0_i32 = arith.constant 0 : i32
    %c0_i32_0 = arith.constant 0 : i32
    %c0_i32_1 = arith.constant 0 : i32
    return %c0_i32, %c0_i32_0 : i32, i32
  }
  func.func @transform_6(%arg0: i32) -> (i32, i32) {
    %c0_i32 = arith.constant 0 : i32
    %c0_i32_0 = arith.constant 0 : i32
    %c0_i32_1 = arith.constant 0 : i32
    return %c0_i32, %c0_i32_0 : i32, i32
  }
  func.func @transform_7(%arg0: i32) -> (i32, i32) {
    %c0_i32 = arith.constant 0 : i32
    %c0_i32_0 = arith.constant 0 : i32
    %c0_i32_1 = arith.constant 0 : i32
    return %c0_i32, %c0_i32_0 : i32, i32
  }
}

</mosaic_0001>

<bundles_post_ra>
// kernel: simplenet_forward.2
= control target key start
LH: loop header
LB: loop body
LE: loop exit
PB: predicated region body
PF: predicated region fallthrough
CT: control target
= control target key end

     0   :  { %16 = vsyncpa [#allocation8], 0  ;;  %s11244_s0 = inlined_call_operand.vmem [shape: f32[40,48], index: 0, kind: input, shape index: {}]   ;;  %s11245_s1 = inlined_call_operand.hbm [shape: f32[48,128], index: 1, kind: input, shape index: {}]   ;;  %s11246_s2 = inlined_call_operand.hbm [shape: f32[1,128], index: 2, kind: input, shape index: {}]   ;;  %s11247_s3 = inlined_call_operand.hbm [shape: f32[512,128], index: 3, kind: input, shape index: {}]   ;;  %s11248_s4 = inlined_call_operand.hbm [shape: f32[1,128], index: 4, kind: input, shape index: {}]   ;;  %s11249_s5 = inlined_call_operand.hbm [shape: f32[512,128], index: 5, kind: input, shape index: {}]   ;;  %s11250_s6 = inlined_call_operand.hbm [shape: f32[1,128], index: 6, kind: input, shape index: {}]   ;;  %s11251_s7 = inlined_call_operand.hbm [shape: f32[1152,128], index: 7, kind: input, shape index: {}]   ;;  %s11252_s8 = inlined_call_operand.hbm [shape: f32[1,128], index: 8, kind: input, shape index: {}]   ;;  %s11253_s9 = inlined_call_operand.hbm [shape: f32[2048,128], index: 9, kind: input, shape index: {}]   ;;  %s11254_s10 = inlined_call_operand.hbm [shape: f32[1,128], index: 10, kind: input, shape index: {}]   ;;  %s11255_s11 = inlined_call_operand.vmem [shape: bf16[50,128], index: 11, kind: output, shape index: {}]  }
   0x1   :  { %17 = vsyncpa [#allocation10], 0 }
   0x2   :  { %18 = vsyncpa [#allocation13], 0 }
   0x3   :  { %19 = vsyncpa [#allocation16], 0 }
   0x4   :  { %20 = vsyncpa [#allocation19], 0 }
   0x5   :  { %21 = vsyncpa [#allocation22], 0  ;;  %s9944_s17 = smov [#allocation9]   ;;  %s9945_s19 = smov [#allocation12]  }
   0x6   :  { %s42_s18 = sshll.u32 %s9944_s17, 4  ;;  %s64_s20 = sshll.u32 %s9945_s19, 4  ;;  %s43_s18 = int_to_ptr.vmem [resolvable:$true] %s42_s18  ;;  %s65_s20 = int_to_ptr.vmem [resolvable:$true] %s64_s20 }
   0x7   :  { %s9712_s23 = scalar_lea.hbm %s11246_s2, 16 }
   0x8   :  { %p9713_p0 = scmp.ne.s32.totalorder %s11246_s2, %s9712_s23  ;;  %p9716_p1 = scmp.lt.u32.totalorder %s9712_s23, %s11246_s2 }
   0xa   :  { %p9718_p2 = pnand %p9716_p1, %p9713_p0 }
   0xc   :  { %9721 = shalt.err (!%p9718_p2)
}
   0xd   :  { %s9722_s28 = scalar_lea.vmem %s43_s18, 16  ;;  %s9726_s29 = scalar_lea.vmem %s43_s18, 32 }
   0xe   :  { %p9723_p3 = scmp.ne.s32.totalorder %s43_s18, %s9722_s28  ;;  %p9727_p4 = scmp.lt.s32.totalorder %s43_s18, %s43_s18 }
   0xf   :  { %p9728_p5 = scmp.lt.s32.totalorder %s9726_s29, %s9722_s28 }
  0x11   :  { %p9729_p6 = por %p9728_p5, %p9727_p4 }
  0x13   :  { %p9730_p7 = pnand %p9729_p6, %p9723_p3 }
  0x15   :  { %9733 = shalt.err (!%p9730_p7)
}
  0x16   :  { %45 = dma.hbm_to_vmem [thread:$0]  %s11246_s2, 16, %s43_s18, [#allocation10]  }
  0x17   :  { %s9734_s15 = scalar_lea.hbm %s11248_s4, 16 }
  0x18   :  { %p9735_p8 = scmp.ne.s32.totalorder %s11248_s4, %s9734_s15  ;;  %p9738_p9 = scmp.lt.u32.totalorder %s9734_s15, %s11248_s4 }
  0x1a   :  { %p9740_p10 = pnand %p9738_p9, %p9735_p8 }
  0x1c   :  { %9743 = shalt.err (!%p9740_p10)
}
  0x1d   :  { %s9744_s22 = scalar_lea.vmem %s65_s20, 16  ;;  %s9748_s23 = scalar_lea.vmem %s65_s20, 32 }
  0x1e   :  { %p9745_p11 = scmp.ne.s32.totalorder %s65_s20, %s9744_s22  ;;  %p9749_p12 = scmp.lt.s32.totalorder %s65_s20, %s65_s20 }
  0x1f   :  { %p9750_p13 = scmp.lt.s32.totalorder %s9748_s23, %s9744_s22 }
  0x21   :  { %p9751_p0 = por %p9750_p13, %p9749_p12 }
  0x23   :  { %p9752_p1 = pnand %p9751_p0, %p9745_p11 }
  0x25   :  { %9755 = shalt.err (!%p9752_p1)
}
  0x26   :  { %67 = dma.hbm_to_vmem [thread:$0]  %s11248_s4, 16, %s65_s20, [#allocation13]  }
  0x27   :  { %s9946_s24 = smov [#allocation15]   ;;  %s9947_s26 = smov [#allocation18]  }
  0x28   :  { %s86_s25 = sshll.u32 %s9946_s24, 4  ;;  %s108_s27 = sshll.u32 %s9947_s26, 4  ;;  %s87_s25 = int_to_ptr.vmem [resolvable:$true] %s86_s25  ;;  %s109_s27 = int_to_ptr.vmem [resolvable:$true] %s108_s27 }
  0x29   :  { %s9756_s30 = scalar_lea.hbm %s11250_s6, 16 }
  0x2a   :  { %p9757_p2 = scmp.ne.s32.totalorder %s11250_s6, %s9756_s30  ;;  %p9760_p3 = scmp.lt.u32.totalorder %s9756_s30, %s11250_s6 }
  0x2c   :  { %p9762_p4 = pnand %p9760_p3, %p9757_p2 }
  0x2e   :  { %9765 = shalt.err (!%p9762_p4)
}
  0x2f   :  { %s9766_s4 = scalar_lea.vmem %s87_s25, 16  ;;  %s9770_s20 = scalar_lea.vmem %s87_s25, 32 }
  0x30   :  { %p9767_p5 = scmp.ne.s32.totalorder %s87_s25, %s9766_s4  ;;  %p9771_p6 = scmp.lt.s32.totalorder %s87_s25, %s87_s25 }
  0x31   :  { %p9772_p7 = scmp.lt.s32.totalorder %s9770_s20, %s9766_s4 }
  0x33   :  { %p9773_p8 = por %p9772_p7, %p9771_p6 }
  0x35   :  { %p9774_p9 = pnand %p9773_p8, %p9767_p5 }
  0x37   :  { %9777 = shalt.err (!%p9774_p9)
}
  0x38   :  { %89 = dma.hbm_to_vmem [thread:$0]  %s11250_s6, 16, %s87_s25, [#allocation16]  }
  0x39   :  { %s9778_s22 = scalar_lea.hbm %s11252_s8, 16 }
  0x3a   :  { %p9779_p10 = scmp.ne.s32.totalorder %s11252_s8, %s9778_s22  ;;  %p9782_p11 = scmp.lt.u32.totalorder %s9778_s22, %s11252_s8 }
  0x3c   :  { %p9784_p12 = pnand %p9782_p11, %p9779_p10 }
  0x3e   :  { %9787 = shalt.err (!%p9784_p12)
}
  0x3f   :  { %s9788_s26 = scalar_lea.vmem %s109_s27, 16  ;;  %s9792_s28 = scalar_lea.vmem %s109_s27, 32 }
  0x40   :  { %p9789_p13 = scmp.ne.s32.totalorder %s109_s27, %s9788_s26  ;;  %p9793_p0 = scmp.lt.s32.totalorder %s109_s27, %s109_s27 }
  0x41   :  { %p9794_p1 = scmp.lt.s32.totalorder %s9792_s28, %s9788_s26 }
  0x43   :  { %p9795_p2 = por %p9794_p1, %p9793_p0 }
  0x45   :  { %p9796_p3 = pnand %p9795_p2, %p9789_p13 }
  0x47   :  { %9799 = shalt.err (!%p9796_p3)
}
  0x48   :  { %111 = dma.hbm_to_vmem [thread:$0]  %s11252_s8, 16, %s109_s27, [#allocation19]  }
  0x49   :  { %s9948_s29 = smov [#allocation7]   ;;  %s9800_s14 = scalar_lea.hbm %s11245_s1, 768 }
  0x4a   :  { %s29_s30 = sshll.u32 %s9948_s29, 4  ;;  %p9801_p4 = scmp.ne.s32.totalorder %s11245_s1, %s9800_s14  ;;  %s30_s30 = int_to_ptr.vmem [resolvable:$true] %s29_s30 }
  0x4b   :  { %p9804_p5 = scmp.lt.u32.totalorder %s9800_s14, %s11245_s1 }
  0x4d   :  { %p9806_p6 = pnand %p9804_p5, %p9801_p4 }
  0x4f   :  { %9809 = shalt.err (!%p9806_p6)
}
  0x50   :  { %s9810_s17 = scalar_lea.vmem %s30_s30, 768  ;;  %p9815_p8 = scmp.lt.s32.totalorder %s30_s30, %s30_s30 }
  0x51   :  { %p9811_p7 = scmp.ne.s32.totalorder %s30_s30, %s9810_s17  ;;  %p9816_p9 = scmp.lt.s32.totalorder %s9810_s17, %s9810_s17 }
  0x53   :  { %p9817_p10 = por %p9816_p9, %p9815_p8 }
  0x55   :  { %p9818_p11 = pnand %p9817_p10, %p9811_p7 }
  0x57   :  { %9821 = shalt.err (!%p9818_p11)
}
  0x58   :  { %s9949_s8 = smov 128   ;;  %s9950_s27 = smov 8  }
  0x59   :  { %35 = dma.hbm_to_vmem [thread:$0]  %s11245_s1, 768, %s30_s30, [#allocation8], %s9949_s8, %s9949_s8, %s9950_s27  }
  0x5a   :  { %s9951_s22 = smov [#allocation11]   ;;  %s9952_s2 = smov [#allocation14]  }
  0x5b   :  { %s51_s23 = sshll.u32 %s9951_s22, 4  ;;  %s73_s18 = sshll.u32 %s9952_s2, 4  ;;  %s52_s23 = int_to_ptr.vmem [resolvable:$true] %s51_s23  ;;  %s74_s18 = int_to_ptr.vmem [resolvable:$true] %s73_s18 }
  0x5c   :  { %s9822_s28 = scalar_lea.hbm %s11247_s3, 8192 }
  0x5d   :  { %p9823_p12 = scmp.ne.s32.totalorder %s11247_s3, %s9822_s28  ;;  %p9826_p13 = scmp.lt.u32.totalorder %s9822_s28, %s11247_s3 }
  0x5f   :  { %p9828_p0 = pnand %p9826_p13, %p9823_p12 }
  0x61   :  { %9831 = shalt.err (!%p9828_p0)
}
  0x62   :  { %s9832_s1 = scalar_lea.vmem %s52_s23, 8192  ;;  %p9837_p2 = scmp.lt.s32.totalorder %s52_s23, %s52_s23 }
  0x63   :  { %p9833_p1 = scmp.ne.s32.totalorder %s52_s23, %s9832_s1  ;;  %p9838_p3 = scmp.lt.s32.totalorder %s9832_s1, %s9832_s1 }
  0x65   :  { %p9839_p4 = por %p9838_p3, %p9837_p2 }
  0x67   :  { %p9840_p5 = pnand %p9839_p4, %p9833_p1 }
  0x69   :  { %9843 = shalt.err (!%p9840_p5)
}
  0x6a   :  { %57 = dma.hbm_to_vmem [thread:$0]  %s11247_s3, 8192, %s52_s23, [#allocation10], %s9949_s8, %s9949_s8, %s9950_s27  }
  0x6b   :  { %s9844_s4 = scalar_lea.hbm %s11249_s5, 8192 }
  0x6c   :  { %p9845_p6 = scmp.ne.s32.totalorder %s11249_s5, %s9844_s4  ;;  %p9848_p7 = scmp.lt.u32.totalorder %s9844_s4, %s11249_s5 }
  0x6e   :  { %p9850_p8 = pnand %p9848_p7, %p9845_p6 }
  0x70   :  { %9853 = shalt.err (!%p9850_p8)
}
  0x71   :  { %s9854_s21 = scalar_lea.vmem %s74_s18, 8192  ;;  %p9859_p10 = scmp.lt.s32.totalorder %s74_s18, %s74_s18 }
  0x72   :  { %p9855_p9 = scmp.ne.s32.totalorder %s74_s18, %s9854_s21  ;;  %p9860_p11 = scmp.lt.s32.totalorder %s9854_s21, %s9854_s21 }
  0x74   :  { %p9861_p12 = por %p9860_p11, %p9859_p10 }
  0x76   :  { %p9862_p13 = pnand %p9861_p12, %p9855_p9 }
  0x78   :  { %9865 = shalt.err (!%p9862_p13)
}
  0x79   :  { %79 = dma.hbm_to_vmem [thread:$0]  %s11249_s5, 8192, %s74_s18, [#allocation13], %s9949_s8, %s9949_s8, %s9950_s27  }
  0x7a   :  { %s9953_s23 = smov [#allocation17]   ;;  %s9954_s24 = smov [#allocation20]  }
  0x7b   :  { %s95_s2 = sshll.u32 %s9953_s23, 4  ;;  %s117_s26 = sshll.u32 %s9954_s24, 4  ;;  %s96_s2 = int_to_ptr.vmem [resolvable:$true] %s95_s2  ;;  %s118_s26 = int_to_ptr.vmem [resolvable:$true] %s117_s26 }
  0x7c   :  { %s9866_s25 = scalar_lea.hbm %s11251_s7, 18432 }
  0x7d   :  { %p9867_p0 = scmp.ne.s32.totalorder %s11251_s7, %s9866_s25  ;;  %p9870_p1 = scmp.lt.u32.totalorder %s9866_s25, %s11251_s7 }
  0x7f   :  { %p9872_p2 = pnand %p9870_p1, %p9867_p0 }
  0x81   :  { %9875 = shalt.err (!%p9872_p2)
}
  0x82   :  { %s9876_s5 = scalar_lea.vmem %s96_s2, 18432  ;;  %p9881_p4 = scmp.lt.s32.totalorder %s96_s2, %s96_s2 }
  0x83   :  { %p9877_p3 = scmp.ne.s32.totalorder %s96_s2, %s9876_s5  ;;  %p9882_p5 = scmp.lt.s32.totalorder %s9876_s5, %s9876_s5 }
  0x85   :  { %p9883_p6 = por %p9882_p5, %p9881_p4 }
  0x87   :  { %p9884_p7 = pnand %p9883_p6, %p9877_p3 }
  0x89   :  { %9887 = shalt.err (!%p9884_p7)
}
  0x8a   :  { %101 = dma.hbm_to_vmem [thread:$0]  %s11251_s7, 18432, %s96_s2, [#allocation16], %s9949_s8, %s9949_s8, %s9950_s27  }
  0x8b   :  { %s9888_s4 = scalar_lea.hbm %s11253_s9, 32768 }
  0x8c   :  { %p9889_p8 = scmp.ne.s32.totalorder %s11253_s9, %s9888_s4  ;;  %p9892_p9 = scmp.lt.u32.totalorder %s9888_s4, %s11253_s9 }
  0x8e   :  { %p9894_p10 = pnand %p9892_p9, %p9889_p8 }
  0x90   :  { %9897 = shalt.err (!%p9894_p10)
}
  0x91   :  { %s9898_s21 = scalar_lea.vmem %s118_s26, 32768  ;;  %p9903_p12 = scmp.lt.s32.totalorder %s118_s26, %s118_s26 }
  0x92   :  { %p9899_p11 = scmp.ne.s32.totalorder %s118_s26, %s9898_s21  ;;  %p9904_p13 = scmp.lt.s32.totalorder %s9898_s21, %s9898_s21 }
  0x94   :  { %p9905_p0 = por %p9904_p13, %p9903_p12 }
  0x96   :  { %p9906_p1 = pnand %p9905_p0, %p9899_p11 }
  0x98   :  { %9909 = shalt.err (!%p9906_p1)
}
  0x99   :  { %123 = dma.hbm_to_vmem [thread:$0]  %s11253_s9, 32768, %s118_s26, [#allocation19], %s9949_s8, %s9949_s8, %s9950_s27  }
  0x9a   :  { %s9955_s22 = smov [#allocation21]   ;;  %s9910_s28 = scalar_lea.hbm %s11254_s10, 16 }
  0x9b   :  { %s130_s23 = sshll.u32 %s9955_s22, 4  ;;  %p9911_p2 = scmp.ne.s32.totalorder %s11254_s10, %s9910_s28  ;;  %s131_s23 = int_to_ptr.vmem [resolvable:$true] %s130_s23 }
  0x9c   :  { %p9914_p3 = scmp.lt.u32.totalorder %s9910_s28, %s11254_s10 }
  0x9e   :  { %p9916_p4 = pnand %p9914_p3, %p9911_p2 }
  0xa0   :  { %9919 = shalt.err (!%p9916_p4)
}
  0xa1   :  { %s9920_s1 = scalar_lea.vmem %s131_s23, 16  ;;  %s9924_s9 = scalar_lea.vmem %s131_s23, 32 }
  0xa2   :  { %p9921_p5 = scmp.ne.s32.totalorder %s131_s23, %s9920_s1  ;;  %p9925_p6 = scmp.lt.s32.totalorder %s131_s23, %s131_s23 }
  0xa3   :  { %p9926_p7 = scmp.lt.s32.totalorder %s9924_s9, %s9920_s1 }
  0xa5   :  { %p9927_p8 = por %p9926_p7, %p9925_p6 }
  0xa7   :  { %p9928_p9 = pnand %p9927_p8, %p9921_p5 }
  0xa9   :  { %9931 = shalt.err (!%p9928_p9)
}
  0xaa   :  { %133 = dma.hbm_to_vmem [thread:$0]  %s11254_s10, 16, %s131_s23, [#allocation22]  }
  0xab   :  { %9932 = dma.done.wait [#allocation8], 768  }
  0xac   :  { %9933 = vsyncadd [#allocation8], 4294966528 }
  0xad   :  { %9934 = dma.done.wait [#allocation10], 8208  }
  0xae   :  { %9935 = vsyncadd [#allocation10], 4294959088 }
  0xaf   :  { %9936 = dma.done.wait [#allocation13], 8208  }
  0xb0   :  { %9937 = vsyncadd [#allocation13], 4294959088 }
  0xb1   :  { %9938 = dma.done.wait [#allocation16], 18448  }
  0xb2   :  { %9939 = vsyncadd [#allocation16], 4294948848 }
  0xb3   :  { %9940 = dma.done.wait [#allocation19], 32784  }
  0xb4   :  { %9941 = vsyncadd [#allocation19], 4294934512 }
  0xb5   :  { %9942 = dma.done.wait [#allocation22], 16  }
  0xb6   :  { %9943 = vsyncadd [#allocation22], 4294967280  ;;  %v9956_v0 = vmov 0.0|0.0   ;;  %vm9957_vm0 = vmmov 0   ;;  %v9958_v1 = vmov 0.0   ;;  %v219_v2 = vld [vmem:[#allocation7] sm:$0xff] }
  0xb7   :  { %8578 = vmatprep.subr.bf16.mxu0 %v9956_v0  ;;  %6736 = vmatprep.mubr.msk.f32.mxu0 %vm9957_vm0, %v9958_v1  ;;  %164 = vst [vmem:[#allocation2] sm:$0xff] %v9958_v1  ;;  %165 = vst [vmem:[#allocation2 + $0x8] sm:$0xff] %v9958_v1  ;;  %v220_v3 = vld [vmem:[#allocation7 + $0x8] sm:$0xff]  ;;  %v221_v4 = vld [vmem:[#allocation7 + $0x10] sm:$0xff]  ;;  %vm232_vm1 = vcmask 392192  }
  0xb8   :  { %166 = vst [vmem:[#allocation2 + $0x10] sm:$0xff] %v9958_v1  ;;  %167 = vst [vmem:[#allocation2 + $0x18] sm:$0xff] %v9958_v1  ;;  %v8579_v5 = vpack.c.bf16 %v220_v3, %v219_v2  ;;  %v222_v6 = vld [vmem:[#allocation7 + $0x18] sm:$0xff]  ;;  %v223_v8 = vld [vmem:[#allocation7 + $0x20] sm:$0xff] }
  0xb9   :  { %168 = vst [vmem:[#allocation2 + $0x20] sm:$0xff] %v9958_v1  ;;  %169 = vst [vmem:[#allocation2 + $0x28] sm:$0xff] %v9958_v1  ;;  %v8582_v7 = vpack.c.bf16 %v222_v6, %v221_v4  ;;  %v224_v9 = vld [vmem:[#allocation7 + $0x28] sm:$0xff]  ;;  %v391_v10 = vld [vmem:[#allocation11 + $0x80] sm:$0xff] }
  0xba   :  { %170 = vst [vmem:[#allocation2 + $0x30] sm:$0xff] %v9958_v1  ;;  %171 = vst [vmem:[#allocation2 + $0x38] sm:$0xff] %v9958_v1  ;;  %8580 = vmatpush3.bf16.msra.mxu0 %v8579_v5  ;;  %v392_v11 = vld [vmem:[#allocation11 + $0x88] sm:$0xff]  ;;  %v393_v12 = vld [vmem:[#allocation11 + $0x90] sm:$0xff]  ;;  %v8585_v18 = vpack.c.bf16 %v224_v9, %v223_v8 }
  0xbb   :  { %172 = vst [vmem:[#allocation2 + $0x40] sm:$0xff] %v9958_v1  ;;  %173 = vst [vmem:[#allocation2 + $0x48] sm:$0xff] %v9958_v1  ;;  %8581 = vmatprep.subr.bf16.mxu0 %v9956_v0  ;;  %v394_v13 = vld [vmem:[#allocation11 + $0x98] sm:$0xff]  ;;  %v8587_v14 = vpack.c.bf16 %v392_v11, %v391_v10  ;;  %v395_v16 = vld [vmem:[#allocation11 + $0xa0] sm:$0xff] }
  0xbc   :  { %174 = vst [vmem:[#allocation2 + $0x50] sm:$0xff] %v9958_v1  ;;  %175 = vst [vmem:[#allocation2 + $0x58] sm:$0x7f] %v9958_v1  ;;  %v8591_v15 = vpack.c.bf16 %v394_v13, %v393_v12  ;;  %v396_v17 = vld [vmem:[#allocation11 + $0xa8] sm:$0xff]  ;;  %v397_v20 = vld [vmem:[#allocation11 + $0xb0] sm:$0xff] }
  0xbd   :  { %176 = vst [vmem:[#allocation3] sm:$0xff] %v9958_v1  ;;  %177 = vst [vmem:[#allocation3 + $0x8] sm:$0xff] %v9958_v1  ;;  %8588 = vmatprep.subr.bf16.mxu1 %v8587_v14  ;;  %v8595_v19 = vpack.c.bf16 %v396_v17, %v395_v16  ;;  %v398_v21 = vld [vmem:[#allocation11 + $0xb8] sm:$0xff]  ;;  %v214_v22 = vld [vmem:[%s11244_s0] sm:$0xff] }
  0xbe   :  { %178 = vst [vmem:[#allocation3 + $0x10] sm:$0xff] %v9958_v1  ;;  %179 = vst [vmem:[#allocation3 + $0x18] sm:$0xff] %v9958_v1  ;;  %8583 = vmatpush3.bf16.msra.mxu0 %v8582_v7  ;;  %8590 = vmatpush3.bf16.msra.mxu1 %v8587_v14  ;;  %v8599_v23 = vpack.c.bf16 %v398_v21, %v397_v20  ;;  %v215_v24 = vld [vmem:[%s11244_s0 + $0x8] sm:$0xff]  ;;  %v216_v25 = vld [vmem:[%s11244_s0 + $0x10] sm:$0xff] }
  0xbf   :  { %180 = vst [vmem:[#allocation3 + $0x20] sm:$0xff] %v9958_v1  ;;  %181 = vst [vmem:[#allocation3 + $0x28] sm:$0xff] %v9958_v1  ;;  %8584 = vmatprep.subr.bf16.mxu0 %v9956_v0  ;;  %8592 = vmatprep.subr.bf16.mxu1 %v8591_v15  ;;  %v217_v26 = vld [vmem:[%s11244_s0 + $0x18] sm:$0xff]  ;;  %v218_v27 = vld [vmem:[%s11244_s0 + $0x20] sm:$0xff] }
  0xc0   :  { %182 = vst [vmem:[#allocation3 + $0x30] sm:$0xff] %v9958_v1  ;;  %183 = vst [vmem:[#allocation4] sm:$0xff] %v9958_v1  ;;  %v399_v28 = vld [vmem:[#allocation11 + $0xc0] sm:$0xff]  ;;  %v400_v29 = vld [vmem:[#allocation11 + $0xc8] sm:$0xff] }
  0xc1   :  { %184 = vst [vmem:[#allocation4 + $0x8] sm:$0xff] %v9958_v1  ;;  %185 = vst [vmem:[#allocation4 + $0x10] sm:$0xff] %v9958_v1  ;;  %v8603_v30 = vpack.c.bf16 %v400_v29, %v399_v28  ;;  %v401_v31 = vld [vmem:[#allocation11 + $0xd0] sm:$0xff]  ;;  %v402_v32 = vld [vmem:[#allocation11 + $0xd8] sm:$0xff] }
  0xc2   :  { %186 = vst [vmem:[#allocation4 + $0x18] sm:$0xff] %v9958_v1  ;;  %187 = vst [vmem:[#allocation4 + $0x20] sm:$0xff] %v9958_v1  ;;  %8586 = vmatpush3.bf16.msra.mxu0 %v8585_v18  ;;  %8594 = vmatpush3.bf16.msra.mxu1 %v8591_v15  ;;  %v8607_v33 = vpack.c.bf16 %v402_v32, %v401_v31  ;;  %v403_v34 = vld [vmem:[#allocation11 + $0xe0] sm:$0xff]  ;;  %v404_v35 = vld [vmem:[#allocation11 + $0xe8] sm:$0xff] }
  0xc3   :  { %188 = vst [vmem:[#allocation4 + $0x28] sm:$0xff] %v9958_v1  ;;  %189 = vst [vmem:[#allocation4 + $0x30] sm:$0xff] %v9958_v1  ;;  %8787 = vmatprep.subr.bf16.mxu0 %v9956_v0  ;;  %8596 = vmatprep.subr.bf16.mxu1 %v8595_v19  ;;  %v8611_v36 = vpack.c.bf16 %v404_v35, %v403_v34  ;;  %v405_v37 = vld [vmem:[#allocation11 + $0xf0] sm:$0xff]  ;;  %v406_v38 = vld [vmem:[#allocation11 + $0xf8] sm:$0xff] }
  0xc4   :  { %190 = vst [vmem:[#allocation4 + $0x38] sm:$0xff] %v9958_v1  ;;  %191 = vst [vmem:[#allocation4 + $0x40] sm:$0xff] %v9958_v1  ;;  %v8615_v39 = vpack.c.bf16 %v406_v38, %v405_v37  ;;  %v365_v40 = vld [vmem:[#allocation11] sm:$0xff]  ;;  %v366_v41 = vld [vmem:[#allocation11 + $0x8] sm:$0xff] }
  0xc5   :  { %192 = vst [vmem:[#allocation4 + $0x48] sm:$0xff] %v9958_v1  ;;  %193 = vst [vmem:[#allocation4 + $0x50] sm:$0x3f] %v9958_v1  ;;  %6737 = vmatmul.mubr.msk.f32.vlgmr.msra.gmra.mrb[0].mxu0 %vm232_vm1, %v214_v22  ;;  %v8619_v42 = vpack.c.bf16 %v366_v41, %v365_v40  ;;  %v5739_v43 = vld [vmem:[#allocation9] ss:$0 sm:$0xff]  ;;  %v367_v58 = vld [vmem:[#allocation11 + $0x10] sm:$0xff] }
  0xc6   :  { %194 = vst [vmem:[#allocation5] sm:$0xff] %v9958_v1  ;;  %195 = vst [vmem:[#allocation5 + $0x8] sm:$0xff] %v9958_v1  ;;  %6739 = vmatprep.mubr.msk.f32.mxu0 %vm9957_vm0, %v9958_v1  ;;  %8598 = vmatpush3.bf16.msra.mxu1 %v8595_v19  ;;  %v368_v59 = vld [vmem:[#allocation11 + $0x18] sm:$0xff]  ;;  %v369_v4 = vld [vmem:[#allocation11 + $0x20] sm:$0xff] }
  0xc7   :  { %196 = vst [vmem:[#allocation5 + $0x10] sm:$0xff] %v9958_v1  ;;  %197 = vst [vmem:[#allocation5 + $0x18] sm:$0xff] %v9958_v1  ;;  %8600 = vmatprep.subr.bf16.mxu1 %v8599_v23  ;;  %v8623_v63 = vpack.c.bf16 %v368_v59, %v367_v58  ;;  %v370_v5 = vld [vmem:[#allocation11 + $0x28] sm:$0xff]  ;;  %v371_v10 = vld [vmem:[#allocation11 + $0x30] sm:$0xff] }
  0xc8   :  { %198 = vst [vmem:[#allocation5 + $0x20] sm:$0xff] %v9958_v1  ;;  %199 = vst [vmem:[#allocation5 + $0x28] sm:$0xff] %v9958_v1  ;;  %v8627_v9 = vpack.c.bf16 %v370_v5, %v369_v4  ;;  %v372_v13 = vld [vmem:[#allocation11 + $0x38] sm:$0xff]  ;;  %v385_v14 = vld [vmem:[#allocation2 + $0x25] sm:$0xff] }
  0xc9   :  { %200 = vst [vmem:[#allocation5 + $0x30] sm:$0xff] %v9958_v1  ;;  %201 = vst [vmem:[#allocation5 + $0x38] sm:$0xff] %v9958_v1  ;;  %6740 = vmatmul.mubr.msk.f32.gmra.mrb[2].mxu0 %vm232_vm1, %v215_v24  ;;  %v8631_v15 = vpack.c.bf16 %v372_v13, %v371_v10  ;;  %v373_v17 = vld [vmem:[#allocation11 + $0x40] sm:$0xff]  ;;  %v374_v18 = vld [vmem:[#allocation11 + $0x48] sm:$0xff] }
  0xca   :  { %202 = vst [vmem:[#allocation5 + $0x40] sm:$0xff] %v9958_v1  ;;  %203 = vst [vmem:[#allocation5 + $0x48] sm:$0xff] %v9958_v1  ;;  %6742 = vmatprep.mubr.msk.f32.mxu0 %vm9957_vm0, %v9958_v1  ;;  %8602 = vmatpush3.bf16.msra.mxu1 %v8599_v23  ;;  %v8635_v20 = vpack.c.bf16 %v374_v18, %v373_v17  ;;  %v375_v21 = vld [vmem:[#allocation11 + $0x50] sm:$0xff]  ;;  %v376_v22 = vld [vmem:[#allocation11 + $0x58] sm:$0xff] }
  0xcb   :  { %204 = vst [vmem:[#allocation5 + $0x50] sm:$0xff] %v9958_v1  ;;  %205 = vst [vmem:[#allocation5 + $0x58] sm:$0xff] %v9958_v1  ;;  %8604 = vmatprep.subr.bf16.mxu1 %v8603_v30  ;;  %v390_v28 = vld [vmem:[#allocation2 + $0x4d] sm:$0xff]  ;;  %v644_v34 = vld [vmem:[#allocation11 + $0x108] sm:$0xff] }
  0xcc   :  { %206 = vst [vmem:[#allocation5 + $0x60] sm:$0xff] %v9958_v1  ;;  %207 = vst [vmem:[#allocation5 + $0x68] sm:$0xff] %v9958_v1  ;;  %v380_v31 = vld [vmem:[#allocation11 + $0x78] sm:$0xff]  ;;  %v647_v40 = vld [vmem:[#allocation11 + $0x120] sm:$0xff] }
  0xcd   :  { %208 = vst [vmem:[#allocation5 + $0x70] sm:$0xff] %v9958_v1  ;;  %209 = vst [vmem:[#allocation5 + $0x78] sm:$0xff] %v9958_v1  ;;  %6743 = vmatmul.mubr.msk.f32.gmra.mrb[4].mxu0 %vm232_vm1, %v216_v25  ;;  %v8639_v25 = vpack.c.bf16 %v376_v22, %v375_v21  ;;  %v646_v37 = vld [vmem:[#allocation11 + $0x118] sm:$0xff]  ;;  %v648_v41 = vld [vmem:[#allocation11 + $0x128] sm:$0xff] }
  0xce   :  { %210 = vst [vmem:[#allocation5 + $0x80] sm:$0xff] %v9958_v1  ;;  %211 = vst [vmem:[#allocation5 + $0x88] sm:$0xff] %v9958_v1  ;;  %6745 = vmatprep.mubr.msk.f32.mxu0 %vm9957_vm0, %v9958_v1  ;;  %8606 = vmatpush3.bf16.msra.mxu1 %v8603_v30  ;;  %v379_v30 = vld [vmem:[#allocation11 + $0x70] sm:$0xff]  ;;  %v656_v58 = vld [vmem:[#allocation11 + $0x168] sm:$0xff] }
  0xcf   :  { %212 = vst [vmem:[#allocation5 + $0x90] sm:$0xff] %v9958_v1  ;;  %213 = vst [vmem:[#allocation5 + $0x98] sm:$0x7] %v9958_v1  ;;  %8608 = vmatprep.subr.bf16.mxu1 %v8607_v33  ;;  %v8647_v32 = vpack.c.bf16 %v380_v31, %v379_v30  ;;  %v792_v5 = vld [vmem:[#allocation11 + $0x190] sm:$0xff]  ;;  %v795_v10 = vld [vmem:[#allocation11 + $0x1a8] sm:$0xff] }
  0xd0   :  { %v637_v13 = vld [vmem:[#allocation2 + $0x2a] sm:$0xff]  ;;  %v803_v30 = vld [vmem:[#allocation11 + $0x1e8] sm:$0xff] }
  0xd1   :  { %6746 = vmatmul.mubr.msk.f32.gmra.mrb[6].mxu0 %vm232_vm1, %v217_v26  ;;  %v377_v26 = vld [vmem:[#allocation11 + $0x60] sm:$0xff]  ;;  %v641_v22 = vld [vmem:[#allocation2 + $0x4a] sm:$0xff] }
  0xd2   :  { %6748 = vmatprep.mubr.msk.f32.mxu0 %vm9957_vm0, %v9958_v1  ;;  %8610 = vmatpush3.bf16.msra.mxu1 %v8607_v33  ;;  %v643_v33 = vld [vmem:[#allocation11 + $0x100] sm:$0xff] }
  0xd3   :  { %8612 = vmatprep.subr.bf16.mxu1 %v8611_v36  ;;  %v8651_v35 = vpack.c.bf16 %v644_v34, %v643_v33  ;;  %v804_v33 = vld [vmem:[#allocation11 + $0x1f0] sm:$0xff]  ;;  %v805_v34 = vld [vmem:[#allocation11 + $0x1f8] sm:$0xff] }
  0xd5   :  { %6749 = vmatmul.mubr.msk.f32.gmra.mrb[8].mxu0 %vm232_vm1, %v218_v27  ;;  %v378_v27 = vld [vmem:[#allocation11 + $0x68] sm:$0xff] }
  0xd6   :  { %7130 = vmatprep.mubr.msk.f32.mxu0 %vm9957_vm0, %v9958_v1  ;;  %8614 = vmatpush3.bf16.msra.mxu1 %v8611_v36  ;;  %v8643_v29 = vpack.c.bf16 %v378_v27, %v377_v26  ;;  %v645_v36 = vld [vmem:[#allocation11 + $0x110] sm:$0xff]  ;;  %v801_v26 = vld [vmem:[#allocation11 + $0x1d8] sm:$0xff] }
  0xd7   :  { %8616 = vmatprep.subr.bf16.mxu1 %v8615_v39  ;;  %v8655_v38 = vpack.c.bf16 %v646_v37, %v645_v36  ;;  %v642_v27 = vld [vmem:[#allocation2 + $0x52] sm:$0xff]  ;;  %v782_v36 = vld [vmem:[#allocation2 + $0x1f] sm:$0xff] }
  0xda   :  { %8618 = vmatpush3.bf16.msra.mxu1 %v8615_v39 }
  0xdb   :  { %8620 = vmatprep.subr.bf16.mxu1 %v8619_v42 }
 0x198   :  { %v314_v44 = vpop.f32.mrb[0].mxu0 }
 0x199   :  { %v315_v45 = vadd.f32 %v5739_v43, %v314_v44  ;;  %v6738_v46 = vpop.f32.mrb[1].mxu0 }
 0x19a   :  { %v650_v46 = vld [vmem:[#allocation11 + $0x138] sm:$0xff] }
 0x19b   :  { %v338_v47 = vmax.f32 %v315_v45, 0.0  ;;  %v649_v45 = vld [vmem:[#allocation11 + $0x130] sm:$0xff] }
 0x19c   :  { %v319_v48 = vpop.f32.mrb[2].mxu0 }
 0x19d   :  { %343 = vst [vmem:[#allocation2 + $0xa] sm:$0xff] %v338_v47   ;;  %v320_v49 = vadd.f32 %v5739_v43, %v319_v48  ;;  %v6741_v50 = vpop.f32.mrb[3].mxu0  ;;  %v8663_v47 = vpack.c.bf16 %v650_v46, %v649_v45  ;;  %v651_v48 = vld [vmem:[#allocation11 + $0x140] sm:$0xff]  ;;  %v997_v46 = vld [vmem:[#allocation14 + $0x88] sm:$0xff] }
 0x19e   :  { %v996_v45 = vld [vmem:[#allocation14 + $0x80] sm:$0xff] }
 0x19f   :  { %v339_v51 = vmax.f32 %v320_v49, 0.0  ;;  %v652_v49 = vld [vmem:[#allocation11 + $0x148] sm:$0xff] }
 0x1a0   :  { %v324_v52 = vpop.f32.mrb[4].mxu0 }
 0x1a1   :  { %345 = vst [vmem:[#allocation2 + $0x12] sm:$0x7f] %v339_v51   ;;  %347 = vst [vmem:[#allocation2 + $0x12] sm:$0x80] %v339_v51  ;;  %v325_v53 = vadd.f32 %v5739_v43, %v324_v52  ;;  %v6744_v54 = vpop.f32.mrb[5].mxu0  ;;  %v8667_v51 = vpack.c.bf16 %v652_v49, %v651_v48  ;;  %v8716_v48 = vpack.c.bf16 %v997_v46, %v996_v45  ;;  %v1346_v49 = vld [vmem:[#allocation14 + $0x188] sm:$0xff] }
 0x1a2   :  { %v654_v54 = vld [vmem:[#allocation11 + $0x158] sm:$0xff] }
 0x1a3   :  { %v340_v55 = vmax.f32 %v325_v53, 0.0  ;;  %v653_v53 = vld [vmem:[#allocation11 + $0x150] sm:$0xff] }
 0x1a4   :  { %v381_v56 = vld [vmem:[#allocation2 + $0x5] sm:$0xff]  ;;  %v329_v57 = vpop.f32.mrb[6].mxu0 }
 0x1a5   :  { %348 = vst [vmem:[#allocation2 + $0x1a] ss:$24 sps:$4 sm:$0xff] %v340_v55   ;;  %6783 = vmatprep.mubr.f32.mxu1 %v381_v56  ;;  %v330_v60 = vadd.f32 %v5739_v43, %v329_v57  ;;  %v6747_v61 = vpop.f32.mrb[7].mxu0  ;;  %v356_v39 = vld [vmem:[#allocation2 + $0x8] sm:$0xff]  ;;  %v8671_v56 = vpack.c.bf16 %v654_v54, %v653_v53  ;;  %v655_v57 = vld [vmem:[#allocation11 + $0x160] sm:$0xff] }
 0x1a6   :  { %v633_v59 = vld [vmem:[#allocation2 + $0xa] sm:$0xff] }
 0x1a7   :  { %v341_v62 = vmax.f32 %v330_v60, 0.0  ;;  %v8675_v60 = vpack.c.bf16 %v656_v58, %v655_v57  ;;  %v657_v61 = vld [vmem:[#allocation11 + $0x170] sm:$0xff]  ;;  %v1000_v57 = vld [vmem:[#allocation14 + $0xa0] sm:$0xff] }
 0x1a8   :  { %v382_v2 = vld [vmem:[#allocation2 + $0xd] sm:$0xff]  ;;  %v334_v3 = vpop.f32.mrb[8].mxu0  ;;  %v1001_v58 = vld [vmem:[#allocation14 + $0xa8] sm:$0xff] }
 0x1a9   :  { %6784 = vmatmul.mubr.f32.vlgmr.msra.gmra.mrb[0].mxu1 %v382_v2  ;;  %350 = vst [vmem:[#allocation2 + $0x36] sm:$0x3f] %v341_v62   ;;  %352 = vst [vmem:[#allocation2 + $0x36] sm:$0xc0] %v341_v62  ;;  %v335_v6 = vadd.f32 %v5739_v43, %v334_v3  ;;  %v6750_v7 = vpop.f32.mrb[9].mxu0  ;;  %v8659_v43 = vpack.c.bf16 %v648_v41, %v647_v40  ;;  %v658_v62 = vld [vmem:[#allocation11 + $0x178] sm:$0xff] }
 0x1aa   :  { %8622 = vmatpush3.bf16.msra.mxu1 %v8619_v42  ;;  %v357_v42 = vld [vmem:[#allocation2 + $0x10] sm:$0xff]  ;;  %v790_v2 = vld [vmem:[#allocation11 + $0x180] sm:$0xff]  ;;  %v791_v3 = vld [vmem:[#allocation11 + $0x188] sm:$0xff] }
 0x1ab   :  { %8624 = vmatprep.subr.bf16.mxu1 %v8623_v63  ;;  %v342_v8 = vmax.f32 %v335_v6, 0.0  ;;  %v8683_v4 = vpack.c.bf16 %v791_v3, %v790_v2  ;;  %v793_v6 = vld [vmem:[#allocation11 + $0x198] sm:$0xff] }
 0x1ac   :  { %v383_v11 = vld [vmem:[#allocation2 + $0x15] sm:$0xff]  ;;  %v384_v12 = vld [vmem:[#allocation2 + $0x1d] sm:$0xff]  ;;  %v386_v16 = vld [vmem:[#allocation2 + $0x2d] sm:$0xff]  ;;  %v8687_v7 = vpack.c.bf16 %v793_v6, %v792_v5 }
 0x1ad   :  { %6786 = vmatprep.mubr.f32.mxu1 %v383_v11  ;;  %353 = vst [vmem:[#allocation2 + $0x3e] sm:$0xff] %v342_v8   ;;  %v358_v44 = vld [vmem:[#allocation2 + $0x18] sm:$0xff]  ;;  %v780_v31 = vld [vmem:[#allocation2 + $0xf] sm:$0xff] }
 0x1ae   :  { %8626 = vmatpush3.bf16.msra.mxu1 %v8623_v63  ;;  %v8679_v63 = vpack.c.bf16 %v658_v62, %v657_v61  ;;  %v634_v8 = vld [vmem:[#allocation2 + $0x12] sm:$0xff]  ;;  %v635_v11 = vld [vmem:[#allocation2 + $0x1a] sm:$0xff]  ;;  %v1350_v61 = vld [vmem:[#allocation14 + $0x1a8] sm:$0xff] }
 0x1af   :  { %8628 = vmatprep.subr.bf16.mxu1 %v8627_v9  ;;  %6787 = vmatmul.mubr.f32.gmra.mrb[2].mxu1 %v384_v12  ;;  %v636_v12 = vld [vmem:[#allocation2 + $0x22] sm:$0xff]  ;;  %v781_v37 = vld [vmem:[#allocation2 + $0x17] sm:$0xff]  ;;  %v1347_v54 = vld [vmem:[#allocation14 + $0x190] sm:$0xff] }
 0x1b0   :  { %6789 = vmatprep.mubr.f32.mxu1 %v385_v14  ;;  %v387_v19 = vld [vmem:[#allocation2 + $0x35] sm:$0xff]  ;;  %v1002_v62 = vld [vmem:[#allocation14 + $0xb0] sm:$0xff] }
 0x1b1   :  { %v361_v50 = vld [vmem:[#allocation2 + $0x30] sm:$0xff] }
 0x1b2   :  { %8630 = vmatpush3.bf16.msra.mxu1 %v8627_v9  ;;  %v794_v9 = vld [vmem:[#allocation11 + $0x1a0] sm:$0xff]  ;;  %v638_v18 = vld [vmem:[#allocation2 + $0x32] sm:$0xff] }
 0x1b3   :  { %8632 = vmatprep.subr.bf16.mxu1 %v8631_v15  ;;  %6790 = vmatmul.mubr.f32.gmra.mrb[4].mxu1 %v386_v16  ;;  %v8691_v14 = vpack.c.bf16 %v795_v10, %v794_v9  ;;  %v797_v16 = vld [vmem:[#allocation11 + $0x1b8] sm:$0xff]  ;;  %v1353_v9 = vld [vmem:[#allocation14 + $0x1c0] sm:$0xff]  ;;  %v1354_v10 = vld [vmem:[#allocation14 + $0x1c8] sm:$0xff] }
 0x1b4   :  { %6792 = vmatprep.mubr.f32.mxu1 %v387_v19  ;;  %v388_v23 = vld [vmem:[#allocation2 + $0x3d] sm:$0xff]  ;;  %v389_v24 = vld [vmem:[#allocation2 + $0x45] sm:$0xff] }
 0x1b5   :  { %v362_v52 = vld [vmem:[#allocation2 + $0x38] sm:$0xff]  ;;  %v363_v55 = vld [vmem:[#allocation2 + $0x40] sm:$0xff]  ;;  %v1351_v3 = vld [vmem:[#allocation14 + $0x1b0] sm:$0xff] }
 0x1b6   :  { %8634 = vmatpush3.bf16.msra.mxu1 %v8631_v15  ;;  %v796_v15 = vld [vmem:[#allocation11 + $0x1b0] sm:$0xff]  ;;  %v798_v19 = vld [vmem:[#allocation11 + $0x1c0] sm:$0xff] }
 0x1b7   :  { %8636 = vmatprep.subr.bf16.mxu1 %v8635_v20  ;;  %6793 = vmatmul.mubr.f32.gmra.mrb[6].mxu1 %v388_v23  ;;  %v8695_v17 = vpack.c.bf16 %v797_v16, %v796_v15  ;;  %v639_v21 = vld [vmem:[#allocation2 + $0x3a] sm:$0xff]  ;;  %v1355_v16 = vld [vmem:[#allocation14 + $0x1d0] sm:$0xff] }
 0x1b8   :  { %6795 = vmatprep.mubr.f32.mxu1 %v389_v24  ;;  %v640_v24 = vld [vmem:[#allocation2 + $0x42] sm:$0xff]  ;;  %v785_v40 = vld [vmem:[#allocation2 + $0x37] sm:$0xff] }
 0x1b9   :  { %v786_v41 = vld [vmem:[#allocation2 + $0x3f] sm:$0xff] }
 0x1ba   :  { %8638 = vmatpush3.bf16.msra.mxu1 %v8635_v20  ;;  %v799_v20 = vld [vmem:[#allocation11 + $0x1c8] sm:$0xff] }
 0x1bb   :  { %8640 = vmatprep.subr.bf16.mxu1 %v8639_v25  ;;  %6796 = vmatmul.mubr.f32.gmra.mrb[8].mxu1 %v390_v28  ;;  %v8699_v23 = vpack.c.bf16 %v799_v20, %v798_v19  ;;  %v1008_v19 = vld [vmem:[#allocation14 + $0xe0] sm:$0xff]  ;;  %v1009_v20 = vld [vmem:[#allocation14 + $0xe8] sm:$0xff] }
 0x1bc   :  { %6830 = vmatprep.mubr.f32.mxu1 %v9958_v1 }
 0x1be   :  { %8642 = vmatpush3.bf16.msra.mxu1 %v8639_v25  ;;  %v800_v25 = vld [vmem:[#allocation11 + $0x1d0] sm:$0xff] }
 0x1bf   :  { %8644 = vmatprep.subr.bf16.mxu1 %v8643_v29  ;;  %v8703_v28 = vpack.c.bf16 %v801_v26, %v800_v25  ;;  %v1010_v25 = vld [vmem:[#allocation14 + $0xf0] sm:$0xff]  ;;  %v1011_v26 = vld [vmem:[#allocation14 + $0xf8] sm:$0xff] }
 0x1c2   :  { %8646 = vmatpush3.bf16.msra.mxu1 %v8643_v29  ;;  %v802_v29 = vld [vmem:[#allocation11 + $0x1e0] sm:$0xff] }
 0x1c3   :  { %8648 = vmatprep.subr.bf16.mxu1 %v8647_v32 }
 0x1c6   :  { %8650 = vmatpush3.bf16.msra.mxu1 %v8647_v32  ;;  %v8707_v32 = vpack.c.bf16 %v803_v30, %v802_v29  ;;  %v1360_v29 = vld [vmem:[#allocation14 + $0x1f8] sm:$0xff] }
 0x1c7   :  { %8652 = vmatprep.subr.bf16.mxu1 %v8651_v35 }
 0x1c9   :  { %6831 = vmatmul.mubr.f32.vlgmr.msra.gmra.mrb[0].mxu1 %v356_v39  ;;  %v784_v39 = vld [vmem:[#allocation2 + $0x2f] sm:$0xff] }
 0x1ca   :  { %6833 = vmatprep.mubr.f32.mxu1 %v357_v42  ;;  %8654 = vmatpush3.bf16.msra.mxu1 %v8651_v35  ;;  %v8711_v35 = vpack.c.bf16 %v805_v34, %v804_v33  ;;  %v787_v42 = vld [vmem:[#allocation2 + $0x47] sm:$0xff] }
 0x1cb   :  { %8656 = vmatprep.subr.bf16.mxu1 %v8655_v38 }
 0x1cd   :  { %6834 = vmatmul.mubr.f32.gmra.mrb[2].mxu1 %v358_v44  ;;  %v789_v44 = vld [vmem:[#allocation2 + $0x57] sm:$0xff] }
 0x1ce   :  { %8658 = vmatpush3.bf16.msra.mxu1 %v8655_v38  ;;  %6836 = vmatprep.mubr.f32.mxu1 %v9958_v1  ;;  %v783_v38 = vld [vmem:[#allocation2 + $0x27] sm:$0xff] }
 0x1cf   :  { %8660 = vmatprep.subr.bf16.mxu1 %v8659_v43 }
 0x1d1   :  { %6837 = vmatmul.mubr.f32.gmra.mrb[10].mxu1 %v9958_v1 }
 0x1d2   :  { %6839 = vmatprep.mubr.f32.mxu1 %v361_v50  ;;  %8662 = vmatpush3.bf16.msra.mxu1 %v8659_v43  ;;  %v788_v43 = vld [vmem:[#allocation2 + $0x4f] sm:$0xff] }
 0x1d3   :  { %8664 = vmatprep.subr.bf16.mxu1 %v8663_v47 }
 0x1d5   :  { %6840 = vmatmul.mubr.f32.gmra.mrb[6].mxu1 %v362_v52  ;;  %v999_v52 = vld [vmem:[#allocation14 + $0x98] sm:$0xff] }
 0x1d6   :  { %6842 = vmatprep.mubr.f32.mxu1 %v363_v55  ;;  %8666 = vmatpush3.bf16.msra.mxu1 %v8663_v47  ;;  %v1345_v47 = vld [vmem:[#allocation14 + $0x180] sm:$0xff]  ;;  %v1348_v55 = vld [vmem:[#allocation14 + $0x198] sm:$0xff] }
 0x1d7   :  { %8668 = vmatprep.subr.bf16.mxu1 %v8667_v51  ;;  %v8788_v50 = vpack.c.bf16 %v1346_v49, %v1345_v47  ;;  %v5745_v47 = vld [vmem:[#allocation12] ss:$0 sm:$0xff] }
 0x1d9   :  { %6843 = vmatmul.mubr.f32.gmra.mrb[12].mxu1 %v9958_v1  ;;  %8789 = vmatpush3.bf16.msra.mxu0 %v8788_v50 }
 0x1da   :  { %8670 = vmatpush3.bf16.msra.mxu1 %v8667_v51  ;;  %6877 = vmatprep.mubr.f32.mxu1 %v633_v59  ;;  %v998_v51 = vld [vmem:[#allocation14 + $0x90] sm:$0xff]  ;;  %v1349_v59 = vld [vmem:[#allocation14 + $0x1a0] sm:$0xff] }
 0x1db   :  { %8672 = vmatprep.subr.bf16.mxu1 %v8671_v56  ;;  %8790 = vmatprep.subr.bf16.mxu0 %v9956_v0  ;;  %v8719_v53 = vpack.c.bf16 %v999_v52, %v998_v51  ;;  %v8794_v2 = vpack.c.bf16 %v1350_v61, %v1349_v59  ;;  %v973_v61 = vld [vmem:[#allocation14] sm:$0xff] }
 0x1de   :  { %8674 = vmatpush3.bf16.msra.mxu1 %v8671_v56  ;;  %v8791_v56 = vpack.c.bf16 %v1348_v55, %v1347_v54 }
 0x1df   :  { %8676 = vmatprep.subr.bf16.mxu1 %v8675_v60 }
 0x1e0   :  { %8792 = vmatpush3.bf16.msra.mxu0 %v8791_v56 }
 0x1e1   :  { %8793 = vmatprep.subr.bf16.mxu0 %v9956_v0 }
 0x1e2   :  { %8678 = vmatpush3.bf16.msra.mxu1 %v8675_v60  ;;  %v8722_v60 = vpack.c.bf16 %v1001_v58, %v1000_v57 }
 0x1e3   :  { %8680 = vmatprep.subr.bf16.mxu1 %v8679_v63 }
 0x1e4   :  { %8795 = vmatpush3.bf16.msra.mxu0 %v8794_v2 }
 0x1e5   :  { %8796 = vmatprep.subr.bf16.mxu0 %v9956_v0 }
 0x1e6   :  { %8682 = vmatpush3.bf16.msra.mxu1 %v8679_v63  ;;  %v1003_v63 = vld [vmem:[#allocation14 + $0xb8] sm:$0xff] }
 0x1e7   :  { %8684 = vmatprep.subr.bf16.mxu1 %v8683_v4  ;;  %v8725_v5 = vpack.c.bf16 %v1003_v63, %v1002_v62  ;;  %v974_v62 = vld [vmem:[#allocation14 + $0x8] sm:$0xff] }
 0x1e9   :  { %6878 = vmatmul.mubr.f32.vlgmr.msra.gmra.mrb[0].mxu1 %v634_v8  ;;  %v1005_v8 = vld [vmem:[#allocation14 + $0xc8] sm:$0xff] }
 0x1ea   :  { %6880 = vmatprep.mubr.f32.mxu1 %v635_v11  ;;  %8686 = vmatpush3.bf16.msra.mxu1 %v8683_v4  ;;  %v1352_v4 = vld [vmem:[#allocation14 + $0x1b8] sm:$0xff] }
 0x1eb   :  { %8688 = vmatprep.subr.bf16.mxu1 %v8687_v7  ;;  %v8797_v6 = vpack.c.bf16 %v1352_v4, %v1351_v3  ;;  %v8740_v4 = vpack.c.bf16 %v974_v62, %v973_v61  ;;  %v1223_v62 = vld [vmem:[#allocation14 + $0x130] sm:$0xff] }
 0x1ed   :  { %6881 = vmatmul.mubr.f32.gmra.mrb[2].mxu1 %v636_v12  ;;  %8798 = vmatpush3.bf16.msra.mxu0 %v8797_v6  ;;  %v8800_v12 = vpack.c.bf16 %v1354_v10, %v1353_v9  ;;  %v975_v6 = vld [vmem:[#allocation14 + $0x10] sm:$0xff] }
 0x1ee   :  { %8690 = vmatpush3.bf16.msra.mxu1 %v8687_v7  ;;  %6883 = vmatprep.mubr.f32.mxu1 %v637_v13  ;;  %v1004_v7 = vld [vmem:[#allocation14 + $0xc0] sm:$0xff]  ;;  %v1006_v13 = vld [vmem:[#allocation14 + $0xd0] sm:$0xff] }
 0x1ef   :  { %8692 = vmatprep.subr.bf16.mxu1 %v8691_v14  ;;  %v8728_v11 = vpack.c.bf16 %v1005_v8, %v1004_v7  ;;  %8799 = vmatprep.subr.bf16.mxu0 %v9956_v0  ;;  %v976_v7 = vld [vmem:[#allocation14 + $0x18] sm:$0xff] }
 0x1f1   :  { %6884 = vmatmul.mubr.f32.gmra.mrb[14].mxu1 %v638_v18  ;;  %8801 = vmatpush3.bf16.msra.mxu0 %v8800_v12 }
 0x1f2   :  { %6886 = vmatprep.mubr.f32.mxu1 %v639_v21  ;;  %8694 = vmatpush3.bf16.msra.mxu1 %v8691_v14  ;;  %v1007_v14 = vld [vmem:[#allocation14 + $0xd8] sm:$0xff]  ;;  %v8734_v21 = vpack.c.bf16 %v1009_v20, %v1008_v19  ;;  %v978_v19 = vld [vmem:[#allocation14 + $0x28] sm:$0xff] }
 0x1f3   :  { %8696 = vmatprep.subr.bf16.mxu1 %v8695_v17  ;;  %v8731_v15 = vpack.c.bf16 %v1007_v14, %v1006_v13  ;;  %8802 = vmatprep.subr.bf16.mxu0 %v9956_v0 }
 0x1f5   :  { %6887 = vmatmul.mubr.f32.gmra.mrb[6].mxu1 %v640_v24 }
 0x1f6   :  { %8698 = vmatpush3.bf16.msra.mxu1 %v8695_v17  ;;  %6889 = vmatprep.mubr.f32.mxu1 %v641_v22  ;;  %v1356_v17 = vld [vmem:[#allocation14 + $0x1d8] sm:$0xff]  ;;  %v1357_v22 = vld [vmem:[#allocation14 + $0x1e0] sm:$0xff] }
 0x1f7   :  { %8700 = vmatprep.subr.bf16.mxu1 %v8699_v23  ;;  %v8803_v18 = vpack.c.bf16 %v1356_v17, %v1355_v16 }
 0x1f9   :  { %6890 = vmatmul.mubr.f32.gmra.mrb[16].mxu1 %v642_v27  ;;  %8804 = vmatpush3.bf16.msra.mxu0 %v8803_v18  ;;  %v8737_v27 = vpack.c.bf16 %v1011_v26, %v1010_v25  ;;  %v977_v18 = vld [vmem:[#allocation14 + $0x20] sm:$0xff]  ;;  %v979_v26 = vld [vmem:[#allocation14 + $0x30] sm:$0xff] }
 0x1fa   :  { %8702 = vmatpush3.bf16.msra.mxu1 %v8699_v23  ;;  %6924 = vmatprep.mubr.f32.mxu1 %v780_v31  ;;  %v1358_v23 = vld [vmem:[#allocation14 + $0x1e8] sm:$0xff] }
 0x1fb   :  { %8704 = vmatprep.subr.bf16.mxu1 %v8703_v28  ;;  %8805 = vmatprep.subr.bf16.mxu0 %v9956_v0  ;;  %v8806_v24 = vpack.c.bf16 %v1358_v23, %v1357_v22 }
 0x1fd   :  { %8807 = vmatpush3.bf16.msra.mxu0 %v8806_v24  ;;  %v8746_v24 = vpack.c.bf16 %v978_v19, %v977_v18 }
 0x1fe   :  { %8706 = vmatpush3.bf16.msra.mxu1 %v8703_v28  ;;  %8808 = vmatprep.subr.bf16.mxu0 %v9956_v0  ;;  %v1359_v28 = vld [vmem:[#allocation14 + $0x1f0] sm:$0xff] }
 0x1ff   :  { %8708 = vmatprep.subr.bf16.mxu1 %v8707_v32  ;;  %v8809_v30 = vpack.c.bf16 %v1360_v29, %v1359_v28 }
 0x201   :  { %8810 = vmatpush3.bf16.msra.mxu0 %v8809_v30 }
 0x202   :  { %8710 = vmatpush3.bf16.msra.mxu1 %v8707_v32 }
 0x203   :  { %8712 = vmatprep.subr.bf16.mxu1 %v8711_v35 }
 0x206   :  { %8714 = vmatpush3.bf16.msra.mxu1 %v8711_v35 }
 0x207   :  { %8715 = vmatprep.subr.bf16.mxu1 %v9956_v0 }
 0x209   :  { %6925 = vmatmul.mubr.f32.vlgmr.msra.gmra.mrb[0].mxu1 %v781_v37 }
 0x20a   :  { %6927 = vmatprep.mubr.f32.mxu1 %v782_v36  ;;  %8717 = vmatpush3.bf16.msra.mxu1 %v8716_v48 }
 0x20b   :  { %8718 = vmatprep.subr.bf16.mxu1 %v9956_v0 }
 0x20d   :  { %6928 = vmatmul.mubr.f32.gmra.mrb[2].mxu1 %v783_v38 }
 0x20e   :  { %6930 = vmatprep.mubr.f32.mxu1 %v784_v39  ;;  %8720 = vmatpush3.bf16.msra.mxu1 %v8719_v53 }
 0x20f   :  { %8721 = vmatprep.subr.bf16.mxu1 %v9956_v0 }
 0x211   :  { %6931 = vmatmul.mubr.f32.gmra.mrb[18].mxu1 %v785_v40 }
 0x212   :  { %6933 = vmatprep.mubr.f32.mxu1 %v786_v41  ;;  %8723 = vmatpush3.bf16.msra.mxu1 %v8722_v60 }
 0x213   :  { %8724 = vmatprep.subr.bf16.mxu1 %v9956_v0 }
 0x215   :  { %6934 = vmatmul.mubr.f32.gmra.mrb[6].mxu1 %v787_v42 }
 0x216   :  { %6936 = vmatprep.mubr.f32.mxu1 %v788_v43  ;;  %8726 = vmatpush3.bf16.msra.mxu1 %v8725_v5 }
 0x217   :  { %8727 = vmatprep.subr.bf16.mxu1 %v9956_v0 }
 0x219   :  { %6937 = vmatmul.mubr.f32.gmra.mrb[20].mxu1 %v789_v44 }
 0x21a   :  { %6971 = vmatprep.mubr.msk.f32.mxu1 %vm9957_vm0, %v9958_v1  ;;  %8729 = vmatpush3.bf16.msra.mxu1 %v8728_v11 }
 0x21b   :  { %8730 = vmatprep.subr.bf16.mxu1 %v9956_v0 }
 0x21e   :  { %8732 = vmatpush3.bf16.msra.mxu1 %v8731_v15  ;;  %v8743_v15 = vpack.c.bf16 %v976_v7, %v975_v6 }
 0x21f   :  { %8733 = vmatprep.subr.bf16.mxu1 %v9956_v0 }
 0x222   :  { %8735 = vmatpush3.bf16.msra.mxu1 %v8734_v21 }
 0x223   :  { %8736 = vmatprep.subr.bf16.mxu1 %v9956_v0 }
 0x226   :  { %8738 = vmatpush3.bf16.msra.mxu1 %v8737_v27  ;;  %v980_v27 = vld [vmem:[#allocation14 + $0x38] sm:$0xff] }
 0x227   :  { %8739 = vmatprep.subr.bf16.mxu1 %v9956_v0 }
 0x286   :  { %v6791_v31 = vpop.f32.mrb[4].mxu1 }
 0x287   :  { %v493_v32 = vpop.f32.mrb[5].mxu1 }
 0x288   :  { %v10272_v32 = vld [vmem:[#allocation2] sm:$0xff] }
 0x28e   :  { %v6797_v33 = vpop.f32.mrb[8].mxu1 }
 0x28f   :  { %v512_v34 = vpop.f32.mrb[9].mxu1  ;;  %v981_v33 = vld [vmem:[#allocation14 + $0x40] sm:$0xff] }
 0x2a4   :  { %v6838_v35 = vpop.f32.mrb[10].mxu1 }
 0x2a5   :  { %v611_v36 = vadd.f32 %v6838_v35, %v6791_v31  ;;  %v606_v37 = vpop.f32.mrb[11].mxu1  ;;  %v8749_v31 = vpack.c.bf16 %v980_v27, %v979_v26  ;;  %v1530_v26 = vld [vmem:[#allocation17 + $0x80] sm:$0xff]  ;;  %v1531_v27 = vld [vmem:[#allocation17 + $0x88] sm:$0xff] }
 0x2a6   :  { %v983_v37 = vld [vmem:[#allocation14 + $0x50] sm:$0xff] }
 0x2ac   :  { %v6844_v38 = vpop.f32.mrb[12].mxu1 }
 0x2ad   :  { %v625_v39 = vpop.f32.mrb[13].mxu1  ;;  %v984_v38 = vld [vmem:[#allocation14 + $0x58] sm:$0xff] }
 0x2ae   :  { %v626_v40 = vadd.f32 %v625_v39, %v512_v34  ;;  %v982_v34 = vld [vmem:[#allocation14 + $0x48] sm:$0xff] }
 0x2c4   :  { %v6885_v41 = vpop.f32.mrb[14].mxu1 }
 0x2c5   :  { %v776_v42 = vadd.f32 %v6885_v41, %v611_v36  ;;  %v745_v43 = vpop.f32.mrb[15].mxu1  ;;  %v8752_v36 = vpack.c.bf16 %v982_v34, %v981_v33  ;;  %v8755_v41 = vpack.c.bf16 %v984_v38, %v983_v37  ;;  %v1534_v33 = vld [vmem:[#allocation17 + $0xa0] sm:$0xff]  ;;  %v1535_v34 = vld [vmem:[#allocation17 + $0xa8] sm:$0xff] }
 0x2c6   :  { %v986_v43 = vld [vmem:[#allocation14 + $0x68] sm:$0xff] }
 0x2c7   :  { %v1538_v38 = vld [vmem:[#allocation17 + $0xc0] sm:$0xff] }
 0x2cc   :  { %v6891_v44 = vpop.f32.mrb[16].mxu1 }
 0x2cd   :  { %v764_v45 = vpop.f32.mrb[17].mxu1 }
 0x2ce   :  { %v779_v46 = vadd.f32 %v764_v45, %v626_v40 }
 0x2dc   :  { %v6926_v48 = vpop.f32.mrb[0].mxu1 }
 0x2dd   :  { %v935_v49 = vadd.f32 %v6926_v48, %v5745_v47  ;;  %v872_v50 = vpop.f32.mrb[1].mxu1  ;;  %v988_v48 = vld [vmem:[#allocation14 + $0x78] sm:$0xff] }
 0x2de   :  { %v934_v51 = vadd.f32 %v5745_v47, %v872_v50 }
 0x2df   :  { %v943_v52 = vmax.f32 %v935_v49, 0.0 }
 0x2e0   :  { %v942_v53 = vmax.f32 %v934_v51, 0.0  ;;  %v6929_v54 = vpop.f32.mrb[2].mxu1  ;;  %v1217_v51 = vld [vmem:[#allocation14 + $0x100] sm:$0xff] }
 0x2e1   :  { %952 = vst [vmem:[#allocation3 + $0x8] sm:$0x7f] %v943_v52   ;;  %954 = vst [vmem:[#allocation3 + $0x8] sm:$0x80] %v943_v52  ;;  %v937_v55 = vadd.f32 %v6929_v54, %v5745_v47  ;;  %v882_v56 = vpop.f32.mrb[3].mxu1  ;;  %v1218_v52 = vld [vmem:[#allocation14 + $0x108] sm:$0xff] }
 0x2e2   :  { %950 = vst [vmem:[#allocation3] sm:$0xff] %v942_v53   ;;  %v936_v57 = vadd.f32 %v5745_v47, %v882_v56  ;;  %v8764_v53 = vpack.c.bf16 %v1218_v52, %v1217_v51  ;;  %v1219_v54 = vld [vmem:[#allocation14 + $0x110] sm:$0xff] }
 0x2e3   :  { %v945_v58 = vmax.f32 %v937_v55, 0.0  ;;  %v1220_v55 = vld [vmem:[#allocation14 + $0x118] sm:$0xff] }
 0x2e4   :  { %v944_v59 = vmax.f32 %v936_v57, 0.0  ;;  %v6932_v60 = vpop.f32.mrb[18].mxu1  ;;  %v8767_v57 = vpack.c.bf16 %v1220_v55, %v1219_v54 }
 0x2e5   :  { %957 = vst [vmem:[#allocation3 + $0x18] sm:$0x1] %v945_v58  ;;  %v923_v63 = vadd.f32 %v6932_v60, %v776_v42  ;;  %v892_v2 = vpop.f32.mrb[19].mxu1  ;;  %v985_v42 = vld [vmem:[#allocation14 + $0x60] sm:$0xff] }
 0x2e6   :  { %955 = vst [vmem:[#allocation3 + $0x10] sm:$0xff] %v944_v59   ;;  %v1221_v58 = vld [vmem:[#allocation14 + $0x120] sm:$0xff]  ;;  %v1222_v59 = vld [vmem:[#allocation14 + $0x128] sm:$0xff] }
 0x2e7   :  { %v938_v3 = vadd.f32 %v5745_v47, %v923_v63  ;;  %v8770_v61 = vpack.c.bf16 %v1222_v59, %v1221_v58  ;;  %v1224_v63 = vld [vmem:[#allocation14 + $0x138] sm:$0xff] }
 0x2e8   :  { %v6935_v5 = vpop.f32.mrb[6].mxu1  ;;  %v967_v60 = vld [vmem:[#allocation3 + $0x8] sm:$0xff] }
 0x2e9   :  { %v946_v8 = vmax.f32 %v938_v3, 0.0  ;;  %v940_v9 = vadd.f32 %v6935_v5, %v5745_v47  ;;  %v901_v10 = vpop.f32.mrb[7].mxu1  ;;  %v989_v11 = vld [vmem:[#allocation3 + $0x1] sm:$0xff]  ;;  %v8773_v3 = vpack.c.bf16 %v1224_v63, %v1223_v62 }
 0x2ea   :  { %v1338_v12 = vld [vmem:[#allocation3 + $0x6] sm:$0xff]  ;;  %v939_v13 = vadd.f32 %v5745_v47, %v901_v10  ;;  %6972 = vmatmul.mubr.f32.vlgmr.msra.gmra.mrb[22].mxu1 %v989_v11 }
 0x2eb   :  { %7131 = vmatmul.mubr.f32.vlgmr.msra.gmra.mrb[10].mxu0 %v1338_v12  ;;  %958 = vst [vmem:[#allocation3 + $0x19] sm:$0xff] %v946_v8   ;;  %v948_v14 = vmax.f32 %v940_v9, 0.0  ;;  %8741 = vmatpush3.bf16.msra.mxu1 %v8740_v4  ;;  %v966_v56 = vld [vmem:[#allocation3] sm:$0xff]  ;;  %v1227_v8 = vld [vmem:[#allocation14 + $0x150] sm:$0xff]  ;;  %v1228_v9 = vld [vmem:[#allocation14 + $0x158] sm:$0xff] }
 0x2ec   :  { %6974 = vmatprep.mubr.msk.f32.mxu1 %vm9957_vm0, %v9958_v1  ;;  %v947_v16 = vmax.f32 %v939_v13, 0.0  ;;  %v6938_v17 = vpop.f32.mrb[20].mxu1  ;;  %8742 = vmatprep.subr.bf16.mxu1 %v9956_v0  ;;  %v1225_v4 = vld [vmem:[#allocation14 + $0x140] sm:$0xff]  ;;  %v1226_v5 = vld [vmem:[#allocation14 + $0x148] sm:$0xff]  ;;  %v8779_v11 = vpack.c.bf16 %v1228_v9, %v1227_v8 }
 0x2ed   :  { %7133 = vmatprep.mubr.msk.f32.mxu0 %vm9957_vm0, %v9958_v1  ;;  %963 = vst [vmem:[#allocation3 + $0x29] sm:$0xff] %v948_v14   ;;  %v911_v20 = vpop.f32.mrb[21].mxu1  ;;  %v990_v21 = vld [vmem:[#allocation3 + $0x9] sm:$0xff]  ;;  %v991_v28 = vld [vmem:[#allocation3 + $0x11] sm:$0xff]  ;;  %v8776_v7 = vpack.c.bf16 %v1226_v5, %v1225_v4  ;;  %v1229_v12 = vld [vmem:[#allocation14 + $0x160] sm:$0xff] }
 0x2ee   :  { %v1339_v22 = vld [vmem:[#allocation3 + $0xe] sm:$0xff]  ;;  %960 = vst [vmem:[#allocation3 + $0x21] sm:$0x7f] %v947_v16   ;;  %962 = vst [vmem:[#allocation3 + $0x21] sm:$0x80] %v947_v16  ;;  %v926_v23 = vadd.f32 %v911_v20, %v779_v46  ;;  %6975 = vmatmul.mubr.f32.gmra.mrb[24].mxu1 %v990_v21  ;;  %v8758_v46 = vpack.c.bf16 %v986_v43, %v985_v42  ;;  %v1230_v13 = vld [vmem:[#allocation14 + $0x168] sm:$0xff] }
 0x2ef   :  { %7134 = vmatmul.mubr.f32.gmra.mrb[12].mxu0 %v1339_v22  ;;  %8744 = vmatpush3.bf16.msra.mxu1 %v8743_v15  ;;  %v968_v2 = vld [vmem:[#allocation3 + $0x10] sm:$0xff]  ;;  %v8782_v15 = vpack.c.bf16 %v1230_v13, %v1229_v12  ;;  %v1210_v20 = vld [vmem:[#allocation3 + $0x5] sm:$0xff] }
 0x2f0   :  { %6977 = vmatprep.mubr.msk.f32.mxu1 %vm9957_vm0, %v9958_v1  ;;  %v941_v25 = vadd.f32 %v5745_v47, %v926_v23  ;;  %8745 = vmatprep.subr.bf16.mxu1 %v9956_v0  ;;  %v987_v47 = vld [vmem:[#allocation14 + $0x70] sm:$0xff]  ;;  %v1232_v17 = vld [vmem:[#allocation14 + $0x178] sm:$0xff] }
 0x2f1   :  { %7136 = vmatprep.mubr.msk.f32.mxu0 %vm9957_vm0, %v9958_v1  ;;  %v8761_v50 = vpack.c.bf16 %v988_v48, %v987_v47  ;;  %v1231_v16 = vld [vmem:[#allocation14 + $0x170] sm:$0xff]  ;;  %v1541_v42 = vld [vmem:[#allocation17 + $0xd8] sm:$0xff] }
 0x2f2   :  { %v949_v29 = vmax.f32 %v941_v25, 0.0  ;;  %6978 = vmatmul.mubr.f32.gmra.mrb[26].mxu1 %v991_v28  ;;  %v1340_v30 = vld [vmem:[#allocation3 + $0x16] sm:$0xff]  ;;  %v8785_v19 = vpack.c.bf16 %v1232_v17, %v1231_v16  ;;  %v1211_v21 = vld [vmem:[#allocation3 + $0xd] sm:$0xff]  ;;  %v8812_v28 = vpack.c.bf16 %v1531_v27, %v1530_v26 }
 0x2f3   :  { %8747 = vmatpush3.bf16.msra.mxu1 %v8746_v24  ;;  %7137 = vmatmul.mubr.f32.gmra.mrb[14].mxu0 %v1340_v30  ;;  %v992_v1 = vld [vmem:[#allocation3 + $0x19] sm:$0xff]  ;;  %v1216_v47 = vld [vmem:[#allocation3 + $0x35] sm:$0x3] }
 0x2f4   :  { %965 = vst [vmem:[#allocation3 + $0x31] sm:$0x1] %v949_v29  ;;  %6980 = vmatprep.mubr.msk.f32.mxu1 %vm9957_vm0, %v10272_v32  ;;  %8748 = vmatprep.subr.bf16.mxu1 %v9956_v0  ;;  %v994_v44 = vld [vmem:[#allocation3 + $0x29] sm:$0xff]  ;;  %v969_v6 = vld [vmem:[#allocation3 + $0x18] sm:$0xff] }
 0x2f5   :  { %7139 = vmatprep.mubr.msk.f32.mxu0 %vm9957_vm0, %v10272_v32  ;;  %v1341_v35 = vld [vmem:[#allocation3 + $0x1e] sm:$0xff]  ;;  %v1342_v40 = vld [vmem:[#allocation3 + $0x26] sm:$0xff]  ;;  %v1212_v22 = vld [vmem:[#allocation3 + $0x15] sm:$0xff] }
 0x2f6   :  { %6981 = vmatmul.mubr.f32.gmra.mrb[28].mxu1 %v992_v1  ;;  %v993_v39 = vld [vmem:[#allocation3 + $0x21] sm:$0xff]  ;;  %v1532_v29 = vld [vmem:[#allocation17 + $0x90] sm:$0xff]  ;;  %v1533_v30 = vld [vmem:[#allocation17 + $0x98] sm:$0xff]  ;;  %v8818_v1 = vpack.c.bf16 %v1535_v34, %v1534_v33 }
 0x2f7   :  { %8750 = vmatpush3.bf16.msra.mxu1 %v8749_v31  ;;  %7140 = vmatmul.mubr.f32.gmra.mrb[16].mxu0 %v1341_v35  ;;  %v970_v10 = vld [vmem:[#allocation3 + $0x20] sm:$0xff]  ;;  %v971_v14 = vld [vmem:[#allocation3 + $0x28] sm:$0xff]  ;;  %v8815_v31 = vpack.c.bf16 %v1533_v30, %v1532_v29 }
 0x2f8   :  { %6983 = vmatprep.mubr.msk.f32.mxu1 %vm9957_vm0, %v10272_v32  ;;  %8751 = vmatprep.subr.bf16.mxu1 %v9956_v0  ;;  %v1213_v23 = vld [vmem:[#allocation3 + $0x1d] sm:$0xff]  ;;  %v1214_v24 = vld [vmem:[#allocation3 + $0x25] sm:$0xff]  ;;  %v1536_v35 = vld [vmem:[#allocation17 + $0xb0] sm:$0xff] }
 0x2f9   :  { %7142 = vmatprep.mubr.msk.f32.mxu0 %vm9957_vm0, %v10272_v32  ;;  %v1544_v48 = vld [vmem:[#allocation17 + $0xf0] sm:$0xff] }
 0x2fa   :  { %6984 = vmatmul.mubr.f32.gmra.mrb[30].mxu1 %v993_v39  ;;  %v1539_v39 = vld [vmem:[#allocation17 + $0xc8] sm:$0xff] }
 0x2fb   :  { %8753 = vmatpush3.bf16.msra.mxu1 %v8752_v36  ;;  %7143 = vmatmul.mubr.f32.gmra.mrb[18].mxu0 %v1342_v40  ;;  %v1343_v45 = vld [vmem:[#allocation3 + $0x2e] sm:$0xff]  ;;  %v1537_v36 = vld [vmem:[#allocation17 + $0xb8] sm:$0xff]  ;;  %v8824_v40 = vpack.c.bf16 %v1539_v39, %v1538_v38 }
 0x2fc   :  { %6986 = vmatprep.mubr.msk.f32.mxu1 %vm9957_vm0, %v10272_v32  ;;  %8754 = vmatprep.subr.bf16.mxu1 %v9956_v0  ;;  %v995_v49 = vld [vmem:[#allocation3 + $0x31] sm:$0x3]  ;;  %v8821_v37 = vpack.c.bf16 %v1537_v36, %v1536_v35  ;;  %v5746_v38 = vld [vmem:[#allocation15] ss:$0 sm:$0xff] }
 0x2fd   :  { %7145 = vmatprep.mubr.msk.f32.mxu0 %vm9957_vm0, %v10272_v32  ;;  %v972_v18 = vld [vmem:[#allocation3 + $0x30] sm:$0x3] }
 0x2fe   :  { %6987 = vmatmul.mubr.f32.gmra.mrb[32].mxu1 %v994_v44  ;;  %v1215_v25 = vld [vmem:[#allocation3 + $0x2d] sm:$0xff]  ;;  %v1542_v44 = vld [vmem:[#allocation17 + $0xe0] sm:$0xff] }
 0x2ff   :  { %8756 = vmatpush3.bf16.msra.mxu1 %v8755_v41  ;;  %7146 = vmatmul.mubr.f32.gmra.mrb[20].mxu0 %v1343_v45  ;;  %v1540_v41 = vld [vmem:[#allocation17 + $0xd0] sm:$0xff]  ;;  %v1543_v45 = vld [vmem:[#allocation17 + $0xe8] sm:$0xff] }
 0x300   :  { %6989 = vmatprep.mubr.msk.f32.mxu1 %vm9957_vm0, %v10272_v32  ;;  %8757 = vmatprep.subr.bf16.mxu1 %v9956_v0  ;;  %v8827_v43 = vpack.c.bf16 %v1541_v42, %v1540_v41 }
 0x301   :  { %7148 = vmatprep.mubr.msk.f32.mxu0 %vm9957_vm0, %v10272_v32 }
 0x302   :  { %6990 = vmatmul.mubr.f32.gmra.mrb[34].mxu1 %v995_v49  ;;  %v1545_v49 = vld [vmem:[#allocation17 + $0xf8] sm:$0xff] }
 0x303   :  { %8759 = vmatpush3.bf16.msra.mxu1 %v8758_v46  ;;  %7024 = vmatprep.mubr.msk.f32.mxu1 %vm9957_vm0, %v10272_v32  ;;  %v8830_v46 = vpack.c.bf16 %v1543_v45, %v1542_v44 }
 0x304   :  { %8760 = vmatprep.subr.bf16.mxu1 %v9956_v0 }
 0x307   :  { %8762 = vmatpush3.bf16.msra.mxu1 %v8761_v50  ;;  %v8833_v50 = vpack.c.bf16 %v1545_v49, %v1544_v48 }
 0x308   :  { %8763 = vmatprep.subr.bf16.mxu1 %v9956_v0 }
 0x30a   :  { %7025 = vmatmul.mubr.f32.vlgmr.msra.gmra.mrb[36].mxu1 %v966_v56 }
 0x30b   :  { %8765 = vmatpush3.bf16.msra.mxu1 %v8764_v53  ;;  %7027 = vmatprep.mubr.msk.f32.mxu1 %vm9957_vm0, %v10272_v32 }
 0x30c   :  { %8766 = vmatprep.subr.bf16.mxu1 %v9956_v0 }
 0x30e   :  { %7028 = vmatmul.mubr.f32.gmra.mrb[38].mxu1 %v967_v60 }
 0x30f   :  { %8768 = vmatpush3.bf16.msra.mxu1 %v8767_v57  ;;  %7030 = vmatprep.mubr.msk.f32.mxu1 %vm9957_vm0, %v10272_v32 }
 0x310   :  { %8769 = vmatprep.subr.bf16.mxu1 %v9956_v0 }
 0x312   :  { %7031 = vmatmul.mubr.f32.gmra.mrb[40].mxu1 %v968_v2 }
 0x313   :  { %8771 = vmatpush3.bf16.msra.mxu1 %v8770_v61  ;;  %7033 = vmatprep.mubr.msk.f32.mxu1 %vm9957_vm0, %v10272_v32 }
 0x314   :  { %8772 = vmatprep.subr.bf16.mxu1 %v9956_v0 }
 0x316   :  { %7034 = vmatmul.mubr.f32.gmra.mrb[42].mxu1 %v969_v6 }
 0x317   :  { %8774 = vmatpush3.bf16.msra.mxu1 %v8773_v3  ;;  %7036 = vmatprep.mubr.msk.f32.mxu1 %vm9957_vm0, %v10272_v32 }
 0x318   :  { %8775 = vmatprep.subr.bf16.mxu1 %v9956_v0 }
 0x31a   :  { %7037 = vmatmul.mubr.f32.gmra.mrb[44].mxu1 %v970_v10 }
 0x31b   :  { %8777 = vmatpush3.bf16.msra.mxu1 %v8776_v7  ;;  %7039 = vmatprep.mubr.msk.f32.mxu1 %vm9957_vm0, %v10272_v32 }
 0x31c   :  { %8778 = vmatprep.subr.bf16.mxu1 %v9956_v0 }
 0x31e   :  { %7040 = vmatmul.mubr.f32.gmra.mrb[46].mxu1 %v971_v14 }
 0x31f   :  { %8780 = vmatpush3.bf16.msra.mxu1 %v8779_v11  ;;  %7042 = vmatprep.mubr.msk.f32.mxu1 %vm9957_vm0, %v10272_v32 }
 0x320   :  { %8781 = vmatprep.subr.bf16.mxu1 %v9956_v0 }
 0x322   :  { %7043 = vmatmul.mubr.f32.gmra.mrb[48].mxu1 %v972_v18 }
 0x323   :  { %8783 = vmatpush3.bf16.msra.mxu1 %v8782_v15  ;;  %7077 = vmatprep.mubr.msk.f32.mxu1 %vm9957_vm0, %v10272_v32 }
 0x324   :  { %8784 = vmatprep.subr.bf16.mxu1 %v9956_v0 }
 0x327   :  { %8786 = vmatpush3.bf16.msra.mxu1 %v8785_v19 }
 0x328   :  { %8811 = vmatprep.subr.bf16.mxu1 %v9956_v0 }
 0x32a   :  { %7078 = vmatmul.mubr.f32.vlgmr.msra.gmra.mrb[50].mxu1 %v1210_v20 }
 0x32b   :  { %7080 = vmatprep.mubr.msk.f32.mxu1 %vm9957_vm0, %v10272_v32  ;;  %8813 = vmatpush3.bf16.msra.mxu1 %v8812_v28 }
 0x32c   :  { %8814 = vmatprep.subr.bf16.mxu1 %v9956_v0 }
 0x32e   :  { %7081 = vmatmul.mubr.f32.gmra.mrb[52].mxu1 %v1211_v21 }
 0x32f   :  { %7083 = vmatprep.mubr.msk.f32.mxu1 %vm9957_vm0, %v10272_v32  ;;  %8816 = vmatpush3.bf16.msra.mxu1 %v8815_v31 }
 0x330   :  { %8817 = vmatprep.subr.bf16.mxu1 %v9956_v0 }
 0x332   :  { %7084 = vmatmul.mubr.f32.gmra.mrb[54].mxu1 %v1212_v22 }
 0x333   :  { %7086 = vmatprep.mubr.msk.f32.mxu1 %vm9957_vm0, %v10272_v32  ;;  %8819 = vmatpush3.bf16.msra.mxu1 %v8818_v1 }
 0x334   :  { %8820 = vmatprep.subr.bf16.mxu1 %v9956_v0 }
 0x336   :  { %7087 = vmatmul.mubr.f32.gmra.mrb[56].mxu1 %v1213_v23 }
 0x337   :  { %7089 = vmatprep.mubr.msk.f32.mxu1 %vm9957_vm0, %v10272_v32  ;;  %8822 = vmatpush3.bf16.msra.mxu1 %v8821_v37 }
 0x338   :  { %8823 = vmatprep.subr.bf16.mxu1 %v9956_v0 }
 0x33a   :  { %7090 = vmatmul.mubr.f32.gmra.mrb[58].mxu1 %v1214_v24 }
 0x33b   :  { %7092 = vmatprep.mubr.msk.f32.mxu1 %vm9957_vm0, %v10272_v32  ;;  %8825 = vmatpush3.bf16.msra.mxu1 %v8824_v40 }
 0x33c   :  { %8826 = vmatprep.subr.bf16.mxu1 %v9956_v0 }
 0x33e   :  { %7093 = vmatmul.mubr.f32.gmra.mrb[60].mxu1 %v1215_v25 }
 0x33f   :  { %7095 = vmatprep.mubr.msk.f32.mxu1 %vm9957_vm0, %v10272_v32  ;;  %8828 = vmatpush3.bf16.msra.mxu1 %v8827_v43 }
 0x340   :  { %8829 = vmatprep.subr.bf16.mxu1 %v9956_v0 }
 0x342   :  { %7096 = vmatmul.mubr.f32.gmra.mrb[62].mxu1 %v1216_v47 }
 0x343   :  { %8831 = vmatpush3.bf16.msra.mxu1 %v8830_v46  ;;  %7183 = vmatprep.mubr.msk.f32.mxu1 %vm9957_vm0, %v10272_v32 }
 0x344   :  { %8832 = vmatprep.subr.bf16.mxu1 %v9956_v0 }
 0x347   :  { %8834 = vmatpush3.bf16.msra.mxu1 %v8833_v50 }
 0x348   :  { %8835 = vmatprep.subr.bf16.mxu1 %v9956_v0 }
 0x3bd   :  { %v1078_v51 = vpop.f32.mrb[22].mxu1 }
 0x3be   :  { %v1427_v52 = vpop.f32.mrb[10].mxu0  ;;  %v6973_v53 = vpop.f32.mrb[23].mxu1 }
 0x3bf   :  { %v7132_v54 = vpop.f32.mrb[11].mxu0  ;;  %v1505_v53 = vld [vmem:[#allocation17] sm:$0xff] }
 0x3c0   :  { %v1506_v54 = vld [vmem:[#allocation17 + $0x8] sm:$0xff] }
 0x3c1   :  { %v1083_v55 = vpop.f32.mrb[24].mxu1 }
 0x3c2   :  { %v1432_v56 = vpop.f32.mrb[12].mxu0  ;;  %v6976_v57 = vpop.f32.mrb[25].mxu1 }
 0x3c3   :  { %v7135_v58 = vpop.f32.mrb[13].mxu0 }
 0x3c5   :  { %v1088_v59 = vpop.f32.mrb[26].mxu1 }
 0x3c6   :  { %v6979_v60 = vpop.f32.mrb[27].mxu1  ;;  %v1437_v61 = vpop.f32.mrb[14].mxu0 }
 0x3c7   :  { %v7138_v62 = vpop.f32.mrb[15].mxu0 }
 0x3c9   :  { %v1093_v63 = vpop.f32.mrb[28].mxu1 }
 0x3ca   :  { %v6982_v2 = vpop.f32.mrb[29].mxu1  ;;  %v1442_v3 = vpop.f32.mrb[16].mxu0 }
 0x3cb   :  { %v7141_v4 = vpop.f32.mrb[17].mxu0 }
 0x3cd   :  { %v1098_v5 = vpop.f32.mrb[30].mxu1 }
 0x3ce   :  { %v6985_v6 = vpop.f32.mrb[31].mxu1  ;;  %v10342_v7 = vpop.f32.mrb[18].mxu0 }
 0x3cf   :  { %v7144_v8 = vpop.f32.mrb[19].mxu0 }
 0x3d1   :  { %v1103_v9 = vpop.f32.mrb[32].mxu1 }
 0x3d2   :  { %v6988_v10 = vpop.f32.mrb[33].mxu1  ;;  %v10344_v11 = vpop.f32.mrb[20].mxu0 }
 0x3d3   :  { %v7147_v12 = vpop.f32.mrb[21].mxu0 }
 0x3d4   :  { %v1510_v12 = vld [vmem:[#allocation17 + $0x28] sm:$0xff] }
 0x3d5   :  { %v1108_v13 = vpop.f32.mrb[34].mxu1 }
 0x3d6   :  { %v6991_v14 = vpop.f32.mrb[35].mxu1 }
 0x3dd   :  { %v1177_v15 = vpop.f32.mrb[36].mxu1 }
 0x3de   :  { %v1178_v16 = vadd.f32 %v1177_v15, %v1078_v51  ;;  %v7026_v17 = vpop.f32.mrb[37].mxu1 }
 0x3e1   :  { %v1182_v18 = vpop.f32.mrb[38].mxu1 }
 0x3e2   :  { %v1183_v19 = vadd.f32 %v1182_v18, %v1083_v55  ;;  %v7029_v20 = vpop.f32.mrb[39].mxu1 }
 0x3e3   :  { %v1511_v20 = vld [vmem:[#allocation17 + $0x30] sm:$0xff] }
 0x3e5   :  { %v1187_v21 = vpop.f32.mrb[40].mxu1 }
 0x3e6   :  { %v1188_v22 = vadd.f32 %v1187_v21, %v1088_v59  ;;  %v7032_v23 = vpop.f32.mrb[41].mxu1  ;;  %v8836_v59 = vpack.c.bf16 %v1506_v54, %v1505_v53  ;;  %v1512_v21 = vld [vmem:[#allocation17 + $0x38] sm:$0xff] }
 0x3e9   :  { %v1192_v24 = vpop.f32.mrb[42].mxu1 }
 0x3ea   :  { %v1193_v25 = vadd.f32 %v1192_v24, %v1093_v63  ;;  %v7035_v26 = vpop.f32.mrb[43].mxu1  ;;  %v1507_v63 = vld [vmem:[#allocation17 + $0x10] sm:$0xff]  ;;  %v8845_v24 = vpack.c.bf16 %v1512_v21, %v1511_v20  ;;  %v1915_v21 = vld [vmem:[#allocation17 + $0x1a0] sm:$0xff] }
 0x3eb   :  { %v1513_v26 = vld [vmem:[#allocation17 + $0x40] sm:$0xff] }
 0x3ed   :  { %v1197_v27 = vpop.f32.mrb[44].mxu1 }
 0x3ee   :  { %v1198_v28 = vadd.f32 %v1197_v27, %v1098_v5  ;;  %v7038_v29 = vpop.f32.mrb[45].mxu1  ;;  %v1514_v27 = vld [vmem:[#allocation17 + $0x48] sm:$0xff] }
 0x3ef   :  { %v8848_v29 = vpack.c.bf16 %v1514_v27, %v1513_v26  ;;  %v1918_v26 = vld [vmem:[#allocation17 + $0x1b8] sm:$0xff] }
 0x3f1   :  { %v1202_v30 = vpop.f32.mrb[46].mxu1 }
 0x3f2   :  { %v1203_v31 = vadd.f32 %v1202_v30, %v1103_v9  ;;  %v7041_v33 = vpop.f32.mrb[47].mxu1  ;;  %v1515_v30 = vld [vmem:[#allocation17 + $0x50] sm:$0xff] }
 0x3f5   :  { %v1207_v34 = vpop.f32.mrb[48].mxu1 }
 0x3f6   :  { %v7044_v1 = vpop.f32.mrb[49].mxu1  ;;  %v1517_v34 = vld [vmem:[#allocation17 + $0x60] sm:$0xff] }
 0x3f7   :  { %v1518_v1 = vld [vmem:[#allocation17 + $0x68] sm:$0xff] }
 0x3fd   :  { %v1299_v35 = vpop.f32.mrb[50].mxu1 }
 0x3fe   :  { %v1332_v36 = vadd.f32 %v1299_v35, %v1178_v16  ;;  %v7079_v37 = vpop.f32.mrb[51].mxu1 }
 0x3ff   :  { %v1519_v37 = vld [vmem:[#allocation17 + $0x70] sm:$0xff] }
 0x400   :  { %v1460_v39 = vadd.f32 %v1427_v52, %v1332_v36  ;;  %v8854_v36 = vpack.c.bf16 %v1518_v1, %v1517_v34  ;;  %v1766_v34 = vld [vmem:[#allocation4 + $0x22] sm:$0xff] }
 0x401   :  { %v1304_v40 = vpop.f32.mrb[52].mxu1 }
 0x402   :  { %v1473_v41 = vadd.f32 %v5746_v38, %v1460_v39  ;;  %v1333_v42 = vadd.f32 %v1304_v40, %v1183_v19  ;;  %v7082_v43 = vpop.f32.mrb[53].mxu1 }
 0x403   :  { %v1771_v43 = vld [vmem:[#allocation17 + $0x100] sm:$0xff] }
 0x404   :  { %v1479_v44 = vmax.f32 %v1473_v41, 0.0  ;;  %v1461_v45 = vadd.f32 %v1432_v56, %v1333_v42  ;;  %v1508_v56 = vld [vmem:[#allocation17 + $0x18] sm:$0xff] }
 0x405   :  { %v1309_v46 = vpop.f32.mrb[54].mxu1  ;;  %v1529_v42 = vld [vmem:[#allocation4 + $0x41] sm:$0xff] }
 0x406   :  { %1485 = vst [vmem:[#allocation4 + $0x7] ss:$5 sps:$4 sm:$0xef] %v1479_v44   ;;  %v1474_v47 = vadd.f32 %v5746_v38, %v1461_v45  ;;  %v1334_v48 = vadd.f32 %v1309_v46, %v1188_v22  ;;  %v7085_v49 = vpop.f32.mrb[55].mxu1  ;;  %v1772_v44 = vld [vmem:[#allocation17 + $0x108] sm:$0xff]  ;;  %v1773_v46 = vld [vmem:[#allocation17 + $0x110] sm:$0xff] }
 0x407   :  { %v8860_v45 = vpack.c.bf16 %v1772_v44, %v1771_v43  ;;  %v1926_v43 = vld [vmem:[#allocation17 + $0x1f8] sm:$0xff] }
 0x408   :  { %v1480_v50 = vmax.f32 %v1474_v47, 0.0  ;;  %v1462_v51 = vadd.f32 %v1437_v61, %v1334_v48  ;;  %v8839_v61 = vpack.c.bf16 %v1508_v56, %v1507_v63  ;;  %v1774_v47 = vld [vmem:[#allocation17 + $0x118] sm:$0xff]  ;;  %v1781_v56 = vld [vmem:[#allocation17 + $0x150] sm:$0xff] }
 0x409   :  { %v1314_v55 = vpop.f32.mrb[56].mxu1  ;;  %v8863_v49 = vpack.c.bf16 %v1774_v47, %v1773_v46  ;;  %v1770_v47 = vld [vmem:[#allocation4 + $0x42] sm:$0xff] }
 0x40a   :  { %1487 = vst [vmem:[#allocation4 + $0x10] ss:$6 sps:$4 sm:$0x81] %v1480_v50   ;;  %1488 = vst [vmem:[#allocation4 + $0x11] sm:$0x3c] %v1480_v50  ;;  %v1475_v57 = vadd.f32 %v5746_v38, %v1462_v51  ;;  %v1335_v52 = vadd.f32 %v1314_v55, %v1193_v25  ;;  %v7088_v58 = vpop.f32.mrb[57].mxu1 }
 0x40b   :  { %v1775_v50 = vld [vmem:[#allocation17 + $0x120] sm:$0xff]  ;;  %v1776_v51 = vld [vmem:[#allocation17 + $0x128] sm:$0xff]  ;;  %v1777_v55 = vld [vmem:[#allocation17 + $0x130] sm:$0xff] }
 0x40c   :  { %v1481_v60 = vmax.f32 %v1475_v57, 0.0  ;;  %v1463_v62 = vadd.f32 %v1442_v3, %v1335_v52  ;;  %v1509_v3 = vld [vmem:[#allocation17 + $0x20] sm:$0xff]  ;;  %v8866_v54 = vpack.c.bf16 %v1776_v51, %v1775_v50  ;;  %v1778_v57 = vld [vmem:[#allocation17 + $0x138] sm:$0xff]  ;;  %v2053_v51 = vld [vmem:[#allocation17 + $0x210] sm:$0xff] }
 0x40d   :  { %v1319_v2 = vpop.f32.mrb[58].mxu1  ;;  %v1521_v4 = vld [vmem:[#allocation4 + $0x1] sm:$0xff]  ;;  %v8842_v18 = vpack.c.bf16 %v1510_v12, %v1509_v3  ;;  %v8869_v58 = vpack.c.bf16 %v1778_v57, %v1777_v55 }
 0x40e   :  { %1490 = vst [vmem:[#allocation4 + $0x1a] sm:$0x7] %v1481_v60  ;;  %v1476_v5 = vadd.f32 %v5746_v38, %v1463_v62  ;;  %v1336_v6 = vadd.f32 %v1319_v2, %v1198_v28  ;;  %v7091_v8 = vpop.f32.mrb[59].mxu1  ;;  %7184 = vmatmul.mubr.f32.vlgmr.msra.gmra.mrb[64].mxu1 %v1521_v4  ;;  %v1525_v28 = vld [vmem:[#allocation4 + $0x21] sm:$0xff]  ;;  %v1780_v60 = vld [vmem:[#allocation17 + $0x148] sm:$0xff] }
 0x40f   :  { %8837 = vmatpush3.bf16.msra.mxu1 %v8836_v59  ;;  %7186 = vmatprep.mubr.msk.f32.mxu1 %vm9957_vm0, %v10272_v32  ;;  %v1496_v48 = vld [vmem:[#allocation4] sm:$0xff]  ;;  %v10377_v53 = vld [vmem:[#allocation4 + $0x8] sm:$0xff] }
 0x410   :  { %v1482_v9 = vmax.f32 %v1476_v5, 0.0  ;;  %v1464_v10 = vadd.f32 %v10342_v7, %v1336_v6  ;;  %8838 = vmatprep.subr.bf16.mxu1 %v9956_v0  ;;  %v1779_v59 = vld [vmem:[#allocation17 + $0x140] sm:$0xff]  ;;  %v1782_v2 = vld [vmem:[#allocation17 + $0x158] sm:$0xff]  ;;  %v1784_v6 = vld [vmem:[#allocation17 + $0x168] sm:$0xff] }
 0x411   :  { %v1324_v13 = vpop.f32.mrb[60].mxu1  ;;  %v1522_v14 = vld [vmem:[#allocation4 + $0x9] sm:$0xff]  ;;  %v1523_v22 = vld [vmem:[#allocation4 + $0x11] sm:$0xff]  ;;  %v8872_v63 = vpack.c.bf16 %v1780_v60, %v1779_v59  ;;  %v8875_v4 = vpack.c.bf16 %v1782_v2, %v1781_v56  ;;  %v2058_v2 = vld [vmem:[#allocation17 + $0x238] sm:$0xff] }
 0x412   :  { %1491 = vst [vmem:[#allocation4 + $0x2a] sm:$0x1e] %v1482_v9  ;;  %1492 = vst [vmem:[#allocation4 + $0x2b] sm:$0xc0] %v1482_v9  ;;  %v1477_v15 = vadd.f32 %v5746_v38, %v1464_v10  ;;  %v1337_v16 = vadd.f32 %v1324_v13, %v1203_v31  ;;  %v7094_v17 = vpop.f32.mrb[61].mxu1  ;;  %7187 = vmatmul.mubr.f32.gmra.mrb[66].mxu1 %v1522_v14  ;;  %v1516_v31 = vld [vmem:[#allocation17 + $0x58] sm:$0xff] }
 0x413   :  { %8840 = vmatpush3.bf16.msra.mxu1 %v8839_v61  ;;  %7189 = vmatprep.mubr.msk.f32.mxu1 %vm9957_vm0, %v10272_v32  ;;  %v8851_v33 = vpack.c.bf16 %v1516_v31, %v1515_v30  ;;  %v10383_v52 = vld [vmem:[#allocation4 + $0x10] sm:$0xff]  ;;  %v1783_v5 = vld [vmem:[#allocation17 + $0x160] sm:$0xff]  ;;  %v1786_v10 = vld [vmem:[#allocation17 + $0x178] sm:$0xff] }
 0x414   :  { %v1483_v19 = vmax.f32 %v1477_v15, 0.0  ;;  %v1465_v7 = vadd.f32 %v10344_v11, %v1337_v16  ;;  %8841 = vmatprep.subr.bf16.mxu1 %v9956_v0  ;;  %v8878_v61 = vpack.c.bf16 %v1784_v6, %v1783_v5  ;;  %v1785_v9 = vld [vmem:[#allocation17 + $0x170] sm:$0xff]  ;;  %v1911_v14 = vld [vmem:[#allocation17 + $0x180] sm:$0xff]  ;;  %v1912_v15 = vld [vmem:[#allocation17 + $0x188] sm:$0xff] }
 0x415   :  { %v1524_v11 = vld [vmem:[#allocation4 + $0x19] sm:$0xff]  ;;  %v8881_v12 = vpack.c.bf16 %v1786_v10, %v1785_v9  ;;  %v8884_v17 = vpack.c.bf16 %v1912_v15, %v1911_v14  ;;  %v1919_v30 = vld [vmem:[#allocation17 + $0x1c0] sm:$0xff]  ;;  %v1920_v31 = vld [vmem:[#allocation17 + $0x1c8] sm:$0xff] }
 0x416   :  { %1493 = vst [vmem:[#allocation4 + $0x33] sm:$0x3] %v1483_v19  ;;  %1494 = vst [vmem:[#allocation4 + $0x34] sm:$0x78] %v1483_v19  ;;  %v1478_v23 = vadd.f32 %v5746_v38, %v1465_v7  ;;  %7190 = vmatmul.mubr.f32.gmra.mrb[68].mxu1 %v1523_v22  ;;  %v1520_v38 = vld [vmem:[#allocation17 + $0x78] sm:$0xff]  ;;  %v1916_v22 = vld [vmem:[#allocation17 + $0x1a8] sm:$0xff]  ;;  %v8896_v1 = vpack.c.bf16 %v1920_v31, %v1919_v30 }
 0x417   :  { %8843 = vmatpush3.bf16.msra.mxu1 %v8842_v18  ;;  %7192 = vmatprep.mubr.msk.f32.mxu1 %vm9957_vm0, %v10272_v32  ;;  %v8857_v40 = vpack.c.bf16 %v1520_v38, %v1519_v37  ;;  %v10389_v62 = vld [vmem:[#allocation4 + $0x18] sm:$0xff]  ;;  %v1762_v7 = vld [vmem:[#allocation4 + $0x2] sm:$0xff]  ;;  %v2056_v59 = vld [vmem:[#allocation17 + $0x228] sm:$0xff] }
 0x418   :  { %v1484_v25 = vmax.f32 %v1478_v23, 0.0  ;;  %8844 = vmatprep.subr.bf16.mxu1 %v9956_v0  ;;  %v1913_v18 = vld [vmem:[#allocation17 + $0x190] sm:$0xff]  ;;  %v1914_v19 = vld [vmem:[#allocation17 + $0x198] sm:$0xff]  ;;  %v1763_v23 = vld [vmem:[#allocation4 + $0xa] sm:$0xff] }
 0x419   :  { %v1526_v35 = vld [vmem:[#allocation4 + $0x29] sm:$0xff]  ;;  %v8887_v20 = vpack.c.bf16 %v1914_v19, %v1913_v18  ;;  %v1764_v27 = vld [vmem:[#allocation4 + $0x12] sm:$0xff]  ;;  %v10462_v5 = vld [vmem:[#allocation4 + $0x1e] sm:$0xff] }
 0x41a   :  { %1495 = vst [vmem:[#allocation4 + $0x3d] sm:$0xf] %v1484_v25  ;;  %7193 = vmatmul.mubr.f32.gmra.mrb[70].mxu1 %v1524_v11  ;;  %v10399_v8 = vld [vmem:[#allocation4 + $0x28] sm:$0xff]  ;;  %v1917_v25 = vld [vmem:[#allocation17 + $0x1b0] sm:$0xff]  ;;  %v1329_v11 = vpop.f32.mrb[62].mxu1  ;;  %v2062_v14 = vld [vmem:[#allocation17 + $0x258] sm:$0xff] }
 0x41b   :  { %8846 = vmatpush3.bf16.msra.mxu1 %v8845_v24  ;;  %7195 = vmatprep.mubr.msk.f32.mxu1 %vm9957_vm0, %v10272_v32  ;;  %v8890_v24 = vpack.c.bf16 %v1916_v22, %v1915_v21  ;;  %v1923_v38 = vld [vmem:[#allocation17 + $0x1e0] sm:$0xff]  ;;  %v10451_v60 = vld [vmem:[#allocation4 + $0xe] sm:$0xff]  ;;  %v2057_v56 = vld [vmem:[#allocation17 + $0x230] sm:$0xff] }
 0x41c   :  { %8847 = vmatprep.subr.bf16.mxu1 %v9956_v0  ;;  %v1902_v55 = vld [vmem:[#allocation4 + $0x6] sm:$0xff]  ;;  %v8917_v6 = vpack.c.bf16 %v2058_v2, %v2057_v56  ;;  %v2060_v9 = vld [vmem:[#allocation17 + $0x248] sm:$0xff]  ;;  %v2065_v21 = vld [vmem:[#allocation17 + $0x270] sm:$0xff] }
 0x41d   :  { %v1527_v39 = vld [vmem:[#allocation4 + $0x31] sm:$0xff]  ;;  %v10469_v15 = vld [vmem:[#allocation4 + $0x26] sm:$0xff]  ;;  %v2066_v22 = vld [vmem:[#allocation17 + $0x278] sm:$0xff] }
 0x41e   :  { %7196 = vmatmul.mubr.f32.gmra.mrb[72].mxu1 %v1525_v28  ;;  %v10405_v3 = vld [vmem:[#allocation4 + $0x30] sm:$0xff]  ;;  %v7097_v28 = vpop.f32.mrb[63].mxu1  ;;  %v2063_v18 = vld [vmem:[#allocation17 + $0x260] sm:$0xff]  ;;  %v2194_v30 = vld [vmem:[#allocation17 + $0x298] sm:$0xff] }
 0x41f   :  { %8849 = vmatpush3.bf16.msra.mxu1 %v8848_v29  ;;  %7198 = vmatprep.mubr.msk.f32.mxu1 %vm9957_vm0, %v10272_v32  ;;  %v8893_v29 = vpack.c.bf16 %v1918_v26, %v1917_v25  ;;  %v1768_v44 = vld [vmem:[#allocation4 + $0x32] sm:$0xff]  ;;  %v8929_v25 = vpack.c.bf16 %v2066_v22, %v2065_v21  ;;  %v10494_v26 = vld [vmem:[#allocation4 + $0x46] sm:$0xff] }
 0x420   :  { %8850 = vmatprep.subr.bf16.mxu1 %v9956_v0  ;;  %v2064_v19 = vld [vmem:[#allocation17 + $0x268] sm:$0xff]  ;;  %v2331_v2 = vld [vmem:[#allocation17 + $0x300] sm:$0xff] }
 0x421   :  { %v1528_v41 = vld [vmem:[#allocation4 + $0x39] sm:$0xff]  ;;  %v2192_v11 = vld [vmem:[#allocation17 + $0x288] sm:$0xff]  ;;  %v2339_v21 = vld [vmem:[#allocation17 + $0x340] sm:$0xff] }
 0x422   :  { %7199 = vmatmul.mubr.f32.gmra.mrb[74].mxu1 %v1526_v35  ;;  %v10411_v13 = vld [vmem:[#allocation4 + $0x38] sm:$0xff]  ;;  %v10417_v16 = vld [vmem:[#allocation4 + $0x40] sm:$0xff] }
 0x423   :  { %7201 = vmatprep.mubr.msk.f32.mxu1 %vm9957_vm0, %v10272_v32  ;;  %8852 = vmatpush3.bf16.msra.mxu1 %v8851_v33  ;;  %v1765_v33 = vld [vmem:[#allocation4 + $0x1a] sm:$0xff]  ;;  %v2042_v31 = vld [vmem:[#allocation4 + $0x7] sm:$0xff] }
 0x424   :  { %8853 = vmatprep.subr.bf16.mxu1 %v9956_v0  ;;  %v1921_v35 = vld [vmem:[#allocation17 + $0x1d0] sm:$0xff]  ;;  %v2050_v56 = vld [vmem:[#allocation4 + $0x47] sm:$0xff] }
 0x425   :  { %v1769_v46 = vld [vmem:[#allocation4 + $0x3a] sm:$0xff] }
 0x426   :  { %7202 = vmatmul.mubr.f32.gmra.mrb[76].mxu1 %v1527_v39  ;;  %v1924_v39 = vld [vmem:[#allocation17 + $0x1e8] sm:$0xff] }
 0x427   :  { %7204 = vmatprep.mubr.msk.f32.mxu1 %vm9957_vm0, %v10272_v32  ;;  %8855 = vmatpush3.bf16.msra.mxu1 %v8854_v36  ;;  %v1922_v36 = vld [vmem:[#allocation17 + $0x1d8] sm:$0xff] }
 0x428   :  { %8856 = vmatprep.subr.bf16.mxu1 %v9956_v0  ;;  %v8899_v37 = vpack.c.bf16 %v1922_v36, %v1921_v35  ;;  %v2043_v35 = vld [vmem:[#allocation4 + $0xf] sm:$0xff] }
 0x42a   :  { %7205 = vmatmul.mubr.f32.gmra.mrb[78].mxu1 %v1528_v41  ;;  %v8902_v41 = vpack.c.bf16 %v1924_v39, %v1923_v38  ;;  %v2198_v38 = vld [vmem:[#allocation17 + $0x2b8] sm:$0xff] }
 0x42b   :  { %7207 = vmatprep.mubr.msk.f32.mxu1 %vm9957_vm0, %v10272_v32  ;;  %8858 = vmatpush3.bf16.msra.mxu1 %v8857_v40  ;;  %v1767_v40 = vld [vmem:[#allocation4 + $0x2a] sm:$0xff]  ;;  %v2044_v39 = vld [vmem:[#allocation4 + $0x17] sm:$0xff] }
 0x42c   :  { %8859 = vmatprep.subr.bf16.mxu1 %v9956_v0 }
 0x42e   :  { %7208 = vmatmul.mubr.f32.gmra.mrb[80].mxu1 %v1529_v42  ;;  %v1925_v42 = vld [vmem:[#allocation17 + $0x1f0] sm:$0xff] }
 0x42f   :  { %7242 = vmatprep.mubr.msk.f32.mxu1 %vm9957_vm0, %v10272_v32 }
 0x432   :  { %7243 = vmatmul.mubr.f32.vlgmr.msra.gmra.mrb[82].mxu1 %v1496_v48  ;;  %v2051_v48 = vld [vmem:[#allocation17 + $0x200] sm:$0xff] }
 0x433   :  { %8861 = vmatpush3.bf16.msra.mxu1 %v8860_v45  ;;  %7245 = vmatprep.mubr.msk.f32.mxu1 %vm9957_vm0, %v10272_v32  ;;  %v8905_v45 = vpack.c.bf16 %v1926_v43, %v1925_v42  ;;  %v2199_v42 = vld [vmem:[#allocation17 + $0x2c0] sm:$0xff]  ;;  %v2200_v43 = vld [vmem:[#allocation17 + $0x2c8] sm:$0xff] }
 0x434   :  { %8862 = vmatprep.subr.bf16.mxu1 %v9956_v0 }
 0x436   :  { %7246 = vmatmul.mubr.f32.gmra.mrb[84].mxu1 %v10377_v53 }
 0x437   :  { %8864 = vmatpush3.bf16.msra.mxu1 %v8863_v49  ;;  %7248 = vmatprep.mubr.msk.f32.mxu1 %vm9957_vm0, %v10272_v32  ;;  %v2052_v49 = vld [vmem:[#allocation17 + $0x208] sm:$0xff] }
 0x438   :  { %8865 = vmatprep.subr.bf16.mxu1 %v9956_v0  ;;  %v8908_v50 = vpack.c.bf16 %v2052_v49, %v2051_v48  ;;  %v2203_v49 = vld [vmem:[#allocation17 + $0x2e0] sm:$0xff] }
 0x43a   :  { %7249 = vmatmul.mubr.f32.gmra.mrb[86].mxu1 %v10383_v52 }
 0x43b   :  { %8867 = vmatpush3.bf16.msra.mxu1 %v8866_v54  ;;  %7251 = vmatprep.mubr.msk.f32.mxu1 %vm9957_vm0, %v10272_v32  ;;  %v2054_v54 = vld [vmem:[#allocation17 + $0x218] sm:$0xff] }
 0x43c   :  { %8868 = vmatprep.subr.bf16.mxu1 %v9956_v0  ;;  %v8911_v57 = vpack.c.bf16 %v2054_v54, %v2053_v51  ;;  %v2047_v51 = vld [vmem:[#allocation4 + $0x2f] sm:$0xff] }
 0x43e   :  { %7252 = vmatmul.mubr.f32.gmra.mrb[88].mxu1 %v10389_v62 }
 0x43f   :  { %8870 = vmatpush3.bf16.msra.mxu1 %v8869_v58  ;;  %7254 = vmatprep.mubr.msk.f32.mxu1 %vm9957_vm0, %v10272_v32  ;;  %v2055_v58 = vld [vmem:[#allocation17 + $0x220] sm:$0xff] }
 0x440   :  { %8871 = vmatprep.subr.bf16.mxu1 %v9956_v0 }
 0x442   :  { %7255 = vmatmul.mubr.f32.gmra.mrb[90].mxu1 %v10272_v32 }
 0x443   :  { %8873 = vmatpush3.bf16.msra.mxu1 %v8872_v63  ;;  %7257 = vmatprep.mubr.msk.f32.mxu1 %vm9957_vm0, %v10272_v32  ;;  %v8914_v63 = vpack.c.bf16 %v2056_v59, %v2055_v58  ;;  %v2048_v58 = vld [vmem:[#allocation4 + $0x37] sm:$0xff] }
 0x444   :  { %8874 = vmatprep.subr.bf16.mxu1 %v9956_v0 }
 0x446   :  { %7258 = vmatmul.mubr.f32.gmra.mrb[92].mxu1 %v10399_v8 }
 0x447   :  { %7260 = vmatprep.mubr.msk.f32.mxu1 %vm9957_vm0, %v10272_v32  ;;  %8876 = vmatpush3.bf16.msra.mxu1 %v8875_v4  ;;  %v10457_v4 = vld [vmem:[#allocation4 + $0x16] sm:$0xff] }
 0x448   :  { %8877 = vmatprep.subr.bf16.mxu1 %v9956_v0 }
 0x44a   :  { %7261 = vmatmul.mubr.f32.gmra.mrb[94].mxu1 %v10405_v3 }
 0x44b   :  { %7263 = vmatprep.mubr.msk.f32.mxu1 %vm9957_vm0, %v10272_v32  ;;  %8879 = vmatpush3.bf16.msra.mxu1 %v8878_v61  ;;  %v2059_v61 = vld [vmem:[#allocation17 + $0x240] sm:$0xff] }
 0x44c   :  { %8880 = vmatprep.subr.bf16.mxu1 %v9956_v0  ;;  %v8920_v10 = vpack.c.bf16 %v2060_v9, %v2059_v61  ;;  %v2333_v9 = vld [vmem:[#allocation17 + $0x310] sm:$0xff] }
 0x44e   :  { %7264 = vmatmul.mubr.f32.gmra.mrb[96].mxu1 %v10411_v13 }
 0x44f   :  { %7266 = vmatprep.mubr.msk.f32.mxu1 %vm9957_vm0, %v10272_v32  ;;  %8882 = vmatpush3.bf16.msra.mxu1 %v8881_v12  ;;  %v2061_v12 = vld [vmem:[#allocation17 + $0x250] sm:$0xff] }
 0x450   :  { %8883 = vmatprep.subr.bf16.mxu1 %v9956_v0 }
 0x452   :  { %7267 = vmatmul.mubr.f32.gmra.mrb[98].mxu1 %v10417_v16 }
 0x453   :  { %7301 = vmatprep.mubr.msk.f32.mxu1 %vm9957_vm0, %v10272_v32 }
 0x456   :  { %7302 = vmatmul.mubr.f32.vlgmr.msra.gmra.mrb[100].mxu1 %v1762_v7  ;;  %v10475_v7 = vld [vmem:[#allocation4 + $0x2e] sm:$0xff] }
 0x457   :  { %8885 = vmatpush3.bf16.msra.mxu1 %v8884_v17  ;;  %7304 = vmatprep.mubr.msk.f32.mxu1 %vm9957_vm0, %v10272_v32  ;;  %v8923_v17 = vpack.c.bf16 %v2062_v14, %v2061_v12  ;;  %v2335_v14 = vld [vmem:[#allocation17 + $0x320] sm:$0xff] }
 0x458   :  { %8886 = vmatprep.subr.bf16.mxu1 %v9956_v0 }
 0x45a   :  { %7305 = vmatmul.mubr.f32.gmra.mrb[102].mxu1 %v1763_v23  ;;  %v10481_v23 = vld [vmem:[#allocation4 + $0x36] sm:$0xff] }
 0x45b   :  { %8888 = vmatpush3.bf16.msra.mxu1 %v8887_v20  ;;  %7307 = vmatprep.mubr.msk.f32.mxu1 %vm9957_vm0, %v10272_v32  ;;  %v8926_v20 = vpack.c.bf16 %v2064_v19, %v2063_v18  ;;  %v2337_v19 = vld [vmem:[#allocation17 + $0x330] sm:$0xff] }
 0x45c   :  { %8889 = vmatprep.subr.bf16.mxu1 %v9956_v0 }
 0x45e   :  { %7308 = vmatmul.mubr.f32.gmra.mrb[104].mxu1 %v1764_v27  ;;  %v2191_v27 = vld [vmem:[#allocation17 + $0x280] sm:$0xff] }
 0x45f   :  { %8891 = vmatpush3.bf16.msra.mxu1 %v8890_v24  ;;  %7310 = vmatprep.mubr.msk.f32.mxu1 %vm9957_vm0, %v10272_v32  ;;  %v10484_v24 = vld [vmem:[#allocation2] sm:$0xff]  ;;  %v8932_v28 = vpack.c.bf16 %v2192_v11, %v2191_v27 }
 0x460   :  { %8892 = vmatprep.subr.bf16.mxu1 %v9956_v0  ;;  %v2343_v11 = vld [vmem:[#allocation17 + $0x360] sm:$0xff] }
 0x462   :  { %7311 = vmatmul.mubr.f32.gmra.mrb[106].mxu1 %v1765_v33 }
 0x463   :  { %8894 = vmatpush3.bf16.msra.mxu1 %v8893_v29  ;;  %7313 = vmatprep.mubr.msk.f32.mxu1 %vm9957_vm0, %v10272_v32  ;;  %v2193_v29 = vld [vmem:[#allocation17 + $0x290] sm:$0xff] }
 0x464   :  { %8895 = vmatprep.subr.bf16.mxu1 %v9956_v0  ;;  %v8935_v33 = vpack.c.bf16 %v2194_v30, %v2193_v29  ;;  %v2345_v30 = vld [vmem:[#allocation17 + $0x370] sm:$0xff] }
 0x466   :  { %7314 = vmatmul.mubr.f32.gmra.mrb[108].mxu1 %v1766_v34  ;;  %v2195_v34 = vld [vmem:[#allocation17 + $0x2a0] sm:$0xff] }
 0x467   :  { %8897 = vmatpush3.bf16.msra.mxu1 %v8896_v1  ;;  %7316 = vmatprep.mubr.msk.f32.mxu1 %vm9957_vm0, %v10272_v32  ;;  %v2196_v1 = vld [vmem:[#allocation17 + $0x2a8] sm:$0xff] }
 0x468   :  { %8898 = vmatprep.subr.bf16.mxu1 %v9956_v0  ;;  %v8938_v36 = vpack.c.bf16 %v2196_v1, %v2195_v34 }
 0x46a   :  { %7317 = vmatmul.mubr.f32.gmra.mrb[110].mxu1 %v1767_v40  ;;  %v2045_v40 = vld [vmem:[#allocation4 + $0x1f] sm:$0xff] }
 0x46b   :  { %7319 = vmatprep.mubr.msk.f32.mxu1 %vm9957_vm0, %v10272_v32  ;;  %8900 = vmatpush3.bf16.msra.mxu1 %v8899_v37  ;;  %v2197_v37 = vld [vmem:[#allocation17 + $0x2b0] sm:$0xff] }
 0x46c   :  { %8901 = vmatprep.subr.bf16.mxu1 %v9956_v0 }
 0x46e   :  { %7320 = vmatmul.mubr.f32.gmra.mrb[112].mxu1 %v1768_v44  ;;  %v8944_v44 = vpack.c.bf16 %v2200_v43, %v2199_v42  ;;  %v2323_v43 = vld [vmem:[#allocation4 + $0x14] sm:$0xff] }
 0x46f   :  { %7322 = vmatprep.mubr.msk.f32.mxu1 %vm9957_vm0, %v10272_v32  ;;  %8903 = vmatpush3.bf16.msra.mxu1 %v8902_v41  ;;  %v8941_v41 = vpack.c.bf16 %v2198_v38, %v2197_v37  ;;  %v2322_v37 = vld [vmem:[#allocation4 + $0xc] sm:$0xff] }
 0x470   :  { %8904 = vmatprep.subr.bf16.mxu1 %v9956_v0 }
 0x472   :  { %7323 = vmatmul.mubr.f32.gmra.mrb[114].mxu1 %v1769_v46  ;;  %v2202_v46 = vld [vmem:[#allocation17 + $0x2d8] sm:$0xff] }
 0x473   :  { %7325 = vmatprep.mubr.msk.f32.mxu1 %vm9957_vm0, %v10272_v32  ;;  %8906 = vmatpush3.bf16.msra.mxu1 %v8905_v45  ;;  %v2201_v45 = vld [vmem:[#allocation17 + $0x2d0] sm:$0xff] }
 0x474   :  { %8907 = vmatprep.subr.bf16.mxu1 %v9956_v0  ;;  %v8947_v48 = vpack.c.bf16 %v2202_v46, %v2201_v45  ;;  %v2477_v46 = vld [vmem:[#allocation17 + $0x3b0] sm:$0xff] }
 0x476   :  { %7326 = vmatmul.mubr.f32.gmra.mrb[116].mxu1 %v1770_v47  ;;  %v2046_v47 = vld [vmem:[#allocation4 + $0x27] sm:$0xff] }
 0x477   :  { %7360 = vmatprep.mubr.msk.f32.mxu1 %vm9957_vm0, %v10272_v32 }
 0x47a   :  { %7361 = vmatmul.mubr.f32.vlgmr.msra.gmra.mrb[118].mxu1 %v1902_v55  ;;  %v2205_v55 = vld [vmem:[#allocation17 + $0x2f0] sm:$0xff] }
 0x47b   :  { %8909 = vmatpush3.bf16.msra.mxu1 %v8908_v50  ;;  %7363 = vmatprep.mubr.msk.f32.mxu1 %vm9957_vm0, %v10272_v32  ;;  %v2204_v50 = vld [vmem:[#allocation17 + $0x2e8] sm:$0xff] }
 0x47c   :  { %8910 = vmatprep.subr.bf16.mxu1 %v9956_v0  ;;  %v8950_v54 = vpack.c.bf16 %v2204_v50, %v2203_v49  ;;  %v2324_v49 = vld [vmem:[#allocation4 + $0x1c] sm:$0xff] }
 0x47e   :  { %7364 = vmatmul.mubr.f32.gmra.mrb[120].mxu1 %v10451_v60 }
 0x47f   :  { %8912 = vmatpush3.bf16.msra.mxu1 %v8911_v57  ;;  %7366 = vmatprep.mubr.msk.f32.mxu1 %vm9957_vm0, %v10272_v32  ;;  %v2206_v57 = vld [vmem:[#allocation17 + $0x2f8] sm:$0xff] }
 0x480   :  { %8913 = vmatprep.subr.bf16.mxu1 %v9956_v0  ;;  %v8953_v59 = vpack.c.bf16 %v2206_v57, %v2205_v55  ;;  %v2480_v55 = vld [vmem:[#allocation17 + $0x3c8] sm:$0xff] }
 0x482   :  { %7367 = vmatmul.mubr.f32.gmra.mrb[122].mxu1 %v10457_v4 }
 0x483   :  { %8915 = vmatpush3.bf16.msra.mxu1 %v8914_v63  ;;  %7369 = vmatprep.mubr.msk.f32.mxu1 %vm9957_vm0, %v10272_v32  ;;  %v2049_v63 = vld [vmem:[#allocation4 + $0x3f] sm:$0xff] }
 0x484   :  { %8916 = vmatprep.subr.bf16.mxu1 %v9956_v0 }
 0x486   :  { %7370 = vmatmul.mubr.f32.gmra.mrb[124].mxu1 %v10462_v5 }
 0x487   :  { %8918 = vmatpush3.bf16.msra.mxu1 %v8917_v6  ;;  %7372 = vmatprep.mubr.msk.f32.mxu1 %vm9957_vm0, %v10272_v32  ;;  %v2332_v6 = vld [vmem:[#allocation17 + $0x308] sm:$0xff] }
 0x488   :  { %8919 = vmatprep.subr.bf16.mxu1 %v9956_v0  ;;  %v8956_v61 = vpack.c.bf16 %v2332_v6, %v2331_v2  ;;  %v2482_v2 = vld [vmem:[#allocation17 + $0x3d8] sm:$0xff] }
 0x48a   :  { %7373 = vmatmul.mubr.f32.gmra.mrb[126].mxu1 %v10469_v15 }
 0x48b   :  { %8921 = vmatpush3.bf16.msra.mxu1 %v8920_v10  ;;  %7375 = vmatprep.mubr.msk.f32.mxu1 %vm9957_vm0, %v10272_v32  ;;  %v2334_v10 = vld [vmem:[#allocation17 + $0x318] sm:$0xff] }
 0x48c   :  { %8922 = vmatprep.subr.bf16.mxu1 %v9956_v0  ;;  %v8959_v12 = vpack.c.bf16 %v2334_v10, %v2333_v9 }
 0x48e   :  { %7376 = vmatmul.mubr.f32.gmra.mrb[128].mxu1 %v10475_v7 }
 0x48f   :  { %7378 = vmatprep.mubr.msk.f32.mxu1 %vm9957_vm0, %v10272_v32  ;;  %8924 = vmatpush3.bf16.msra.mxu1 %v8923_v17  ;;  %v10489_v32 = vld [vmem:[#allocation4 + $0x3e] sm:$0xff]  ;;  %v2336_v17 = vld [vmem:[#allocation17 + $0x328] sm:$0xff] }
 0x490   :  { %8925 = vmatprep.subr.bf16.mxu1 %v9956_v0  ;;  %v8962_v18 = vpack.c.bf16 %v2336_v17, %v2335_v14  ;;  %v2484_v14 = vld [vmem:[#allocation17 + $0x3e8] sm:$0xff] }
 0x492   :  { %7379 = vmatmul.mubr.f32.gmra.mrb[130].mxu1 %v10481_v23 }
 0x493   :  { %7381 = vmatprep.mubr.msk.f32.mxu1 %vm9957_vm0, %v10484_v24  ;;  %8927 = vmatpush3.bf16.msra.mxu1 %v8926_v20 }
 0x494   :  { %8928 = vmatprep.subr.bf16.mxu1 %v9956_v0 }
 0x496   :  { %7382 = vmatmul.mubr.f32.gmra.mrb[132].mxu1 %v10489_v32 }
 0x497   :  { %7384 = vmatprep.mubr.msk.f32.mxu1 %vm9957_vm0, %v10484_v24  ;;  %8930 = vmatpush3.bf16.msra.mxu1 %v8929_v25  ;;  %v2341_v25 = vld [vmem:[#allocation17 + $0x350] sm:$0xff] }
 0x498   :  { %8931 = vmatprep.subr.bf16.mxu1 %v9956_v0 }
 0x49a   :  { %7385 = vmatmul.mubr.f32.gmra.mrb[134].mxu1 %v10494_v26 }
 0x49b   :  { %7419 = vmatprep.mubr.msk.f32.mxu1 %vm9957_vm0, %v10484_v24 }
 0x49e   :  { %7420 = vmatmul.mubr.f32.vlgmr.msra.gmra.mrb[136].mxu1 %v2042_v31 }
 0x49f   :  { %8933 = vmatpush3.bf16.msra.mxu1 %v8932_v28  ;;  %7422 = vmatprep.mubr.msk.f32.mxu1 %vm9957_vm0, %v10484_v24  ;;  %v2344_v28 = vld [vmem:[#allocation17 + $0x368] sm:$0xff] }
 0x4a0   :  { %8934 = vmatprep.subr.bf16.mxu1 %v9956_v0  ;;  %v8974_v29 = vpack.c.bf16 %v2344_v28, %v2343_v11 }
 0x4a2   :  { %7423 = vmatmul.mubr.f32.gmra.mrb[138].mxu1 %v2043_v35  ;;  %v2473_v35 = vld [vmem:[#allocation17 + $0x390] sm:$0xff] }
 0x4a3   :  { %8936 = vmatpush3.bf16.msra.mxu1 %v8935_v33  ;;  %7425 = vmatprep.mubr.msk.f32.mxu1 %vm9957_vm0, %v10484_v24  ;;  %v2472_v33 = vld [vmem:[#allocation17 + $0x388] sm:$0xff] }
 0x4a4   :  { %8937 = vmatprep.subr.bf16.mxu1 %v9956_v0 }
 0x4a6   :  { %7426 = vmatmul.mubr.f32.gmra.mrb[140].mxu1 %v2044_v39 }
 0x4a7   :  { %8939 = vmatpush3.bf16.msra.mxu1 %v8938_v36  ;;  %7428 = vmatprep.mubr.msk.f32.mxu1 %vm9957_vm0, %v10484_v24  ;;  %v2474_v36 = vld [vmem:[#allocation17 + $0x398] sm:$0xff] }
 0x4a8   :  { %8940 = vmatprep.subr.bf16.mxu1 %v9956_v0  ;;  %v8983_v39 = vpack.c.bf16 %v2474_v36, %v2473_v35  ;;  %v2614_v35 = vld [vmem:[#allocation17 + $0x418] sm:$0xff] }
 0x4aa   :  { %7429 = vmatmul.mubr.f32.gmra.mrb[142].mxu1 %v2045_v40  ;;  %v2475_v40 = vld [vmem:[#allocation17 + $0x3a0] sm:$0xff] }
 0x4ab   :  { %8942 = vmatpush3.bf16.msra.mxu1 %v8941_v41  ;;  %7431 = vmatprep.mubr.msk.f32.mxu1 %vm9957_vm0, %v10484_v24  ;;  %v2476_v41 = vld [vmem:[#allocation17 + $0x3a8] sm:$0xff] }
 0x4ac   :  { %8943 = vmatprep.subr.bf16.mxu1 %v9956_v0  ;;  %v8986_v45 = vpack.c.bf16 %v2476_v41, %v2475_v40  ;;  %v2615_v40 = vld [vmem:[#allocation17 + $0x420] sm:$0xff]  ;;  %v2616_v41 = vld [vmem:[#allocation17 + $0x428] sm:$0xff] }
 0x4ae   :  { %7432 = vmatmul.mubr.f32.gmra.mrb[144].mxu1 %v2046_v47  ;;  %v2478_v47 = vld [vmem:[#allocation17 + $0x3b8] sm:$0xff] }
 0x4af   :  { %8945 = vmatpush3.bf16.msra.mxu1 %v8944_v44  ;;  %7434 = vmatprep.mubr.msk.f32.mxu1 %vm9957_vm0, %v10484_v24 }
 0x4b0   :  { %8946 = vmatprep.subr.bf16.mxu1 %v9956_v0 }
 0x4b2   :  { %7435 = vmatmul.mubr.f32.gmra.mrb[146].mxu1 %v2047_v51  ;;  %v8989_v51 = vpack.c.bf16 %v2478_v47, %v2477_v46  ;;  %v9010_v47 = vpack.c.bf16 %v2616_v41, %v2615_v40 }
 0x4b3   :  { %7437 = vmatprep.mubr.msk.f32.mxu1 %vm9957_vm0, %v10484_v24  ;;  %8948 = vmatpush3.bf16.msra.mxu1 %v8947_v48 }
 0x4b4   :  { %8949 = vmatprep.subr.bf16.mxu1 %v9956_v0 }
 0x4b6   :  { %7438 = vmatmul.mubr.f32.gmra.mrb[148].mxu1 %v2048_v58  ;;  %v2325_v58 = vld [vmem:[#allocation4 + $0x24] sm:$0xff] }
 0x4b7   :  { %7440 = vmatprep.mubr.msk.f32.mxu1 %vm9957_vm0, %v10484_v24  ;;  %8951 = vmatpush3.bf16.msra.mxu1 %v8950_v54  ;;  %v2479_v54 = vld [vmem:[#allocation17 + $0x3c0] sm:$0xff] }
 0x4b8   :  { %8952 = vmatprep.subr.bf16.mxu1 %v9956_v0 }
 0x4ba   :  { %7441 = vmatmul.mubr.f32.gmra.mrb[150].mxu1 %v2049_v63  ;;  %v8992_v63 = vpack.c.bf16 %v2480_v55, %v2479_v54  ;;  %v2619_v54 = vld [vmem:[#allocation17 + $0x440] sm:$0xff]  ;;  %v2620_v55 = vld [vmem:[#allocation17 + $0x448] sm:$0xff] }
 0x4bb   :  { %7443 = vmatprep.mubr.msk.f32.mxu1 %vm9957_vm0, %v10484_v24  ;;  %8954 = vmatpush3.bf16.msra.mxu1 %v8953_v59 }
 0x4bc   :  { %8955 = vmatprep.subr.bf16.mxu1 %v9956_v0 }
 0x4be   :  { %7444 = vmatmul.mubr.f32.gmra.mrb[152].mxu1 %v2050_v56  ;;  %v2481_v56 = vld [vmem:[#allocation17 + $0x3d0] sm:$0xff] }
 0x4bf   :  { %7478 = vmatprep.mubr.msk.f32.mxu1 %vm9957_vm0, %v10484_v24  ;;  %v8995_v10 = vpack.c.bf16 %v2482_v2, %v2481_v56  ;;  %v9016_v2 = vpack.c.bf16 %v2620_v55, %v2619_v54 }
 0x4c2   :  { %7479 = vmatmul.mubr.f32.vlgmr.msra.gmra.mrb[154].mxu1 %v10377_v53  ;;  %v2338_v53 = vld [vmem:[#allocation17 + $0x338] sm:$0xff] }
 0x4c3   :  { %8957 = vmatpush3.bf16.msra.mxu1 %v8956_v61  ;;  %7481 = vmatprep.mubr.msk.f32.mxu1 %vm9957_vm0, %v10484_v24  ;;  %v8965_v20 = vpack.c.bf16 %v2338_v53, %v2337_v19  ;;  %v2326_v61 = vld [vmem:[#allocation4 + $0x2c] sm:$0xff] }
 0x4c4   :  { %8958 = vmatprep.subr.bf16.mxu1 %v9956_v0 }
 0x4c6   :  { %7482 = vmatmul.mubr.f32.gmra.mrb[156].mxu1 %v10383_v52  ;;  %v2340_v52 = vld [vmem:[#allocation17 + $0x348] sm:$0xff] }
 0x4c7   :  { %8960 = vmatpush3.bf16.msra.mxu1 %v8959_v12  ;;  %7484 = vmatprep.mubr.msk.f32.mxu1 %vm9957_vm0, %v10484_v24  ;;  %v8968_v22 = vpack.c.bf16 %v2340_v52, %v2339_v21  ;;  %v2483_v12 = vld [vmem:[#allocation17 + $0x3e0] sm:$0xff]  ;;  %v2486_v21 = vld [vmem:[#allocation17 + $0x3f8] sm:$0xff] }
 0x4c8   :  { %8961 = vmatprep.subr.bf16.mxu1 %v9956_v0  ;;  %v8998_v53 = vpack.c.bf16 %v2484_v14, %v2483_v12  ;;  %v2466_v12 = vld [vmem:[#allocation4 + $0x2d] sm:$0xff] }
 0x4ca   :  { %7485 = vmatmul.mubr.f32.gmra.mrb[158].mxu1 %v10389_v62  ;;  %v2342_v62 = vld [vmem:[#allocation17 + $0x358] sm:$0xff] }
 0x4cb   :  { %8963 = vmatpush3.bf16.msra.mxu1 %v8962_v18  ;;  %7487 = vmatprep.mubr.msk.f32.mxu1 %vm9957_vm0, %v10484_v24  ;;  %v8971_v27 = vpack.c.bf16 %v2342_v62, %v2341_v25  ;;  %v2327_v18 = vld [vmem:[#allocation4 + $0x34] sm:$0xff]  ;;  %v2329_v62 = vld [vmem:[#allocation4 + $0x44] sm:$0xff] }
 0x4cc   :  { %8964 = vmatprep.subr.bf16.mxu1 %v9956_v0 }
 0x4ce   :  { %7488 = vmatmul.mubr.f32.gmra.mrb[160].mxu1 %v10484_v24 }
 0x4cf   :  { %8966 = vmatpush3.bf16.msra.mxu1 %v8965_v20  ;;  %7490 = vmatprep.mubr.msk.f32.mxu1 %vm9957_vm0, %v10484_v24  ;;  %v2485_v20 = vld [vmem:[#allocation17 + $0x3f0] sm:$0xff] }
 0x4d0   :  { %8967 = vmatprep.subr.bf16.mxu1 %v9956_v0 }
 0x4d2   :  { %7491 = vmatmul.mubr.f32.gmra.mrb[162].mxu1 %v10399_v8  ;;  %v2346_v8 = vld [vmem:[#allocation17 + $0x378] sm:$0xff] }
 0x4d3   :  { %8969 = vmatpush3.bf16.msra.mxu1 %v8968_v22  ;;  %7493 = vmatprep.mubr.msk.f32.mxu1 %vm9957_vm0, %v10484_v24  ;;  %v8977_v31 = vpack.c.bf16 %v2346_v8, %v2345_v30  ;;  %v2328_v22 = vld [vmem:[#allocation4 + $0x3c] sm:$0xff]  ;;  %v2611_v30 = vld [vmem:[#allocation17 + $0x400] sm:$0xff]  ;;  %v2612_v8 = vld [vmem:[#allocation17 + $0x408] sm:$0xff] }
 0x4d4   :  { %8970 = vmatprep.subr.bf16.mxu1 %v9956_v0 }
 0x4d6   :  { %7494 = vmatmul.mubr.f32.gmra.mrb[164].mxu1 %v10405_v3  ;;  %v2471_v3 = vld [vmem:[#allocation17 + $0x380] sm:$0xff] }
 0x4d7   :  { %7496 = vmatprep.mubr.msk.f32.mxu1 %vm9957_vm0, %v10484_v24  ;;  %8972 = vmatpush3.bf16.msra.mxu1 %v8971_v27  ;;  %v8980_v1 = vpack.c.bf16 %v2472_v33, %v2471_v3  ;;  %v9001_v27 = vpack.c.bf16 %v2486_v21, %v2485_v20  ;;  %v2467_v21 = vld [vmem:[#allocation4 + $0x35] sm:$0xff] }
 0x4d8   :  { %8973 = vmatprep.subr.bf16.mxu1 %v9956_v0 }
 0x4da   :  { %7497 = vmatmul.mubr.f32.gmra.mrb[166].mxu1 %v10411_v13 }
 0x4db   :  { %7499 = vmatprep.mubr.msk.f32.mxu1 %vm9957_vm0, %v10484_v24  ;;  %8975 = vmatpush3.bf16.msra.mxu1 %v8974_v29  ;;  %v2330_v29 = vld [vmem:[#allocation4 + $0x4c] sm:$0xff] }
 0x4dc   :  { %8976 = vmatprep.subr.bf16.mxu1 %v9956_v0 }
 0x4de   :  { %7500 = vmatmul.mubr.f32.gmra.mrb[168].mxu1 %v10417_v16 }
 0x4df   :  { %7502 = vmatprep.mubr.msk.f32.mxu1 %vm9957_vm0, %v10484_v24  ;;  %8978 = vmatpush3.bf16.msra.mxu1 %v8977_v31 }
 0x4e0   :  { %8979 = vmatprep.subr.bf16.mxu1 %v9956_v0 }
 0x4e1   :  { %v10558_v34 = vpop.f32.mrb[64].mxu1 }
 0x4e2   :  { %v7185_v13 = vpop.f32.mrb[65].mxu1  ;;  %7503 = vmatmul.mubr.f32.gmra.mrb[170].mxu1 %v10484_v24 }
 0x4e3   :  { %7537 = vmatprep.mubr.msk.f32.mxu1 %vm9957_vm0, %v10484_v24  ;;  %v9004_v13 = vpack.c.bf16 %v2612_v8, %v2611_v30 }
 0x4e5   :  { %v10563_v16 = vpop.f32.mrb[66].mxu1 }
 0x4e6   :  { %v7188_v38 = vpop.f32.mrb[67].mxu1  ;;  %7538 = vmatmul.mubr.f32.vlgmr.msra.gmra.mrb[172].mxu1 %v2322_v37  ;;  %v2462_v37 = vld [vmem:[#allocation4 + $0xd] sm:$0xff] }
 0x4e7   :  { %8981 = vmatpush3.bf16.msra.mxu1 %v8980_v1  ;;  %7540 = vmatprep.mubr.msk.f32.mxu1 %vm9957_vm0, %v10484_v24  ;;  %v2613_v1 = vld [vmem:[#allocation17 + $0x410] sm:$0xff] }
 0x4e8   :  { %8982 = vmatprep.subr.bf16.mxu1 %v9956_v0 }
 0x4e9   :  { %v10568_v42 = vpop.f32.mrb[68].mxu1 }
 0x4ea   :  { %v7191_v44 = vpop.f32.mrb[69].mxu1  ;;  %7541 = vmatmul.mubr.f32.gmra.mrb[174].mxu1 %v2323_v43 }
 0x4eb   :  { %8984 = vmatpush3.bf16.msra.mxu1 %v8983_v39  ;;  %7543 = vmatprep.mubr.msk.f32.mxu1 %vm9957_vm0, %v10484_v24  ;;  %v2463_v44 = vld [vmem:[#allocation4 + $0x15] sm:$0xff] }
 0x4ec   :  { %8985 = vmatprep.subr.bf16.mxu1 %v9956_v0 }
 0x4ed   :  { %v1627_v48 = vpop.f32.mrb[70].mxu1 }
 0x4ee   :  { %v7194_v50 = vpop.f32.mrb[71].mxu1  ;;  %7544 = vmatmul.mubr.f32.gmra.mrb[176].mxu1 %v2324_v49  ;;  %v2617_v48 = vld [vmem:[#allocation17 + $0x430] sm:$0xff]  ;;  %v2618_v49 = vld [vmem:[#allocation17 + $0x438] sm:$0xff] }
 0x4ef   :  { %8987 = vmatpush3.bf16.msra.mxu1 %v8986_v45  ;;  %7546 = vmatprep.mubr.msk.f32.mxu1 %vm9957_vm0, %v10484_v24 }
 0x4f0   :  { %8988 = vmatprep.subr.bf16.mxu1 %v9956_v0 }
 0x4f1   :  { %v10576_v57 = vpop.f32.mrb[72].mxu1 }
 0x4f2   :  { %v7197_v59 = vpop.f32.mrb[73].mxu1  ;;  %7547 = vmatmul.mubr.f32.gmra.mrb[178].mxu1 %v2325_v58 }
 0x4f3   :  { %8990 = vmatpush3.bf16.msra.mxu1 %v8989_v51  ;;  %7549 = vmatprep.mubr.msk.f32.mxu1 %vm9957_vm0, %v10484_v24  ;;  %v2465_v59 = vld [vmem:[#allocation4 + $0x25] sm:$0xff] }
 0x4f4   :  { %8991 = vmatprep.subr.bf16.mxu1 %v9956_v0 }
 0x4f5   :  { %v10581_v6 = vpop.f32.mrb[74].mxu1 }
 0x4f6   :  { %v7200_v9 = vpop.f32.mrb[75].mxu1  ;;  %7550 = vmatmul.mubr.f32.gmra.mrb[180].mxu1 %v2326_v61  ;;  %v2621_v61 = vld [vmem:[#allocation17 + $0x450] sm:$0xff] }
 0x4f7   :  { %8993 = vmatpush3.bf16.msra.mxu1 %v8992_v63  ;;  %7552 = vmatprep.mubr.msk.f32.mxu1 %vm9957_vm0, %v10484_v24  ;;  %v2622_v9 = vld [vmem:[#allocation17 + $0x458] sm:$0xff] }
 0x4f8   :  { %8994 = vmatprep.subr.bf16.mxu1 %v9956_v0 }
 0x4f9   :  { %v10586_v17 = vpop.f32.mrb[76].mxu1 }
 0x4fa   :  { %v7203_v19 = vpop.f32.mrb[77].mxu1  ;;  %7553 = vmatmul.mubr.f32.gmra.mrb[182].mxu1 %v2327_v18 }
 0x4fb   :  { %7555 = vmatprep.mubr.msk.f32.mxu1 %vm9957_vm0, %v10484_v24  ;;  %8996 = vmatpush3.bf16.msra.mxu1 %v8995_v10  ;;  %v2623_v19 = vld [vmem:[#allocation17 + $0x460] sm:$0xff] }
 0x4fc   :  { %8997 = vmatprep.subr.bf16.mxu1 %v9956_v0 }
 0x4fd   :  { %v10591_v52 = vpop.f32.mrb[78].mxu1 }
 0x4fe   :  { %v7206_v25 = vpop.f32.mrb[79].mxu1  ;;  %7556 = vmatmul.mubr.f32.gmra.mrb[184].mxu1 %v2328_v22 }
 0x4ff   :  { %7558 = vmatprep.mubr.msk.f32.mxu1 %vm9957_vm0, %v10484_v24  ;;  %8999 = vmatpush3.bf16.msra.mxu1 %v8998_v53  ;;  %v2624_v53 = vld [vmem:[#allocation17 + $0x468] sm:$0xff] }
 0x500   :  { %9000 = vmatprep.subr.bf16.mxu1 %v9956_v0 }
 0x501   :  { %v1651_v11 = vpop.f32.mrb[80].mxu1 }
 0x502   :  { %v7209_v28 = vpop.f32.mrb[81].mxu1  ;;  %7559 = vmatmul.mubr.f32.gmra.mrb[186].mxu1 %v2329_v62  ;;  %v2625_v62 = vld [vmem:[#allocation17 + $0x470] sm:$0xff] }
 0x503   :  { %7561 = vmatprep.mubr.msk.f32.mxu1 %vm9957_vm0, %v10484_v24  ;;  %9002 = vmatpush3.bf16.msra.mxu1 %v9001_v27  ;;  %v2626_v27 = vld [vmem:[#allocation17 + $0x478] sm:$0xff] }
 0x504   :  { %9003 = vmatprep.subr.bf16.mxu1 %v9956_v0  ;;  %v2468_v28 = vld [vmem:[#allocation4 + $0x3d] sm:$0xff]  ;;  %v9025_v8 = vpack.c.bf16 %v2626_v27, %v2625_v62 }
 0x505   :  { %v1720_v31 = vpop.f32.mrb[82].mxu1 }
 0x506   :  { %v10600_v3 = vadd.f32 %v1720_v31, %v10558_v34  ;;  %v7244_v33 = vpop.f32.mrb[83].mxu1  ;;  %7562 = vmatmul.mubr.f32.gmra.mrb[188].mxu1 %v2330_v29  ;;  %v9007_v34 = vpack.c.bf16 %v2614_v35, %v2613_v1 }
 0x507   :  { %7596 = vmatprep.mubr.msk.f32.mxu1 %vm9957_vm0, %v10484_v24 }
 0x509   :  { %v1725_v36 = vpop.f32.mrb[84].mxu1 }
 0x50a   :  { %v10605_v38 = vadd.f32 %v1725_v36, %v10563_v16  ;;  %v7247_v39 = vpop.f32.mrb[85].mxu1  ;;  %7597 = vmatmul.mubr.f32.vlgmr.msra.gmra.mrb[190].mxu1 %v2462_v37  ;;  %v2464_v16 = vld [vmem:[#allocation4 + $0x1d] sm:$0xff] }
 0x50b   :  { %9005 = vmatpush3.bf16.msra.mxu1 %v9004_v13  ;;  %7599 = vmatprep.mubr.msk.f32.mxu1 %vm9957_vm0, %v10484_v24  ;;  %v2470_v13 = vld [vmem:[#allocation4 + $0x4d] sm:$0xff] }
 0x50c   :  { %9006 = vmatprep.subr.bf16.mxu1 %v9956_v0 }
 0x50d   :  { %v1730_v43 = vpop.f32.mrb[86].mxu1 }
 0x50e   :  { %v10611_v45 = vadd.f32 %v1730_v43, %v10568_v42  ;;  %v7250_v46 = vpop.f32.mrb[87].mxu1  ;;  %7600 = vmatmul.mubr.f32.gmra.mrb[192].mxu1 %v2463_v44  ;;  %v9013_v42 = vpack.c.bf16 %v2618_v49, %v2617_v48 }
 0x50f   :  { %9008 = vmatpush3.bf16.msra.mxu1 %v9007_v34  ;;  %7602 = vmatprep.mubr.msk.f32.mxu1 %vm9957_vm0, %v10484_v24 }
 0x510   :  { %9009 = vmatprep.subr.bf16.mxu1 %v9956_v0 }
 0x511   :  { %v1735_v50 = vpop.f32.mrb[88].mxu1 }
 0x512   :  { %v7253_v51 = vpop.f32.mrb[89].mxu1  ;;  %7603 = vmatmul.mubr.f32.gmra.mrb[194].mxu1 %v2464_v16 }
 0x513   :  { %9011 = vmatpush3.bf16.msra.mxu1 %v9010_v47  ;;  %7605 = vmatprep.mubr.msk.f32.mxu1 %vm9957_vm0, %v10484_v24 }
 0x514   :  { %9012 = vmatprep.subr.bf16.mxu1 %v9956_v0 }
 0x515   :  { %v1739_v58 = vpop.f32.mrb[90].mxu1 }
 0x516   :  { %v10620_v63 = vadd.f32 %v1739_v58, %v10576_v57  ;;  %v7256_v56 = vpop.f32.mrb[91].mxu1  ;;  %7606 = vmatmul.mubr.f32.gmra.mrb[196].mxu1 %v2465_v59  ;;  %v9019_v57 = vpack.c.bf16 %v2622_v9, %v2621_v61 }
 0x517   :  { %9014 = vmatpush3.bf16.msra.mxu1 %v9013_v42  ;;  %7608 = vmatprep.mubr.msk.f32.mxu1 %vm9957_vm0, %v10484_v24 }
 0x518   :  { %9015 = vmatprep.subr.bf16.mxu1 %v9956_v0 }
 0x519   :  { %v1744_v10 = vpop.f32.mrb[92].mxu1 }
 0x51a   :  { %v1745_v14 = vadd.f32 %v1744_v10, %v10581_v6  ;;  %v7259_v18 = vpop.f32.mrb[93].mxu1  ;;  %7609 = vmatmul.mubr.f32.gmra.mrb[198].mxu1 %v2466_v12  ;;  %v9022_v6 = vpack.c.bf16 %v2624_v53, %v2623_v19 }
 0x51b   :  { %9017 = vmatpush3.bf16.msra.mxu1 %v9016_v2  ;;  %7611 = vmatprep.mubr.msk.f32.mxu1 %vm9957_vm0, %v10484_v24 }
 0x51c   :  { %9018 = vmatprep.subr.bf16.mxu1 %v9956_v0 }
 0x51d   :  { %v1749_v20 = vpop.f32.mrb[94].mxu1 }
 0x51e   :  { %v1750_v22 = vadd.f32 %v1749_v20, %v10586_v17  ;;  %v7262_v25 = vpop.f32.mrb[95].mxu1  ;;  %7612 = vmatmul.mubr.f32.gmra.mrb[200].mxu1 %v2467_v21  ;;  %v2469_v17 = vld [vmem:[#allocation4 + $0x45] sm:$0xff] }
 0x51f   :  { %7614 = vmatprep.mubr.msk.f32.mxu1 %vm9957_vm0, %v10484_v24  ;;  %9020 = vmatpush3.bf16.msra.mxu1 %v9019_v57  ;;  %v2822_v25 = vld [vmem:[#allocation20 + $0x88] sm:$0xff] }
 0x520   :  { %9021 = vmatprep.subr.bf16.mxu1 %v9956_v0 }
 0x521   :  { %v1754_v11 = vpop.f32.mrb[96].mxu1 }
 0x522   :  { %v1755_v29 = vadd.f32 %v1754_v11, %v10591_v52  ;;  %v7265_v30 = vpop.f32.mrb[97].mxu1  ;;  %7615 = vmatmul.mubr.f32.gmra.mrb[202].mxu1 %v2468_v28  ;;  %v2823_v28 = vld [vmem:[#allocation20 + $0x90] sm:$0xff] }
 0x523   :  { %7617 = vmatprep.mubr.msk.f32.mxu1 %vm9957_vm0, %v10484_v24  ;;  %9023 = vmatpush3.bf16.msra.mxu1 %v9022_v6 }
 0x524   :  { %9024 = vmatprep.subr.bf16.mxu1 %v9956_v0 }
 0x525   :  { %v1759_v31 = vpop.f32.mrb[98].mxu1 }
 0x526   :  { %v7268_v33 = vpop.f32.mrb[99].mxu1  ;;  %7618 = vmatmul.mubr.f32.gmra.mrb[204].mxu1 %v2469_v17 }
 0x527   :  { %7620 = vmatprep.mubr.msk.f32.mxu1 %vm9957_vm0, %v10484_v24  ;;  %9026 = vmatpush3.bf16.msra.mxu1 %v9025_v8  ;;  %v2825_v33 = vld [vmem:[#allocation20 + $0xa0] sm:$0xff] }
 0x529   :  { %v1853_v1 = vpop.f32.mrb[100].mxu1 }
 0x52a   :  { %v1895_v52 = vadd.f32 %v1853_v1, %v10600_v3  ;;  %v7303_v35 = vpop.f32.mrb[101].mxu1  ;;  %7621 = vmatmul.mubr.f32.gmra.mrb[206].mxu1 %v2470_v13  ;;  %v2826_v13 = vld [vmem:[#allocation20 + $0xa8] sm:$0xff] }
 0x52b   :  { %7655 = vmatprep.mubr.msk.f32.mxu1 %vm9957_vm0, %v10484_v24  ;;  %v9035_v1 = vpack.c.bf16 %v2826_v13, %v2825_v33  ;;  %v2798_v33 = vld [vmem:[#allocation20 + $0x48] sm:$0xff]  ;;  %v2799_v13 = vld [vmem:[#allocation20 + $0x50] sm:$0xff] }
 0x52d   :  { %v1858_v36 = vpop.f32.mrb[102].mxu1 }
 0x52e   :  { %v1896_v37 = vadd.f32 %v1858_v36, %v10605_v38  ;;  %v7306_v0 = vpop.f32.mrb[103].mxu1  ;;  %7656 = vmatmul.mubr.f32.vlgmr.msra.gmra.mrb[208].mxu1 %v10451_v60 }
 0x52f   :  { %7658 = vmatprep.mubr.msk.f32.mxu1 %vm9957_vm0, %v10484_v24  ;;  %v2828_v0 = vld [vmem:[#allocation20 + $0xb8] sm:$0xff] }
 0x531   :  { %v1863_v39 = vpop.f32.mrb[104].mxu1 }
 0x532   :  { %v1897_v34 = vadd.f32 %v1863_v39, %v10611_v45  ;;  %v7309_v40 = vpop.f32.mrb[105].mxu1  ;;  %7659 = vmatmul.mubr.f32.gmra.mrb[210].mxu1 %v10457_v4 }
 0x533   :  { %7661 = vmatprep.mubr.msk.f32.mxu1 %vm9957_vm0, %v10484_v24 }
 0x535   :  { %v1868_v3 = vpop.f32.mrb[106].mxu1 }
 0x536   :  { %v7312_v41 = vpop.f32.mrb[107].mxu1  ;;  %7662 = vmatmul.mubr.f32.gmra.mrb[212].mxu1 %v10462_v5  ;;  %v2829_v3 = vld [vmem:[#allocation20 + $0xc0] sm:$0xff] }
 0x537   :  { %7664 = vmatprep.mubr.msk.f32.mxu1 %vm9957_vm0, %v10484_v24  ;;  %v2830_v41 = vld [vmem:[#allocation20 + $0xc8] sm:$0xff] }
 0x539   :  { %v1872_v60 = vpop.f32.mrb[108].mxu1 }
 0x53a   :  { %v1898_v38 = vadd.f32 %v1872_v60, %v10620_v63  ;;  %v7315_v43 = vpop.f32.mrb[109].mxu1  ;;  %7665 = vmatmul.mubr.f32.gmra.mrb[214].mxu1 %v10469_v15  ;;  %v9043_v60 = vpack.c.bf16 %v2830_v41, %v2829_v3 }
 0x53b   :  { %7667 = vmatprep.mubr.msk.f32.mxu1 %vm9957_vm0, %v10484_v24 }
 0x53d   :  { %v1877_v4 = vpop.f32.mrb[110].mxu1 }
 0x53e   :  { %v1899_v44 = vadd.f32 %v1877_v4, %v1745_v14  ;;  %v7318_v45 = vpop.f32.mrb[111].mxu1  ;;  %7668 = vmatmul.mubr.f32.gmra.mrb[216].mxu1 %v10475_v7 }
 0x53f   :  { %7670 = vmatprep.mubr.msk.f32.mxu1 %vm9957_vm0, %v10484_v24  ;;  %v2832_v45 = vld [vmem:[#allocation20 + $0xd8] sm:$0xff] }
 0x541   :  { %v1882_v5 = vpop.f32.mrb[112].mxu1 }
 0x542   :  { %v1900_v46 = vadd.f32 %v1882_v5, %v1750_v22  ;;  %v7321_v16 = vpop.f32.mrb[113].mxu1  ;;  %7671 = vmatmul.mubr.f32.gmra.mrb[218].mxu1 %v10481_v23  ;;  %v2821_v22 = vld [vmem:[#allocation20 + $0x80] sm:$0xff] }
 0x543   :  { %7673 = vmatprep.mubr.msk.f32.mxu1 %vm9957_vm0, %v10484_v24  ;;  %v9027_v6 = vpack.c.bf16 %v2822_v25, %v2821_v22  ;;  %v2793_v22 = vld [vmem:[#allocation20 + $0x20] sm:$0xff]  ;;  %v2794_v25 = vld [vmem:[#allocation20 + $0x28] sm:$0xff] }
 0x545   :  { %v1887_v15 = vpop.f32.mrb[114].mxu1  ;;  %9028 = vmatprep.subr.bf16.mxu0 %v9027_v6 }
 0x546   :  { %v1901_v47 = vadd.f32 %v1887_v15, %v1755_v29  ;;  %v7324_v48 = vpop.f32.mrb[115].mxu1  ;;  %7674 = vmatmul.mubr.f32.gmra.mrb[220].mxu1 %v10489_v32  ;;  %9030 = vmatpush3.bf16.msra.mxu0 %v9027_v6  ;;  %v2824_v29 = vld [vmem:[#allocation20 + $0x98] sm:$0xff] }
 0x547   :  { %7676 = vmatprep.mubr.msk.f32.mxu1 %vm9957_vm0, %v10484_v24  ;;  %v9031_v30 = vpack.c.bf16 %v2824_v29, %v2823_v28  ;;  %v2834_v48 = vld [vmem:[#allocation20 + $0xe8] sm:$0xff]  ;;  %v2795_v28 = vld [vmem:[#allocation20 + $0x30] sm:$0xff]  ;;  %v2796_v29 = vld [vmem:[#allocation20 + $0x38] sm:$0xff] }
 0x549   :  { %v1892_v7 = vpop.f32.mrb[116].mxu1  ;;  %9032 = vmatprep.subr.bf16.mxu0 %v9031_v30 }
 0x54a   :  { %v7327_v49 = vpop.f32.mrb[117].mxu1  ;;  %7677 = vmatmul.mubr.f32.gmra.mrb[222].mxu1 %v10494_v26  ;;  %9034 = vmatpush3.bf16.msra.mxu0 %v9031_v30 }
 0x54b   :  { %7679 = vmatprep.mubr.msk.f32.mxu1 %vm9957_vm0, %v10484_v24  ;;  %9036 = vmatprep.subr.bf16.mxu0 %v9035_v1 }
 0x54d   :  { %v1993_v50 = vpop.f32.mrb[118].mxu1 }
 0x54e   :  { %v2035_v23 = vadd.f32 %v1993_v50, %v1895_v52  ;;  %v7362_v51 = vpop.f32.mrb[119].mxu1  ;;  %9038 = vmatpush3.bf16.msra.mxu0 %v9035_v1 }
 0x54f   :  { %v2835_v51 = vld [vmem:[#allocation20 + $0xf0] sm:$0xff] }
 0x551   :  { %v1998_v42 = vpop.f32.mrb[120].mxu1 }
 0x552   :  { %v2036_v54 = vadd.f32 %v1998_v42, %v1896_v37  ;;  %v7365_v55 = vpop.f32.mrb[121].mxu1  ;;  %v2827_v37 = vld [vmem:[#allocation20 + $0xb0] sm:$0xff]  ;;  %v2836_v42 = vld [vmem:[#allocation20 + $0xf8] sm:$0xff] }
 0x553   :  { %v9039_v39 = vpack.c.bf16 %v2828_v0, %v2827_v37 }
 0x555   :  { %v2003_v58 = vpop.f32.mrb[122].mxu1  ;;  %9040 = vmatprep.subr.bf16.mxu0 %v9039_v39 }
 0x556   :  { %v2037_v59 = vadd.f32 %v2003_v58, %v1897_v34  ;;  %v7368_v63 = vpop.f32.mrb[123].mxu1  ;;  %9042 = vmatpush3.bf16.msra.mxu0 %v9039_v39  ;;  %v1344_v58 = vld [vmem:[#allocation3 + $0x36] sm:$0x3]  ;;  %v2801_v39 = vld [vmem:[#allocation20 + $0x60] sm:$0xff] }
 0x557   :  { %9044 = vmatprep.subr.bf16.mxu0 %v9043_v60  ;;  %7149 = vmatmul.mubr.f32.gmra.mrb[22].mxu0 %v1344_v58 }
 0x559   :  { %v2008_v32 = vpop.f32.mrb[124].mxu1 }
 0x55a   :  { %v7371_v56 = vpop.f32.mrb[125].mxu1  ;;  %9046 = vmatpush3.bf16.msra.mxu0 %v9043_v60  ;;  %v2805_v32 = vld [vmem:[#allocation5 + $0x1] sm:$0xff] }
 0x55b   :  { %v10686_v56 = vld [vmem:[#allocation5 + $0x9] sm:$0xff]  ;;  %7714 = vmatprep.mubr.f32.mxu0 %v2805_v32 }
 0x55d   :  { %v2012_v2 = vpop.f32.mrb[126].mxu1 }
 0x55e   :  { %v2038_v61 = vadd.f32 %v2012_v2, %v1898_v38  ;;  %v7374_v9 = vpop.f32.mrb[127].mxu1 }
 0x55f   :  { %v2789_v9 = vld [vmem:[#allocation20] sm:$0xff] }
 0x561   :  { %v2017_v10 = vpop.f32.mrb[128].mxu1 }
 0x562   :  { %v2039_v12 = vadd.f32 %v2017_v10, %v1899_v44  ;;  %v7377_v26 = vpop.f32.mrb[129].mxu1  ;;  %v2831_v44 = vld [vmem:[#allocation20 + $0xd0] sm:$0xff]  ;;  %v2790_v10 = vld [vmem:[#allocation20 + $0x8] sm:$0xff] }
 0x563   :  { %v9047_v5 = vpack.c.bf16 %v2832_v45, %v2831_v44  ;;  %v9059_v26 = vpack.c.bf16 %v2790_v10, %v2789_v9  ;;  %v2804_v44 = vld [vmem:[#allocation20 + $0x78] sm:$0xff] }
 0x565   :  { %v2022_v14 = vpop.f32.mrb[130].mxu1  ;;  %9048 = vmatprep.subr.bf16.mxu0 %v9047_v5 }
 0x566   :  { %v2040_v18 = vadd.f32 %v2022_v14, %v1900_v46  ;;  %v7380_v24 = vpop.f32.mrb[131].mxu1  ;;  %9050 = vmatpush3.bf16.msra.mxu0 %v9047_v5 }
 0x567   :  { %v2791_v24 = vld [vmem:[#allocation20 + $0x10] sm:$0xff] }
 0x569   :  { %v2027_v57 = vpop.f32.mrb[132].mxu1 }
 0x56a   :  { %v10669_v19 = vadd.f32 %v2027_v57, %v1901_v47  ;;  %v7383_v53 = vpop.f32.mrb[133].mxu1  ;;  %v2833_v47 = vld [vmem:[#allocation20 + $0xe0] sm:$0xff]  ;;  %v2792_v57 = vld [vmem:[#allocation20 + $0x18] sm:$0xff] }
 0x56b   :  { %v9051_v7 = vpack.c.bf16 %v2834_v48, %v2833_v47  ;;  %v9063_v53 = vpack.c.bf16 %v2792_v57, %v2791_v24  ;;  %v3132_v47 = vld [vmem:[#allocation20 + $0x108] sm:$0xff] }
 0x56d   :  { %v2032_v20 = vpop.f32.mrb[134].mxu1  ;;  %9052 = vmatprep.subr.bf16.mxu0 %v9051_v7 }
 0x56e   :  { %v7386_v21 = vpop.f32.mrb[135].mxu1  ;;  %9054 = vmatpush3.bf16.msra.mxu0 %v9051_v7 }
 0x571   :  { %v2133_v62 = vpop.f32.mrb[136].mxu1 }
 0x572   :  { %v10671_v27 = vadd.f32 %v2133_v62, %v2035_v23  ;;  %v7421_v11 = vpop.f32.mrb[137].mxu1  ;;  %v9067_v62 = vpack.c.bf16 %v2794_v25, %v2793_v22 }
 0x575   :  { %v2138_v17 = vpop.f32.mrb[138].mxu1 }
 0x576   :  { %v10673_v8 = vadd.f32 %v2138_v17, %v2036_v54  ;;  %v7424_v31 = vpop.f32.mrb[139].mxu1  ;;  %v9055_v54 = vpack.c.bf16 %v2836_v42, %v2835_v51  ;;  %v9071_v17 = vpack.c.bf16 %v2796_v29, %v2795_v28 }
 0x578   :  { %9056 = vmatprep.subr.bf16.mxu0 %v9055_v54 }
 0x579   :  { %v2143_v52 = vpop.f32.mrb[140].mxu1  ;;  %9058 = vmatpush3.bf16.msra.mxu0 %v9055_v54 }
 0x57a   :  { %v10675_v35 = vadd.f32 %v2143_v52, %v2037_v59  ;;  %v7427_v36 = vpop.f32.mrb[141].mxu1  ;;  %9060 = vmatprep.subr.bf16.mxu0 %v9059_v26 }
 0x57b   :  { %v2800_v36 = vld [vmem:[#allocation20 + $0x58] sm:$0xff] }
 0x57c   :  { %7715 = vmatmul.mubr.f32.vlgmr.msra.gmra.mrb[24].mxu0 %v10686_v56 }
 0x57d   :  { %v2148_v34 = vpop.f32.mrb[142].mxu1  ;;  %9062 = vmatpush3.bf16.msra.mxu0 %v9059_v26 }
 0x57e   :  { %v7430_v40 = vpop.f32.mrb[143].mxu1  ;;  %9064 = vmatprep.subr.bf16.mxu0 %v9063_v53  ;;  %v2802_v34 = vld [vmem:[#allocation20 + $0x68] sm:$0xff] }
 0x57f   :  { %v9083_v3 = vpack.c.bf16 %v2802_v34, %v2801_v39 }
 0x581   :  { %v2152_v38 = vpop.f32.mrb[144].mxu1  ;;  %9066 = vmatpush3.bf16.msra.mxu0 %v9063_v53 }
 0x582   :  { %v10677_v43 = vadd.f32 %v2152_v38, %v2038_v61  ;;  %v7433_v4 = vpop.f32.mrb[145].mxu1  ;;  %9068 = vmatprep.subr.bf16.mxu0 %v9067_v62 }
 0x583   :  { %v2803_v4 = vld [vmem:[#allocation20 + $0x70] sm:$0xff] }
 0x584   :  { %v9087_v5 = vpack.c.bf16 %v2804_v44, %v2803_v4  ;;  %v5747_v44 = vld [vmem:[#allocation18] ss:$0 sm:$0xff] }
 0x585   :  { %v2157_v46 = vpop.f32.mrb[146].mxu1  ;;  %9070 = vmatpush3.bf16.msra.mxu0 %v9067_v62 }
 0x586   :  { %v10679_v16 = vadd.f32 %v2157_v46, %v2039_v12  ;;  %v7436_v15 = vpop.f32.mrb[147].mxu1  ;;  %9072 = vmatprep.subr.bf16.mxu0 %v9071_v17 }
 0x587   :  { %v3131_v15 = vld [vmem:[#allocation20 + $0x100] sm:$0xff] }
 0x589   :  { %v2162_v49 = vpop.f32.mrb[148].mxu1  ;;  %9074 = vmatpush3.bf16.msra.mxu0 %v9071_v17 }
 0x58a   :  { %v10681_v50 = vadd.f32 %v2162_v49, %v2040_v18  ;;  %v7439_v23 = vpop.f32.mrb[149].mxu1  ;;  %v10698_v49 = vpack.c.bf16 %v3132_v47, %v3131_v15 }
 0x58d   :  { %v2167_v55 = vpop.f32.mrb[150].mxu1 }
 0x58e   :  { %v10684_v59 = vadd.f32 %v2167_v55, %v10669_v19  ;;  %v7442_v63 = vpop.f32.mrb[151].mxu1 }
 0x591   :  { %v2172_v2 = vpop.f32.mrb[152].mxu1 }
 0x592   :  { %v7445_v61 = vpop.f32.mrb[153].mxu1 }
 0x595   :  { %v2273_v12 = vpop.f32.mrb[154].mxu1 }
 0x596   :  { %v10690_v14 = vadd.f32 %v2273_v12, %v10671_v27  ;;  %v7480_v18 = vpop.f32.mrb[155].mxu1 }
 0x599   :  { %v2278_v19 = vpop.f32.mrb[156].mxu1 }
 0x59a   :  { %v2316_v20 = vadd.f32 %v2278_v19, %v10673_v8  ;;  %v7483_v21 = vpop.f32.mrb[157].mxu1  ;;  %v2797_v8 = vld [vmem:[#allocation20 + $0x40] sm:$0xff] }
 0x59b   :  { %v9075_v52 = vpack.c.bf16 %v2798_v33, %v2797_v8 }
 0x59d   :  { %v2283_v6 = vpop.f32.mrb[158].mxu1  ;;  %9076 = vmatprep.subr.bf16.mxu0 %v9075_v52 }
 0x59e   :  { %v2317_v11 = vadd.f32 %v2283_v6, %v10675_v35  ;;  %v7486_v27 = vpop.f32.mrb[159].mxu1  ;;  %v9079_v35 = vpack.c.bf16 %v2800_v36, %v2799_v13  ;;  %9078 = vmatpush3.bf16.msra.mxu0 %v9075_v52 }
 0x5a0   :  { %9080 = vmatprep.subr.bf16.mxu0 %v9079_v35 }
 0x5a1   :  { %v2288_v30 = vpop.f32.mrb[160].mxu1 }
 0x5a2   :  { %v7489_v31 = vpop.f32.mrb[161].mxu1  ;;  %9082 = vmatpush3.bf16.msra.mxu0 %v9079_v35 }
 0x5a3   :  { %9084 = vmatprep.subr.bf16.mxu0 %v9083_v3 }
 0x5a5   :  { %v2292_v1 = vpop.f32.mrb[162].mxu1 }
 0x5a6   :  { %v2318_v37 = vadd.f32 %v2292_v1, %v10677_v43  ;;  %v7492_v0 = vpop.f32.mrb[163].mxu1  ;;  %9086 = vmatpush3.bf16.msra.mxu0 %v9083_v3 }
 0x5a7   :  { %9088 = vmatprep.subr.bf16.mxu0 %v9087_v5 }
 0x5a9   :  { %v2297_v40 = vpop.f32.mrb[164].mxu1 }
 0x5aa   :  { %v2319_v41 = vadd.f32 %v2297_v40, %v10679_v16  ;;  %v7495_v60 = vpop.f32.mrb[165].mxu1  ;;  %9090 = vmatpush3.bf16.msra.mxu0 %v9087_v5 }
 0x5ab   :  { %9092 = vmatprep.subr.bf16.mxu0 %v10698_v49 }
 0x5ad   :  { %v2302_v38 = vpop.f32.mrb[166].mxu1 }
 0x5ae   :  { %v2320_v45 = vadd.f32 %v2302_v38, %v10681_v50  ;;  %v7498_v43 = vpop.f32.mrb[167].mxu1 }
 0x5b1   :  { %v2307_v46 = vpop.f32.mrb[168].mxu1 }
 0x5b2   :  { %v2321_v48 = vadd.f32 %v2307_v46, %v10684_v59  ;;  %v7501_v7 = vpop.f32.mrb[169].mxu1 }
 0x5b5   :  { %v2312_v16 = vpop.f32.mrb[170].mxu1 }
 0x5b6   :  { %v7504_v23 = vpop.f32.mrb[171].mxu1 }
 0x5b9   :  { %v2413_v51 = vpop.f32.mrb[172].mxu1 }
 0x5ba   :  { %v2455_v50 = vadd.f32 %v2413_v51, %v10690_v14  ;;  %v7539_v42 = vpop.f32.mrb[173].mxu1 }
 0x5bd   :  { %v2418_v54 = vpop.f32.mrb[174].mxu1 }
 0x5be   :  { %v2456_v55 = vadd.f32 %v2418_v54, %v2316_v20  ;;  %v7542_v58 = vpop.f32.mrb[175].mxu1 }
 0x5c1   :  { %v2423_v63 = vpop.f32.mrb[176].mxu1 }
 0x5c2   :  { %v2457_v32 = vadd.f32 %v2423_v63, %v2317_v11  ;;  %v7545_v2 = vpop.f32.mrb[177].mxu1 }
 0x5c5   :  { %v2428_v61 = vpop.f32.mrb[178].mxu1 }
 0x5c6   :  { %v7548_v59 = vpop.f32.mrb[179].mxu1 }
 0x5c9   :  { %v2432_v9 = vpop.f32.mrb[180].mxu1 }
 0x5ca   :  { %v2458_v10 = vadd.f32 %v2432_v9, %v2318_v37  ;;  %v7551_v12 = vpop.f32.mrb[181].mxu1 }
 0x5cd   :  { %v2437_v26 = vpop.f32.mrb[182].mxu1 }
 0x5ce   :  { %v2459_v18 = vadd.f32 %v2437_v26, %v2319_v41  ;;  %v7554_v24 = vpop.f32.mrb[183].mxu1 }
 0x5d1   :  { %v2442_v57 = vpop.f32.mrb[184].mxu1 }
 0x5d2   :  { %v2460_v19 = vadd.f32 %v2442_v57, %v2320_v45  ;;  %v7557_v53 = vpop.f32.mrb[185].mxu1  ;;  %v10711_v57 = vld [vmem:[#allocation5 + $0x31] sm:$0xff] }
 0x5d5   :  { %v2447_v21 = vpop.f32.mrb[186].mxu1 }
 0x5d6   :  { %v2461_v14 = vadd.f32 %v2447_v21, %v2321_v48  ;;  %v7560_v22 = vpop.f32.mrb[187].mxu1 }
 0x5d9   :  { %v2452_v25 = vpop.f32.mrb[188].mxu1 }
 0x5da   :  { %v7563_v20 = vpop.f32.mrb[189].mxu1 }
 0x5dd   :  { %v2553_v6 = vpop.f32.mrb[190].mxu1 }
 0x5de   :  { %v2595_v62 = vadd.f32 %v2553_v6, %v2455_v50  ;;  %v7598_v11 = vpop.f32.mrb[191].mxu1  ;;  %v10719_v6 = vld [vmem:[#allocation5 + $0x41] sm:$0xff] }
 0x5e1   :  { %v2558_v27 = vpop.f32.mrb[192].mxu1 }
 0x5e2   :  { %v2596_v28 = vadd.f32 %v2558_v27, %v2456_v55  ;;  %v7601_v29 = vpop.f32.mrb[193].mxu1  ;;  %v10723_v27 = vld [vmem:[#allocation5 + $0x49] sm:$0xff] }
 0x5e5   :  { %v2563_v30 = vpop.f32.mrb[194].mxu1 }
 0x5e6   :  { %v2597_v17 = vadd.f32 %v2563_v30, %v2457_v32  ;;  %v7604_v31 = vpop.f32.mrb[195].mxu1 }
 0x5e9   :  { %v2568_v8 = vpop.f32.mrb[196].mxu1 }
 0x5ea   :  { %v7607_v33 = vpop.f32.mrb[197].mxu1 }
 0x5ed   :  { %v2572_v13 = vpop.f32.mrb[198].mxu1 }
 0x5ee   :  { %v2598_v1 = vadd.f32 %v2572_v13, %v2458_v10  ;;  %v7610_v52 = vpop.f32.mrb[199].mxu1 }
 0x5f1   :  { %v2577_v36 = vpop.f32.mrb[200].mxu1 }
 0x5f2   :  { %v2599_v37 = vadd.f32 %v2577_v36, %v2459_v18  ;;  %v7613_v0 = vpop.f32.mrb[201].mxu1  ;;  %v10741_v36 = vld [vmem:[#allocation5 + $0x79] sm:$0xff] }
 0x5f3   :  { %v3134_v0 = vld [vmem:[#allocation20 + $0x118] sm:$0xff] }
 0x5f5   :  { %v2582_v35 = vpop.f32.mrb[202].mxu1 }
 0x5f6   :  { %v2600_v39 = vadd.f32 %v2582_v35, %v2460_v19  ;;  %v7616_v34 = vpop.f32.mrb[203].mxu1  ;;  %v10744_v35 = vld [vmem:[#allocation2] sm:$0xff] }
 0x5f7   :  { %v3135_v34 = vld [vmem:[#allocation20 + $0x120] sm:$0xff] }
 0x5f9   :  { %v2587_v40 = vpop.f32.mrb[204].mxu1 }
 0x5fa   :  { %v2601_v3 = vadd.f32 %v2587_v40, %v2461_v14  ;;  %v7619_v41 = vpop.f32.mrb[205].mxu1  ;;  %v10717_v14 = vld [vmem:[#allocation5 + $0x39] sm:$0xff] }
 0x5fb   :  { %v3136_v40 = vld [vmem:[#allocation20 + $0x128] sm:$0xff] }
 0x5fc   :  { %v9099_v41 = vpack.c.bf16 %v3136_v40, %v3135_v34  ;;  %v10799_v34 = vld [vmem:[#allocation5 + $0x42] sm:$0xff] }
 0x5fd   :  { %v2592_v60 = vpop.f32.mrb[206].mxu1 }
 0x5fe   :  { %v7622_v38 = vpop.f32.mrb[207].mxu1 }
 0x5ff   :  { %v3137_v38 = vld [vmem:[#allocation20 + $0x130] sm:$0xff] }
 0x601   :  { %v2693_v4 = vpop.f32.mrb[208].mxu1 }
 0x602   :  { %v2735_v45 = vadd.f32 %v2693_v4, %v2595_v62  ;;  %v7657_v43 = vpop.f32.mrb[209].mxu1  ;;  %v3138_v4 = vld [vmem:[#allocation20 + $0x138] sm:$0xff] }
 0x604   :  { %v2749_v5 = vadd.f32 %v5747_v44, %v2735_v45  ;;  %v9103_v45 = vpack.c.bf16 %v3138_v4, %v3137_v38  ;;  %v3323_v38 = vld [vmem:[#allocation20 + $0x1d8] sm:$0xff] }
 0x605   :  { %v2698_v46 = vpop.f32.mrb[210].mxu1  ;;  %v10803_v4 = vld [vmem:[#allocation5 + $0x4a] sm:$0xff] }
 0x606   :  { %v2756_v15 = vmax.f32 %v2749_v5, 0.0  ;;  %v2736_v47 = vadd.f32 %v2698_v46, %v2596_v28  ;;  %v7660_v48 = vpop.f32.mrb[211].mxu1  ;;  %v3140_v5 = vld [vmem:[#allocation20 + $0x148] sm:$0xff] }
 0x608   :  { %2763 = vst [vmem:[#allocation5 + $0x12] ss:$6 sps:$4 sm:$0xcf] %v2756_v15   ;;  %v2750_v7 = vadd.f32 %v5747_v44, %v2736_v47  ;;  %v3141_v15 = vld [vmem:[#allocation20 + $0x150] sm:$0xff]  ;;  %v3142_v47 = vld [vmem:[#allocation20 + $0x158] sm:$0xff] }
 0x609   :  { %v2703_v16 = vpop.f32.mrb[212].mxu1  ;;  %v9111_v48 = vpack.c.bf16 %v3142_v47, %v3141_v15  ;;  %v3325_v15 = vld [vmem:[#allocation20 + $0x1e8] sm:$0xff] }
 0x60a   :  { %v2757_v23 = vmax.f32 %v2750_v7, 0.0  ;;  %v2737_v51 = vadd.f32 %v2703_v16, %v2597_v17  ;;  %v7663_v50 = vpop.f32.mrb[213].mxu1  ;;  %v3143_v7 = vld [vmem:[#allocation20 + $0x160] sm:$0xff]  ;;  %v3144_v16 = vld [vmem:[#allocation20 + $0x168] sm:$0xff] }
 0x60c   :  { %2765 = vst [vmem:[#allocation5 + $0x1c] ss:$6 sps:$4 sm:$0xf3] %v2757_v23   ;;  %v2751_v42 = vadd.f32 %v5747_v44, %v2737_v51  ;;  %v9115_v51 = vpack.c.bf16 %v3144_v16, %v3143_v7  ;;  %v3326_v16 = vld [vmem:[#allocation20 + $0x1f0] sm:$0xff] }
 0x60d   :  { %v2708_v54 = vpop.f32.mrb[214].mxu1 }
 0x60e   :  { %v2758_v55 = vmax.f32 %v2751_v42, 0.0  ;;  %v7666_v58 = vpop.f32.mrb[215].mxu1  ;;  %v3145_v42 = vld [vmem:[#allocation20 + $0x170] sm:$0xff]  ;;  %v3146_v54 = vld [vmem:[#allocation20 + $0x178] sm:$0xff] }
 0x60f   :  { %v10702_v63 = vld [vmem:[#allocation5 + $0x11] sm:$0xff]  ;;  %v9119_v58 = vpack.c.bf16 %v3146_v54, %v3145_v42 }
 0x610   :  { %2767 = vst [vmem:[#allocation5 + $0x28] sm:$0x3c] %v2758_v55  ;;  %7717 = vmatprep.mubr.f32.mxu0 %v10702_v63  ;;  %v10815_v54 = vld [vmem:[#allocation5 + $0x72] sm:$0xff] }
 0x611   :  { %v2712_v32 = vpop.f32.mrb[216].mxu1 }
 0x612   :  { %v2738_v2 = vadd.f32 %v2712_v32, %v2598_v1  ;;  %v7669_v61 = vpop.f32.mrb[217].mxu1  ;;  %v10735_v1 = vld [vmem:[#allocation5 + $0x71] sm:$0xff] }
 0x613   :  { %v10705_v59 = vld [vmem:[#allocation5 + $0x19] sm:$0xff]  ;;  %v10707_v9 = vld [vmem:[#allocation5 + $0x21] sm:$0xff] }
 0x614   :  { %v2752_v10 = vadd.f32 %v5747_v44, %v2738_v2  ;;  %7718 = vmatmul.mubr.f32.gmra.mrb[26].mxu0 %v10705_v59  ;;  %v10752_v60 = vld [vmem:[#allocation5 + $0x18] sm:$0xff]  ;;  %v3312_v2 = vld [vmem:[#allocation20 + $0x180] sm:$0xff] }
 0x615   :  { %v2717_v12 = vpop.f32.mrb[218].mxu1  ;;  %7720 = vmatprep.mubr.f32.mxu0 %v10707_v9  ;;  %v3313_v61 = vld [vmem:[#allocation20 + $0x188] sm:$0xff] }
 0x616   :  { %v2759_v26 = vmax.f32 %v2752_v10, 0.0  ;;  %v2739_v18 = vadd.f32 %v2717_v12, %v2599_v37  ;;  %v7672_v24 = vpop.f32.mrb[219].mxu1  ;;  %v3133_v37 = vld [vmem:[#allocation20 + $0x110] sm:$0xff]  ;;  %v9123_v12 = vpack.c.bf16 %v3313_v61, %v3312_v2  ;;  %v3493_v61 = vld [vmem:[#allocation20 + $0x200] sm:$0xff] }
 0x617   :  { %v10713_v19 = vld [vmem:[#allocation5 + $0x29] sm:$0xff] }
 0x618   :  { %2768 = vst [vmem:[#allocation5 + $0x4e] sm:$0xf0] %v2759_v26  ;;  %v2753_v53 = vadd.f32 %v5747_v44, %v2739_v18  ;;  %7721 = vmatmul.mubr.f32.gmra.mrb[28].mxu0 %v10713_v19  ;;  %v10758_v43 = vld [vmem:[#allocation5 + $0x28] sm:$0xff]  ;;  %v3314_v26 = vld [vmem:[#allocation20 + $0x190] sm:$0xff] }
 0x619   :  { %v2722_v21 = vpop.f32.mrb[220].mxu1  ;;  %7723 = vmatprep.mubr.f32.mxu0 %v10711_v57  ;;  %v3115_v10 = vld [vmem:[#allocation5 + $0x2] sm:$0xff]  ;;  %v10779_v24 = vld [vmem:[#allocation5 + $0xa] sm:$0xff] }
 0x61a   :  { %v2760_v22 = vmax.f32 %v2753_v53, 0.0  ;;  %v2740_v25 = vadd.f32 %v2722_v21, %v2600_v39  ;;  %v7675_v20 = vpop.f32.mrb[221].mxu1  ;;  %v9095_v39 = vpack.c.bf16 %v3134_v0, %v3133_v37  ;;  %v3315_v18 = vld [vmem:[#allocation20 + $0x198] sm:$0xff]  ;;  %v3316_v21 = vld [vmem:[#allocation20 + $0x1a0] sm:$0xff]  ;;  %v3321_v0 = vld [vmem:[#allocation20 + $0x1c8] sm:$0xff] }
 0x61b   :  { %v9127_v53 = vpack.c.bf16 %v3315_v18, %v3314_v26  ;;  %v3320_v37 = vld [vmem:[#allocation20 + $0x1c0] sm:$0xff]  ;;  %v3296_v26 = vld [vmem:[#allocation5 + $0x3] sm:$0xff] }
 0x61c   :  { %2769 = vst [vmem:[#allocation5 + $0x58] sm:$0x3c] %v2760_v22  ;;  %v2754_v62 = vadd.f32 %v5747_v44, %v2740_v25  ;;  %7724 = vmatmul.mubr.f32.gmra.mrb[30].mxu0 %v10717_v14  ;;  %v3317_v22 = vld [vmem:[#allocation20 + $0x1a8] sm:$0xff]  ;;  %v9139_v40 = vpack.c.bf16 %v3321_v0, %v3320_v37 }
 0x61d   :  { %v2727_v11 = vpop.f32.mrb[222].mxu1  ;;  %7726 = vmatprep.mubr.f32.mxu0 %v10719_v6  ;;  %v10782_v25 = vld [vmem:[#allocation5 + $0x12] sm:$0xff]  ;;  %v9131_v20 = vpack.c.bf16 %v3317_v22, %v3316_v21  ;;  %v3496_v21 = vld [vmem:[#allocation20 + $0x218] sm:$0xff]  ;;  %v10830_v0 = vld [vmem:[#allocation5 + $0x1b] sm:$0xff] }
 0x61e   :  { %v2761_v28 = vmax.f32 %v2754_v62, 0.0  ;;  %v2741_v29 = vadd.f32 %v2727_v11, %v2601_v3  ;;  %v7678_v30 = vpop.f32.mrb[223].mxu1  ;;  %v10748_v3 = vld [vmem:[#allocation5 + $0x10] sm:$0xff]  ;;  %v10785_v62 = vld [vmem:[#allocation5 + $0x1a] sm:$0xff] }
 0x61f   :  { %v10725_v17 = vld [vmem:[#allocation5 + $0x51] sm:$0xff]  ;;  %v3318_v11 = vld [vmem:[#allocation20 + $0x1b0] sm:$0xff] }
 0x620   :  { %2770 = vst [vmem:[#allocation5 + $0x62] ss:$6 sps:$4 sm:$0xcf] %v2761_v28   ;;  %v2755_v31 = vadd.f32 %v5747_v44, %v2741_v29  ;;  %7727 = vmatmul.mubr.f32.gmra.mrb[32].mxu0 %v10723_v27  ;;  %v10755_v44 = vld [vmem:[#allocation5 + $0x20] sm:$0xff]  ;;  %v10765_v23 = vld [vmem:[#allocation5 + $0x50] sm:$0xff]  ;;  %v3319_v28 = vld [vmem:[#allocation20 + $0x1b8] sm:$0xff] }
 0x621   :  { %7729 = vmatprep.mubr.f32.mxu0 %v10725_v17  ;;  %v10788_v29 = vld [vmem:[#allocation5 + $0x22] sm:$0xff]  ;;  %v10791_v30 = vld [vmem:[#allocation5 + $0x32] sm:$0xff] }
 0x622   :  { %v2762_v8 = vmax.f32 %v2755_v31, 0.0  ;;  %v9135_v31 = vpack.c.bf16 %v3319_v28, %v3318_v11  ;;  %v10806_v47 = vld [vmem:[#allocation5 + $0x52] sm:$0xff] }
 0x623   :  { %v10729_v33 = vld [vmem:[#allocation5 + $0x59] sm:$0xff]  ;;  %v3497_v11 = vld [vmem:[#allocation20 + $0x220] sm:$0xff] }
 0x624   :  { %2772 = vst [vmem:[#allocation5 + $0x6c] sm:$0x3] %v2762_v8  ;;  %7730 = vmatmul.mubr.f32.gmra.mrb[34].mxu0 %v10729_v33  ;;  %v10768_v50 = vld [vmem:[#allocation5 + $0x58] sm:$0xff]  ;;  %v10793_v8 = vld [vmem:[#allocation5 + $0x2a] sm:$0xff] }
 0x625   :  { %v10809_v7 = vld [vmem:[#allocation5 + $0x5a] sm:$0xff] }
 0x626   :  { %v3498_v28 = vld [vmem:[#allocation20 + $0x228] sm:$0xff] }
 0x627   :  { %v10732_v13 = vld [vmem:[#allocation5 + $0x61] sm:$0xff]  ;;  %v9163_v37 = vpack.c.bf16 %v3498_v28, %v3497_v11 }
 0x628   :  { %7732 = vmatprep.mubr.f32.mxu0 %v10732_v13  ;;  %v10771_v55 = vld [vmem:[#allocation5 + $0x60] sm:$0xff] }
 0x629   :  { %v10812_v42 = vld [vmem:[#allocation5 + $0x62] sm:$0xff] }
 0x62a   :  { %v10854_v11 = vld [vmem:[#allocation5 + $0x5b] sm:$0xff] }
 0x62b   :  { %v10737_v52 = vld [vmem:[#allocation5 + $0x69] sm:$0xff]  ;;  %v3507_v28 = vld [vmem:[#allocation20 + $0x270] sm:$0xff] }
 0x62c   :  { %7733 = vmatmul.mubr.f32.gmra.mrb[36].mxu0 %v10737_v52  ;;  %v10774_v32 = vld [vmem:[#allocation5 + $0x68] sm:$0xff] }
 0x62d   :  { %7735 = vmatprep.mubr.f32.mxu0 %v10735_v1  ;;  %v10817_v2 = vld [vmem:[#allocation5 + $0x6a] sm:$0xff] }
 0x630   :  { %7736 = vmatmul.mubr.f32.gmra.mrb[38].mxu0 %v10741_v36 }
 0x631   :  { %7770 = vmatprep.mubr.f32.mxu0 %v10744_v35 }
 0x634   :  { %7771 = vmatmul.mubr.f32.vlgmr.msra.gmra.mrb[24].mxu0 %v10744_v35 }
 0x635   :  { %9094 = vmatpush3.bf16.msra.mxu0 %v10698_v49  ;;  %7773 = vmatprep.mubr.f32.mxu0 %v10748_v3  ;;  %v3139_v49 = vld [vmem:[#allocation20 + $0x140] sm:$0xff] }
 0x636   :  { %9096 = vmatprep.subr.bf16.mxu0 %v9095_v39  ;;  %v9107_v46 = vpack.c.bf16 %v3140_v5, %v3139_v49 }
 0x638   :  { %7774 = vmatmul.mubr.f32.gmra.mrb[26].mxu0 %v10752_v60 }
 0x639   :  { %9098 = vmatpush3.bf16.msra.mxu0 %v9095_v39  ;;  %7776 = vmatprep.mubr.f32.mxu0 %v10755_v44  ;;  %v10797_v39 = vld [vmem:[#allocation5 + $0x3a] sm:$0xff] }
 0x63a   :  { %9100 = vmatprep.subr.bf16.mxu0 %v9099_v41 }
 0x63c   :  { %7777 = vmatmul.mubr.f32.gmra.mrb[40].mxu0 %v10758_v43 }
 0x63d   :  { %9102 = vmatpush3.bf16.msra.mxu0 %v9099_v41  ;;  %7779 = vmatprep.mubr.f32.mxu0 %v10744_v35  ;;  %v3322_v41 = vld [vmem:[#allocation20 + $0x1d0] sm:$0xff] }
 0x63e   :  { %9104 = vmatprep.subr.bf16.mxu0 %v9103_v45  ;;  %v9143_v49 = vpack.c.bf16 %v3323_v38, %v3322_v41  ;;  %v3500_v41 = vld [vmem:[#allocation20 + $0x238] sm:$0xff] }
 0x63f   :  { %v10833_v38 = vld [vmem:[#allocation5 + $0x23] sm:$0xff] }
 0x640   :  { %7780 = vmatmul.mubr.f32.gmra.mrb[42].mxu0 %v10744_v35 }
 0x641   :  { %9106 = vmatpush3.bf16.msra.mxu0 %v9103_v45  ;;  %7782 = vmatprep.mubr.f32.mxu0 %v10744_v35  ;;  %v1457_v45 = vpop.f32.mrb[22].mxu0 }
 0x642   :  { %9108 = vmatprep.subr.bf16.mxu0 %v9107_v46  ;;  %v7150_v5 = vpop.f32.mrb[23].mxu0  ;;  %v10836_v45 = vld [vmem:[#allocation5 + $0x33] sm:$0xff] }
 0x643   :  { %v10838_v5 = vld [vmem:[#allocation5 + $0x2b] sm:$0xff] }
 0x644   :  { %7783 = vmatmul.mubr.f32.gmra.mrb[32].mxu0 %v10744_v35 }
 0x645   :  { %9110 = vmatpush3.bf16.msra.mxu0 %v9107_v46  ;;  %7785 = vmatprep.mubr.f32.mxu0 %v10765_v23  ;;  %v3324_v46 = vld [vmem:[#allocation20 + $0x1e0] sm:$0xff] }
 0x646   :  { %9112 = vmatprep.subr.bf16.mxu0 %v9111_v48 }
 0x648   :  { %7786 = vmatmul.mubr.f32.gmra.mrb[34].mxu0 %v10768_v50 }
 0x649   :  { %9114 = vmatpush3.bf16.msra.mxu0 %v9111_v48  ;;  %7788 = vmatprep.mubr.f32.mxu0 %v10771_v55  ;;  %v9147_v48 = vpack.c.bf16 %v3325_v15, %v3324_v46  ;;  %v3501_v46 = vld [vmem:[#allocation20 + $0x240] sm:$0xff]  ;;  %v3502_v15 = vld [vmem:[#allocation20 + $0x248] sm:$0xff] }
 0x64a   :  { %9116 = vmatprep.subr.bf16.mxu0 %v9115_v51 }
 0x64c   :  { %7789 = vmatmul.mubr.f32.gmra.mrb[44].mxu0 %v10774_v32 }
 0x64d   :  { %9118 = vmatpush3.bf16.msra.mxu0 %v9115_v51  ;;  %7791 = vmatprep.mubr.f32.mxu0 %v10744_v35  ;;  %v3327_v51 = vld [vmem:[#allocation20 + $0x1f8] sm:$0xff] }
 0x64e   :  { %9120 = vmatprep.subr.bf16.mxu0 %v9119_v58 }
 0x650   :  { %7792 = vmatmul.mubr.f32.gmra.mrb[46].mxu0 %v10744_v35 }
 0x651   :  { %9122 = vmatpush3.bf16.msra.mxu0 %v9119_v58  ;;  %7826 = vmatprep.mubr.f32.mxu0 %v3115_v10  ;;  %v9151_v58 = vpack.c.bf16 %v3327_v51, %v3326_v16  ;;  %v3494_v10 = vld [vmem:[#allocation20 + $0x208] sm:$0xff]  ;;  %v10844_v16 = vld [vmem:[#allocation5 + $0x43] sm:$0xff]  ;;  %v9171_v51 = vpack.c.bf16 %v3502_v15, %v3501_v46  ;;  %v10862_v46 = vld [vmem:[#allocation5 + $0x6b] sm:$0xff] }
 0x652   :  { %9124 = vmatprep.subr.bf16.mxu0 %v9123_v12  ;;  %v9155_v18 = vpack.c.bf16 %v3494_v10, %v3493_v61  ;;  %v3504_v61 = vld [vmem:[#allocation20 + $0x258] sm:$0xff]  ;;  %v3674_v15 = vld [vmem:[#allocation20 + $0x280] sm:$0xff] }
 0x654   :  { %7827 = vmatmul.mubr.f32.vlgmr.msra.gmra.mrb[24].mxu0 %v10779_v24 }
 0x655   :  { %9126 = vmatpush3.bf16.msra.mxu0 %v9123_v12  ;;  %7829 = vmatprep.mubr.f32.mxu0 %v10782_v25  ;;  %v10821_v12 = vld [vmem:[#allocation5 + $0x7a] sm:$0xff] }
 0x656   :  { %9128 = vmatprep.subr.bf16.mxu0 %v9127_v53 }
 0x658   :  { %7830 = vmatmul.mubr.f32.gmra.mrb[26].mxu0 %v10785_v62 }
 0x659   :  { %9130 = vmatpush3.bf16.msra.mxu0 %v9127_v53  ;;  %7832 = vmatprep.mubr.f32.mxu0 %v10788_v29  ;;  %v3495_v53 = vld [vmem:[#allocation20 + $0x210] sm:$0xff] }
 0x65a   :  { %9132 = vmatprep.subr.bf16.mxu0 %v9131_v20  ;;  %v9159_v22 = vpack.c.bf16 %v3496_v21, %v3495_v53  ;;  %v3506_v53 = vld [vmem:[#allocation20 + $0x268] sm:$0xff] }
 0x65b   :  { %v10851_v21 = vld [vmem:[#allocation5 + $0x53] sm:$0xff] }
 0x65c   :  { %7833 = vmatmul.mubr.f32.gmra.mrb[48].mxu0 %v10793_v8 }
 0x65d   :  { %9134 = vmatpush3.bf16.msra.mxu0 %v9131_v20  ;;  %7835 = vmatprep.mubr.f32.mxu0 %v10791_v30  ;;  %v10824_v20 = vld [vmem:[#allocation5 + $0xb] sm:$0xff] }
 0x65e   :  { %9136 = vmatprep.subr.bf16.mxu0 %v9135_v31 }
 0x660   :  { %7836 = vmatmul.mubr.f32.gmra.mrb[50].mxu0 %v10797_v39 }
 0x661   :  { %9138 = vmatpush3.bf16.msra.mxu0 %v9135_v31  ;;  %7838 = vmatprep.mubr.f32.mxu0 %v10799_v34  ;;  %v10827_v31 = vld [vmem:[#allocation5 + $0x13] sm:$0xff] }
 0x662   :  { %9140 = vmatprep.subr.bf16.mxu0 %v9139_v40 }
 0x664   :  { %7839 = vmatmul.mubr.f32.gmra.mrb[32].mxu0 %v10803_v4 }
 0x665   :  { %9142 = vmatpush3.bf16.msra.mxu0 %v9139_v40  ;;  %7841 = vmatprep.mubr.f32.mxu0 %v10806_v47  ;;  %v3499_v40 = vld [vmem:[#allocation20 + $0x230] sm:$0xff] }
 0x666   :  { %9144 = vmatprep.subr.bf16.mxu0 %v9143_v49 }
 0x668   :  { %7842 = vmatmul.mubr.f32.gmra.mrb[34].mxu0 %v10809_v7 }
 0x669   :  { %9146 = vmatpush3.bf16.msra.mxu0 %v9143_v49  ;;  %7844 = vmatprep.mubr.f32.mxu0 %v10812_v42  ;;  %v9167_v49 = vpack.c.bf16 %v3500_v41, %v3499_v40  ;;  %v10857_v40 = vld [vmem:[#allocation5 + $0x63] sm:$0xff]  ;;  %v10860_v41 = vld [vmem:[#allocation5 + $0x73] sm:$0xff] }
 0x66a   :  { %9148 = vmatprep.subr.bf16.mxu0 %v9147_v48  ;;  %11267 = vst [vmem:[#allocation29_spill] sm:$0xff] %v10860_v41 }
 0x66c   :  { %7845 = vmatmul.mubr.f32.gmra.mrb[52].mxu0 %v10817_v2 }
 0x66d   :  { %9150 = vmatpush3.bf16.msra.mxu0 %v9147_v48  ;;  %7847 = vmatprep.mubr.f32.mxu0 %v10815_v54  ;;  %v10842_v48 = vld [vmem:[#allocation5 + $0x3b] sm:$0xff] }
 0x66e   :  { %9152 = vmatprep.subr.bf16.mxu0 %v9151_v58 }
 0x670   :  { %7848 = vmatmul.mubr.f32.gmra.mrb[54].mxu0 %v10821_v12 }
 0x671   :  { %9154 = vmatpush3.bf16.msra.mxu0 %v9151_v58  ;;  %7882 = vmatprep.mubr.f32.mxu0 %v3296_v26  ;;  %v3503_v58 = vld [vmem:[#allocation20 + $0x250] sm:$0xff]  ;;  %v10848_v26 = vld [vmem:[#allocation5 + $0x4b] sm:$0xff] }
 0x672   :  { %9156 = vmatprep.subr.bf16.mxu0 %v9155_v18  ;;  %v9175_v10 = vpack.c.bf16 %v3504_v61, %v3503_v58  ;;  %v10866_v58 = vld [vmem:[#allocation5 + $0x7b] sm:$0xff] }
 0x674   :  { %7883 = vmatmul.mubr.f32.vlgmr.msra.gmra.mrb[24].mxu0 %v10824_v20 }
 0x675   :  { %9158 = vmatpush3.bf16.msra.mxu0 %v9155_v18  ;;  %7885 = vmatprep.mubr.f32.mxu0 %v10827_v31  ;;  %v3505_v18 = vld [vmem:[#allocation20 + $0x260] sm:$0xff] }
 0x676   :  { %9160 = vmatprep.subr.bf16.mxu0 %v9159_v22 }
 0x678   :  { %7886 = vmatmul.mubr.f32.gmra.mrb[26].mxu0 %v10830_v0 }
 0x679   :  { %9162 = vmatpush3.bf16.msra.mxu0 %v9159_v22  ;;  %7888 = vmatprep.mubr.f32.mxu0 %v10833_v38  ;;  %v9179_v22 = vpack.c.bf16 %v3506_v53, %v3505_v18  ;;  %v3677_v18 = vld [vmem:[#allocation20 + $0x298] sm:$0xff] }
 0x67a   :  { %9164 = vmatprep.subr.bf16.mxu0 %v9163_v37 }
 0x67c   :  { %7889 = vmatmul.mubr.f32.gmra.mrb[56].mxu0 %v10838_v5 }
 0x67d   :  { %9166 = vmatpush3.bf16.msra.mxu0 %v9163_v37  ;;  %7891 = vmatprep.mubr.f32.mxu0 %v10836_v45  ;;  %v3508_v37 = vld [vmem:[#allocation20 + $0x278] sm:$0xff] }
 0x67e   :  { %9168 = vmatprep.subr.bf16.mxu0 %v9167_v49 }
 0x680   :  { %7892 = vmatmul.mubr.f32.gmra.mrb[58].mxu0 %v10842_v48 }
 0x681   :  { %9170 = vmatpush3.bf16.msra.mxu0 %v9167_v49  ;;  %7894 = vmatprep.mubr.f32.mxu0 %v10844_v16  ;;  %v9183_v49 = vpack.c.bf16 %v3508_v37, %v3507_v28  ;;  %v3678_v28 = vld [vmem:[#allocation20 + $0x2a0] sm:$0xff]  ;;  %v3679_v37 = vld [vmem:[#allocation20 + $0x2a8] sm:$0xff] }
 0x682   :  { %9172 = vmatprep.subr.bf16.mxu0 %v9171_v51 }
 0x684   :  { %7895 = vmatmul.mubr.f32.gmra.mrb[32].mxu0 %v10848_v26 }
 0x685   :  { %9174 = vmatpush3.bf16.msra.mxu0 %v9171_v51  ;;  %7897 = vmatprep.mubr.f32.mxu0 %v10851_v21  ;;  %v3675_v51 = vld [vmem:[#allocation20 + $0x288] sm:$0xff] }
 0x686   :  { %9176 = vmatprep.subr.bf16.mxu0 %v9175_v10  ;;  %v9187_v61 = vpack.c.bf16 %v3675_v51, %v3674_v15  ;;  %v3681_v15 = vld [vmem:[#allocation20 + $0x2b8] sm:$0xff]  ;;  %v3682_v51 = vld [vmem:[#allocation20 + $0x2c0] sm:$0xff] }
 0x688   :  { %7898 = vmatmul.mubr.f32.gmra.mrb[34].mxu0 %v10854_v11 }
 0x689   :  { %9178 = vmatpush3.bf16.msra.mxu0 %v9175_v10  ;;  %7900 = vmatprep.mubr.f32.mxu0 %v10857_v40  ;;  %v3676_v10 = vld [vmem:[#allocation20 + $0x290] sm:$0xff] }
 0x68a   :  { %9180 = vmatprep.subr.bf16.mxu0 %v9179_v22  ;;  %v9191_v53 = vpack.c.bf16 %v3677_v18, %v3676_v10  ;;  %v3683_v10 = vld [vmem:[#allocation20 + $0x2c8] sm:$0xff]  ;;  %v3684_v18 = vld [vmem:[#allocation20 + $0x2d0] sm:$0xff] }
 0x68c   :  { %7901 = vmatmul.mubr.f32.gmra.mrb[60].mxu0 %v10862_v46 }
 0x68d   :  { %9182 = vmatpush3.bf16.msra.mxu0 %v9179_v22  ;;  %7903 = vmatprep.mubr.f32.mxu0 %v10860_v41  ;;  %v9195_v22 = vpack.c.bf16 %v3679_v37, %v3678_v28  ;;  %v3680_v41 = vld [vmem:[#allocation20 + $0x2b0] sm:$0xff]  ;;  %v3685_v28 = vld [vmem:[#allocation20 + $0x2d8] sm:$0xff]  ;;  %v3686_v37 = vld [vmem:[#allocation20 + $0x2e0] sm:$0xff] }
 0x68e   :  { %9184 = vmatprep.subr.bf16.mxu0 %v9183_v49 }
 0x690   :  { %7904 = vmatmul.mubr.f32.gmra.mrb[62].mxu0 %v10866_v58 }
 0x691   :  { %9186 = vmatpush3.bf16.msra.mxu0 %v9183_v49  ;;  %7938 = vmatprep.mubr.f32.mxu0 %v10744_v35  ;;  %v9199_v49 = vpack.c.bf16 %v3681_v15, %v3680_v41  ;;  %v3687_v41 = vld [vmem:[#allocation20 + $0x2e8] sm:$0xff]  ;;  %v3688_v15 = vld [vmem:[#allocation20 + $0x2f0] sm:$0xff] }
 0x692   :  { %9188 = vmatprep.subr.bf16.mxu0 %v9187_v61 }
 0x694   :  { %7939 = vmatmul.mubr.f32.vlgmr.msra.gmra.mrb[24].mxu0 %v10748_v3 }
 0x695   :  { %9190 = vmatpush3.bf16.msra.mxu0 %v9187_v61  ;;  %7941 = vmatprep.mubr.f32.mxu0 %v10752_v60  ;;  %v9203_v61 = vpack.c.bf16 %v3683_v10, %v3682_v51  ;;  %v3689_v51 = vld [vmem:[#allocation20 + $0x2f8] sm:$0xff]  ;;  %v3855_v10 = vld [vmem:[#allocation20 + $0x300] sm:$0xff] }
 0x696   :  { %9192 = vmatprep.subr.bf16.mxu0 %v9191_v53 }
 0x698   :  { %7942 = vmatmul.mubr.f32.gmra.mrb[26].mxu0 %v10755_v44 }
 0x699   :  { %9194 = vmatpush3.bf16.msra.mxu0 %v9191_v53  ;;  %7944 = vmatprep.mubr.f32.mxu0 %v10758_v43  ;;  %v9207_v53 = vpack.c.bf16 %v3685_v28, %v3684_v18  ;;  %v3856_v18 = vld [vmem:[#allocation20 + $0x308] sm:$0xff] }
 0x69a   :  { %9196 = vmatprep.subr.bf16.mxu0 %v9195_v22  ;;  %v3860_v28 = vld [vmem:[#allocation20 + $0x328] sm:$0xff] }
 0x69c   :  { %7945 = vmatmul.mubr.f32.gmra.mrb[64].mxu0 %v10744_v35 }
 0x69d   :  { %9198 = vmatpush3.bf16.msra.mxu0 %v9195_v22  ;;  %7947 = vmatprep.mubr.f32.mxu0 %v10744_v35  ;;  %v9211_v22 = vpack.c.bf16 %v3687_v41, %v3686_v37  ;;  %v3861_v37 = vld [vmem:[#allocation20 + $0x330] sm:$0xff]  ;;  %v3862_v41 = vld [vmem:[#allocation20 + $0x338] sm:$0xff] }
 0x69e   :  { %9200 = vmatprep.subr.bf16.mxu0 %v9199_v49 }
 0x6a0   :  { %7948 = vmatmul.mubr.f32.gmra.mrb[66].mxu0 %v10744_v35 }
 0x6a1   :  { %9202 = vmatpush3.bf16.msra.mxu0 %v9199_v49  ;;  %7950 = vmatprep.mubr.f32.mxu0 %v10744_v35  ;;  %v9215_v49 = vpack.c.bf16 %v3689_v51, %v3688_v15  ;;  %v3864_v15 = vld [vmem:[#allocation20 + $0x348] sm:$0xff]  ;;  %v3866_v51 = vld [vmem:[#allocation20 + $0x358] sm:$0xff] }
 0x6a2   :  { %9204 = vmatprep.subr.bf16.mxu0 %v9203_v61 }
 0x6a4   :  { %7951 = vmatmul.mubr.f32.gmra.mrb[32].mxu0 %v10765_v23  ;;  %v9219_v23 = vpack.c.bf16 %v3856_v18, %v3855_v10  ;;  %v3870_v10 = vld [vmem:[#allocation20 + $0x378] sm:$0xff]  ;;  %v4037_v18 = vld [vmem:[#allocation20 + $0x388] sm:$0xff] }
 0x6a5   :  { %9206 = vmatpush3.bf16.msra.mxu0 %v9203_v61  ;;  %7953 = vmatprep.mubr.f32.mxu0 %v10768_v50  ;;  %v3857_v50 = vld [vmem:[#allocation20 + $0x310] sm:$0xff]  ;;  %v3858_v61 = vld [vmem:[#allocation20 + $0x318] sm:$0xff] }
 0x6a6   :  { %9208 = vmatprep.subr.bf16.mxu0 %v9207_v53 }
 0x6a8   :  { %7954 = vmatmul.mubr.f32.gmra.mrb[34].mxu0 %v10771_v55  ;;  %v9223_v55 = vpack.c.bf16 %v3858_v61, %v3857_v50  ;;  %v4039_v50 = vld [vmem:[#allocation20 + $0x398] sm:$0xff]  ;;  %v4041_v61 = vld [vmem:[#allocation20 + $0x3a8] sm:$0xff] }
 0x6a9   :  { %9210 = vmatpush3.bf16.msra.mxu0 %v9207_v53  ;;  %7956 = vmatprep.mubr.f32.mxu0 %v10774_v32  ;;  %v3859_v32 = vld [vmem:[#allocation20 + $0x320] sm:$0xff] }
 0x6aa   :  { %9212 = vmatprep.subr.bf16.mxu0 %v9211_v22  ;;  %v9227_v53 = vpack.c.bf16 %v3860_v28, %v3859_v32  ;;  %v4044_v32 = vld [vmem:[#allocation20 + $0x3c0] sm:$0xff]  ;;  %v4045_v28 = vld [vmem:[#allocation20 + $0x3c8] sm:$0xff] }
 0x6ac   :  { %7957 = vmatmul.mubr.f32.gmra.mrb[68].mxu0 %v10744_v35 }
 0x6ad   :  { %9214 = vmatpush3.bf16.msra.mxu0 %v9211_v22  ;;  %7959 = vmatprep.mubr.f32.mxu0 %v10744_v35  ;;  %v3863_v22 = vld [vmem:[#allocation20 + $0x340] sm:$0xff] }
 0x6ae   :  { %9216 = vmatprep.subr.bf16.mxu0 %v9215_v49 }
 0x6b0   :  { %7960 = vmatmul.mubr.f32.gmra.mrb[70].mxu0 %v10744_v35 }
 0x6b1   :  { %9218 = vmatpush3.bf16.msra.mxu0 %v9215_v49  ;;  %7994 = vmatprep.mubr.f32.mxu0 %v10686_v56  ;;  %v9231_v56 = vpack.c.bf16 %v3862_v41, %v3861_v37  ;;  %v3868_v49 = vld [vmem:[#allocation20 + $0x368] sm:$0xff]  ;;  %v4051_v41 = vld [vmem:[#allocation20 + $0x3f8] sm:$0xff] }
 0x6b2   :  { %9220 = vmatprep.subr.bf16.mxu0 %v9219_v23  ;;  %v4049_v37 = vld [vmem:[#allocation20 + $0x3e8] sm:$0xff] }
 0x6b4   :  { %7995 = vmatmul.mubr.f32.vlgmr.msra.gmra.mrb[24].mxu0 %v10702_v63  ;;  %v9235_v63 = vpack.c.bf16 %v3864_v15, %v3863_v22  ;;  %v4218_v22 = vld [vmem:[#allocation20 + $0x408] sm:$0xff] }
 0x6b5   :  { %9222 = vmatpush3.bf16.msra.mxu0 %v9219_v23  ;;  %7997 = vmatprep.mubr.f32.mxu0 %v10705_v59  ;;  %v3865_v59 = vld [vmem:[#allocation20 + $0x350] sm:$0xff] }
 0x6b6   :  { %9224 = vmatprep.subr.bf16.mxu0 %v9223_v55  ;;  %v4038_v23 = vld [vmem:[#allocation20 + $0x390] sm:$0xff] }
 0x6b8   :  { %7998 = vmatmul.mubr.f32.gmra.mrb[26].mxu0 %v10707_v9  ;;  %v9239_v9 = vpack.c.bf16 %v3866_v51, %v3865_v59  ;;  %v4220_v59 = vld [vmem:[#allocation20 + $0x418] sm:$0xff] }
 0x6b9   :  { %9226 = vmatpush3.bf16.msra.mxu0 %v9223_v55  ;;  %8000 = vmatprep.mubr.f32.mxu0 %v10713_v19  ;;  %v3867_v19 = vld [vmem:[#allocation20 + $0x360] sm:$0xff]  ;;  %v4043_v55 = vld [vmem:[#allocation20 + $0x3b8] sm:$0xff] }
 0x6ba   :  { %9228 = vmatprep.subr.bf16.mxu0 %v9227_v53 }
 0x6bc   :  { %8001 = vmatmul.mubr.f32.gmra.mrb[72].mxu0 %v10711_v57  ;;  %v9243_v57 = vpack.c.bf16 %v3868_v49, %v3867_v19  ;;  %v4223_v19 = vld [vmem:[#allocation20 + $0x430] sm:$0xff]  ;;  %v4224_v49 = vld [vmem:[#allocation20 + $0x438] sm:$0xff] }
 0x6bd   :  { %9230 = vmatpush3.bf16.msra.mxu0 %v9227_v53  ;;  %8003 = vmatprep.mubr.f32.mxu0 %v10717_v14  ;;  %v3869_v14 = vld [vmem:[#allocation20 + $0x370] sm:$0xff]  ;;  %v4047_v53 = vld [vmem:[#allocation20 + $0x3d8] sm:$0xff] }
 0x6be   :  { %9232 = vmatprep.subr.bf16.mxu0 %v9231_v56 }
 0x6c0   :  { %8004 = vmatmul.mubr.f32.gmra.mrb[74].mxu0 %v10719_v6  ;;  %v9247_v6 = vpack.c.bf16 %v3870_v10, %v3869_v14  ;;  %v4226_v14 = vld [vmem:[#allocation20 + $0x448] sm:$0xff]  ;;  %v4227_v10 = vld [vmem:[#allocation20 + $0x450] sm:$0xff] }
 0x6c1   :  { %9234 = vmatpush3.bf16.msra.mxu0 %v9231_v56  ;;  %8006 = vmatprep.mubr.f32.mxu0 %v10723_v27  ;;  %v4036_v27 = vld [vmem:[#allocation20 + $0x380] sm:$0xff] }
 0x6c2   :  { %9236 = vmatprep.subr.bf16.mxu0 %v9235_v63  ;;  %v4217_v56 = vld [vmem:[#allocation20 + $0x400] sm:$0xff] }
 0x6c4   :  { %8007 = vmatmul.mubr.f32.gmra.mrb[32].mxu0 %v10725_v17  ;;  %v10900_v17 = vld [vmem:[#allocation5 + $0x81] sm:$0xff] }
 0x6c5   :  { %9238 = vmatpush3.bf16.msra.mxu0 %v9235_v63  ;;  %8009 = vmatprep.mubr.f32.mxu0 %v10729_v33  ;;  %v9251_v33 = vpack.c.bf16 %v4037_v18, %v4036_v27  ;;  %v4219_v63 = vld [vmem:[#allocation20 + $0x410] sm:$0xff]  ;;  %v4229_v18 = vld [vmem:[#allocation20 + $0x460] sm:$0xff] }
 0x6c6   :  { %9240 = vmatprep.subr.bf16.mxu0 %v9239_v9  ;;  %v9287_v51 = vpack.c.bf16 %v4220_v59, %v4219_v63  ;;  %v10966_v59 = vld [vmem:[#allocation5 + $0x68] sm:$0xff] }
 0x6c8   :  { %8010 = vmatmul.mubr.f32.gmra.mrb[34].mxu0 %v10732_v13  ;;  %v9255_v13 = vpack.c.bf16 %v4039_v50, %v4038_v23  ;;  %v4231_v23 = vld [vmem:[#allocation20 + $0x470] sm:$0xff]  ;;  %v4232_v50 = vld [vmem:[#allocation20 + $0x478] sm:$0xff] }
 0x6c9   :  { %9242 = vmatpush3.bf16.msra.mxu0 %v9239_v9  ;;  %8012 = vmatprep.mubr.f32.mxu0 %v10737_v52  ;;  %v4040_v52 = vld [vmem:[#allocation20 + $0x3a0] sm:$0xff] }
 0x6ca   :  { %9244 = vmatprep.subr.bf16.mxu0 %v9243_v57  ;;  %v4221_v9 = vld [vmem:[#allocation20 + $0x420] sm:$0xff] }
 0x6cc   :  { %8013 = vmatmul.mubr.f32.gmra.mrb[76].mxu0 %v10735_v1  ;;  %v9259_v1 = vpack.c.bf16 %v4041_v61, %v4040_v52  ;;  %v11268_v52 = vld [vmem:[#allocation29_spill] sm:$0xff] }
 0x6cd   :  { %9246 = vmatpush3.bf16.msra.mxu0 %v9243_v57  ;;  %8015 = vmatprep.mubr.f32.mxu0 %v10741_v36  ;;  %v4042_v36 = vld [vmem:[#allocation20 + $0x3b0] sm:$0xff]  ;;  %v4225_v57 = vld [vmem:[#allocation20 + $0x440] sm:$0xff] }
 0x6ce   :  { %9248 = vmatprep.subr.bf16.mxu0 %v9247_v6 }
 0x6d0   :  { %8016 = vmatmul.mubr.f32.gmra.mrb[78].mxu0 %v10900_v17 }
 0x6d1   :  { %9250 = vmatpush3.bf16.msra.mxu0 %v9247_v6  ;;  %8050 = vmatprep.mubr.f32.mxu0 %v10779_v24  ;;  %v9263_v24 = vpack.c.bf16 %v4043_v55, %v4042_v36  ;;  %v4228_v6 = vld [vmem:[#allocation20 + $0x458] sm:$0xff] }
 0x6d2   :  { %9252 = vmatprep.subr.bf16.mxu0 %v9251_v33  ;;  %v4401_v36 = vld [vmem:[#allocation20 + $0x498] sm:$0xff] }
 0x6d4   :  { %8051 = vmatmul.mubr.f32.vlgmr.msra.gmra.mrb[24].mxu0 %v10782_v25  ;;  %v9267_v25 = vpack.c.bf16 %v4045_v28, %v4044_v32  ;;  %v4403_v32 = vld [vmem:[#allocation20 + $0x4a8] sm:$0xff] }
 0x6d5   :  { %9254 = vmatpush3.bf16.msra.mxu0 %v9251_v33  ;;  %8053 = vmatprep.mubr.f32.mxu0 %v10785_v62  ;;  %v4046_v62 = vld [vmem:[#allocation20 + $0x3d0] sm:$0xff] }
 0x6d6   :  { %9256 = vmatprep.subr.bf16.mxu0 %v9255_v13 }
 0x6d8   :  { %8054 = vmatmul.mubr.f32.gmra.mrb[26].mxu0 %v10788_v29  ;;  %v9271_v29 = vpack.c.bf16 %v4047_v53, %v4046_v62  ;;  %v4404_v62 = vld [vmem:[#allocation20 + $0x4b0] sm:$0xff]  ;;  %v4405_v53 = vld [vmem:[#allocation20 + $0x4b8] sm:$0xff] }
 0x6d9   :  { %9258 = vmatpush3.bf16.msra.mxu0 %v9255_v13  ;;  %8056 = vmatprep.mubr.f32.mxu0 %v10793_v8  ;;  %v4048_v8 = vld [vmem:[#allocation20 + $0x3e0] sm:$0xff]  ;;  %v4399_v13 = vld [vmem:[#allocation20 + $0x488] sm:$0xff] }
 0x6da   :  { %9260 = vmatprep.subr.bf16.mxu0 %v9259_v1 }
 0x6dc   :  { %8057 = vmatmul.mubr.f32.gmra.mrb[80].mxu0 %v10791_v30  ;;  %v9275_v30 = vpack.c.bf16 %v4049_v37, %v4048_v8  ;;  %v4407_v8 = vld [vmem:[#allocation20 + $0x4c8] sm:$0xff]  ;;  %v4408_v37 = vld [vmem:[#allocation20 + $0x4d0] sm:$0xff] }
 0x6dd   :  { %9262 = vmatpush3.bf16.msra.mxu0 %v9259_v1  ;;  %8059 = vmatprep.mubr.f32.mxu0 %v10797_v39  ;;  %v4050_v39 = vld [vmem:[#allocation20 + $0x3f0] sm:$0xff] }
 0x6de   :  { %9264 = vmatprep.subr.bf16.mxu0 %v9263_v24  ;;  %v4400_v1 = vld [vmem:[#allocation20 + $0x490] sm:$0xff] }
 0x6df   :  { %v9319_v55 = vpack.c.bf16 %v4401_v36, %v4400_v1  ;;  %v10996_v1 = vld [vmem:[#allocation5 + $0x49] sm:$0xff] }
 0x6e0   :  { %8060 = vmatmul.mubr.f32.gmra.mrb[82].mxu0 %v10799_v34  ;;  %v9279_v34 = vpack.c.bf16 %v4051_v41, %v4050_v39 }
 0x6e1   :  { %9266 = vmatpush3.bf16.msra.mxu0 %v9263_v24  ;;  %8062 = vmatprep.mubr.f32.mxu0 %v10803_v4 }
 0x6e2   :  { %9268 = vmatprep.subr.bf16.mxu0 %v9267_v25 }
 0x6e4   :  { %8063 = vmatmul.mubr.f32.gmra.mrb[32].mxu0 %v10806_v47  ;;  %v10920_v47 = vld [vmem:[#allocation5 + $0x82] sm:$0xff] }
 0x6e5   :  { %9270 = vmatpush3.bf16.msra.mxu0 %v9267_v25  ;;  %8065 = vmatprep.mubr.f32.mxu0 %v10809_v7  ;;  %v9283_v7 = vpack.c.bf16 %v4218_v22, %v4217_v56  ;;  %v10960_v56 = vld [vmem:[#allocation5 + $0x58] sm:$0xff]  ;;  %v4410_v22 = vld [vmem:[#allocation20 + $0x4e0] sm:$0xff] }
 0x6e6   :  { %9272 = vmatprep.subr.bf16.mxu0 %v9271_v29 }
 0x6e8   :  { %8066 = vmatmul.mubr.f32.gmra.mrb[34].mxu0 %v10812_v42 }
 0x6e9   :  { %9274 = vmatpush3.bf16.msra.mxu0 %v9271_v29  ;;  %8068 = vmatprep.mubr.f32.mxu0 %v10817_v2  ;;  %v4406_v29 = vld [vmem:[#allocation20 + $0x4c0] sm:$0xff] }
 0x6ea   :  { %9276 = vmatprep.subr.bf16.mxu0 %v9275_v30 }
 0x6eb   :  { %v7722_v4 = vpop.f32.mrb[28].mxu0 }
 0x6ec   :  { %v10916_v15 = vpop.f32.mrb[29].mxu0  ;;  %8069 = vmatmul.mubr.f32.gmra.mrb[84].mxu0 %v10815_v54  ;;  %v4222_v54 = vld [vmem:[#allocation20 + $0x428] sm:$0xff] }
 0x6ed   :  { %9278 = vmatpush3.bf16.msra.mxu0 %v9275_v30  ;;  %8071 = vmatprep.mubr.f32.mxu0 %v10821_v12  ;;  %v9291_v12 = vpack.c.bf16 %v4222_v54, %v4221_v9  ;;  %v4409_v30 = vld [vmem:[#allocation20 + $0x4d8] sm:$0xff]  ;;  %v4579_v54 = vld [vmem:[#allocation20 + $0x500] sm:$0xff] }
 0x6ee   :  { %9280 = vmatprep.subr.bf16.mxu0 %v9279_v34 }
 0x6ef   :  { %v7725_v42 = vpop.f32.mrb[30].mxu0 }
 0x6f0   :  { %8072 = vmatmul.mubr.f32.gmra.mrb[86].mxu0 %v10920_v47  ;;  %v2932_v2 = vpop.f32.mrb[31].mxu0  ;;  %v10963_v42 = vld [vmem:[#allocation5 + $0x60] sm:$0xff] }
 0x6f1   :  { %9282 = vmatpush3.bf16.msra.mxu0 %v9279_v34  ;;  %8106 = vmatprep.mubr.f32.mxu0 %v10824_v20  ;;  %v9295_v20 = vpack.c.bf16 %v4224_v49, %v4223_v19  ;;  %v9335_v34 = vpack.c.bf16 %v4409_v30, %v4408_v37  ;;  %v4412_v2 = vld [vmem:[#allocation20 + $0x4f0] sm:$0xff]  ;;  %v11013_v37 = vld [vmem:[#allocation5 + $0x69] sm:$0xff] }
 0x6f2   :  { %9284 = vmatprep.subr.bf16.mxu0 %v9283_v7  ;;  %v4593_v30 = vld [vmem:[#allocation20 + $0x570] sm:$0xff] }
 0x6f4   :  { %8107 = vmatmul.mubr.f32.vlgmr.msra.gmra.mrb[24].mxu0 %v10827_v31  ;;  %v9299_v31 = vpack.c.bf16 %v4226_v14, %v4225_v57  ;;  %v4582_v57 = vld [vmem:[#allocation20 + $0x518] sm:$0xff] }
 0x6f5   :  { %9286 = vmatpush3.bf16.msra.mxu0 %v9283_v7  ;;  %8109 = vmatprep.mubr.f32.mxu0 %v10830_v0 }
 0x6f6   :  { %9288 = vmatprep.subr.bf16.mxu0 %v9287_v51 }
 0x6f8   :  { %8110 = vmatmul.mubr.f32.gmra.mrb[26].mxu0 %v10833_v38  ;;  %v9303_v38 = vpack.c.bf16 %v4228_v6, %v4227_v10 }
 0x6f9   :  { %9290 = vmatpush3.bf16.msra.mxu0 %v9287_v51  ;;  %8112 = vmatprep.mubr.f32.mxu0 %v10838_v5  ;;  %v4413_v51 = vld [vmem:[#allocation20 + $0x4f8] sm:$0xff] }
 0x6fa   :  { %9292 = vmatprep.subr.bf16.mxu0 %v9291_v12  ;;  %v9343_v9 = vpack.c.bf16 %v4413_v51, %v4412_v2  ;;  %v4762_v2 = vld [vmem:[#allocation20 + $0x590] sm:$0xff]  ;;  %v4763_v51 = vld [vmem:[#allocation20 + $0x598] sm:$0xff] }
 0x6fc   :  { %8113 = vmatmul.mubr.f32.gmra.mrb[88].mxu0 %v10836_v45  ;;  %v4230_v45 = vld [vmem:[#allocation20 + $0x468] sm:$0xff] }
 0x6fd   :  { %9294 = vmatpush3.bf16.msra.mxu0 %v9291_v12  ;;  %8115 = vmatprep.mubr.f32.mxu0 %v10842_v48  ;;  %v9307_v48 = vpack.c.bf16 %v4230_v45, %v4229_v18  ;;  %v4580_v12 = vld [vmem:[#allocation20 + $0x508] sm:$0xff]  ;;  %v10981_v45 = vld [vmem:[#allocation5 + $0x21] sm:$0xff] }
 0x6fe   :  { %9296 = vmatprep.subr.bf16.mxu0 %v9295_v20  ;;  %v9347_v19 = vpack.c.bf16 %v4580_v12, %v4579_v54  ;;  %v4563_v54 = vld [vmem:[#allocation5 + $0x12] sm:$0xff] }
 0x6ff   :  { %v7734_v0 = vpop.f32.mrb[36].mxu0 }
 0x700   :  { %v10930_v27 = vpop.f32.mrb[37].mxu0  ;;  %8116 = vmatmul.mubr.f32.gmra.mrb[90].mxu0 %v10844_v16  ;;  %v9311_v16 = vpack.c.bf16 %v4232_v50, %v4231_v23  ;;  %v4382_v0 = vld [vmem:[#allocation5 + $0x11] sm:$0xff]  ;;  %v10986_v23 = vld [vmem:[#allocation5 + $0x29] sm:$0xff]  ;;  %v4585_v50 = vld [vmem:[#allocation20 + $0x530] sm:$0xff] }
 0x701   :  { %9298 = vmatpush3.bf16.msra.mxu0 %v9295_v20  ;;  %8118 = vmatprep.mubr.f32.mxu0 %v10848_v26  ;;  %v4398_v26 = vld [vmem:[#allocation20 + $0x480] sm:$0xff]  ;;  %v4581_v20 = vld [vmem:[#allocation20 + $0x510] sm:$0xff] }
 0x702   :  { %9300 = vmatprep.subr.bf16.mxu0 %v9299_v31  ;;  %v9351_v6 = vpack.c.bf16 %v4582_v57, %v4581_v20  ;;  %v4765_v57 = vld [vmem:[#allocation20 + $0x5a8] sm:$0xff] }
 0x703   :  { %v7737_v5 = vpop.f32.mrb[38].mxu0 }
 0x704   :  { %v2969_v33 = vpop.f32.mrb[39].mxu0  ;;  %8119 = vmatmul.mubr.f32.gmra.mrb[32].mxu0 %v10851_v21  ;;  %v10940_v21 = vld [vmem:[#allocation5 + $0x83] sm:$0xff]  ;;  %v4584_v5 = vld [vmem:[#allocation20 + $0x528] sm:$0xff] }
 0x705   :  { %9302 = vmatpush3.bf16.msra.mxu0 %v9299_v31  ;;  %8121 = vmatprep.mubr.f32.mxu0 %v10854_v11  ;;  %v9315_v11 = vpack.c.bf16 %v4399_v13, %v4398_v26  ;;  %v10972_v31 = vld [vmem:[#allocation2] sm:$0xff]  ;;  %v10990_v26 = vld [vmem:[#allocation5 + $0x39] sm:$0xff]  ;;  %v10992_v13 = vld [vmem:[#allocation5 + $0x41] sm:$0xff] }
 0x706   :  { %9304 = vmatprep.subr.bf16.mxu0 %v9303_v38  ;;  %v10984_v33 = vld [vmem:[#allocation5 + $0x31] sm:$0xff] }
 0x708   :  { %8122 = vmatmul.mubr.f32.gmra.mrb[34].mxu0 %v10857_v40 }
 0x709   :  { %9306 = vmatpush3.bf16.msra.mxu0 %v9303_v38  ;;  %8124 = vmatprep.mubr.f32.mxu0 %v10862_v46  ;;  %v4583_v38 = vld [vmem:[#allocation20 + $0x520] sm:$0xff] }
 0x70a   :  { %9308 = vmatprep.subr.bf16.mxu0 %v9307_v48 }
 0x70c   :  { %8125 = vmatmul.mubr.f32.gmra.mrb[92].mxu0 %v11268_v52 }
 0x70d   :  { %9310 = vmatpush3.bf16.msra.mxu0 %v9307_v48  ;;  %8127 = vmatprep.mubr.f32.mxu0 %v10866_v58  ;;  %v4402_v58 = vld [vmem:[#allocation20 + $0x4a0] sm:$0xff]  ;;  %v9355_v48 = vpack.c.bf16 %v4584_v5, %v4583_v38  ;;  %v5487_v5 = vld [vmem:[#allocation20 + $0x798] sm:$0xff] }
 0x70e   :  { %9312 = vmatprep.subr.bf16.mxu0 %v9311_v16  ;;  %v9323_v25 = vpack.c.bf16 %v4403_v32, %v4402_v58  ;;  %v10999_v58 = vld [vmem:[#allocation5 + $0x51] sm:$0xff] }
 0x70f   :  { %v7778_v61 = vpop.f32.mrb[40].mxu0 }
 0x710   :  { %v3062_v40 = vpop.f32.mrb[41].mxu0  ;;  %8128 = vmatmul.mubr.f32.gmra.mrb[94].mxu0 %v10940_v21  ;;  %v4588_v61 = vld [vmem:[#allocation20 + $0x548] sm:$0xff] }
 0x711   :  { %v10944_v46 = vadd.f32 %v3062_v40, %v10916_v15  ;;  %9314 = vmatpush3.bf16.msra.mxu0 %v9311_v16  ;;  %8162 = vmatprep.mubr.f32.mxu0 %v10748_v3  ;;  %v9327_v3 = vpack.c.bf16 %v4405_v53, %v4404_v62  ;;  %v4411_v15 = vld [vmem:[#allocation20 + $0x4e8] sm:$0xff]  ;;  %v4586_v16 = vld [vmem:[#allocation20 + $0x538] sm:$0xff]  ;;  %v4591_v53 = vld [vmem:[#allocation20 + $0x560] sm:$0xff] }
 0x712   :  { %9316 = vmatprep.subr.bf16.mxu0 %v9315_v11  ;;  %v9339_v63 = vpack.c.bf16 %v4411_v15, %v4410_v22  ;;  %v9359_v52 = vpack.c.bf16 %v4586_v16, %v4585_v50  ;;  %v11005_v62 = vld [vmem:[#allocation5 + $0x59] sm:$0xff]  ;;  %v11021_v15 = vld [vmem:[#allocation5 + $0x89] sm:$0xff] }
 0x713   :  { %v7781_v24 = vpop.f32.mrb[42].mxu0  ;;  %v4761_v22 = vld [vmem:[#allocation20 + $0x588] sm:$0xff]  ;;  %v11040_v16 = vld [vmem:[#allocation5 + $0x2a] sm:$0xff] }
 0x714   :  { %v3071_v28 = vpop.f32.mrb[43].mxu0  ;;  %8163 = vmatmul.mubr.f32.vlgmr.msra.gmra.mrb[24].mxu0 %v10752_v60  ;;  %v9331_v60 = vpack.c.bf16 %v4407_v8, %v4406_v29  ;;  %v11008_v8 = vld [vmem:[#allocation5 + $0x61] sm:$0xff] }
 0x715   :  { %9318 = vmatpush3.bf16.msra.mxu0 %v9315_v11  ;;  %8165 = vmatprep.mubr.f32.mxu0 %v10755_v44  ;;  %v4587_v11 = vld [vmem:[#allocation20 + $0x540] sm:$0xff] }
 0x716   :  { %9320 = vmatprep.subr.bf16.mxu0 %v9319_v55  ;;  %v9363_v36 = vpack.c.bf16 %v4588_v61, %v4587_v11  ;;  %v4767_v11 = vld [vmem:[#allocation20 + $0x5b8] sm:$0xff]  ;;  %v11046_v61 = vld [vmem:[#allocation5 + $0x3a] sm:$0xff] }
 0x718   :  { %8166 = vmatmul.mubr.f32.gmra.mrb[26].mxu0 %v10758_v43  ;;  %v10954_v43 = vld [vmem:[#allocation5 + $0x50] sm:$0xff] }
 0x719   :  { %9322 = vmatpush3.bf16.msra.mxu0 %v9319_v55  ;;  %8168 = vmatprep.mubr.f32.mxu0 %v10744_v35  ;;  %v4590_v55 = vld [vmem:[#allocation20 + $0x558] sm:$0xff] }
 0x71a   :  { %9324 = vmatprep.subr.bf16.mxu0 %v9323_v25 }
 0x71c   :  { %8169 = vmatmul.mubr.f32.gmra.mrb[96].mxu0 %v10744_v35 }
 0x71d   :  { %9326 = vmatpush3.bf16.msra.mxu0 %v9323_v25  ;;  %8171 = vmatprep.mubr.f32.mxu0 %v10744_v35 }
 0x71e   :  { %9328 = vmatprep.subr.bf16.mxu0 %v9327_v3 }
 0x71f   :  { %v7790_v44 = vpop.f32.mrb[44].mxu0 }
 0x720   :  { %v3099_v39 = vpop.f32.mrb[45].mxu0  ;;  %8172 = vmatmul.mubr.f32.gmra.mrb[98].mxu0 %v10744_v35 }
 0x721   :  { %v10957_v41 = vadd.f32 %v3099_v39, %v10930_v27  ;;  %9330 = vmatpush3.bf16.msra.mxu0 %v9327_v3  ;;  %8174 = vmatprep.mubr.f32.mxu0 %v10954_v43  ;;  %v4592_v3 = vld [vmem:[#allocation20 + $0x568] sm:$0xff]  ;;  %v4594_v39 = vld [vmem:[#allocation20 + $0x578] sm:$0xff] }
 0x722   :  { %9332 = vmatprep.subr.bf16.mxu0 %v9331_v60  ;;  %v9371_v44 = vpack.c.bf16 %v4592_v3, %v4591_v53  ;;  %v11056_v53 = vld [vmem:[#allocation5 + $0x4a] sm:$0xff] }
 0x723   :  { %v7793_v4 = vpop.f32.mrb[46].mxu0 }
 0x724   :  { %v3108_v7 = vpop.f32.mrb[47].mxu0  ;;  %8175 = vmatmul.mubr.f32.gmra.mrb[32].mxu0 %v10960_v56  ;;  %v4760_v4 = vld [vmem:[#allocation20 + $0x580] sm:$0xff] }
 0x725   :  { %9334 = vmatpush3.bf16.msra.mxu0 %v9331_v60  ;;  %8177 = vmatprep.mubr.f32.mxu0 %v10963_v42  ;;  %v11011_v60 = vld [vmem:[#allocation5 + $0x71] sm:$0xff]  ;;  %v9379_v7 = vpack.c.bf16 %v4761_v22, %v4760_v4 }
 0x726   :  { %9336 = vmatprep.subr.bf16.mxu0 %v9335_v34  ;;  %v11060_v22 = vld [vmem:[#allocation5 + $0x52] sm:$0xff] }
 0x728   :  { %8178 = vmatmul.mubr.f32.gmra.mrb[34].mxu0 %v10966_v59 }
 0x729   :  { %9338 = vmatpush3.bf16.msra.mxu0 %v9335_v34  ;;  %8180 = vmatprep.mubr.f32.mxu0 %v10744_v35  ;;  %v9375_v34 = vpack.c.bf16 %v4594_v39, %v4593_v30  ;;  %v4771_v30 = vld [vmem:[#allocation20 + $0x5d8] sm:$0xff]  ;;  %v5490_v39 = vld [vmem:[#allocation20 + $0x7b0] sm:$0xff] }
 0x72a   :  { %9340 = vmatprep.subr.bf16.mxu0 %v9339_v63 }
 0x72c   :  { %8181 = vmatmul.mubr.f32.gmra.mrb[100].mxu0 %v10744_v35 }
 0x72d   :  { %9342 = vmatpush3.bf16.msra.mxu0 %v9339_v63  ;;  %8183 = vmatprep.mubr.f32.mxu0 %v10744_v35  ;;  %v10978_v35 = vld [vmem:[#allocation5 + $0x19] sm:$0xff] }
 0x72e   :  { %9344 = vmatprep.subr.bf16.mxu0 %v9343_v9 }
 0x72f   :  { %v7834_v49 = vpop.f32.mrb[48].mxu0 }
 0x730   :  { %v3233_v14 = vpop.f32.mrb[49].mxu0  ;;  %8184 = vmatmul.mubr.f32.gmra.mrb[102].mxu0 %v10972_v31  ;;  %v4764_v49 = vld [vmem:[#allocation20 + $0x5a0] sm:$0xff] }
 0x731   :  { %v10976_v10 = vadd.f32 %v3233_v14, %v10944_v46  ;;  %9346 = vmatpush3.bf16.msra.mxu0 %v9343_v9  ;;  %8218 = vmatprep.mubr.f32.mxu0 %v4382_v0  ;;  %v4589_v46 = vld [vmem:[#allocation20 + $0x550] sm:$0xff]  ;;  %v5484_v14 = vld [vmem:[#allocation20 + $0x780] sm:$0xff]  ;;  %v5485_v0 = vld [vmem:[#allocation20 + $0x788] sm:$0xff] }
 0x732   :  { %9348 = vmatprep.subr.bf16.mxu0 %v9347_v19  ;;  %v9367_v28 = vpack.c.bf16 %v4590_v55, %v4589_v46  ;;  %v11032_v38 = vpack.c.bf16 %v5485_v0, %v5484_v14  ;;  %v11048_v46 = vld [vmem:[#allocation5 + $0x42] sm:$0xff] }
 0x733   :  { %v7837_v27 = vpop.f32.mrb[50].mxu0  ;;  %v5494_v0 = vld [vmem:[#allocation20 + $0x7d0] sm:$0xff] }
 0x734   :  { %v3242_v18 = vpop.f32.mrb[51].mxu0  ;;  %8219 = vmatmul.mubr.f32.vlgmr.msra.gmra.mrb[24].mxu0 %v10978_v35  ;;  %v11030_v27 = vld [vmem:[#allocation5 + $0x22] sm:$0xff]  ;;  %9539 = vmatprep.subr.bf16.mxu1 %v11032_v38 }
 0x735   :  { %9350 = vmatpush3.bf16.msra.mxu0 %v9347_v19  ;;  %8221 = vmatprep.mubr.f32.mxu0 %v10981_v45  ;;  %v11027_v19 = vld [vmem:[#allocation5 + $0x1a] sm:$0xff]  ;;  %v11035_v18 = vld [vmem:[#allocation5 + $0x32] sm:$0xff] }
 0x736   :  { %9352 = vmatprep.subr.bf16.mxu0 %v9351_v6  ;;  %9547 = vmatpush3.bf16.msra.mxu1 %v11032_v38 }
 0x738   :  { %8222 = vmatmul.mubr.f32.gmra.mrb[26].mxu0 %v10986_v23 }
 0x739   :  { %9354 = vmatpush3.bf16.msra.mxu0 %v9351_v6  ;;  %8224 = vmatprep.mubr.f32.mxu0 %v10984_v33 }
 0x73a   :  { %9356 = vmatprep.subr.bf16.mxu0 %v9355_v48 }
 0x73c   :  { %8225 = vmatmul.mubr.f32.gmra.mrb[104].mxu0 %v10990_v26 }
 0x73d   :  { %9358 = vmatpush3.bf16.msra.mxu0 %v9355_v48  ;;  %8227 = vmatprep.mubr.f32.mxu0 %v10992_v13  ;;  %v9387_v48 = vpack.c.bf16 %v4765_v57, %v4764_v49  ;;  %v5492_v49 = vld [vmem:[#allocation20 + $0x7c0] sm:$0xff] }
 0x73e   :  { %9360 = vmatprep.subr.bf16.mxu0 %v9359_v52 }
 0x73f   :  { %v7846_v40 = vpop.f32.mrb[52].mxu0 }
 0x740   :  { %v3270_v24 = vpop.f32.mrb[53].mxu0  ;;  %8228 = vmatmul.mubr.f32.gmra.mrb[106].mxu0 %v10996_v1  ;;  %v5489_v40 = vld [vmem:[#allocation20 + $0x7a8] sm:$0xff] }
 0x741   :  { %v11002_v32 = vadd.f32 %v3270_v24, %v10957_v41  ;;  %9362 = vmatpush3.bf16.msra.mxu0 %v9359_v52  ;;  %8230 = vmatprep.mubr.f32.mxu0 %v10999_v58  ;;  %v11017_v41 = vld [vmem:[#allocation5 + $0x79] sm:$0xff] }
 0x742   :  { %9364 = vmatprep.subr.bf16.mxu0 %v9363_v36  ;;  %v4766_v52 = vld [vmem:[#allocation20 + $0x5b0] sm:$0xff] }
 0x743   :  { %v7849_v25 = vpop.f32.mrb[54].mxu0  ;;  %v9391_v55 = vpack.c.bf16 %v4767_v11, %v4766_v52  ;;  %v11083_v52 = vld [vmem:[#allocation5 + $0x6a] sm:$0xff]  ;;  %v4774_v11 = vld [vmem:[#allocation20 + $0x5f0] sm:$0xff] }
 0x744   :  { %v3279_v29 = vpop.f32.mrb[55].mxu0  ;;  %8231 = vmatmul.mubr.f32.gmra.mrb[32].mxu0 %v11005_v62  ;;  %v4769_v25 = vld [vmem:[#allocation20 + $0x5c8] sm:$0xff] }
 0x745   :  { %9366 = vmatpush3.bf16.msra.mxu0 %v9363_v36  ;;  %8233 = vmatprep.mubr.f32.mxu0 %v11008_v8  ;;  %v5488_v36 = vld [vmem:[#allocation20 + $0x7a0] sm:$0xff]  ;;  %v4770_v29 = vld [vmem:[#allocation20 + $0x5d0] sm:$0xff] }
 0x746   :  { %9368 = vmatprep.subr.bf16.mxu0 %v9367_v28  ;;  %v11050_v24 = vpack.c.bf16 %v5489_v40, %v5488_v36  ;;  %v4775_v36 = vld [vmem:[#allocation20 + $0x5f8] sm:$0xff]  ;;  %v11089_v40 = vld [vmem:[#allocation5 + $0x7a] sm:$0xff] }
 0x748   :  { %8234 = vmatmul.mubr.f32.gmra.mrb[34].mxu0 %v11013_v37 }
 0x749   :  { %9370 = vmatpush3.bf16.msra.mxu0 %v9367_v28  ;;  %8236 = vmatprep.mubr.f32.mxu0 %v11011_v60  ;;  %v4768_v28 = vld [vmem:[#allocation20 + $0x5c0] sm:$0xff] }
 0x74a   :  { %9372 = vmatprep.subr.bf16.mxu0 %v9371_v44  ;;  %v9395_v3 = vpack.c.bf16 %v4769_v25, %v4768_v28  ;;  %v5497_v28 = vld [vmem:[#allocation20 + $0x7e8] sm:$0xff]  ;;  %v9407_v25 = vpack.c.bf16 %v4775_v36, %v4774_v11 }
 0x74b   :  { %v4946_v11 = vld [vmem:[#allocation20 + $0x628] sm:$0xff] }
 0x74c   :  { %8237 = vmatmul.mubr.f32.gmra.mrb[108].mxu0 %v11017_v41 }
 0x74d   :  { %9374 = vmatpush3.bf16.msra.mxu0 %v9371_v44  ;;  %8239 = vmatprep.mubr.f32.mxu0 %v10900_v17  ;;  %v9383_v17 = vpack.c.bf16 %v4763_v51, %v4762_v2  ;;  %v11068_v2 = vld [vmem:[#allocation5 + $0x5a] sm:$0xff]  ;;  %v9399_v51 = vpack.c.bf16 %v4771_v30, %v4770_v29  ;;  %v4941_v29 = vld [vmem:[#allocation20 + $0x600] sm:$0xff] }
 0x74e   :  { %9376 = vmatprep.subr.bf16.mxu0 %v9375_v34  ;;  %v11097_v30 = vld [vmem:[#allocation5 + $0x8a] sm:$0xff] }
 0x74f   :  { %v7890_v63 = vpop.f32.mrb[56].mxu0 }
 0x750   :  { %v3414_v9 = vpop.f32.mrb[57].mxu0  ;;  %8240 = vmatmul.mubr.f32.gmra.mrb[110].mxu0 %v11021_v15 }
 0x751   :  { %v11025_v12 = vadd.f32 %v3414_v9, %v10976_v10  ;;  %9378 = vmatpush3.bf16.msra.mxu0 %v9375_v34  ;;  %8274 = vmatprep.mubr.f32.mxu0 %v4563_v54  ;;  %v5486_v10 = vld [vmem:[#allocation20 + $0x790] sm:$0xff]  ;;  %v5491_v34 = vld [vmem:[#allocation20 + $0x7b8] sm:$0xff]  ;;  %v4772_v9 = vld [vmem:[#allocation20 + $0x5e0] sm:$0xff] }
 0x752   :  { %9380 = vmatprep.subr.bf16.mxu0 %v9379_v7  ;;  %v11037_v50 = vpack.c.bf16 %v5487_v5, %v5486_v10  ;;  %v11078_v10 = vld [vmem:[#allocation5 + $0x72] sm:$0xff] }
 0x753   :  { %v7893_v20 = vpop.f32.mrb[58].mxu0 }
 0x754   :  { %v3423_v6 = vpop.f32.mrb[59].mxu0  ;;  %8275 = vmatmul.mubr.f32.vlgmr.msra.gmra.mrb[24].mxu0 %v11027_v19  ;;  %9540 = vmatprep.subr.bf16.mxu1 %v11037_v50  ;;  %v5493_v20 = vld [vmem:[#allocation20 + $0x7c8] sm:$0xff] }
 0x755   :  { %9382 = vmatpush3.bf16.msra.mxu0 %v9379_v7  ;;  %8277 = vmatprep.mubr.f32.mxu0 %v11030_v27  ;;  %v11062_v7 = vpack.c.bf16 %v5491_v34, %v5490_v39  ;;  %v11075_v14 = vpack.c.bf16 %v5493_v20, %v5492_v49  ;;  %v5495_v6 = vld [vmem:[#allocation20 + $0x7d8] sm:$0xff]  ;;  %v4943_v34 = vld [vmem:[#allocation20 + $0x610] sm:$0xff]  ;;  %v4744_v49 = vld [vmem:[#allocation5 + $0x13] sm:$0xff] }
 0x756   :  { %9384 = vmatprep.subr.bf16.mxu0 %v9383_v17  ;;  %9548 = vmatpush3.bf16.msra.mxu1 %v11037_v50 }
 0x757   :  { %9541 = vmatprep.subr.bf16.mxu1 %v11050_v24 }
 0x758   :  { %8278 = vmatmul.mubr.f32.gmra.mrb[26].mxu0 %v11040_v16 }
 0x759   :  { %9386 = vmatpush3.bf16.msra.mxu0 %v9383_v17  ;;  %8280 = vmatprep.mubr.f32.mxu0 %v11035_v18  ;;  %v4773_v17 = vld [vmem:[#allocation20 + $0x5e8] sm:$0xff] }
 0x75a   :  { %9388 = vmatprep.subr.bf16.mxu0 %v9387_v48  ;;  %9549 = vmatpush3.bf16.msra.mxu1 %v11050_v24  ;;  %v9403_v5 = vpack.c.bf16 %v4773_v17, %v4772_v9  ;;  %v5498_v9 = vld [vmem:[#allocation20 + $0x7f0] sm:$0xff] }
 0x75b   :  { %9542 = vmatprep.subr.bf16.mxu1 %v11062_v7 }
 0x75c   :  { %8281 = vmatmul.mubr.f32.gmra.mrb[112].mxu0 %v11046_v61 }
 0x75d   :  { %9390 = vmatpush3.bf16.msra.mxu0 %v9387_v48  ;;  %8283 = vmatprep.mubr.f32.mxu0 %v11048_v46  ;;  %v11080_v48 = vpack.c.bf16 %v5495_v6, %v5494_v0  ;;  %v11107_v6 = vld [vmem:[#allocation5 + $0x1b] sm:$0xff] }
 0x75e   :  { %9392 = vmatprep.subr.bf16.mxu0 %v9391_v55  ;;  %9550 = vmatpush3.bf16.msra.mxu1 %v11062_v7 }
 0x75f   :  { %v7902_v44 = vpop.f32.mrb[60].mxu0  ;;  %9543 = vmatprep.subr.bf16.mxu1 %v11075_v14 }
 0x760   :  { %v3451_v4 = vpop.f32.mrb[61].mxu0  ;;  %8284 = vmatmul.mubr.f32.gmra.mrb[114].mxu0 %v11056_v53  ;;  %v4942_v44 = vld [vmem:[#allocation20 + $0x608] sm:$0xff] }
 0x761   :  { %v11065_v63 = vadd.f32 %v3451_v4, %v11002_v32  ;;  %9394 = vmatpush3.bf16.msra.mxu0 %v9391_v55  ;;  %8286 = vmatprep.mubr.f32.mxu0 %v11060_v22  ;;  %v11073_v32 = vld [vmem:[#allocation5 + $0x62] sm:$0xff]  ;;  %v5496_v55 = vld [vmem:[#allocation20 + $0x7e0] sm:$0xff]  ;;  %v9411_v39 = vpack.c.bf16 %v4942_v44, %v4941_v29 }
 0x762   :  { %9396 = vmatprep.subr.bf16.mxu0 %v9395_v3  ;;  %9551 = vmatpush3.bf16.msra.mxu1 %v11075_v14  ;;  %v4947_v29 = vld [vmem:[#allocation20 + $0x630] sm:$0xff]  ;;  %v4948_v44 = vld [vmem:[#allocation20 + $0x638] sm:$0xff] }
 0x763   :  { %v7905_v54 = vpop.f32.mrb[62].mxu0  ;;  %9544 = vmatprep.subr.bf16.mxu1 %v11080_v48 }
 0x764   :  { %v3460_v57 = vpop.f32.mrb[63].mxu0  ;;  %8287 = vmatmul.mubr.f32.gmra.mrb[32].mxu0 %v11068_v2  ;;  %v5499_v54 = vld [vmem:[#allocation20 + $0x7f8] sm:$0xff] }
 0x765   :  { %9398 = vmatpush3.bf16.msra.mxu0 %v9395_v3  ;;  %8289 = vmatprep.mubr.f32.mxu0 %v11073_v32  ;;  %v11091_v3 = vpack.c.bf16 %v5497_v28, %v5496_v55  ;;  %v11101_v20 = vpack.c.bf16 %v5499_v54, %v5498_v9  ;;  %v11111_v55 = vld [vmem:[#allocation5 + $0x23] sm:$0xff]  ;;  %v4950_v9 = vld [vmem:[#allocation20 + $0x648] sm:$0xff] }
 0x766   :  { %9400 = vmatprep.subr.bf16.mxu0 %v9399_v51  ;;  %9552 = vmatpush3.bf16.msra.mxu1 %v11080_v48 }
 0x767   :  { %9545 = vmatprep.subr.bf16.mxu1 %v11091_v3 }
 0x768   :  { %8290 = vmatmul.mubr.f32.gmra.mrb[34].mxu0 %v11083_v52 }
 0x769   :  { %9402 = vmatpush3.bf16.msra.mxu0 %v9399_v51  ;;  %8292 = vmatprep.mubr.f32.mxu0 %v11078_v10  ;;  %v4944_v51 = vld [vmem:[#allocation20 + $0x618] sm:$0xff] }
 0x76a   :  { %9404 = vmatprep.subr.bf16.mxu0 %v9403_v5  ;;  %9553 = vmatpush3.bf16.msra.mxu1 %v11091_v3 }
 0x76b   :  { %9546 = vmatprep.subr.bf16.mxu1 %v11101_v20 }
 0x76c   :  { %8293 = vmatmul.mubr.f32.gmra.mrb[116].mxu0 %v11089_v40 }
 0x76d   :  { %9406 = vmatpush3.bf16.msra.mxu0 %v9403_v5  ;;  %8295 = vmatprep.mubr.f32.mxu0 %v10920_v47  ;;  %v9415_v47 = vpack.c.bf16 %v4944_v51, %v4943_v34  ;;  %v4945_v5 = vld [vmem:[#allocation20 + $0x620] sm:$0xff]  ;;  %v11120_v34 = vld [vmem:[#allocation5 + $0x3b] sm:$0xff] }
 0x76e   :  { %9408 = vmatprep.subr.bf16.mxu0 %v9407_v25  ;;  %9554 = vmatpush3.bf16.msra.mxu1 %v11101_v20  ;;  %v9419_v28 = vpack.c.bf16 %v4946_v11, %v4945_v5  ;;  %11270 = vst [vmem:[#allocation30_spill] sm:$0xff] %v11120_v34  ;;  %v4949_v51 = vld [vmem:[#allocation20 + $0x640] sm:$0xff] }
 0x76f   :  { %v7946_v4 = vpop.f32.mrb[64].mxu0  ;;  %v9427_v54 = vpack.c.bf16 %v4950_v9, %v4949_v51  ;;  %v11129_v11 = vld [vmem:[#allocation5 + $0x53] sm:$0xff] }
 0x770   :  { %v3595_v17 = vpop.f32.mrb[65].mxu0  ;;  %8296 = vmatmul.mubr.f32.gmra.mrb[118].mxu0 %v11097_v30  ;;  %v11122_v4 = vld [vmem:[#allocation5 + $0x43] sm:$0xff]  ;;  %11273 = vst [vmem:[#allocation33_spill] sm:$0xff] %v11129_v11  ;;  %v4953_v51 = vld [vmem:[#allocation20 + $0x660] sm:$0xff]  ;;  %v4954_v9 = vld [vmem:[#allocation20 + $0x668] sm:$0xff] }
 0x771   :  { %v11104_v57 = vadd.f32 %v3595_v17, %v11025_v12  ;;  %9410 = vmatpush3.bf16.msra.mxu0 %v9407_v25  ;;  %8330 = vmatprep.mubr.f32.mxu0 %v4744_v49  ;;  %v11114_v12 = vld [vmem:[#allocation5 + $0x33] sm:$0xff]  ;;  %v11116_v25 = vld [vmem:[#allocation5 + $0x2b] sm:$0xff]  ;;  %11271 = vst [vmem:[#allocation31_spill] sm:$0xff] %v11122_v4 }
 0x772   :  { %9412 = vmatprep.subr.bf16.mxu0 %v9411_v39  ;;  %11269 = vst [vmem:[#allocation29_spill] sm:$0xff] %v11114_v12  ;;  %v11126_v49 = vld [vmem:[#allocation5 + $0x4b] sm:$0xff] }
 0x773   :  { %v7949_v0 = vpop.f32.mrb[66].mxu0  ;;  %11272 = vst [vmem:[#allocation32_spill] sm:$0xff] %v11126_v49 }
 0x774   :  { %v3604_v36 = vpop.f32.mrb[67].mxu0  ;;  %8331 = vmatmul.mubr.f32.vlgmr.msra.gmra.mrb[24].mxu0 %v11107_v6  ;;  %v4952_v0 = vld [vmem:[#allocation20 + $0x658] sm:$0xff] }
 0x775   :  { %9414 = vmatpush3.bf16.msra.mxu0 %v9411_v39  ;;  %8333 = vmatprep.mubr.f32.mxu0 %v11111_v55  ;;  %v9423_v39 = vpack.c.bf16 %v4948_v44, %v4947_v29  ;;  %v11135_v44 = vld [vmem:[#allocation5 + $0x5b] sm:$0xff] }
 0x776   :  { %9416 = vmatprep.subr.bf16.mxu0 %v9415_v47  ;;  %11274 = vst [vmem:[#allocation34_spill] sm:$0xff] %v11135_v44 }
 0x778   :  { %8334 = vmatmul.mubr.f32.gmra.mrb[26].mxu0 %v11116_v25 }
 0x779   :  { %9418 = vmatpush3.bf16.msra.mxu0 %v9415_v47  ;;  %8336 = vmatprep.mubr.f32.mxu0 %v11114_v12  ;;  %v4951_v47 = vld [vmem:[#allocation20 + $0x650] sm:$0xff] }
 0x77a   :  { %9420 = vmatprep.subr.bf16.mxu0 %v9419_v28  ;;  %v5128_v12 = vld [vmem:[#allocation20 + $0x6b0] sm:$0xff] }
 0x77c   :  { %8337 = vmatmul.mubr.f32.gmra.mrb[120].mxu0 %v11120_v34 }
 0x77d   :  { %9422 = vmatpush3.bf16.msra.mxu0 %v9419_v28  ;;  %8339 = vmatprep.mubr.f32.mxu0 %v11122_v4  ;;  %v9431_v28 = vpack.c.bf16 %v4952_v0, %v4951_v47  ;;  %v11138_v4 = vld [vmem:[#allocation5 + $0x63] sm:$0xff] }
 0x77e   :  { %9424 = vmatprep.subr.bf16.mxu0 %v9423_v39  ;;  %11275 = vst [vmem:[#allocation35_spill] sm:$0xff] %v11138_v4  ;;  %v4955_v47 = vld [vmem:[#allocation20 + $0x670] sm:$0xff]  ;;  %v4956_v0 = vld [vmem:[#allocation20 + $0x678] sm:$0xff] }
 0x77f   :  { %v7958_v17 = vpop.f32.mrb[68].mxu0 }
 0x780   :  { %v3632_v5 = vpop.f32.mrb[69].mxu0  ;;  %8340 = vmatmul.mubr.f32.gmra.mrb[122].mxu0 %v11126_v49 }
 0x781   :  { %v11132_v36 = vadd.f32 %v3632_v5, %v11065_v63  ;;  %9426 = vmatpush3.bf16.msra.mxu0 %v9423_v39  ;;  %8342 = vmatprep.mubr.f32.mxu0 %v11129_v11  ;;  %v11141_v63 = vld [vmem:[#allocation5 + $0x73] sm:$0xff]  ;;  %v9435_v39 = vpack.c.bf16 %v4954_v9, %v4953_v51  ;;  %v11143_v5 = vld [vmem:[#allocation5 + $0x6b] sm:$0xff]  ;;  %v5124_v11 = vld [vmem:[#allocation20 + $0x690] sm:$0xff] }
 0x782   :  { %9428 = vmatprep.subr.bf16.mxu0 %v9427_v54  ;;  %11276 = vst [vmem:[#allocation36_spill] sm:$0xff] %v11141_v63  ;;  %11277 = vst [vmem:[#allocation37_spill] sm:$0xff] %v11143_v5  ;;  %v4759_v51 = vld [vmem:[#allocation5 + $0x8b] sm:$0xff] }
 0x783   :  { %v7961_v29 = vpop.f32.mrb[70].mxu0 }
 0x784   :  { %v3641_v17 = vpop.f32.mrb[71].mxu0  ;;  %8343 = vmatmul.mubr.f32.gmra.mrb[32].mxu0 %v11135_v44  ;;  %v11147_v29 = vld [vmem:[#allocation5 + $0x7b] sm:$0xff] }
 0x785   :  { %9430 = vmatpush3.bf16.msra.mxu0 %v9427_v54  ;;  %8345 = vmatprep.mubr.f32.mxu0 %v11138_v4  ;;  %11278 = vst [vmem:[#allocation38_spill] sm:$0xff] %v11147_v29  ;;  %v9439_v17 = vpack.c.bf16 %v4956_v0, %v4955_v47  ;;  %v5122_v54 = vld [vmem:[#allocation20 + $0x680] sm:$0xff]  ;;  %v5123_v44 = vld [vmem:[#allocation20 + $0x688] sm:$0xff] }
 0x786   :  { %9432 = vmatprep.subr.bf16.mxu0 %v9431_v28  ;;  %v9443_v9 = vpack.c.bf16 %v5123_v44, %v5122_v54  ;;  %v4927_v44 = vld [vmem:[#allocation5 + $0x28] sm:$0xff] }
 0x788   :  { %8346 = vmatmul.mubr.f32.gmra.mrb[34].mxu0 %v11143_v5  ;;  %v5125_v5 = vld [vmem:[#allocation20 + $0x698] sm:$0xff] }
 0x789   :  { %9434 = vmatpush3.bf16.msra.mxu0 %v9431_v28  ;;  %8348 = vmatprep.mubr.f32.mxu0 %v11141_v63  ;;  %v4925_v63 = vld [vmem:[#allocation5 + $0x18] sm:$0xff]  ;;  %v9447_v47 = vpack.c.bf16 %v5125_v5, %v5124_v11 }
 0x78a   :  { %9436 = vmatprep.subr.bf16.mxu0 %v9435_v39 }
 0x78c   :  { %8349 = vmatmul.mubr.f32.gmra.mrb[124].mxu0 %v11147_v29  ;;  %v5126_v29 = vld [vmem:[#allocation20 + $0x6a0] sm:$0xff] }
 0x78d   :  { %9438 = vmatpush3.bf16.msra.mxu0 %v9435_v39  ;;  %8351 = vmatprep.mubr.f32.mxu0 %v10940_v21  ;;  %v4926_v39 = vld [vmem:[#allocation5 + $0x20] sm:$0xff]  ;;  %v5127_v21 = vld [vmem:[#allocation20 + $0x6a8] sm:$0xff] }
 0x78e   :  { %9440 = vmatprep.subr.bf16.mxu0 %v9439_v17  ;;  %v9451_v54 = vpack.c.bf16 %v5127_v21, %v5126_v29  ;;  %v5135_v21 = vld [vmem:[#allocation20 + $0x6e8] sm:$0xff] }
 0x78f   :  { %v8002_v4 = vpop.f32.mrb[72].mxu0 }
 0x790   :  { %v3776_v28 = vpop.f32.mrb[73].mxu0  ;;  %8352 = vmatmul.mubr.f32.gmra.mrb[126].mxu0 %v4759_v51  ;;  %v2610_v4 = vld [vmem:[#allocation4 + $0x4e] sm:$0xff] }
 0x791   :  { %v11152_v49 = vadd.f32 %v3776_v28, %v11104_v57  ;;  %9442 = vmatpush3.bf16.msra.mxu0 %v9439_v17  ;;  %8386 = vmatprep.mubr.f32.mxu0 %v4925_v63  ;;  %v5129_v57 = vld [vmem:[#allocation20 + $0x6b8] sm:$0xff]  ;;  %v5483_v17 = vld [vmem:[#allocation5 + $0x93] sm:$0xff] }
 0x792   :  { %9444 = vmatprep.subr.bf16.mxu0 %v9443_v9  ;;  %7680 = vmatmul.mubr.f32.gmra.mrb[224].mxu1 %v2610_v4  ;;  %v9455_v11 = vpack.c.bf16 %v5129_v57, %v5128_v12  ;;  %v5131_v63 = vld [vmem:[#allocation20 + $0x6c8] sm:$0xff] }
 0x793   :  { %v8005_v0 = vpop.f32.mrb[74].mxu0  ;;  %8575 = vmatprep.mubr.f32.mxu1 %v4759_v51  ;;  %v5132_v51 = vld [vmem:[#allocation20 + $0x6d0] sm:$0xff]  ;;  %v5304_v57 = vld [vmem:[#allocation20 + $0x708] sm:$0xff] }
 0x794   :  { %v3785_v34 = vpop.f32.mrb[75].mxu0  ;;  %8387 = vmatmul.mubr.f32.vlgmr.msra.gmra.mrb[24].mxu0 %v4926_v39  ;;  %v5134_v39 = vld [vmem:[#allocation20 + $0x6e0] sm:$0xff] }
 0x795   :  { %9446 = vmatpush3.bf16.msra.mxu0 %v9443_v9  ;;  %8389 = vmatprep.mubr.f32.mxu0 %v4927_v44  ;;  %v5130_v34 = vld [vmem:[#allocation20 + $0x6c0] sm:$0xff]  ;;  %v5133_v9 = vld [vmem:[#allocation20 + $0x6d8] sm:$0xff]  ;;  %v9467_v4 = vpack.c.bf16 %v5135_v21, %v5134_v39  ;;  %v5312_v39 = vld [vmem:[#allocation20 + $0x748] sm:$0xff] }
 0x796   :  { %9448 = vmatprep.subr.bf16.mxu0 %v9447_v47  ;;  %8576 = vmatmul.mubr.f32.vlgmr.msra.gmra.mrb[226].mxu1 %v5483_v17  ;;  %v9459_v5 = vpack.c.bf16 %v5131_v63, %v5130_v34  ;;  %v9463_v12 = vpack.c.bf16 %v5133_v9, %v5132_v51  ;;  %v5305_v17 = vld [vmem:[#allocation20 + $0x710] sm:$0xff]  ;;  %v5307_v51 = vld [vmem:[#allocation20 + $0x720] sm:$0xff]  ;;  %v5308_v9 = vld [vmem:[#allocation20 + $0x728] sm:$0xff] }
 0x797   :  { %v5313_v21 = vld [vmem:[#allocation20 + $0x750] sm:$0xff] }
 0x798   :  { %8390 = vmatmul.mubr.f32.gmra.mrb[26].mxu0 %v10972_v31 }
 0x799   :  { %9450 = vmatpush3.bf16.msra.mxu0 %v9447_v47  ;;  %8392 = vmatprep.mubr.f32.mxu0 %v10972_v31 }
 0x79a   :  { %9452 = vmatprep.subr.bf16.mxu0 %v9451_v54 }
 0x79c   :  { %8393 = vmatmul.mubr.f32.gmra.mrb[128].mxu0 %v10972_v31 }
 0x79d   :  { %9454 = vmatpush3.bf16.msra.mxu0 %v9451_v54  ;;  %8395 = vmatprep.mubr.f32.mxu0 %v10972_v31  ;;  %v5137_v54 = vld [vmem:[#allocation20 + $0x6f8] sm:$0xff] }
 0x79e   :  { %9456 = vmatprep.subr.bf16.mxu0 %v9455_v11 }
 0x79f   :  { %v8014_v29 = vpop.f32.mrb[76].mxu0 }
 0x7a0   :  { %v3813_v28 = vpop.f32.mrb[77].mxu0  ;;  %8396 = vmatmul.mubr.f32.gmra.mrb[130].mxu0 %v10954_v43  ;;  %v5136_v43 = vld [vmem:[#allocation20 + $0x6f0] sm:$0xff] }
 0x7a1   :  { %v11160_v47 = vadd.f32 %v3813_v28, %v11132_v36  ;;  %9458 = vmatpush3.bf16.msra.mxu0 %v9455_v11  ;;  %8398 = vmatprep.mubr.f32.mxu0 %v10960_v56  ;;  %v9471_v56 = vpack.c.bf16 %v5137_v54, %v5136_v43  ;;  %v5303_v36 = vld [vmem:[#allocation20 + $0x700] sm:$0xff]  ;;  %v5306_v11 = vld [vmem:[#allocation20 + $0x718] sm:$0xff]  ;;  %v5316_v54 = vld [vmem:[#allocation20 + $0x768] sm:$0xff] }
 0x7a2   :  { %9460 = vmatprep.subr.bf16.mxu0 %v9459_v5 }
 0x7a3   :  { %v8017_v0 = vpop.f32.mrb[78].mxu0 }
 0x7a4   :  { %v3822_v44 = vpop.f32.mrb[79].mxu0  ;;  %8399 = vmatmul.mubr.f32.gmra.mrb[32].mxu0 %v10963_v42  ;;  %v9475_v42 = vpack.c.bf16 %v5304_v57, %v5303_v36  ;;  %v5310_v0 = vld [vmem:[#allocation20 + $0x738] sm:$0xff]  ;;  %v5317_v36 = vld [vmem:[#allocation20 + $0x770] sm:$0xff] }
 0x7a5   :  { %9462 = vmatpush3.bf16.msra.mxu0 %v9459_v5  ;;  %8401 = vmatprep.mubr.f32.mxu0 %v10966_v59  ;;  %v9479_v5 = vpack.c.bf16 %v5306_v11, %v5305_v17  ;;  %v5314_v44 = vld [vmem:[#allocation20 + $0x758] sm:$0xff] }
 0x7a6   :  { %9464 = vmatprep.subr.bf16.mxu0 %v9463_v12  ;;  %v5481_v17 = vld [vmem:[#allocation5 + $0x83] sm:$0xff] }
 0x7a8   :  { %8402 = vmatmul.mubr.f32.gmra.mrb[34].mxu0 %v10972_v31 }
 0x7a9   :  { %9466 = vmatpush3.bf16.msra.mxu0 %v9463_v12  ;;  %8404 = vmatprep.mubr.f32.mxu0 %v10972_v31  ;;  %v9483_v12 = vpack.c.bf16 %v5308_v9, %v5307_v51 }
 0x7aa   :  { %9468 = vmatprep.subr.bf16.mxu0 %v9467_v4 }
 0x7ac   :  { %8405 = vmatmul.mubr.f32.gmra.mrb[132].mxu0 %v10972_v31 }
 0x7ad   :  { %9470 = vmatpush3.bf16.msra.mxu0 %v9467_v4  ;;  %8407 = vmatprep.mubr.f32.mxu0 %v10972_v31 }
 0x7ae   :  { %9472 = vmatprep.subr.bf16.mxu0 %v9471_v56 }
 0x7af   :  { %v8058_v59 = vpop.f32.mrb[80].mxu0 }
 0x7b0   :  { %v3957_v34 = vpop.f32.mrb[81].mxu0  ;;  %8408 = vmatmul.mubr.f32.gmra.mrb[134].mxu0 %v10972_v31  ;;  %v5309_v31 = vld [vmem:[#allocation20 + $0x730] sm:$0xff] }
 0x7b1   :  { %v11171_v63 = vadd.f32 %v3957_v34, %v11152_v49  ;;  %9474 = vmatpush3.bf16.msra.mxu0 %v9471_v56  ;;  %8442 = vmatprep.mubr.f32.mxu0 %v10978_v35  ;;  %v9487_v35 = vpack.c.bf16 %v5310_v0, %v5309_v31  ;;  %v5311_v49 = vld [vmem:[#allocation20 + $0x740] sm:$0xff]  ;;  %v11288_v59 = vld [vmem:[#allocation38_spill] sm:$0xff] }
 0x7b2   :  { %9476 = vmatprep.subr.bf16.mxu0 %v9475_v42 }
 0x7b3   :  { %v8061_v29 = vpop.f32.mrb[82].mxu0 }
 0x7b4   :  { %v3966_v28 = vpop.f32.mrb[83].mxu0  ;;  %8443 = vmatmul.mubr.f32.vlgmr.msra.gmra.mrb[24].mxu0 %v10981_v45  ;;  %v9491_v45 = vpack.c.bf16 %v5312_v39, %v5311_v49 }
 0x7b5   :  { %9478 = vmatpush3.bf16.msra.mxu0 %v9475_v42  ;;  %8445 = vmatprep.mubr.f32.mxu0 %v10986_v23 }
 0x7b6   :  { %9480 = vmatprep.subr.bf16.mxu0 %v9479_v5 }
 0x7b8   :  { %8446 = vmatmul.mubr.f32.gmra.mrb[26].mxu0 %v10984_v33 }
 0x7b9   :  { %9482 = vmatpush3.bf16.msra.mxu0 %v9479_v5  ;;  %8448 = vmatprep.mubr.f32.mxu0 %v10990_v26  ;;  %v9495_v26 = vpack.c.bf16 %v5314_v44, %v5313_v21 }
 0x7ba   :  { %9484 = vmatprep.subr.bf16.mxu0 %v9483_v12 }
 0x7bc   :  { %8449 = vmatmul.mubr.f32.gmra.mrb[136].mxu0 %v10992_v13  ;;  %v5315_v13 = vld [vmem:[#allocation20 + $0x760] sm:$0xff] }
 0x7bd   :  { %9486 = vmatpush3.bf16.msra.mxu0 %v9483_v12  ;;  %8451 = vmatprep.mubr.f32.mxu0 %v10996_v1  ;;  %v9499_v1 = vpack.c.bf16 %v5316_v54, %v5315_v13 }
 0x7be   :  { %9488 = vmatprep.subr.bf16.mxu0 %v9487_v35 }
 0x7bf   :  { %v8070_v23 = vpop.f32.mrb[84].mxu0 }
 0x7c0   :  { %v3994_v4 = vpop.f32.mrb[85].mxu0  ;;  %8452 = vmatmul.mubr.f32.gmra.mrb[138].mxu0 %v10999_v58  ;;  %v5318_v58 = vld [vmem:[#allocation20 + $0x778] sm:$0xff] }
 0x7c1   :  { %v4019_v33 = vadd.f32 %v3994_v4, %v11160_v47  ;;  %9490 = vmatpush3.bf16.msra.mxu0 %v9487_v35  ;;  %8454 = vmatprep.mubr.f32.mxu0 %v11005_v62  ;;  %v5119_v62 = vld [vmem:[#allocation5 + $0x81] sm:$0xff]  ;;  %v9503_v47 = vpack.c.bf16 %v5318_v58, %v5317_v36 }
 0x7c2   :  { %9492 = vmatprep.subr.bf16.mxu0 %v9491_v45 }
 0x7c3   :  { %v8073_v43 = vpop.f32.mrb[86].mxu0 }
 0x7c4   :  { %v4003_v56 = vpop.f32.mrb[87].mxu0  ;;  %8455 = vmatmul.mubr.f32.gmra.mrb[32].mxu0 %v11008_v8  ;;  %v5121_v8 = vld [vmem:[#allocation5 + $0x91] sm:$0xff] }
 0x7c5   :  { %9494 = vmatpush3.bf16.msra.mxu0 %v9491_v45  ;;  %8457 = vmatprep.mubr.f32.mxu0 %v11013_v37 }
 0x7c6   :  { %9496 = vmatprep.subr.bf16.mxu0 %v9495_v26 }
 0x7c8   :  { %8458 = vmatmul.mubr.f32.gmra.mrb[34].mxu0 %v11011_v60 }
 0x7c9   :  { %9498 = vmatpush3.bf16.msra.mxu0 %v9495_v26  ;;  %8460 = vmatprep.mubr.f32.mxu0 %v11017_v41 }
 0x7ca   :  { %9500 = vmatprep.subr.bf16.mxu0 %v9499_v1 }
 0x7cc   :  { %8461 = vmatmul.mubr.f32.gmra.mrb[140].mxu0 %v5119_v62 }
 0x7cd   :  { %9502 = vmatpush3.bf16.msra.mxu0 %v9499_v1  ;;  %8463 = vmatprep.mubr.f32.mxu0 %v11021_v15 }
 0x7ce   :  { %9504 = vmatprep.subr.bf16.mxu0 %v9503_v47 }
 0x7cf   :  { %v8114_v57 = vpop.f32.mrb[88].mxu0 }
 0x7d0   :  { %v4138_v37 = vpop.f32.mrb[89].mxu0  ;;  %8464 = vmatmul.mubr.f32.gmra.mrb[142].mxu0 %v5121_v8 }
 0x7d1   :  { %v4195_v42 = vadd.f32 %v4138_v37, %v11171_v63  ;;  %9506 = vmatpush3.bf16.msra.mxu0 %v9503_v47  ;;  %8498 = vmatprep.mubr.f32.mxu0 %v11027_v19 }
 0x7d2   :  { %9508 = vmatprep.subr.bf16.mxu0 %v11032_v38 }
 0x7d3   :  { %v8117_v60 = vpop.f32.mrb[90].mxu0 }
 0x7d4   :  { %v4147_v41 = vpop.f32.mrb[91].mxu0  ;;  %8499 = vmatmul.mubr.f32.vlgmr.msra.gmra.mrb[24].mxu0 %v11030_v27 }
 0x7d5   :  { %9510 = vmatpush3.bf16.msra.mxu0 %v11032_v38  ;;  %8501 = vmatprep.mubr.f32.mxu0 %v11040_v16  ;;  %v5302_v16 = vld [vmem:[#allocation5 + $0x92] sm:$0xff] }
 0x7d6   :  { %9512 = vmatprep.subr.bf16.mxu0 %v11037_v50 }
 0x7d8   :  { %8502 = vmatmul.mubr.f32.gmra.mrb[26].mxu0 %v11035_v18 }
 0x7d9   :  { %9514 = vmatpush3.bf16.msra.mxu0 %v11037_v50  ;;  %8504 = vmatprep.mubr.f32.mxu0 %v11046_v61  ;;  %v5300_v50 = vld [vmem:[#allocation5 + $0x82] sm:$0xff] }
 0x7da   :  { %9516 = vmatprep.subr.bf16.mxu0 %v11050_v24 }
 0x7dc   :  { %8505 = vmatmul.mubr.f32.gmra.mrb[144].mxu0 %v11048_v46 }
 0x7dd   :  { %9518 = vmatpush3.bf16.msra.mxu0 %v11050_v24  ;;  %8507 = vmatprep.mubr.f32.mxu0 %v11056_v53 }
 0x7de   :  { %9520 = vmatprep.subr.bf16.mxu0 %v11062_v7 }
 0x7df   :  { %v8126_v15 = vpop.f32.mrb[92].mxu0 }
 0x7e0   :  { %v4175_v19 = vpop.f32.mrb[93].mxu0  ;;  %8508 = vmatmul.mubr.f32.gmra.mrb[146].mxu0 %v11060_v22 }
 0x7e1   :  { %v4200_v27 = vadd.f32 %v4175_v19, %v4019_v33  ;;  %9522 = vmatpush3.bf16.msra.mxu0 %v11062_v7  ;;  %8510 = vmatprep.mubr.f32.mxu0 %v11068_v2  ;;  %v11279_v7 = vld [vmem:[#allocation29_spill] sm:$0xff]  ;;  %v11280_v2 = vld [vmem:[#allocation30_spill] sm:$0xff] }
 0x7e2   :  { %9524 = vmatprep.subr.bf16.mxu0 %v11075_v14 }
 0x7e3   :  { %v8129_v38 = vpop.f32.mrb[94].mxu0 }
 0x7e4   :  { %v4184_v18 = vpop.f32.mrb[95].mxu0  ;;  %8511 = vmatmul.mubr.f32.gmra.mrb[32].mxu0 %v11073_v32  ;;  %v11281_v32 = vld [vmem:[#allocation31_spill] sm:$0xff] }
 0x7e5   :  { %9526 = vmatpush3.bf16.msra.mxu0 %v11075_v14  ;;  %8513 = vmatprep.mubr.f32.mxu0 %v11083_v52  ;;  %v11282_v14 = vld [vmem:[#allocation32_spill] sm:$0xff]  ;;  %v11283_v52 = vld [vmem:[#allocation33_spill] sm:$0xff] }
 0x7e6   :  { %9528 = vmatprep.subr.bf16.mxu0 %v11080_v48 }
 0x7e8   :  { %8514 = vmatmul.mubr.f32.gmra.mrb[34].mxu0 %v11078_v10 }
 0x7e9   :  { %9530 = vmatpush3.bf16.msra.mxu0 %v11080_v48  ;;  %8516 = vmatprep.mubr.f32.mxu0 %v11089_v40 }
 0x7ea   :  { %9532 = vmatprep.subr.bf16.mxu0 %v11091_v3 }
 0x7ec   :  { %8517 = vmatmul.mubr.f32.gmra.mrb[148].mxu0 %v5300_v50 }
 0x7ed   :  { %9534 = vmatpush3.bf16.msra.mxu0 %v11091_v3  ;;  %8519 = vmatprep.mubr.f32.mxu0 %v11097_v30  ;;  %v11284_v3 = vld [vmem:[#allocation34_spill] sm:$0xff] }
 0x7ee   :  { %9536 = vmatprep.subr.bf16.mxu0 %v11101_v20 }
 0x7ef   :  { %v8170_v61 = vpop.f32.mrb[96].mxu0 }
 0x7f0   :  { %v4319_v46 = vpop.f32.mrb[97].mxu0  ;;  %8520 = vmatmul.mubr.f32.gmra.mrb[150].mxu0 %v5302_v16 }
 0x7f1   :  { %v4376_v24 = vadd.f32 %v4319_v46, %v4195_v42  ;;  %9538 = vmatpush3.bf16.msra.mxu0 %v11101_v20  ;;  %8554 = vmatprep.mubr.f32.mxu0 %v11107_v6  ;;  %v11285_v6 = vld [vmem:[#allocation35_spill] sm:$0xff] }
 0x7f3   :  { %v8173_v53 = vpop.f32.mrb[98].mxu0 }
 0x7f4   :  { %v4328_v22 = vpop.f32.mrb[99].mxu0  ;;  %8555 = vmatmul.mubr.f32.vlgmr.msra.gmra.mrb[24].mxu0 %v11111_v55  ;;  %v11286_v55 = vld [vmem:[#allocation37_spill] sm:$0xff] }
 0x7f5   :  { %8557 = vmatprep.mubr.f32.mxu0 %v11116_v25  ;;  %v11287_v25 = vld [vmem:[#allocation36_spill] sm:$0xff] }
 0x7f8   :  { %8558 = vmatmul.mubr.f32.gmra.mrb[26].mxu0 %v11279_v7 }
 0x7f9   :  { %8560 = vmatprep.mubr.f32.mxu0 %v11280_v2 }
 0x7fc   :  { %8561 = vmatmul.mubr.f32.gmra.mrb[152].mxu0 %v11281_v32 }
 0x7fd   :  { %8563 = vmatprep.mubr.f32.mxu0 %v11282_v14 }
 0x7ff   :  { %v8182_v10 = vpop.f32.mrb[100].mxu0 }
 0x800   :  { %v4356_v48 = vpop.f32.mrb[101].mxu0  ;;  %8564 = vmatmul.mubr.f32.gmra.mrb[154].mxu0 %v11283_v52 }
 0x801   :  { %v4381_v40 = vadd.f32 %v4356_v48, %v4200_v27  ;;  %8566 = vmatprep.mubr.f32.mxu0 %v11284_v3 }
 0x803   :  { %v8185_v30 = vpop.f32.mrb[102].mxu0 }
 0x804   :  { %v4365_v20 = vpop.f32.mrb[103].mxu0  ;;  %8567 = vmatmul.mubr.f32.gmra.mrb[32].mxu0 %v11285_v6 }
 0x805   :  { %8569 = vmatprep.mubr.f32.mxu0 %v11286_v55 }
 0x808   :  { %8570 = vmatmul.mubr.f32.gmra.mrb[34].mxu0 %v11287_v25 }
 0x809   :  { %8572 = vmatprep.mubr.f32.mxu0 %v11288_v59 }
 0x80c   :  { %8573 = vmatmul.mubr.f32.gmra.mrb[156].mxu0 %v5481_v17 }
 0x80f   :  { %v8226_v11 = vpop.f32.mrb[104].mxu0 }
 0x810   :  { %v4500_v34 = vpop.f32.mrb[105].mxu0  ;;  %v5748_v11 = vld [vmem:[#allocation21] ss:$0 sm:$0xff] }
 0x811   :  { %v4557_v63 = vadd.f32 %v4500_v34, %v4376_v24 }
 0x813   :  { %v8229_v5 = vpop.f32.mrb[106].mxu0 }
 0x814   :  { %v4509_v29 = vpop.f32.mrb[107].mxu0 }
 0x81f   :  { %v8238_v51 = vpop.f32.mrb[108].mxu0 }
 0x820   :  { %v4537_v9 = vpop.f32.mrb[109].mxu0 }
 0x821   :  { %v4562_v28 = vadd.f32 %v4537_v9, %v4381_v40 }
 0x823   :  { %v8241_v12 = vpop.f32.mrb[110].mxu0 }
 0x824   :  { %v4546_v31 = vpop.f32.mrb[111].mxu0 }
 0x82f   :  { %v8282_v0 = vpop.f32.mrb[112].mxu0 }
 0x830   :  { %v4681_v35 = vpop.f32.mrb[113].mxu0 }
 0x831   :  { %v4738_v49 = vadd.f32 %v4681_v35, %v4557_v63 }
 0x833   :  { %v8285_v39 = vpop.f32.mrb[114].mxu0 }
 0x834   :  { %v4690_v45 = vpop.f32.mrb[115].mxu0 }
 0x83f   :  { %v8294_v23 = vpop.f32.mrb[116].mxu0 }
 0x840   :  { %v4718_v21 = vpop.f32.mrb[117].mxu0 }
 0x841   :  { %v4743_v44 = vadd.f32 %v4718_v21, %v4562_v28 }
 0x843   :  { %v8297_v4 = vpop.f32.mrb[118].mxu0 }
 0x844   :  { %v4727_v33 = vpop.f32.mrb[119].mxu0 }
 0x84f   :  { %v8338_v26 = vpop.f32.mrb[120].mxu0 }
 0x850   :  { %v4862_v43 = vpop.f32.mrb[121].mxu0 }
 0x851   :  { %v4919_v13 = vadd.f32 %v4862_v43, %v4738_v49 }
 0x853   :  { %v8341_v54 = vpop.f32.mrb[122].mxu0 }
 0x854   :  { %v4871_v56 = vpop.f32.mrb[123].mxu0 }
 0x85f   :  { %v8350_v1 = vpop.f32.mrb[124].mxu0 }
 0x860   :  { %v4899_v36 = vpop.f32.mrb[125].mxu0 }
 0x861   :  { %v4924_v58 = vadd.f32 %v4899_v36, %v4743_v44 }
 0x863   :  { %v8353_v62 = vpop.f32.mrb[126].mxu0 }
 0x864   :  { %v4908_v47 = vpop.f32.mrb[127].mxu0 }
 0x865   :  { %v2732_v8 = vpop.f32.mrb[224].mxu1 }
 0x866   :  { %v7681_v57 = vpop.f32.mrb[225].mxu1 }
 0x869   :  { %v8577_v37 = vpop.f32.mrb[226].mxu1 }
 0x86a   :  { %v5632_v42 = vpop.f32.mrb[227].mxu1 }
 0x86f   :  { %v8394_v60 = vpop.f32.mrb[128].mxu0 }
 0x870   :  { %v5043_v41 = vpop.f32.mrb[129].mxu0 }
 0x871   :  { %v5100_v15 = vadd.f32 %v5043_v41, %v4919_v13 }
 0x873   :  { %v8397_v19 = vpop.f32.mrb[130].mxu0 }
 0x874   :  { %v5052_v27 = vpop.f32.mrb[131].mxu0 }
 0x87f   :  { %v8406_v38 = vpop.f32.mrb[132].mxu0 }
 0x880   :  { %v5080_v18 = vpop.f32.mrb[133].mxu0 }
 0x881   :  { %v5105_v50 = vadd.f32 %v5080_v18, %v4924_v58 }
 0x883   :  { %v8409_v16 = vpop.f32.mrb[134].mxu0 }
 0x884   :  { %v5089_v61 = vpop.f32.mrb[135].mxu0 }
 0x88f   :  { %v8450_v46 = vpop.f32.mrb[136].mxu0 }
 0x890   :  { %v5224_v24 = vpop.f32.mrb[137].mxu0 }
 0x891   :  { %v5281_v53 = vadd.f32 %v5224_v24, %v5100_v15 }
 0x893   :  { %v8453_v22 = vpop.f32.mrb[138].mxu0 }
 0x894   :  { %v5233_v7 = vpop.f32.mrb[139].mxu0 }
 0x89f   :  { %v8462_v2 = vpop.f32.mrb[140].mxu0 }
 0x8a0   :  { %v5261_v32 = vpop.f32.mrb[141].mxu0 }
 0x8a1   :  { %v5286_v14 = vadd.f32 %v5261_v32, %v5105_v50 }
 0x8a3   :  { %v8465_v10 = vpop.f32.mrb[142].mxu0 }
 0x8a4   :  { %v5270_v48 = vpop.f32.mrb[143].mxu0 }
 0x8af   :  { %v8506_v52 = vpop.f32.mrb[144].mxu0 }
 0x8b0   :  { %v5405_v40 = vpop.f32.mrb[145].mxu0 }
 0x8b1   :  { %v5462_v3 = vadd.f32 %v5405_v40, %v5281_v53 }
 0x8b3   :  { %v8509_v30 = vpop.f32.mrb[146].mxu0 }
 0x8b4   :  { %v5414_v20 = vpop.f32.mrb[147].mxu0 }
 0x8bf   :  { %v8518_v6 = vpop.f32.mrb[148].mxu0 }
 0x8c0   :  { %v5442_v55 = vpop.f32.mrb[149].mxu0 }
 0x8c1   :  { %v5467_v25 = vadd.f32 %v5442_v55, %v5286_v14 }
 0x8c3   :  { %v8521_v59 = vpop.f32.mrb[150].mxu0 }
 0x8c4   :  { %v5451_v17 = vpop.f32.mrb[151].mxu0 }
 0x8c7   :  { %v8556_v34 = vpop.f32.mrb[24].mxu0 }
 0x8c8   :  { %v5657_v63 = vadd.f32 %v8556_v34, %v5748_v11  ;;  %v5566_v5 = vpop.f32.mrb[25].mxu0 }
 0x8c9   :  { %v5656_v29 = vadd.f32 %v5748_v11, %v5566_v5 }
 0x8ca   :  { %v5667_v51 = vmax.f32 %v5657_v63, 0.0 }
 0x8cb   :  { %v5666_v9 = vmax.f32 %v5656_v29, 0.0  ;;  %v8559_v28 = vpop.f32.mrb[26].mxu0 }
 0x8cc   :  { %5677 = vst [vmem:[#allocation6 + $0x5] sm:$0x1f] %v5667_v51  ;;  %v5659_v12 = vadd.f32 %v8559_v28, %v5748_v11  ;;  %v5576_v31 = vpop.f32.mrb[27].mxu0 }
 0x8cd   :  { %5676 = vst [vmem:[#allocation6] sm:$0x1f] %v5666_v9  ;;  %v5658_v0 = vadd.f32 %v5748_v11, %v5576_v31 }
 0x8ce   :  { %v5669_v35 = vmax.f32 %v5659_v12, 0.0 }
 0x8cf   :  { %v5668_v49 = vmax.f32 %v5658_v0, 0.0  ;;  %v8562_v39 = vpop.f32.mrb[152].mxu0 }
 0x8d0   :  { %5679 = vst [vmem:[#allocation6 + $0xf] sm:$0x1f] %v5669_v35  ;;  %v5586_v45 = vpop.f32.mrb[153].mxu0 }
 0x8d1   :  { %5678 = vst [vmem:[#allocation6 + $0xa] sm:$0x1f] %v5668_v49  ;;  %v5643_v23 = vadd.f32 %v5586_v45, %v5462_v3 }
 0x8d3   :  { %v5660_v21 = vadd.f32 %v5748_v11, %v5643_v23  ;;  %v8565_v44 = vpop.f32.mrb[154].mxu0 }
 0x8d4   :  { %v5595_v4 = vpop.f32.mrb[155].mxu0  ;;  %v5686_v43 = vld [vmem:[#allocation6] sm:$0xff] }
 0x8d5   :  { %v5670_v33 = vmax.f32 %v5660_v21, 0.0 }
 0x8d7   :  { %5680 = vst [vmem:[#allocation6 + $0x14] sm:$0x1f] %v5670_v33  ;;  %v8568_v26 = vpop.f32.mrb[32].mxu0 }
 0x8d8   :  { %v5687_v13 = vld [vmem:[#allocation6 + $0x8] sm:$0xff]  ;;  %v5662_v54 = vadd.f32 %v8568_v26, %v5748_v11  ;;  %v5603_v56 = vpop.f32.mrb[33].mxu0 }
 0x8d9   :  { %v5766_v1 = vpack.c.bf16 %v5687_v13, %v5686_v43  ;;  %v5661_v36 = vadd.f32 %v5748_v11, %v5603_v56 }
 0x8da   :  { %v5672_v58 = vmax.f32 %v5662_v54, 0.0 }
 0x8db   :  { %5767 = vst [vmem:[%s11255_s11] sm:$0xff] %v5766_v1   ;;  %v5671_v62 = vmax.f32 %v5661_v36, 0.0  ;;  %v8571_v47 = vpop.f32.mrb[34].mxu0 }
 0x8dc   :  { %5682 = vst [vmem:[#allocation6 + $0x1e] sm:$0x1f] %v5672_v58  ;;  %v5664_v8 = vadd.f32 %v8571_v47, %v5748_v11  ;;  %v5613_v57 = vpop.f32.mrb[35].mxu0 }
 0x8dd   :  { %5681 = vst [vmem:[#allocation6 + $0x19] sm:$0x1f] %v5671_v62  ;;  %v5663_v37 = vadd.f32 %v5748_v11, %v5613_v57 }
 0x8de   :  { %v5674_v42 = vmax.f32 %v5664_v8, 0.0  ;;  %v5688_v38 = vld [vmem:[#allocation6 + $0x10] sm:$0xff] }
 0x8df   :  { %v5673_v60 = vmax.f32 %v5663_v37, 0.0  ;;  %v8574_v41 = vpop.f32.mrb[156].mxu0 }
 0x8e0   :  { %5684 = vst [vmem:[#allocation6 + $0x28] sm:$0x1f] %v5674_v42  ;;  %v5623_v15 = vpop.f32.mrb[157].mxu0 }
 0x8e1   :  { %5683 = vst [vmem:[#allocation6 + $0x23] sm:$0x1f] %v5673_v60  ;;  %v5648_v19 = vadd.f32 %v5623_v15, %v5467_v25 }
 0x8e3   :  { %v5665_v27 = vadd.f32 %v5748_v11, %v5648_v19 }
 0x8e4   :  { %v5689_v18 = vld [vmem:[#allocation6 + $0x18] sm:$0xff] }
 0x8e5   :  { %v5771_v50 = vpack.c.bf16 %v5689_v18, %v5688_v38  ;;  %v5675_v16 = vmax.f32 %v5665_v27, 0.0 }
 0x8e7   :  { %5778 = vst [vmem:[%s11255_s11 + $0x8] sm:$0xff] %v5771_v50   ;;  %5685 = vst [vmem:[#allocation6 + $0x2d] sm:$0x1f] %v5675_v16 }
 0x8e8   :  { %v5690_v61 = vld [vmem:[#allocation6 + $0x20] sm:$0xff] }
 0x8ee   :  { %v5691_v46 = vld [vmem:[#allocation6 + $0x28] sm:$0xff]  ;;  %v5692_v24 = vld [vmem:[#allocation6 + $0x30] sm:$0x3] }
 0x8ef   :  { %v5762_v53 = vpack.c.bf16 %v5692_v24, %v5692_v24  ;;  %v5776_v22 = vpack.c.bf16 %v5691_v46, %v5690_v61 }
 0x8f1   :  { %5779 = vst [vmem:[%s11255_s11 + $0x10] sm:$0xff] %v5776_v22   ;;  %5728 = vst [vmem:[%s11255_s11 + $0x18] sm:$0x1] %v5762_v53 }
 0x8f2   :  { %5733 = vsyncpa [#allocation8], 1 }
 0x8f3   :  { %5734 = vsyncpa [#allocation10], 1 }
 0x8f4   :  { %5735 = vsyncpa [#allocation13], 1 }
 0x8f5   :  { %5736 = vsyncpa [#allocation16], 1 }
 0x8f6   :  { %5737 = vsyncpa [#allocation19], 1 }
 0x8f7   :  { %5738 = vsyncpa [#allocation22], 1 }

// kernel: simplenet_forward.3
= control target key start
LH: loop header
LB: loop body
LE: loop exit
PB: predicated region body
PF: predicated region fallthrough
CT: control target
= control target key end

     0   :  { %s11426_s0 = inlined_call_operand.vmem [shape: bf16[2,3200], index: 0, kind: input, shape index: {}]   ;;  %s11427_s1 = inlined_call_operand.hbm [shape: bf16[3200,2048], index: 1, kind: input, shape index: {}]   ;;  %s11428_s2 = inlined_call_operand.hbm [shape: f32[1,2048], index: 2, kind: input, shape index: {}]   ;;  %s11429_s3 = inlined_call_operand.hbm [shape: bf16[2048,256], index: 3, kind: input, shape index: {}]   ;;  %s11430_s4 = inlined_call_operand.hbm [shape: f32[1,256], index: 4, kind: input, shape index: {}]   ;;  %s11431_s5 = inlined_call_operand.vmem [shape: bf16[256,4], index: 5, kind: input, shape index: {}]   ;;  %s11432_s6 = inlined_call_operand.hbm [shape: f32[1,4], index: 6, kind: input, shape index: {}]   ;;  %s11433_s7 = inlined_call_operand.hbm [shape: f32[2,4], index: 7, kind: output, shape index: {}]  }
   0x1   :  { %11444 = sst [smem:[#allocation17_spill]] %s11427_s1 }
   0x2   :  { %11445 = sst [smem:[#allocation18_spill]] %s11428_s2 }
   0x3   :  { %11446 = sst [smem:[#allocation19_spill]] %s11430_s4 }
   0x4   :  { %12 = vsyncpa [#allocation4], 0 }
   0x5   :  { %14 = vsyncpa [#allocation4 + $0x1], 0 }
   0x6   :  { %15 = vsyncpa [#allocation7], 0 }
   0x7   :  { %17 = vsyncpa [#allocation7 + $0x1], 0 }
   0x8   :  { %18 = vsyncpa [#allocation10], 0 }
   0x9   :  { %19 = vsyncpa [#allocation5], 0  ;;  %s10013_s24 = smov 0   ;;  %s10015_s25 = smov 0  }
   0xa   :  { %s10017_s26 = smov 0   ;;  %s10019_s27 = smov 0  }
   0xb LB: > { %s10032_s28 = sadd.s32 4294967295, %s9956_s27   ;;  %p66_p0 = scmp.ne.s32.totalorder %s9948_s25, %s9944_s24  ;;  %s9956_s27 = sphi %s10019_s27, %s11473_s27   ;;  %s9952_s26 = sphi %s10017_s26, %s11472_s26   ;;  %s9948_s25 = sphi %s10015_s25, %s11471_s25   ;;  %s9944_s24 = sphi %s10013_s24, %s11470_s24  }
   0xc   : > { %p11434_p1 = scmp.eq.s32.totalorder %s10032_s28, 0  ;;  %p7301_p2 = scmp.ge.s32.totalorder %s9956_s27, 1 }
   0xd   : > { %p213_p3 = scmp.lt.s32.totalorder %s9956_s27, 5  ;;  %s9958_s8 = smov [#allocation9]  }
   0xe   : > { %p10041_p5 = por %p11434_p1, %p66_p0  ;;  %s229_s9 = sshll.u32 %s9958_s8, 4  ;;  %s230_s9 = int_to_ptr.vmem [resolvable:$true] %s229_s9 }
   0xf   : > { %p10045_p6 = pnand %p7301_p2, %p213_p3  ;;  %s10052_s10 = sadd.s32 1, %s9956_s27  }
  0x10   : > { %s11447_s29 = scalar_select %p10041_p5, 1, 0 }
  0x11   : > { %s11448_s30 = scalar_select %p10045_p6, 1, 0 }
  0x12   : > { %p8355_p7 = pneg %p10045_p6  ;;  %s50_s12 = ssub.s32 %s9956_s27, %s10052_s10 }
  0x13   : > { %p10062_p9 = scmp.eq.s32.totalorder %s50_s12, 0  ;;  %s53_s14 = sadd.s32 1, %s9952_s26 }
  0x14   : > { %p10056_p8 = pnand %p8355_p7, %p11434_p1  ;;  %s11451_s4 = sld [smem:[#allocation19_spill]] }
  0x15   : > { %s11450_s13 = scalar_select %p10062_p9, 1, 0 }
  0x16   : > { %s11449_s11 = scalar_select %p10056_p8, 1, 0 }
  0x17   : > { %p11437_p12 = pneg %p10056_p8 }
  0x1a   : > { %s9738_s17 = scalar_lea.hbm %s11451_s4, 32 }
  0x1b   : > { %p9739_p11 = scmp.ne.s32.totalorder %s11451_s4, %s9738_s17  ;;  %p9745_p2 = scmp.lt.u32.totalorder %s9738_s17, %s11451_s4 }
  0x1d   : > { %p9741_p13 = pnand %p11437_p12, %p9739_p11 }
  0x1f   : > { %p9742_p0 = pneg %p9741_p13 }
  0x21   : > { %p9747_p3 = pnand %p9745_p2, %p9742_p0 }
  0x23   : > { %9750 = shalt.err (!%p9747_p3)
}
  0x24   : > { %s9751_s22 = scalar_lea.vmem %s230_s9, 32  ;;  %p9759_p10 = scmp.lt.s32.totalorder %s230_s9, %s230_s9 }
  0x25   : > { %p9752_p7 = scmp.ne.s32.totalorder %s230_s9, %s9751_s22  ;;  %p9760_p5 = scmp.lt.s32.totalorder %s9751_s22, %s9751_s22 }
  0x27   : > { %p9754_p4 = pnand %p9752_p7, %p11437_p12  ;;  %p9761_p6 = por %p9760_p5, %p9759_p10 }
  0x29   : > { %p9755_p1 = pneg %p9754_p4 }
  0x2b   : > { %p9762_p9 = pnand %p9761_p6, %p9755_p1 }
  0x2d   : > { %9765 = shalt.err (!%p9762_p9)
}
  0x2e   : > { %8358 = dma.hbm_to_vmem [thread:$0]  (!%p10056_p8), %s11451_s4, 32, %s230_s9, [#allocation10]  }
  0x2f   : > { %p11452_p4 = scmp.ne.s32.totalorder %s11450_s13, 0  ;;  %p61_p1 = scmp.eq.s32.totalorder %s9956_s27, 0 }
  0x30   : > { %p8374_p5 = scmp.lt.s32.totalorder %s9956_s27, 4  ;;  %s10099_s12 = sand.u32 1, %s9952_s26  }
  0x31   : > { %s10094_s8 = scalar_select %p11452_p4, %s9952_s26, %s53_s14  }
  0x32   : > { %s275_s15 = sand.u32 1, %s9956_s27   ;;  %p11453_p6 = scmp.ne.s32.totalorder %s9952_s26, %s9948_s25 }
  0x33   : > { %s7307_s17 = sshll.u32 %s10099_s12, 2  ;;  %s8208_s9 = sshll.u32 %s9956_s27, 6 }
  0x34   : > { %p62_p9 = por %p61_p1, %p11453_p6  ;;  %s279_s13 = scalar_lea.vmem [#allocation6], %s7307_s17 }
  0x35   : > { %s287_s14 = sshll.u32 %s279_s13, 4  ;;  %s11455_s2 = sld [smem:[#allocation18_spill]]  ;;  %s10117_s14 = int_to_ptr.vmem [resolvable:$true] %s287_s14 }
  0x36   : > { %p10107_p10 = pnand %p8374_p5, %p62_p9  ;;  %s10120_s23 = scalar_lea.sflag [#allocation7], %s275_s15 }
  0x38   : > { %s11454_s18 = scalar_select %p10107_p10, 1, 0 }
  0x39   : > { %p10126_p13 = pneg %p10107_p10 }
  0x3b   : > { %s10115_s21 = scalar_lea.hbm %s11455_s2, %s8208_s9  ;;  %s9771_s19 = scalar_lea.hbm %s11455_s2, 256 }
  0x3c   : > { %s9766_s24 = scalar_lea.hbm %s10115_s21, 64  ;;  %p9772_p3 = scmp.lt.u32.totalorder %s10115_s21, %s11455_s2 }
  0x3d   : > { %p9767_p11 = scmp.ne.s32.totalorder %s10115_s21, %s9766_s24  ;;  %p9773_p7 = scmp.lt.u32.totalorder %s9771_s19, %s9766_s24 }
  0x3e   : > { %s11456_s17 = scalar_select %p10126_p13, 1, 0 }
  0x3f   : > { %p9769_p0 = pnand %p10126_p13, %p9767_p11  ;;  %p9774_p4 = por %p9773_p7, %p9772_p3 }
  0x40   : > { %p9775_p1 = scmp.lt.u32.totalorder %s9766_s24, %s10115_s21 }
  0x41   : > { %p9770_p2 = pneg %p9769_p0 }
  0x42   : > { %p9776_p5 = por %p9775_p1, %p9774_p4 }
  0x44   : > { %p9777_p6 = pnand %p9776_p5, %p9770_p2 }
  0x46   : > { %9780 = shalt.err (!%p9777_p6)
}
  0x47   : > { %s9781_s15 = scalar_lea.vmem %s10117_s14, 64  ;;  %s9959_s9 = smov [#allocation6]  }
  0x48   : > { %p9782_p9 = scmp.ne.s32.totalorder %s10117_s14, %s9781_s15  ;;  %s9786_s13 = sshll.u32 %s9959_s9, 4  ;;  %s9787_s13 = int_to_ptr.vmem [resolvable:$false] %s9786_s13 }
  0x49   : > { %s9788_s16 = scalar_lea.vmem %s9787_s13, 128  ;;  %p9789_p12 = scmp.lt.s32.totalorder %s10117_s14, %s9787_s13 }
  0x4a   : > { %p9784_p11 = pnand %p9782_p9, %p10126_p13  ;;  %p9790_p8 = scmp.lt.s32.totalorder %s9788_s16, %s9781_s15 }
  0x4c   : > { %p9785_p0 = pneg %p9784_p11  ;;  %p9791_p3 = por %p9790_p8, %p9789_p12 }
  0x4e   : > { %p9792_p7 = pnand %p9791_p3, %p9785_p0 }
  0x50   : > { %9795 = shalt.err (!%p9792_p7)
}
  0x51   : > { %8368 = dma.hbm_to_vmem [thread:$0]  (!%p10107_p10), %s10115_s21, 64, %s10117_s14, %s10120_s23  }
  0x52   : > { %s9960_s24 = smov [#allocation11]   ;;  %s8207_s20 = sshll.u32 %s9956_s27, 8 }
  0x53   : > { %s243_s19 = sshll.u32 %s9960_s24, 4  ;;  %s9796_s13 = scalar_lea.hbm %s11432_s6, 16  ;;  %s244_s19 = int_to_ptr.vmem [resolvable:$true] %s243_s19 }
  0x54   : > { %p9797_p8 = scmp.ne.s32.totalorder %s11432_s6, %s9796_s13  ;;  %p11457_p12 = scmp.ne.s32.totalorder %s11449_s11, 0 }
  0x55   : > { %p9803_p5 = scmp.lt.u32.totalorder %s9796_s13, %s11432_s6 }
  0x56   : > { %p11458_p2 = pneg %p11457_p12 }
  0x58   : > { %p9799_p4 = pnand %p9797_p8, %p11458_p2 }
  0x5a   : > { %p9800_p1 = pneg %p9799_p4 }
  0x5c   : > { %p9805_p6 = pnand %p9803_p5, %p9800_p1 }
  0x5e   : > { %9808 = shalt.err (!%p9805_p6)
}
  0x5f   : > { %s9809_s14 = scalar_lea.vmem %s244_s19, 16  ;;  %p11459_p11 = pmov %p11458_p2 }
  0x60   : > { %p9810_p9 = scmp.ne.s32.totalorder %s244_s19, %s9809_s14  ;;  %s9816_s21 = scalar_lea.vmem %s244_s19, 32 }
  0x61   : > { %p9817_p7 = scmp.lt.s32.totalorder %s244_s19, %s244_s19  ;;  %p9818_p10 = scmp.lt.s32.totalorder %s9816_s21, %s9809_s14 }
  0x62   : > { %p9812_p0 = pnand %p9810_p9, %p11459_p11 }
  0x63   : > { %p9819_p13 = por %p9818_p10, %p9817_p7 }
  0x64   : > { %p9813_p3 = pneg %p9812_p0 }
  0x66   : > { %p9820_p2 = pnand %p9819_p13, %p9813_p3 }
  0x68   : > { %9823 = shalt.err (!%p9820_p2)
}
  0x69   : > { %8361 = dma.hbm_to_vmem [thread:$0]  (!%p11457_p12), %s11432_s6, 16, %s244_s19, [#allocation10]  }
  0x6a   : > { %s11460_s1 = sld [smem:[#allocation17_spill]]  ;;  %s11461_s13 = smul.u32 6400, %s10099_s12 }
  0x6b   : > { %s255_s11 = scalar_lea.sflag [#allocation4], %s10099_s12  ;;  %p11462_p13 = scmp.ne.s32.totalorder %s11456_s17, 0 }
  0x6c   : > { %s258_s15 = scalar_lea.vmem [#allocation3], %s11461_s13 }
  0x6d   : > { %s265_s16 = sshll.u32 %s258_s15, 4  ;;  %s10178_s16 = int_to_ptr.vmem [resolvable:$true] %s265_s16 }
  0x70   : > { %s10174_s9 = scalar_lea.hbm %s11460_s1, %s8207_s20  ;;  %s9829_s20 = scalar_lea.hbm %s11460_s1, 409600 }
  0x71   : > { %s9824_s14 = scalar_lea.hbm %s10174_s9, 102400  ;;  %p9830_p4 = scmp.lt.u32.totalorder %s10174_s9, %s11460_s1 }
  0x72   : > { %p9825_p10 = scmp.ne.s32.totalorder %s10174_s9, %s9824_s14  ;;  %p9831_p1 = scmp.lt.u32.totalorder %s9829_s20, %s9824_s14 }
  0x73   : > { %p9833_p6 = scmp.lt.u32.totalorder %s9824_s14, %s10174_s9 }
  0x74   : > { %p9827_p8 = pnand %p9825_p10, %p11462_p13  ;;  %p9832_p5 = por %p9831_p1, %p9830_p4 }
  0x76   : > { %p9828_p12 = pneg %p9827_p8  ;;  %p9834_p9 = por %p9833_p6, %p9832_p5 }
  0x78   : > { %p9835_p11 = pnand %p9834_p9, %p9828_p12 }
  0x7a   : > { %9838 = shalt.err (!%p9835_p11)
}
  0x7b   : > { %s9839_s4 = scalar_lea.vmem %s10178_s16, 102400  ;;  %s9961_s24 = smov [#allocation3]  }
  0x7c   : > { %p9840_p0 = scmp.ne.s32.totalorder %s10178_s16, %s9839_s4  ;;  %s9844_s13 = sshll.u32 %s9961_s24, 4  ;;  %s9845_s13 = int_to_ptr.vmem [resolvable:$false] %s9844_s13 }
  0x7d   : > { %s9846_s15 = scalar_lea.vmem %s9845_s13, 204800  ;;  %p9847_p2 = scmp.lt.s32.totalorder %s10178_s16, %s9845_s13 }
  0x7e   : > { %p9842_p3 = pnand %p9840_p0, %p11462_p13  ;;  %p9848_p10 = scmp.lt.s32.totalorder %s9846_s15, %s9839_s4 }
  0x80   : > { %p9843_p7 = pneg %p9842_p3  ;;  %p9849_p8 = por %p9848_p10, %p9847_p2 }
  0x82   : > { %p9850_p4 = pnand %p9849_p8, %p9843_p7 }
  0x84   : > { %9853 = shalt.err (!%p9850_p4)
}
  0x85   : > { %s9962_s14 = smov 1024   ;;  %s9963_s19 = smov 256  }
  0x86   : > { %s9964_s21 = smov 16   ;;  %p11463_p12 = scmp.ne.s32.totalorder %s11454_s18, 0 }
  0x87   : > { %s8210_s20 = sshll.u32 %s9956_s27, 13  ;;  %s11464_s24 = sshll.u32 %s10099_s12, 9 }
  0x88   : > { %8365 = dma.hbm_to_vmem [thread:$0]  (!%p11463_p12), %s10174_s9, 102400, %s10178_s16, %s255_s11, %s9962_s14, %s9963_s19, %s9964_s21  }
  0x89   : > { %s10208_s4 = scalar_lea.hbm %s11429_s3, %s8210_s20  ;;  %s298_s13 = scalar_lea.vmem [#allocation8], %s11464_s24 }
  0x8a   : > { %s306_s15 = sshll.u32 %s298_s13, 4  ;;  %s9854_s1 = scalar_lea.hbm %s10208_s4, 8192  ;;  %s10212_s15 = int_to_ptr.vmem [resolvable:$true] %s306_s15 }
  0x8b   : > { %p9855_p1 = scmp.ne.s32.totalorder %s10208_s4, %s9854_s1  ;;  %s9859_s16 = scalar_lea.hbm %s11429_s3, 32768 }
  0x8c   : > { %p9860_p9 = scmp.lt.u32.totalorder %s10208_s4, %s11429_s3  ;;  %p9861_p11 = scmp.lt.u32.totalorder %s9859_s16, %s9854_s1 }
  0x8d   : > { %p9857_p5 = pnand %p9855_p1, %p11462_p13  ;;  %p9863_p3 = scmp.lt.u32.totalorder %s9854_s1, %s10208_s4 }
  0x8e   : > { %p9862_p0 = por %p9861_p11, %p9860_p9 }
  0x8f   : > { %p9858_p6 = pneg %p9857_p5 }
  0x90   : > { %p9864_p7 = por %p9863_p3, %p9862_p0 }
  0x92   : > { %p9865_p2 = pnand %p9864_p7, %p9858_p6 }
  0x94   : > { %9868 = shalt.err (!%p9865_p2)
}
  0x95   : > { %s9869_s12 = scalar_lea.vmem %s10212_s15, 8192  ;;  %s9965_s19 = smov [#allocation8]  }
  0x96   : > { %p9870_p10 = scmp.ne.s32.totalorder %s10212_s15, %s9869_s12  ;;  %s9874_s21 = sshll.u32 %s9965_s19, 4  ;;  %s9875_s21 = int_to_ptr.vmem [resolvable:$false] %s9874_s21 }
  0x97   : > { %s9876_s20 = scalar_lea.vmem %s9875_s21, 16384  ;;  %p9877_p1 = scmp.lt.s32.totalorder %s10212_s15, %s9875_s21 }
  0x98   : > { %p9872_p8 = pnand %p9870_p10, %p11462_p13  ;;  %p9878_p5 = scmp.lt.s32.totalorder %s9876_s20, %s9869_s12 }
  0x9a   : > { %p9873_p4 = pneg %p9872_p8  ;;  %p9879_p9 = por %p9878_p5, %p9877_p1 }
  0x9c   : > { %p9880_p11 = pnand %p9879_p9, %p9873_p4 }
  0x9e   : > { %9883 = shalt.err (!%p9880_p11)
}
  0x9f   : > { %s9966_s1 = smov 128   ;;  %s9967_s22 = smov 8  }
  0xa0   : > { %8371 = dma.hbm_to_vmem [thread:$0]  (!%p11463_p12), %s10208_s4, 8192, %s10212_s15, %s10120_s23, %s9966_s1, %s9966_s1, %s9967_s22  }
  0xa1   : > { %p11465_p13 = scmp.ne.s32.totalorder %s11448_s30, 0 }
  0xa2   : > { %s320_s17 = sand.u32 (!%p11465_p13), 1, %s9948_s25   ;;  %p11466_p6 = scmp.ne.s32.totalorder (!%p11465_p13), %s11447_s29, 0 }
  0xa3   : > { %318 = sbr.rel (%p11465_p13) target bundleno = 1752 (0x6d8), region = 48  ;;  %s321_s24 = scalar_lea.sflag (!%p11465_p13), [#allocation4], %s320_s17 }
  0xa4   : > { %s8336_s2 = smul.u32 (!%p11465_p13), 6400, %s320_s17 }
  0xa6   : > { %s10239_s13 = scalar_lea.vmem (!%p11465_p13), [#allocation3], %s8336_s2 }
  0xaa   : > { %9927 = dma.done.wait (%p11466_p6), %s321_s24, 102400  }
  0xab   : > { %9929 = vsyncadd (%p11466_p6), %s321_s24, 4294864896  ;;  %s329_s27 = sand.u32 1, %s10032_s28   ;;  %s7315_s18 = sshll.u32 %s320_s17, 2 }
  0xac   : > { %s330_s23 = scalar_lea.sflag [#allocation7], %s329_s27  ;;  %s10246_s4 = scalar_lea.vmem [#allocation6], %s7315_s18 }
  0xad   : > { %9931 = dma.done.wait (%p11466_p6), %s330_s23, 8256  }
  0xae   : > { %9933 = vsyncadd (%p11466_p6), %s330_s23, 4294959040  ;;  %s7316_s30 = sshll.u32 %s320_s17, 9  ;;  %p11467_p12 = scmp.eq.s32.totalorder %s10032_s28, 0 }
  0xaf   : > { %s10252_s15 = scalar_lea.vmem [#allocation8], %s7316_s30 }
  0xb0   : > { %9935 = dma.done.wait (%p11467_p12), [#allocation10], 48   ;;  %p11468_p0 = pmov %p11467_p12 }
  0xb1   : > { %p11469_p3 = scmp.ne.s32.totalorder %s10032_s28, 0 }
  0xb2   : > { %9937 = vsyncadd (%p11468_p0), [#allocation10], 4294967248  ;;  %v9968_v0 = vmov (!%p11469_p3), 0.0  }
  0xb3   : > { %393 = sbr.rel (%p11469_p3) target bundleno = 186 (0xba), region = 72  ;;  %394 = vst [vmem:[#allocation2] sm:$0xf] (!%p11469_p3), %v9968_v0 }
  0xba PF: > { %v8423_v1 = vld [vmem:[%s10239_s13 + $0x4] ss:$16 sps:$4 sm:$0xff]   ;;  %v8427_v3 = vld [vmem:[%s10239_s13] ss:$16 sps:$4 sm:$0xff]   ;;  %v1201_v37 = vlaneseq  ;;  %v9969_v38 = vmov 1966171168  }
  0xbb   : > { %v8425_v2 = vld [vmem:[%s10239_s13 + $0x204] ss:$16 sps:$4 sm:$0xff]   ;;  %5411 = vmatprep.subr.bf16.mxu1 %v8423_v1  ;;  %v8428_v4 = vld [vmem:[%s10239_s13 + $0x200] ss:$16 sps:$4 sm:$0xff]   ;;  %v1227_v39 = vunpack.c.l.s4 %v9969_v38  ;;  %p8185_p7 = scmp.ne.s32.totalorder %s10032_s28, 3 }
  0xbc   : > { %5452 = vmatprep.subr.bf16.mxu0 %v8425_v2  ;;  %v8429_v5 = vld [vmem:[%s10239_s13 + $0x24] ss:$16 sps:$4 sm:$0xff]   ;;  %5412 = vmatpush1.bf16.msra.mxu1 %v8427_v3  ;;  %v8433_v7 = vld [vmem:[%s10239_s13 + $0x20] ss:$16 sps:$4 sm:$0xff]   ;;  %v10299_v43 = vshrl.u32 %v1201_v37, 7  ;;  %vm7179_vm0 = vcmask (!%p8185_p7), 25600  }
  0xbd   : > { %5453 = vmatpush1.bf16.msra.mxu0 %v8428_v4  ;;  %v8431_v6 = vld [vmem:[%s10239_s13 + $0x224] ss:$16 sps:$4 sm:$0xff]   ;;  %5413 = vmatprep.subr.bf16.mxu1 %v8429_v5  ;;  %v8434_v8 = vld [vmem:[%s10239_s13 + $0x220] ss:$16 sps:$4 sm:$0xff]   ;;  %v1228_v44 = vunpack.c.0.s8 %v1227_v39  ;;  %v8546_v37 = vld [vmem:[%s10239_s13 + $0x88] ss:$16 sps:$4 sm:$0xff]  }
  0xbe   : > { %5454 = vmatprep.subr.bf16.mxu0 %v8431_v6  ;;  %v8435_v9 = vld [vmem:[%s10239_s13 + $0x44] ss:$16 sps:$4 sm:$0xff]   ;;  %v8439_v11 = vld [vmem:[%s10239_s13 + $0x40] ss:$16 sps:$4 sm:$0xff]   ;;  %v8554_v39 = vld [vmem:[%s10239_s13 + $0xac] ss:$16 sps:$4 sm:$0xff]  }
  0xbf   : > { %v8437_v10 = vld [vmem:[%s10239_s13 + $0x244] ss:$16 sps:$4 sm:$0xff]   ;;  %v8440_v12 = vld [vmem:[%s10239_s13 + $0x240] ss:$16 sps:$4 sm:$0xff]   ;;  %v10307_v50 = vsub.s32 %v1228_v44, %v10299_v43  ;;  %v8560_v44 = vld [vmem:[%s10239_s13 + $0xcc] ss:$16 sps:$4 sm:$0xff]  }
  0xc0   : > { %5414 = vmatpush1.bf16.msra.mxu1 %v8433_v7  ;;  %v8441_v13 = vld [vmem:[%s10239_s13 + $0x64] ss:$16 sps:$4 sm:$0xff]   ;;  %v8445_v15 = vld [vmem:[%s10239_s13 + $0x60] ss:$16 sps:$4 sm:$0xff]  }
  0xc1   : > { %5455 = vmatpush1.bf16.msra.mxu0 %v8434_v8  ;;  %5415 = vmatprep.subr.bf16.mxu1 %v8435_v9  ;;  %v8443_v14 = vld [vmem:[%s10239_s13 + $0x264] ss:$16 sps:$4 sm:$0xff]   ;;  %v8446_v16 = vld [vmem:[%s10239_s13 + $0x260] ss:$16 sps:$4 sm:$0xff]  }
  0xc2   : > { %5456 = vmatprep.subr.bf16.mxu0 %v8437_v10  ;;  %v8447_v17 = vld [vmem:[%s10239_s13 + $0x84] ss:$16 sps:$4 sm:$0xff]   ;;  %v8451_v19 = vld [vmem:[%s10239_s13 + $0x80] ss:$16 sps:$4 sm:$0xff]  }
  0xc3   : > { %v8449_v18 = vld [vmem:[%s10239_s13 + $0x284] ss:$16 sps:$4 sm:$0xff]   ;;  %v8452_v20 = vld [vmem:[%s10239_s13 + $0x280] ss:$16 sps:$4 sm:$0xff]  }
  0xc4   : > { %5416 = vmatpush1.bf16.msra.mxu1 %v8439_v11  ;;  %v8453_v21 = vld [vmem:[%s10239_s13 + $0xa4] ss:$16 sps:$4 sm:$0xff]   ;;  %v8457_v23 = vld [vmem:[%s10239_s13 + $0xa0] ss:$16 sps:$4 sm:$0xff]  }
  0xc5   : > { %5457 = vmatpush1.bf16.msra.mxu0 %v8440_v12  ;;  %5417 = vmatprep.subr.bf16.mxu1 %v8441_v13  ;;  %v8455_v22 = vld [vmem:[%s10239_s13 + $0x2a4] ss:$16 sps:$4 sm:$0xff]   ;;  %v8458_v24 = vld [vmem:[%s10239_s13 + $0x2a0] ss:$16 sps:$4 sm:$0xff]  }
  0xc6   : > { %5458 = vmatprep.subr.bf16.mxu0 %v8443_v14  ;;  %v8459_v25 = vld [vmem:[%s10239_s13 + $0xc4] ss:$16 sps:$4 sm:$0xff]   ;;  %v8463_v27 = vld [vmem:[%s10239_s13 + $0xc0] ss:$16 sps:$4 sm:$0xff]  }
  0xc7   : > { %v8461_v26 = vld [vmem:[%s10239_s13 + $0x2c4] ss:$16 sps:$4 sm:$0xff]   ;;  %v8464_v28 = vld [vmem:[%s10239_s13 + $0x2c0] ss:$16 sps:$4 sm:$0xff]  }
  0xc8   : > { %5418 = vmatpush1.bf16.msra.mxu1 %v8445_v15  ;;  %v8465_v29 = vld [vmem:[%s10239_s13 + $0xe4] ss:$16 sps:$4 sm:$0xff]   ;;  %v8469_v31 = vld [vmem:[%s10239_s13 + $0xe0] ss:$16 sps:$4 sm:$0xff]  }
  0xc9   : > { %5459 = vmatpush1.bf16.msra.mxu0 %v8446_v16  ;;  %5419 = vmatprep.subr.bf16.mxu1 %v8447_v17  ;;  %v8467_v30 = vld [vmem:[%s10239_s13 + $0x2e4] ss:$16 sps:$4 sm:$0xff]   ;;  %v8470_v32 = vld [vmem:[%s10239_s13 + $0x2e0] ss:$16 sps:$4 sm:$0xff]   ;;  %v8524_v16 = vld [vmem:[%s10239_s13 + $0xc] ss:$16 sps:$4 sm:$0xff]  }
  0xca   : > { %5460 = vmatprep.subr.bf16.mxu0 %v8449_v18  ;;  %v8471_v33 = vld [vmem:[%s10239_s13 + $0x104] ss:$16 sps:$4 sm:$0xff]   ;;  %v8475_v35 = vld [vmem:[%s10239_s13 + $0x100] ss:$16 sps:$4 sm:$0xff]  }
  0xcb   : > { %v8473_v34 = vld [vmem:[%s10239_s13 + $0x304] ss:$16 sps:$4 sm:$0xff]   ;;  %v8476_v36 = vld [vmem:[%s10239_s13 + $0x300] ss:$16 sps:$4 sm:$0xff]  }
  0xcc   : > { %5420 = vmatpush1.bf16.msra.mxu1 %v8451_v19  ;;  %v8477_v40 = vld [vmem:[%s10239_s13 + $0x124] ss:$16 sps:$4 sm:$0xff]   ;;  %v8481_v42 = vld [vmem:[%s10239_s13 + $0x120] ss:$16 sps:$4 sm:$0xff]  }
  0xcd   : > { %5461 = vmatpush1.bf16.msra.mxu0 %v8452_v20  ;;  %5421 = vmatprep.subr.bf16.mxu1 %v8453_v21  ;;  %v8479_v41 = vld [vmem:[%s10239_s13 + $0x324] ss:$16 sps:$4 sm:$0xff]   ;;  %v8482_v45 = vld [vmem:[%s10239_s13 + $0x320] ss:$16 sps:$4 sm:$0xff]   ;;  %v8522_v20 = vld [vmem:[%s10239_s13 + $0x8] ss:$16 sps:$4 sm:$0xff]  }
  0xce   : > { %5462 = vmatprep.subr.bf16.mxu0 %v8455_v22  ;;  %v8483_v46 = vld [vmem:[%s10239_s13 + $0x144] ss:$16 sps:$4 sm:$0xff]   ;;  %v8487_v48 = vld [vmem:[%s10239_s13 + $0x140] ss:$16 sps:$4 sm:$0xff]   ;;  %v8530_v22 = vld [vmem:[%s10239_s13 + $0x2c] ss:$16 sps:$4 sm:$0xff]  }
  0xcf   : > { %v8485_v47 = vld [vmem:[%s10239_s13 + $0x344] ss:$16 sps:$4 sm:$0xff]   ;;  %v8488_v49 = vld [vmem:[%s10239_s13 + $0x340] ss:$16 sps:$4 sm:$0xff]  }
  0xd0   : > { %5422 = vmatpush1.bf16.msra.mxu1 %v8457_v23  ;;  %v8489_v51 = vld [vmem:[%s10239_s13 + $0x164] ss:$16 sps:$4 sm:$0xff]   ;;  %v395_v53 = vld [vmem:[%s11426_s0] sm:$0xff] }
  0xd1   : > { %5463 = vmatpush1.bf16.msra.mxu0 %v8458_v24  ;;  %5423 = vmatprep.subr.bf16.mxu1 %v8459_v25  ;;  %v8491_v52 = vld [vmem:[%s10239_s13 + $0x364] ss:$16 sps:$4 sm:$0xff]   ;;  %v8493_v54 = vld [vmem:[%s10239_s13 + $0x160] ss:$16 sps:$4 sm:$0xff]   ;;  %v1232_v55 = vrot.slane %v395_v53, %v10307_v50  ;;  %v1225_v6 = vcombine.high %v395_v53, %v395_v53  ;;  %v8528_v25 = vld [vmem:[%s10239_s13 + $0x28] ss:$16 sps:$4 sm:$0xff]  }
  0xd2   : > { %5464 = vmatprep.subr.bf16.mxu0 %v8461_v26  ;;  %v8494_v56 = vld [vmem:[%s10239_s13 + $0x360] ss:$16 sps:$4 sm:$0xff]   ;;  %v8495_v57 = vld [vmem:[%s10239_s13 + $0x184] ss:$16 sps:$4 sm:$0xff]   ;;  %v8572_v53 = vld [vmem:[%s10239_s13 + $0x10c] ss:$16 sps:$4 sm:$0xff]  }
  0xd3   : > { %v8497_v58 = vld [vmem:[%s10239_s13 + $0x384] ss:$16 sps:$4 sm:$0xff]   ;;  %v1240_v59 = vcombine.high %v1232_v55, %v1232_v55  ;;  %v8499_v60 = vld [vmem:[%s10239_s13 + $0x180] ss:$16 sps:$4 sm:$0xff]   ;;  %v10336_v11 = vrot.slane %v1225_v6, %v10307_v50  ;;  %v10340_v13 = vrot.slane %v1232_v55, %v10307_v50  ;;  %v8570_v55 = vld [vmem:[%s10239_s13 + $0x108] ss:$16 sps:$4 sm:$0xff]  }
  0xd4   : > { %5424 = vmatpush1.bf16.msra.mxu1 %v8463_v27  ;;  %v8500_v62 = vld [vmem:[%s10239_s13 + $0x380] ss:$16 sps:$4 sm:$0xff]   ;;  %v8501_v63 = vld [vmem:[%s10239_s13 + $0x1a4] ss:$16 sps:$4 sm:$0xff]   ;;  %v8536_v27 = vld [vmem:[%s10239_s13 + $0x4c] ss:$16 sps:$4 sm:$0xff]  }
  0xd5   : > { %5465 = vmatpush1.bf16.msra.mxu0 %v8464_v28  ;;  %5425 = vmatprep.subr.bf16.mxu1 %v8465_v29  ;;  %v1262_v61 = vrot.slane %v1240_v59, %v10307_v50  ;;  %v8503_v0 = vld [vmem:[%s10239_s13 + $0x3a4] ss:$16 sps:$4 sm:$0xff]   ;;  %v8505_v2 = vld [vmem:[%s10239_s13 + $0x1a0] ss:$16 sps:$4 sm:$0xff]   ;;  %v1241_v17 = vcombine.high %v10336_v11, %v10336_v11  ;;  %v10350_v19 = vcombine.high %v10340_v13, %v10340_v13  ;;  %v8534_v29 = vld [vmem:[%s10239_s13 + $0x48] ss:$16 sps:$4 sm:$0xff]  }
  0xd6   : > { %5466 = vmatprep.subr.bf16.mxu0 %v8467_v30  ;;  %v8506_v3 = vld [vmem:[%s10239_s13 + $0x3a0] ss:$16 sps:$4 sm:$0xff]   ;;  %v8507_v4 = vld [vmem:[%s10239_s13 + $0x1c4] ss:$16 sps:$4 sm:$0xff]   ;;  %v8576_v59 = vld [vmem:[%s10239_s13 + $0x128] ss:$16 sps:$4 sm:$0xff]  }
  0xd7   : > { %v10324_v1 = vcombine.high %v1262_v61, %v1262_v61  ;;  %5443 = vmatprep.mubr.bf16.mxu1 %v1262_v61  ;;  %v8509_v5 = vld [vmem:[%s10239_s13 + $0x3c4] ss:$16 sps:$4 sm:$0xff]   ;;  %v8511_v7 = vld [vmem:[%s10239_s13 + $0x1c0] ss:$16 sps:$4 sm:$0xff]   ;;  %v10356_v23 = vrot.slane %v1241_v17, %v10307_v50  ;;  %v8596_v6 = vld [vmem:[%s10239_s13 + $0x18c] ss:$16 sps:$4 sm:$0xff]  }
  0xd8   : > { %5426 = vmatpush1.bf16.msra.mxu1 %v8469_v31  ;;  %v8512_v8 = vld [vmem:[%s10239_s13 + $0x3c0] ss:$16 sps:$4 sm:$0xff]   ;;  %v8513_v9 = vld [vmem:[%s10239_s13 + $0x1e4] ss:$16 sps:$4 sm:$0xff]   ;;  %v8542_v31 = vld [vmem:[%s10239_s13 + $0x6c] ss:$16 sps:$4 sm:$0xff]  }
  0xd9   : > { %5467 = vmatpush1.bf16.msra.mxu0 %v8470_v32  ;;  %5427 = vmatprep.subr.bf16.mxu1 %v8471_v33  ;;  %v8515_v10 = vld [vmem:[%s10239_s13 + $0x3e4] ss:$16 sps:$4 sm:$0xff]   ;;  %v8517_v12 = vld [vmem:[%s10239_s13 + $0x1e0] ss:$16 sps:$4 sm:$0xff]   ;;  %v8540_v33 = vld [vmem:[%s10239_s13 + $0x68] ss:$16 sps:$4 sm:$0xff]  }
  0xda   : > { %5468 = vmatprep.subr.bf16.mxu0 %v8473_v34  ;;  %5484 = vmatprep.mubr.bf16.mxu0 %v10324_v1  ;;  %v8518_v14 = vld [vmem:[%s10239_s13 + $0x3e0] ss:$16 sps:$4 sm:$0xff]   ;;  %v8521_v15 = vld [vmem:[%s10239_s13 + $0x404] ss:$16 sps:$4 sm:$0xff]  }
  0xdb   : > { %v8519_v18 = vld [vmem:[%s10239_s13 + $0x400] ss:$16 sps:$4 sm:$0xff]   ;;  %v8527_v21 = vld [vmem:[%s10239_s13 + $0x424] ss:$16 sps:$4 sm:$0xff]  }
  0xdc   : > { %5428 = vmatpush1.bf16.msra.mxu1 %v8475_v35  ;;  %v8525_v24 = vld [vmem:[%s10239_s13 + $0x420] ss:$16 sps:$4 sm:$0xff]   ;;  %v8533_v26 = vld [vmem:[%s10239_s13 + $0x444] ss:$16 sps:$4 sm:$0xff]   ;;  %v8548_v35 = vld [vmem:[%s10239_s13 + $0x8c] ss:$16 sps:$4 sm:$0xff]  }
  0xdd   : > { %5469 = vmatpush1.bf16.msra.mxu0 %v8476_v36  ;;  %5429 = vmatprep.subr.bf16.mxu1 %v8477_v40  ;;  %v8531_v28 = vld [vmem:[%s10239_s13 + $0x440] ss:$16 sps:$4 sm:$0xff]   ;;  %v8539_v30 = vld [vmem:[%s10239_s13 + $0x464] ss:$16 sps:$4 sm:$0xff]  }
  0xde   : > { %5470 = vmatprep.subr.bf16.mxu0 %v8479_v41  ;;  %v8537_v32 = vld [vmem:[%s10239_s13 + $0x460] ss:$16 sps:$4 sm:$0xff]   ;;  %v8545_v34 = vld [vmem:[%s10239_s13 + $0x484] ss:$16 sps:$4 sm:$0xff]   ;;  %v8552_v41 = vld [vmem:[%s10239_s13 + $0xa8] ss:$16 sps:$4 sm:$0xff]  }
  0xdf   : > { %v8543_v36 = vld [vmem:[%s10239_s13 + $0x480] ss:$16 sps:$4 sm:$0xff]   ;;  %v8551_v38 = vld [vmem:[%s10239_s13 + $0x4a4] ss:$16 sps:$4 sm:$0xff]  }
  0xe0   : > { %5430 = vmatpush1.bf16.msra.mxu1 %v8481_v42  ;;  %v8549_v40 = vld [vmem:[%s10239_s13 + $0x4a0] ss:$16 sps:$4 sm:$0xff]   ;;  %v8557_v42 = vld [vmem:[%s10239_s13 + $0x4c4] ss:$16 sps:$4 sm:$0xff]  }
  0xe1   : > { %5471 = vmatpush1.bf16.msra.mxu0 %v8482_v45  ;;  %5431 = vmatprep.subr.bf16.mxu1 %v8483_v46  ;;  %v8555_v45 = vld [vmem:[%s10239_s13 + $0x4c0] ss:$16 sps:$4 sm:$0xff]   ;;  %v8558_v46 = vld [vmem:[%s10239_s13 + $0xc8] ss:$16 sps:$4 sm:$0xff]  }
  0xe2   : > { %5472 = vmatprep.subr.bf16.mxu0 %v8485_v47  ;;  %v8563_v47 = vld [vmem:[%s10239_s13 + $0x4e4] ss:$16 sps:$4 sm:$0xff]   ;;  %v8603_v17 = vld [vmem:[%s10239_s13 + $0x5c0] ss:$16 sps:$4 sm:$0xff]  }
  0xe4   : > { %5432 = vmatpush1.bf16.msra.mxu1 %v8487_v48  ;;  %v8566_v48 = vld [vmem:[%s10239_s13 + $0xec] ss:$16 sps:$4 sm:$0xff]  }
  0xe5   : > { %5473 = vmatpush1.bf16.msra.mxu0 %v8488_v49  ;;  %5433 = vmatprep.subr.bf16.mxu1 %v8489_v51  ;;  %v8561_v49 = vld [vmem:[%s10239_s13 + $0x4e0] ss:$16 sps:$4 sm:$0xff]   ;;  %v8564_v51 = vld [vmem:[%s10239_s13 + $0xe8] ss:$16 sps:$4 sm:$0xff]  }
  0xe6   : > { %5474 = vmatprep.subr.bf16.mxu0 %v8491_v52  ;;  %v8569_v52 = vld [vmem:[%s10239_s13 + $0x504] ss:$16 sps:$4 sm:$0xff]  }
  0xe8   : > { %5434 = vmatpush1.bf16.msra.mxu1 %v8493_v54  ;;  %v8567_v54 = vld [vmem:[%s10239_s13 + $0x500] ss:$16 sps:$4 sm:$0xff]  }
  0xe9   : > { %5475 = vmatpush1.bf16.msra.mxu0 %v8494_v56  ;;  %5435 = vmatprep.subr.bf16.mxu1 %v8495_v57  ;;  %v8575_v56 = vld [vmem:[%s10239_s13 + $0x524] ss:$16 sps:$4 sm:$0xff]   ;;  %v8578_v57 = vld [vmem:[%s10239_s13 + $0x12c] ss:$16 sps:$4 sm:$0xff]  }
  0xea   : > { %5476 = vmatprep.subr.bf16.mxu0 %v8497_v58  ;;  %v8573_v58 = vld [vmem:[%s10239_s13 + $0x520] ss:$16 sps:$4 sm:$0xff]  }
  0xec   : > { %5436 = vmatpush1.bf16.msra.mxu1 %v8499_v60  ;;  %v8581_v60 = vld [vmem:[%s10239_s13 + $0x544] ss:$16 sps:$4 sm:$0xff]  }
  0xed   : > { %5477 = vmatpush1.bf16.msra.mxu0 %v8500_v62  ;;  %5437 = vmatprep.subr.bf16.mxu1 %v8501_v63  ;;  %v8579_v62 = vld [vmem:[%s10239_s13 + $0x540] ss:$16 sps:$4 sm:$0xff]   ;;  %v8582_v63 = vld [vmem:[%s10239_s13 + $0x148] ss:$16 sps:$4 sm:$0xff]  }
  0xee   : > { %5478 = vmatprep.subr.bf16.mxu0 %v8503_v0  ;;  %v8587_v0 = vld [vmem:[%s10239_s13 + $0x564] ss:$16 sps:$4 sm:$0xff]  }
  0xf0   : > { %5438 = vmatpush1.bf16.msra.mxu1 %v8505_v2  ;;  %v8590_v2 = vld [vmem:[%s10239_s13 + $0x16c] ss:$16 sps:$4 sm:$0xff]  }
  0xf1   : > { %5479 = vmatpush1.bf16.msra.mxu0 %v8506_v3  ;;  %5439 = vmatprep.subr.bf16.mxu1 %v8507_v4  ;;  %v8585_v3 = vld [vmem:[%s10239_s13 + $0x560] ss:$16 sps:$4 sm:$0xff]   ;;  %v8588_v4 = vld [vmem:[%s10239_s13 + $0x168] ss:$16 sps:$4 sm:$0xff]  }
  0xf2   : > { %5480 = vmatprep.subr.bf16.mxu0 %v8509_v5  ;;  %v8593_v5 = vld [vmem:[%s10239_s13 + $0x584] ss:$16 sps:$4 sm:$0xff]  }
  0xf4   : > { %5440 = vmatpush1.bf16.msra.mxu1 %v8511_v7  ;;  %v8591_v7 = vld [vmem:[%s10239_s13 + $0x580] ss:$16 sps:$4 sm:$0xff]  }
  0xf5   : > { %5481 = vmatpush1.bf16.msra.mxu0 %v8512_v8  ;;  %5441 = vmatprep.subr.bf16.mxu1 %v8513_v9  ;;  %v8594_v8 = vld [vmem:[%s10239_s13 + $0x188] ss:$16 sps:$4 sm:$0xff]   ;;  %v8599_v9 = vld [vmem:[%s10239_s13 + $0x5a4] ss:$16 sps:$4 sm:$0xff]  }
  0xf6   : > { %5482 = vmatprep.subr.bf16.mxu0 %v8515_v10  ;;  %v8602_v10 = vld [vmem:[%s10239_s13 + $0x1ac] ss:$16 sps:$4 sm:$0xff]  }
  0xf8   : > { %5442 = vmatpush1.bf16.msra.mxu1 %v8517_v12  ;;  %v8597_v12 = vld [vmem:[%s10239_s13 + $0x5a0] ss:$16 sps:$4 sm:$0xff]  }
  0xf9   : > { %5483 = vmatpush1.bf16.msra.mxu0 %v8518_v14  ;;  %5944 = vmatprep.subr.bf16.mxu1 %v8524_v16  ;;  %v8600_v14 = vld [vmem:[%s10239_s13 + $0x1a8] ss:$16 sps:$4 sm:$0xff]   ;;  %v8608_v16 = vld [vmem:[%s10239_s13 + $0x1cc] ss:$16 sps:$4 sm:$0xff]  }
  0xfa   : > { %5493 = vmatprep.subr.bf16.mxu0 %v8521_v15  ;;  %v8605_v15 = vld [vmem:[%s10239_s13 + $0x5c4] ss:$16 sps:$4 sm:$0xff]  }
  0xfb   : > { %5444 = vmatmul.mubr.bf16.vlgmr.msra.gmra.mrb[0].mxu1 %v10340_v13 }
  0xfc   : > { %5485 = vmatmul.mubr.bf16.vlgmr.msra.gmra.mrb[0].mxu0 %v10350_v19  ;;  %5945 = vmatpush1.bf16.msra.mxu1 %v8522_v20  ;;  %v8611_v20 = vld [vmem:[%s10239_s13 + $0x5e4] ss:$16 sps:$4 sm:$0xff]  }
  0xfd   : > { %5494 = vmatpush1.bf16.msra.mxu0 %v8519_v18  ;;  %5946 = vmatprep.subr.bf16.mxu1 %v8530_v22  ;;  %v8606_v18 = vld [vmem:[%s10239_s13 + $0x1c8] ss:$16 sps:$4 sm:$0xff]   ;;  %v8609_v22 = vld [vmem:[%s10239_s13 + $0x5e0] ss:$16 sps:$4 sm:$0xff]  }
  0xfe   : > { %5495 = vmatprep.subr.bf16.mxu0 %v8527_v21  ;;  %5525 = vmatprep.mubr.bf16.mxu0 %v10356_v23  ;;  %v8614_v21 = vld [vmem:[%s10239_s13 + $0x1ec] ss:$16 sps:$4 sm:$0xff]  }
  0xff   : > { %5976 = vmatprep.mubr.bf16.mxu1 %v1262_v61  ;;  %v8584_v61 = vld [vmem:[%s10239_s13 + $0x14c] ss:$16 sps:$4 sm:$0xff]  }
 0x100   : > { %5947 = vmatpush1.bf16.msra.mxu1 %v8528_v25  ;;  %v8618_v25 = vld [vmem:[%s10239_s13 + $0x604] ss:$16 sps:$4 sm:$0xff]  }
 0x101   : > { %5496 = vmatpush1.bf16.msra.mxu0 %v8525_v24  ;;  %5948 = vmatprep.subr.bf16.mxu1 %v8536_v27  ;;  %v8612_v24 = vld [vmem:[%s10239_s13 + $0x1e8] ss:$16 sps:$4 sm:$0xff]   ;;  %v8616_v27 = vld [vmem:[%s10239_s13 + $0x600] ss:$16 sps:$4 sm:$0xff]  }
 0x102   : > { %5497 = vmatprep.subr.bf16.mxu0 %v8533_v26  ;;  %v8621_v26 = vld [vmem:[%s10239_s13 + $0x20c] ss:$16 sps:$4 sm:$0xff]  }
 0x104   : > { %5949 = vmatpush1.bf16.msra.mxu1 %v8534_v29  ;;  %v8619_v29 = vld [vmem:[%s10239_s13 + $0x208] ss:$16 sps:$4 sm:$0xff]  }
 0x105   : > { %5498 = vmatpush1.bf16.msra.mxu0 %v8531_v28  ;;  %5950 = vmatprep.subr.bf16.mxu1 %v8542_v31  ;;  %v10424_v28 = vrot.slane %v10336_v11, %v10307_v50  ;;  %v8627_v31 = vld [vmem:[%s10239_s13 + $0x22c] ss:$16 sps:$4 sm:$0xff]   ;;  %v8622_v11 = vld [vmem:[%s10239_s13 + $0x620] ss:$16 sps:$4 sm:$0xff]  }
 0x106   : > { %5499 = vmatprep.subr.bf16.mxu0 %v8539_v30  ;;  %v8624_v30 = vld [vmem:[%s10239_s13 + $0x624] ss:$16 sps:$4 sm:$0xff]  }
 0x108   : > { %5951 = vmatpush1.bf16.msra.mxu1 %v8540_v33  ;;  %v8625_v33 = vld [vmem:[%s10239_s13 + $0x228] ss:$16 sps:$4 sm:$0xff]  }
 0x109   : > { %5500 = vmatpush1.bf16.msra.mxu0 %v8537_v32  ;;  %5952 = vmatprep.subr.bf16.mxu1 %v8548_v35  ;;  %v10431_v32 = vcombine.high %v10356_v23, %v10356_v23  ;;  %v8633_v35 = vld [vmem:[%s10239_s13 + $0x24c] ss:$16 sps:$4 sm:$0xff]  }
 0x10a   : > { %5501 = vmatprep.subr.bf16.mxu0 %v8545_v34  ;;  %v8630_v34 = vld [vmem:[%s10239_s13 + $0x644] ss:$16 sps:$4 sm:$0xff]  }
 0x10c   : > { %5953 = vmatpush1.bf16.msra.mxu1 %v8546_v37  ;;  %v8636_v37 = vld [vmem:[%s10239_s13 + $0x664] ss:$16 sps:$4 sm:$0xff]  }
 0x10d   : > { %5502 = vmatpush1.bf16.msra.mxu0 %v8543_v36  ;;  %5954 = vmatprep.subr.bf16.mxu1 %v8554_v39  ;;  %v8628_v36 = vld [vmem:[%s10239_s13 + $0x640] ss:$16 sps:$4 sm:$0xff]  }
 0x10e   : > { %5503 = vmatprep.subr.bf16.mxu0 %v8551_v38  ;;  %v8639_v38 = vld [vmem:[%s10239_s13 + $0x26c] ss:$16 sps:$4 sm:$0xff]   ;;  %v8634_v39 = vld [vmem:[%s10239_s13 + $0x660] ss:$16 sps:$4 sm:$0xff]  }
 0x110   : > { %5955 = vmatpush1.bf16.msra.mxu1 %v8552_v41  ;;  %v8645_v41 = vld [vmem:[%s10239_s13 + $0x28c] ss:$16 sps:$4 sm:$0xff]  }
 0x111   : > { %5504 = vmatpush1.bf16.msra.mxu0 %v8549_v40  ;;  %5956 = vmatprep.subr.bf16.mxu1 %v8560_v44  ;;  %v8637_v40 = vld [vmem:[%s10239_s13 + $0x268] ss:$16 sps:$4 sm:$0xff]  }
 0x112   : > { %5505 = vmatprep.subr.bf16.mxu0 %v8557_v42  ;;  %v8640_v42 = vld [vmem:[%s10239_s13 + $0x680] ss:$16 sps:$4 sm:$0xff]   ;;  %v8643_v44 = vld [vmem:[%s10239_s13 + $0x288] ss:$16 sps:$4 sm:$0xff]  }
 0x114   : > { %5957 = vmatpush1.bf16.msra.mxu1 %v8558_v46  ;;  %v8651_v46 = vld [vmem:[%s10239_s13 + $0x2ac] ss:$16 sps:$4 sm:$0xff]  }
 0x115   : > { %5506 = vmatpush1.bf16.msra.mxu0 %v8555_v45  ;;  %5958 = vmatprep.subr.bf16.mxu1 %v8566_v48  ;;  %v8648_v45 = vld [vmem:[%s10239_s13 + $0x6a4] ss:$16 sps:$4 sm:$0xff]   ;;  %v8649_v48 = vld [vmem:[%s10239_s13 + $0x2a8] ss:$16 sps:$4 sm:$0xff]  }
 0x116   : > { %5507 = vmatprep.subr.bf16.mxu0 %v8563_v47  ;;  %v8646_v47 = vld [vmem:[%s10239_s13 + $0x6a0] ss:$16 sps:$4 sm:$0xff]  }
 0x118   : > { %5959 = vmatpush1.bf16.msra.mxu1 %v8564_v51  ;;  %v8657_v51 = vld [vmem:[%s10239_s13 + $0x2cc] ss:$16 sps:$4 sm:$0xff]  }
 0x119   : > { %5508 = vmatpush1.bf16.msra.mxu0 %v8561_v49  ;;  %5960 = vmatprep.subr.bf16.mxu1 %v8572_v53  ;;  %v8654_v49 = vld [vmem:[%s10239_s13 + $0x6c4] ss:$16 sps:$4 sm:$0xff]   ;;  %v8655_v53 = vld [vmem:[%s10239_s13 + $0x2c8] ss:$16 sps:$4 sm:$0xff]  }
 0x11a   : > { %5509 = vmatprep.subr.bf16.mxu0 %v8569_v52  ;;  %v8652_v52 = vld [vmem:[%s10239_s13 + $0x6c0] ss:$16 sps:$4 sm:$0xff]  }
 0x11c   : > { %5961 = vmatpush1.bf16.msra.mxu1 %v8570_v55  ;;  %v8663_v55 = vld [vmem:[%s10239_s13 + $0x2ec] ss:$16 sps:$4 sm:$0xff]  }
 0x11d   : > { %5510 = vmatpush1.bf16.msra.mxu0 %v8567_v54  ;;  %5962 = vmatprep.subr.bf16.mxu1 %v8578_v57  ;;  %v8660_v54 = vld [vmem:[%s10239_s13 + $0x6e4] ss:$16 sps:$4 sm:$0xff]   ;;  %v8661_v57 = vld [vmem:[%s10239_s13 + $0x2e8] ss:$16 sps:$4 sm:$0xff]  }
 0x11e   : > { %5511 = vmatprep.subr.bf16.mxu0 %v8575_v56  ;;  %v8658_v56 = vld [vmem:[%s10239_s13 + $0x6e0] ss:$16 sps:$4 sm:$0xff]  }
 0x120   : > { %5963 = vmatpush1.bf16.msra.mxu1 %v8576_v59  ;;  %v8669_v59 = vld [vmem:[%s10239_s13 + $0x30c] ss:$16 sps:$4 sm:$0xff]  }
 0x121   : > { %5512 = vmatpush1.bf16.msra.mxu0 %v8573_v58  ;;  %5964 = vmatprep.subr.bf16.mxu1 %v8584_v61  ;;  %v8666_v58 = vld [vmem:[%s10239_s13 + $0x704] ss:$16 sps:$4 sm:$0xff]   ;;  %v8667_v61 = vld [vmem:[%s10239_s13 + $0x308] ss:$16 sps:$4 sm:$0xff]  }
 0x122   : > { %5513 = vmatprep.subr.bf16.mxu0 %v8581_v60  ;;  %v8664_v60 = vld [vmem:[%s10239_s13 + $0x700] ss:$16 sps:$4 sm:$0xff]  }
 0x124   : > { %5965 = vmatpush1.bf16.msra.mxu1 %v8582_v63  ;;  %v8675_v63 = vld [vmem:[%s10239_s13 + $0x32c] ss:$16 sps:$4 sm:$0xff]  }
 0x125   : > { %5514 = vmatpush1.bf16.msra.mxu0 %v8579_v62  ;;  %5966 = vmatprep.subr.bf16.mxu1 %v8590_v2  ;;  %v8672_v62 = vld [vmem:[%s10239_s13 + $0x724] ss:$16 sps:$4 sm:$0xff]   ;;  %v8673_v2 = vld [vmem:[%s10239_s13 + $0x328] ss:$16 sps:$4 sm:$0xff]  }
 0x126   : > { %5515 = vmatprep.subr.bf16.mxu0 %v8587_v0  ;;  %v8670_v0 = vld [vmem:[%s10239_s13 + $0x720] ss:$16 sps:$4 sm:$0xff]  }
 0x128   : > { %5967 = vmatpush1.bf16.msra.mxu1 %v8588_v4  ;;  %v8681_v4 = vld [vmem:[%s10239_s13 + $0x34c] ss:$16 sps:$4 sm:$0xff]  }
 0x129   : > { %5516 = vmatpush1.bf16.msra.mxu0 %v8585_v3  ;;  %5968 = vmatprep.subr.bf16.mxu1 %v8596_v6  ;;  %v8678_v3 = vld [vmem:[%s10239_s13 + $0x744] ss:$16 sps:$4 sm:$0xff]   ;;  %v8679_v6 = vld [vmem:[%s10239_s13 + $0x348] ss:$16 sps:$4 sm:$0xff]  }
 0x12a   : > { %5517 = vmatprep.subr.bf16.mxu0 %v8593_v5  ;;  %v8676_v5 = vld [vmem:[%s10239_s13 + $0x740] ss:$16 sps:$4 sm:$0xff]  }
 0x12c   : > { %5969 = vmatpush1.bf16.msra.mxu1 %v8594_v8  ;;  %v8687_v8 = vld [vmem:[%s10239_s13 + $0x36c] ss:$16 sps:$4 sm:$0xff]  }
 0x12d   : > { %5518 = vmatpush1.bf16.msra.mxu0 %v8591_v7  ;;  %5970 = vmatprep.subr.bf16.mxu1 %v8602_v10  ;;  %v8684_v7 = vld [vmem:[%s10239_s13 + $0x764] ss:$16 sps:$4 sm:$0xff]   ;;  %v8685_v10 = vld [vmem:[%s10239_s13 + $0x368] ss:$16 sps:$4 sm:$0xff]  }
 0x12e   : > { %5519 = vmatprep.subr.bf16.mxu0 %v8599_v9  ;;  %v8682_v9 = vld [vmem:[%s10239_s13 + $0x760] ss:$16 sps:$4 sm:$0xff]  }
 0x130   : > { %5971 = vmatpush1.bf16.msra.mxu1 %v8600_v14  ;;  %v8693_v14 = vld [vmem:[%s10239_s13 + $0x38c] ss:$16 sps:$4 sm:$0xff]  }
 0x131   : > { %5520 = vmatpush1.bf16.msra.mxu0 %v8597_v12  ;;  %5972 = vmatprep.subr.bf16.mxu1 %v8608_v16  ;;  %v8690_v12 = vld [vmem:[%s10239_s13 + $0x784] ss:$16 sps:$4 sm:$0xff]   ;;  %v8691_v16 = vld [vmem:[%s10239_s13 + $0x388] ss:$16 sps:$4 sm:$0xff]  }
 0x132   : > { %5521 = vmatprep.subr.bf16.mxu0 %v8605_v15  ;;  %v8688_v15 = vld [vmem:[%s10239_s13 + $0x780] ss:$16 sps:$4 sm:$0xff]  }
 0x134   : > { %5973 = vmatpush1.bf16.msra.mxu1 %v8606_v18  ;;  %v8699_v18 = vld [vmem:[%s10239_s13 + $0x3ac] ss:$16 sps:$4 sm:$0xff]  }
 0x135   : > { %5522 = vmatpush1.bf16.msra.mxu0 %v8603_v17  ;;  %5974 = vmatprep.subr.bf16.mxu1 %v8614_v21  ;;  %v8696_v17 = vld [vmem:[%s10239_s13 + $0x7a4] ss:$16 sps:$4 sm:$0xff]   ;;  %v8697_v21 = vld [vmem:[%s10239_s13 + $0x3a8] ss:$16 sps:$4 sm:$0xff]  }
 0x136   : > { %5523 = vmatprep.subr.bf16.mxu0 %v8611_v20  ;;  %v8694_v20 = vld [vmem:[%s10239_s13 + $0x7a0] ss:$16 sps:$4 sm:$0xff]  }
 0x138   : > { %5975 = vmatpush1.bf16.msra.mxu1 %v8612_v24  ;;  %v8705_v24 = vld [vmem:[%s10239_s13 + $0x3cc] ss:$16 sps:$4 sm:$0xff]  }
 0x139   : > { %5524 = vmatpush1.bf16.msra.mxu0 %v8609_v22  ;;  %5985 = vmatprep.subr.bf16.mxu1 %v8621_v26  ;;  %v8702_v22 = vld [vmem:[%s10239_s13 + $0x7c4] ss:$16 sps:$4 sm:$0xff]   ;;  %v8700_v26 = vld [vmem:[%s10239_s13 + $0x7c0] ss:$16 sps:$4 sm:$0xff]  }
 0x13a   : > { %5534 = vmatprep.subr.bf16.mxu0 %v8618_v25  ;;  %v10492_v25 = vld [vmem:[%s11426_s0 + $0x8] sm:$0xff] }
 0x13b   : > { %5977 = vmatmul.mubr.bf16.vlgmr.msra.gmra.mrb[4].mxu1 %v10340_v13  ;;  %v8631_v13 = vld [vmem:[%s10239_s13 + $0x248] ss:$16 sps:$4 sm:$0xff]  }
 0x13c   : > { %5526 = vmatmul.mubr.bf16.vlgmr.msra.gmra.mrb[0].mxu0 %v10424_v28  ;;  %5986 = vmatpush1.bf16.msra.mxu1 %v8619_v29  ;;  %v8708_v29 = vld [vmem:[%s10239_s13 + $0x7e4] ss:$16 sps:$4 sm:$0xff]  }
 0x13d   : > { %5535 = vmatpush1.bf16.msra.mxu0 %v8616_v27  ;;  %5987 = vmatprep.subr.bf16.mxu1 %v8627_v31  ;;  %v8703_v27 = vld [vmem:[%s10239_s13 + $0x3c8] ss:$16 sps:$4 sm:$0xff]   ;;  %v10500_v31 = vrot.slane %v10492_v25, %v10307_v50 }
 0x13e   : > { %5536 = vmatprep.subr.bf16.mxu0 %v8624_v30  ;;  %5566 = vmatprep.mubr.bf16.mxu0 %v10431_v32  ;;  %v8711_v30 = vld [vmem:[%s10239_s13 + $0x3ec] ss:$16 sps:$4 sm:$0xff]  }
 0x13f   : > { %6017 = vmatprep.mubr.bf16.mxu1 %v10324_v1  ;;  %v8642_v1 = vld [vmem:[%s10239_s13 + $0x684] ss:$16 sps:$4 sm:$0xff]  }
 0x140   : > { %5988 = vmatpush1.bf16.msra.mxu1 %v8625_v33  ;;  %v8709_v33 = vld [vmem:[%s10239_s13 + $0x3e8] ss:$16 sps:$4 sm:$0xff]  }
 0x141   : > { %5537 = vmatpush1.bf16.msra.mxu0 %v8622_v11  ;;  %5989 = vmatprep.subr.bf16.mxu1 %v8633_v35  ;;  %v8706_v11 = vld [vmem:[%s10239_s13 + $0x7e0] ss:$16 sps:$4 sm:$0xff]   ;;  %v8717_v35 = vld [vmem:[%s10239_s13 + $0x40c] ss:$16 sps:$4 sm:$0xff]  }
 0x142   : > { %5538 = vmatprep.subr.bf16.mxu0 %v8630_v34  ;;  %v8714_v34 = vld [vmem:[%s10239_s13 + $0x804] ss:$16 sps:$4 sm:$0xff]  }
 0x144   : > { %5990 = vmatpush1.bf16.msra.mxu1 %v8631_v13  ;;  %v8712_v13 = vld [vmem:[%s10239_s13 + $0x800] ss:$16 sps:$4 sm:$0xff]  }
 0x145   : > { %5539 = vmatpush1.bf16.msra.mxu0 %v8628_v36  ;;  %5991 = vmatprep.subr.bf16.mxu1 %v8639_v38  ;;  %v1289_v36 = vcombine.high %v10500_v31, %v10500_v31  ;;  %v8715_v38 = vld [vmem:[%s10239_s13 + $0x408] ss:$16 sps:$4 sm:$0xff]  }
 0x146   : > { %5540 = vmatprep.subr.bf16.mxu0 %v8636_v37  ;;  %v10511_v37 = vcombine.high %v10424_v28, %v10424_v28 }
 0x148   : > { %5992 = vmatpush1.bf16.msra.mxu1 %v8637_v40  ;;  %v8723_v40 = vld [vmem:[%s10239_s13 + $0x42c] ss:$16 sps:$4 sm:$0xff]  }
 0x149   : > { %5541 = vmatpush1.bf16.msra.mxu0 %v8634_v39  ;;  %5993 = vmatprep.subr.bf16.mxu1 %v8645_v41  ;;  %v8720_v39 = vld [vmem:[%s10239_s13 + $0x824] ss:$16 sps:$4 sm:$0xff]   ;;  %v8718_v41 = vld [vmem:[%s10239_s13 + $0x820] ss:$16 sps:$4 sm:$0xff]  }
 0x14a   : > { %5542 = vmatprep.subr.bf16.mxu0 %v8642_v1  ;;  %v10517_v1 = vrot.slane %v1289_v36, %v10307_v50  ;;  %v8801_v36 = vld [vmem:[%s10239_s13 + $0x5cc] ss:$16 sps:$4 sm:$0xff]  }
 0x14c   : > { %5994 = vmatpush1.bf16.msra.mxu1 %v8643_v44  ;;  %v8726_v44 = vld [vmem:[%s10239_s13 + $0x844] ss:$16 sps:$4 sm:$0xff]  }
 0x14d   : > { %5543 = vmatpush1.bf16.msra.mxu0 %v8640_v42  ;;  %5995 = vmatprep.subr.bf16.mxu1 %v8651_v46  ;;  %v8721_v42 = vld [vmem:[%s10239_s13 + $0x428] ss:$16 sps:$4 sm:$0xff]   ;;  %v8724_v46 = vld [vmem:[%s10239_s13 + $0x840] ss:$16 sps:$4 sm:$0xff]  }
 0x14e   : > { %5544 = vmatprep.subr.bf16.mxu0 %v8648_v45  ;;  %v8729_v45 = vld [vmem:[%s10239_s13 + $0x44c] ss:$16 sps:$4 sm:$0xff]  }
 0x150   : > { %5996 = vmatpush1.bf16.msra.mxu1 %v8649_v48  ;;  %v8735_v48 = vld [vmem:[%s10239_s13 + $0x46c] ss:$16 sps:$4 sm:$0xff]  }
 0x151   : > { %5545 = vmatpush1.bf16.msra.mxu0 %v8646_v47  ;;  %5997 = vmatprep.subr.bf16.mxu1 %v8657_v51  ;;  %v8732_v47 = vld [vmem:[%s10239_s13 + $0x864] ss:$16 sps:$4 sm:$0xff]   ;;  %v8733_v51 = vld [vmem:[%s10239_s13 + $0x468] ss:$16 sps:$4 sm:$0xff]  }
 0x152   : > { %5546 = vmatprep.subr.bf16.mxu0 %v8654_v49  ;;  %v8730_v49 = vld [vmem:[%s10239_s13 + $0x860] ss:$16 sps:$4 sm:$0xff]  }
 0x154   : > { %5998 = vmatpush1.bf16.msra.mxu1 %v8655_v53  ;;  %v8736_v53 = vld [vmem:[%s10239_s13 + $0x880] ss:$16 sps:$4 sm:$0xff]  }
 0x155   : > { %5547 = vmatpush1.bf16.msra.mxu0 %v8652_v52  ;;  %5999 = vmatprep.subr.bf16.mxu1 %v8663_v55  ;;  %v8741_v52 = vld [vmem:[%s10239_s13 + $0x48c] ss:$16 sps:$4 sm:$0xff]   ;;  %v8744_v55 = vld [vmem:[%s10239_s13 + $0x8a4] ss:$16 sps:$4 sm:$0xff]  }
 0x156   : > { %5548 = vmatprep.subr.bf16.mxu0 %v8660_v54  ;;  %v8739_v54 = vld [vmem:[%s10239_s13 + $0x488] ss:$16 sps:$4 sm:$0xff]  }
 0x158   : > { %6000 = vmatpush1.bf16.msra.mxu1 %v8661_v57  ;;  %v8742_v57 = vld [vmem:[%s10239_s13 + $0x8a0] ss:$16 sps:$4 sm:$0xff]  }
 0x159   : > { %5549 = vmatpush1.bf16.msra.mxu0 %v8658_v56  ;;  %6001 = vmatprep.subr.bf16.mxu1 %v8669_v59  ;;  %v8747_v56 = vld [vmem:[%s10239_s13 + $0x4ac] ss:$16 sps:$4 sm:$0xff]   ;;  %v8750_v59 = vld [vmem:[%s10239_s13 + $0x8c4] ss:$16 sps:$4 sm:$0xff]  }
 0x15a   : > { %5550 = vmatprep.subr.bf16.mxu0 %v8666_v58  ;;  %v8745_v58 = vld [vmem:[%s10239_s13 + $0x4a8] ss:$16 sps:$4 sm:$0xff]  }
 0x15c   : > { %6002 = vmatpush1.bf16.msra.mxu1 %v8667_v61  ;;  %v8748_v61 = vld [vmem:[%s10239_s13 + $0x8c0] ss:$16 sps:$4 sm:$0xff]  }
 0x15d   : > { %5551 = vmatpush1.bf16.msra.mxu0 %v8664_v60  ;;  %6003 = vmatprep.subr.bf16.mxu1 %v8675_v63  ;;  %v8753_v60 = vld [vmem:[%s10239_s13 + $0x4cc] ss:$16 sps:$4 sm:$0xff]   ;;  %v8756_v63 = vld [vmem:[%s10239_s13 + $0x8e4] ss:$16 sps:$4 sm:$0xff]  }
 0x15e   : > { %5552 = vmatprep.subr.bf16.mxu0 %v8672_v62  ;;  %v8751_v62 = vld [vmem:[%s10239_s13 + $0x4c8] ss:$16 sps:$4 sm:$0xff]  }
 0x160   : > { %6004 = vmatpush1.bf16.msra.mxu1 %v8673_v2  ;;  %v8754_v2 = vld [vmem:[%s10239_s13 + $0x8e0] ss:$16 sps:$4 sm:$0xff]  }
 0x161   : > { %5553 = vmatpush1.bf16.msra.mxu0 %v8670_v0  ;;  %6005 = vmatprep.subr.bf16.mxu1 %v8681_v4  ;;  %v8759_v0 = vld [vmem:[%s10239_s13 + $0x4ec] ss:$16 sps:$4 sm:$0xff]   ;;  %v8762_v4 = vld [vmem:[%s10239_s13 + $0x904] ss:$16 sps:$4 sm:$0xff]  }
 0x162   : > { %5554 = vmatprep.subr.bf16.mxu0 %v8678_v3  ;;  %v8757_v3 = vld [vmem:[%s10239_s13 + $0x4e8] ss:$16 sps:$4 sm:$0xff]  }
 0x164   : > { %6006 = vmatpush1.bf16.msra.mxu1 %v8679_v6  ;;  %v8760_v6 = vld [vmem:[%s10239_s13 + $0x900] ss:$16 sps:$4 sm:$0xff]  }
 0x165   : > { %5555 = vmatpush1.bf16.msra.mxu0 %v8676_v5  ;;  %6007 = vmatprep.subr.bf16.mxu1 %v8687_v8  ;;  %v8765_v5 = vld [vmem:[%s10239_s13 + $0x50c] ss:$16 sps:$4 sm:$0xff]   ;;  %v8768_v8 = vld [vmem:[%s10239_s13 + $0x924] ss:$16 sps:$4 sm:$0xff]  }
 0x166   : > { %5556 = vmatprep.subr.bf16.mxu0 %v8684_v7  ;;  %v8763_v7 = vld [vmem:[%s10239_s13 + $0x508] ss:$16 sps:$4 sm:$0xff]  }
 0x168   : > { %6008 = vmatpush1.bf16.msra.mxu1 %v8685_v10  ;;  %v8766_v10 = vld [vmem:[%s10239_s13 + $0x920] ss:$16 sps:$4 sm:$0xff]  }
 0x169   : > { %5557 = vmatpush1.bf16.msra.mxu0 %v8682_v9  ;;  %6009 = vmatprep.subr.bf16.mxu1 %v8693_v14  ;;  %v8771_v9 = vld [vmem:[%s10239_s13 + $0x52c] ss:$16 sps:$4 sm:$0xff]   ;;  %v8774_v14 = vld [vmem:[%s10239_s13 + $0x944] ss:$16 sps:$4 sm:$0xff]  }
 0x16a   : > { %5558 = vmatprep.subr.bf16.mxu0 %v8690_v12  ;;  %v8769_v12 = vld [vmem:[%s10239_s13 + $0x528] ss:$16 sps:$4 sm:$0xff]  }
 0x16c   : > { %6010 = vmatpush1.bf16.msra.mxu1 %v8691_v16  ;;  %v8772_v16 = vld [vmem:[%s10239_s13 + $0x940] ss:$16 sps:$4 sm:$0xff]  }
 0x16d   : > { %5559 = vmatpush1.bf16.msra.mxu0 %v8688_v15  ;;  %6011 = vmatprep.subr.bf16.mxu1 %v8699_v18  ;;  %v8777_v15 = vld [vmem:[%s10239_s13 + $0x54c] ss:$16 sps:$4 sm:$0xff]   ;;  %v8780_v18 = vld [vmem:[%s10239_s13 + $0x964] ss:$16 sps:$4 sm:$0xff]  }
 0x16e   : > { %5560 = vmatprep.subr.bf16.mxu0 %v8696_v17  ;;  %v8775_v17 = vld [vmem:[%s10239_s13 + $0x548] ss:$16 sps:$4 sm:$0xff]  }
 0x170   : > { %6012 = vmatpush1.bf16.msra.mxu1 %v8697_v21  ;;  %v8778_v21 = vld [vmem:[%s10239_s13 + $0x960] ss:$16 sps:$4 sm:$0xff]  }
 0x171   : > { %5561 = vmatpush1.bf16.msra.mxu0 %v8694_v20  ;;  %6013 = vmatprep.subr.bf16.mxu1 %v8705_v24  ;;  %v8783_v20 = vld [vmem:[%s10239_s13 + $0x56c] ss:$16 sps:$4 sm:$0xff]   ;;  %v8786_v24 = vld [vmem:[%s10239_s13 + $0x984] ss:$16 sps:$4 sm:$0xff]  }
 0x172   : > { %5562 = vmatprep.subr.bf16.mxu0 %v8702_v22  ;;  %v8781_v22 = vld [vmem:[%s10239_s13 + $0x568] ss:$16 sps:$4 sm:$0xff]  }
 0x174   : > { %6014 = vmatpush1.bf16.msra.mxu1 %v8703_v27  ;;  %v8784_v27 = vld [vmem:[%s10239_s13 + $0x980] ss:$16 sps:$4 sm:$0xff]  }
 0x175   : > { %5563 = vmatpush1.bf16.msra.mxu0 %v8700_v26  ;;  %6015 = vmatprep.subr.bf16.mxu1 %v8711_v30  ;;  %v8789_v26 = vld [vmem:[%s10239_s13 + $0x58c] ss:$16 sps:$4 sm:$0xff]   ;;  %v8792_v30 = vld [vmem:[%s10239_s13 + $0x9a4] ss:$16 sps:$4 sm:$0xff]  }
 0x176   : > { %5564 = vmatprep.subr.bf16.mxu0 %v8708_v29  ;;  %v8787_v29 = vld [vmem:[%s10239_s13 + $0x588] ss:$16 sps:$4 sm:$0xff]  }
 0x178   : > { %6016 = vmatpush1.bf16.msra.mxu1 %v8709_v33  ;;  %v8790_v33 = vld [vmem:[%s10239_s13 + $0x9a0] ss:$16 sps:$4 sm:$0xff]  }
 0x179   : > { %5565 = vmatpush1.bf16.msra.mxu0 %v8706_v11  ;;  %6026 = vmatprep.subr.bf16.mxu1 %v8717_v35  ;;  %v8795_v11 = vld [vmem:[%s10239_s13 + $0x5ac] ss:$16 sps:$4 sm:$0xff]   ;;  %v8798_v35 = vld [vmem:[%s10239_s13 + $0x9c4] ss:$16 sps:$4 sm:$0xff]  }
 0x17a   : > { %5575 = vmatprep.subr.bf16.mxu0 %v8714_v34  ;;  %v8793_v34 = vld [vmem:[%s10239_s13 + $0x5a8] ss:$16 sps:$4 sm:$0xff]  }
 0x17b   : > { %6018 = vmatmul.mubr.bf16.vlgmr.msra.gmra.mrb[4].mxu1 %v10350_v19  ;;  %v8727_v19 = vld [vmem:[%s10239_s13 + $0x448] ss:$16 sps:$4 sm:$0xff]  }
 0x17c   : > { %5567 = vmatmul.mubr.bf16.vlgmr.msra.gmra.mrb[0].mxu0 %v10511_v37  ;;  %6027 = vmatpush1.bf16.msra.mxu1 %v8715_v38  ;;  %v8799_v38 = vld [vmem:[%s10239_s13 + $0x5c8] ss:$16 sps:$4 sm:$0xff]  }
 0x17d   : > { %5576 = vmatpush1.bf16.msra.mxu0 %v8712_v13  ;;  %6028 = vmatprep.subr.bf16.mxu1 %v8723_v40  ;;  %v8796_v13 = vld [vmem:[%s10239_s13 + $0x9c0] ss:$16 sps:$4 sm:$0xff]   ;;  %v8807_v40 = vld [vmem:[%s10239_s13 + $0x5ec] ss:$16 sps:$4 sm:$0xff]  }
 0x17e   : > { %5577 = vmatprep.subr.bf16.mxu0 %v8720_v39  ;;  %5607 = vmatprep.mubr.bf16.mxu0 %v10517_v1  ;;  %v8804_v39 = vld [vmem:[%s10239_s13 + $0x9e4] ss:$16 sps:$4 sm:$0xff]  }
 0x17f   : > { %6058 = vmatprep.mubr.bf16.mxu1 %v10356_v23  ;;  %v8738_v23 = vld [vmem:[%s10239_s13 + $0x884] ss:$16 sps:$4 sm:$0xff]  }
 0x180   : > { %6029 = vmatpush1.bf16.msra.mxu1 %v8721_v42  ;;  %v8805_v42 = vld [vmem:[%s10239_s13 + $0x5e8] ss:$16 sps:$4 sm:$0xff]  }
 0x181   : > { %5578 = vmatpush1.bf16.msra.mxu0 %v8718_v41  ;;  %6030 = vmatprep.subr.bf16.mxu1 %v8729_v45  ;;  %v8802_v41 = vld [vmem:[%s10239_s13 + $0x9e0] ss:$16 sps:$4 sm:$0xff]   ;;  %v8813_v45 = vld [vmem:[%s10239_s13 + $0x60c] ss:$16 sps:$4 sm:$0xff]  }
 0x182   : > { %5579 = vmatprep.subr.bf16.mxu0 %v8726_v44  ;;  %v8810_v44 = vld [vmem:[%s10239_s13 + $0xa04] ss:$16 sps:$4 sm:$0xff]  }
 0x184   : > { %6031 = vmatpush1.bf16.msra.mxu1 %v8727_v19  ;;  %v10586_v19 = vrot.slane %v10500_v31, %v10307_v50  ;;  %v8814_v31 = vld [vmem:[%s10239_s13 + $0xa20] ss:$16 sps:$4 sm:$0xff]  }
 0x185   : > { %5580 = vmatpush1.bf16.msra.mxu0 %v8724_v46  ;;  %6032 = vmatprep.subr.bf16.mxu1 %v8735_v48  ;;  %v8808_v46 = vld [vmem:[%s10239_s13 + $0xa00] ss:$16 sps:$4 sm:$0xff]   ;;  %v8816_v48 = vld [vmem:[%s10239_s13 + $0xa24] ss:$16 sps:$4 sm:$0xff]  }
 0x186   : > { %5581 = vmatprep.subr.bf16.mxu0 %v8732_v47  ;;  %v8811_v47 = vld [vmem:[%s10239_s13 + $0x608] ss:$16 sps:$4 sm:$0xff]  }
 0x188   : > { %6033 = vmatpush1.bf16.msra.mxu1 %v8733_v51  ;;  %v10593_v51 = vcombine.high %v10517_v1, %v10517_v1 }
 0x189   : > { %5582 = vmatpush1.bf16.msra.mxu0 %v8730_v49  ;;  %6034 = vmatprep.subr.bf16.mxu1 %v8741_v52  ;;  %v8819_v49 = vld [vmem:[%s10239_s13 + $0x62c] ss:$16 sps:$4 sm:$0xff]   ;;  %v8822_v52 = vld [vmem:[%s10239_s13 + $0xa44] ss:$16 sps:$4 sm:$0xff]  }
 0x18a   : > { %5583 = vmatprep.subr.bf16.mxu0 %v8738_v23  ;;  %v8817_v23 = vld [vmem:[%s10239_s13 + $0x628] ss:$16 sps:$4 sm:$0xff]  }
 0x18c   : > { %6035 = vmatpush1.bf16.msra.mxu1 %v8739_v54  ;;  %v8823_v54 = vld [vmem:[%s10239_s13 + $0x648] ss:$16 sps:$4 sm:$0xff]  }
 0x18d   : > { %5584 = vmatpush1.bf16.msra.mxu0 %v8736_v53  ;;  %6036 = vmatprep.subr.bf16.mxu1 %v8747_v56  ;;  %v8825_v53 = vld [vmem:[%s10239_s13 + $0x64c] ss:$16 sps:$4 sm:$0xff]  }
 0x18e   : > { %5585 = vmatprep.subr.bf16.mxu0 %v8744_v55  ;;  %v8828_v55 = vld [vmem:[%s10239_s13 + $0xa64] ss:$16 sps:$4 sm:$0xff]   ;;  %v8831_v56 = vld [vmem:[%s10239_s13 + $0x66c] ss:$16 sps:$4 sm:$0xff]  }
 0x190   : > { %6037 = vmatpush1.bf16.msra.mxu1 %v8745_v58  ;;  %v8829_v58 = vld [vmem:[%s10239_s13 + $0x668] ss:$16 sps:$4 sm:$0xff]  }
 0x191   : > { %5586 = vmatpush1.bf16.msra.mxu0 %v8742_v57  ;;  %6038 = vmatprep.subr.bf16.mxu1 %v8753_v60  ;;  %v8826_v57 = vld [vmem:[%s10239_s13 + $0xa60] ss:$16 sps:$4 sm:$0xff]  }
 0x192   : > { %5587 = vmatprep.subr.bf16.mxu0 %v8750_v59  ;;  %v8837_v59 = vld [vmem:[%s10239_s13 + $0x68c] ss:$16 sps:$4 sm:$0xff]   ;;  %v8832_v60 = vld [vmem:[%s10239_s13 + $0xa80] ss:$16 sps:$4 sm:$0xff]  }
 0x194   : > { %6039 = vmatpush1.bf16.msra.mxu1 %v8751_v62  ;;  %v8840_v62 = vld [vmem:[%s10239_s13 + $0xaa4] ss:$16 sps:$4 sm:$0xff]  }
 0x195   : > { %5588 = vmatpush1.bf16.msra.mxu0 %v8748_v61  ;;  %6040 = vmatprep.subr.bf16.mxu1 %v8759_v0  ;;  %v8835_v61 = vld [vmem:[%s10239_s13 + $0x688] ss:$16 sps:$4 sm:$0xff]   ;;  %v8838_v0 = vld [vmem:[%s10239_s13 + $0xaa0] ss:$16 sps:$4 sm:$0xff]  }
 0x196   : > { %5589 = vmatprep.subr.bf16.mxu0 %v8756_v63  ;;  %v8843_v63 = vld [vmem:[%s10239_s13 + $0x6ac] ss:$16 sps:$4 sm:$0xff]  }
 0x198   : > { %6041 = vmatpush1.bf16.msra.mxu1 %v8757_v3  ;;  %v8846_v3 = vld [vmem:[%s10239_s13 + $0xac4] ss:$16 sps:$4 sm:$0xff]  }
 0x199   : > { %5590 = vmatpush1.bf16.msra.mxu0 %v8754_v2  ;;  %6042 = vmatprep.subr.bf16.mxu1 %v8765_v5  ;;  %v8841_v2 = vld [vmem:[%s10239_s13 + $0x6a8] ss:$16 sps:$4 sm:$0xff]  }
 0x19a   : > { %5591 = vmatprep.subr.bf16.mxu0 %v8762_v4  ;;  %v8849_v4 = vld [vmem:[%s10239_s13 + $0x6cc] ss:$16 sps:$4 sm:$0xff]  }
 0x19c   : > { %6043 = vmatpush1.bf16.msra.mxu1 %v8763_v7 }
 0x19d   : > { %5592 = vmatpush1.bf16.msra.mxu0 %v8760_v6  ;;  %6044 = vmatprep.subr.bf16.mxu1 %v8771_v9  ;;  %v8847_v9 = vld [vmem:[%s10239_s13 + $0x6c8] ss:$16 sps:$4 sm:$0xff]  }
 0x19e   : > { %5593 = vmatprep.subr.bf16.mxu0 %v8768_v8  ;;  %v8844_v8 = vld [vmem:[%s10239_s13 + $0xac0] ss:$16 sps:$4 sm:$0xff]  }
 0x1a0   : > { %6045 = vmatpush1.bf16.msra.mxu1 %v8769_v12  ;;  %v8852_v12 = vld [vmem:[%s10239_s13 + $0xae4] ss:$16 sps:$4 sm:$0xff]  }
 0x1a1   : > { %5594 = vmatpush1.bf16.msra.mxu0 %v8766_v10  ;;  %6046 = vmatprep.subr.bf16.mxu1 %v8777_v15  ;;  %v8850_v15 = vld [vmem:[%s10239_s13 + $0xae0] ss:$16 sps:$4 sm:$0xff]  }
 0x1a2   : > { %5595 = vmatprep.subr.bf16.mxu0 %v8774_v14  ;;  %v8855_v14 = vld [vmem:[%s10239_s13 + $0x6ec] ss:$16 sps:$4 sm:$0xff]  }
 0x1a4   : > { %6047 = vmatpush1.bf16.msra.mxu1 %v8775_v17  ;;  %v8858_v17 = vld [vmem:[%s10239_s13 + $0xb04] ss:$16 sps:$4 sm:$0xff]  }
 0x1a5   : > { %5596 = vmatpush1.bf16.msra.mxu0 %v8772_v16  ;;  %6048 = vmatprep.subr.bf16.mxu1 %v8783_v20  ;;  %v8853_v16 = vld [vmem:[%s10239_s13 + $0x6e8] ss:$16 sps:$4 sm:$0xff]   ;;  %v8856_v20 = vld [vmem:[%s10239_s13 + $0xb00] ss:$16 sps:$4 sm:$0xff]  }
 0x1a6   : > { %5597 = vmatprep.subr.bf16.mxu0 %v8780_v18  ;;  %v8861_v18 = vld [vmem:[%s10239_s13 + $0x70c] ss:$16 sps:$4 sm:$0xff]  }
 0x1a8   : > { %6049 = vmatpush1.bf16.msra.mxu1 %v8781_v22  ;;  %v8864_v22 = vld [vmem:[%s10239_s13 + $0xb24] ss:$16 sps:$4 sm:$0xff]  }
 0x1a9   : > { %5598 = vmatpush1.bf16.msra.mxu0 %v8778_v21  ;;  %6050 = vmatprep.subr.bf16.mxu1 %v8789_v26  ;;  %v8859_v21 = vld [vmem:[%s10239_s13 + $0x708] ss:$16 sps:$4 sm:$0xff]   ;;  %v8862_v26 = vld [vmem:[%s10239_s13 + $0xb20] ss:$16 sps:$4 sm:$0xff]  }
 0x1aa   : > { %5599 = vmatprep.subr.bf16.mxu0 %v8786_v24  ;;  %v8867_v24 = vld [vmem:[%s10239_s13 + $0x72c] ss:$16 sps:$4 sm:$0xff]  }
 0x1ac   : > { %6051 = vmatpush1.bf16.msra.mxu1 %v8787_v29  ;;  %v8870_v29 = vld [vmem:[%s10239_s13 + $0xb44] ss:$16 sps:$4 sm:$0xff]  }
 0x1ad   : > { %5600 = vmatpush1.bf16.msra.mxu0 %v8784_v27  ;;  %6052 = vmatprep.subr.bf16.mxu1 %v8795_v11  ;;  %v8865_v27 = vld [vmem:[%s10239_s13 + $0x728] ss:$16 sps:$4 sm:$0xff]   ;;  %v8868_v11 = vld [vmem:[%s10239_s13 + $0xb40] ss:$16 sps:$4 sm:$0xff]  }
 0x1ae   : > { %5601 = vmatprep.subr.bf16.mxu0 %v8792_v30  ;;  %v8873_v30 = vld [vmem:[%s10239_s13 + $0x74c] ss:$16 sps:$4 sm:$0xff]  }
 0x1b0   : > { %6053 = vmatpush1.bf16.msra.mxu1 %v8793_v34  ;;  %v8876_v34 = vld [vmem:[%s10239_s13 + $0xb64] ss:$16 sps:$4 sm:$0xff]  }
 0x1b1   : > { %5602 = vmatpush1.bf16.msra.mxu0 %v8790_v33  ;;  %6054 = vmatprep.subr.bf16.mxu1 %v8801_v36  ;;  %v8871_v33 = vld [vmem:[%s10239_s13 + $0x748] ss:$16 sps:$4 sm:$0xff]   ;;  %v8874_v36 = vld [vmem:[%s10239_s13 + $0xb60] ss:$16 sps:$4 sm:$0xff]  }
 0x1b2   : > { %5603 = vmatprep.subr.bf16.mxu0 %v8798_v35  ;;  %v8879_v35 = vld [vmem:[%s10239_s13 + $0x76c] ss:$16 sps:$4 sm:$0xff]  }
 0x1b4   : > { %6055 = vmatpush1.bf16.msra.mxu1 %v8799_v38  ;;  %v8882_v38 = vld [vmem:[%s10239_s13 + $0xb84] ss:$16 sps:$4 sm:$0xff]  }
 0x1b5   : > { %5604 = vmatpush1.bf16.msra.mxu0 %v8796_v13  ;;  %6056 = vmatprep.subr.bf16.mxu1 %v8807_v40  ;;  %v8877_v13 = vld [vmem:[%s10239_s13 + $0x768] ss:$16 sps:$4 sm:$0xff]   ;;  %v8880_v40 = vld [vmem:[%s10239_s13 + $0xb80] ss:$16 sps:$4 sm:$0xff]  }
 0x1b6   : > { %5605 = vmatprep.subr.bf16.mxu0 %v8804_v39  ;;  %v8885_v39 = vld [vmem:[%s10239_s13 + $0x78c] ss:$16 sps:$4 sm:$0xff]  }
 0x1b8   : > { %6057 = vmatpush1.bf16.msra.mxu1 %v8805_v42  ;;  %v8888_v42 = vld [vmem:[%s10239_s13 + $0xba4] ss:$16 sps:$4 sm:$0xff]  }
 0x1b9   : > { %5606 = vmatpush1.bf16.msra.mxu0 %v8802_v41  ;;  %6067 = vmatprep.subr.bf16.mxu1 %v8813_v45  ;;  %v8883_v41 = vld [vmem:[%s10239_s13 + $0x788] ss:$16 sps:$4 sm:$0xff]   ;;  %v8886_v45 = vld [vmem:[%s10239_s13 + $0xba0] ss:$16 sps:$4 sm:$0xff]  }
 0x1ba   : > { %5616 = vmatprep.subr.bf16.mxu0 %v8810_v44  ;;  %v8891_v44 = vld [vmem:[%s10239_s13 + $0x7ac] ss:$16 sps:$4 sm:$0xff]  }
 0x1bb   : > { %6059 = vmatmul.mubr.bf16.vlgmr.msra.gmra.mrb[4].mxu1 %v10424_v28  ;;  %v8820_v28 = vld [vmem:[%s10239_s13 + $0xa40] ss:$16 sps:$4 sm:$0xff]  }
 0x1bc   : > { %5608 = vmatmul.mubr.bf16.vlgmr.msra.gmra.mrb[0].mxu0 %v10586_v19  ;;  %6068 = vmatpush1.bf16.msra.mxu1 %v8811_v47  ;;  %v8894_v47 = vld [vmem:[%s10239_s13 + $0xbc4] ss:$16 sps:$4 sm:$0xff]  }
 0x1bd   : > { %5617 = vmatpush1.bf16.msra.mxu0 %v8808_v46  ;;  %6069 = vmatprep.subr.bf16.mxu1 %v8819_v49  ;;  %v8889_v46 = vld [vmem:[%s10239_s13 + $0x7a8] ss:$16 sps:$4 sm:$0xff]   ;;  %v1274_v49 = vcombine.high %v10492_v25, %v10492_v25  ;;  %v8898_v25 = vld [vmem:[%s10239_s13 + $0xbe0] ss:$16 sps:$4 sm:$0xff]  }
 0x1be   : > { %5618 = vmatprep.subr.bf16.mxu0 %v8816_v48  ;;  %5648 = vmatprep.mubr.bf16.mxu0 %v10593_v51  ;;  %v8897_v48 = vld [vmem:[%s10239_s13 + $0x7cc] ss:$16 sps:$4 sm:$0xff]  }
 0x1bf   : > { %6099 = vmatprep.mubr.bf16.mxu1 %v10431_v32  ;;  %v8834_v32 = vld [vmem:[%s10239_s13 + $0xa84] ss:$16 sps:$4 sm:$0xff]  }
 0x1c0   : > { %6070 = vmatpush1.bf16.msra.mxu1 %v8817_v23  ;;  %v8895_v23 = vld [vmem:[%s10239_s13 + $0x7c8] ss:$16 sps:$4 sm:$0xff]  }
 0x1c1   : > { %5619 = vmatpush1.bf16.msra.mxu0 %v8814_v31  ;;  %6071 = vmatprep.subr.bf16.mxu1 %v8825_v53  ;;  %v8892_v31 = vld [vmem:[%s10239_s13 + $0xbc0] ss:$16 sps:$4 sm:$0xff]   ;;  %v8903_v53 = vld [vmem:[%s10239_s13 + $0x7ec] ss:$16 sps:$4 sm:$0xff]  }
 0x1c2   : > { %5620 = vmatprep.subr.bf16.mxu0 %v8822_v52  ;;  %v8900_v52 = vld [vmem:[%s10239_s13 + $0xbe4] ss:$16 sps:$4 sm:$0xff]  }
 0x1c4   : > { %6072 = vmatpush1.bf16.msra.mxu1 %v8823_v54  ;;  %v8901_v54 = vld [vmem:[%s10239_s13 + $0x7e8] ss:$16 sps:$4 sm:$0xff]  }
 0x1c5   : > { %5621 = vmatpush1.bf16.msra.mxu0 %v8820_v28  ;;  %6073 = vmatprep.subr.bf16.mxu1 %v8831_v56  ;;  %v10662_v28 = vrot.slane %v1274_v49, %v10307_v50  ;;  %v8909_v56 = vld [vmem:[%s10239_s13 + $0x80c] ss:$16 sps:$4 sm:$0xff]   ;;  %v8973_v49 = vld [vmem:[%s10239_s13 + $0x968] ss:$16 sps:$4 sm:$0xff]  }
 0x1c6   : > { %5622 = vmatprep.subr.bf16.mxu0 %v8828_v55  ;;  %v8906_v55 = vld [vmem:[%s10239_s13 + $0xc04] ss:$16 sps:$4 sm:$0xff]  }
 0x1c8   : > { %6074 = vmatpush1.bf16.msra.mxu1 %v8829_v58  ;;  %v10672_v58 = vcombine.high %v10586_v19, %v10586_v19 }
 0x1c9   : > { %5623 = vmatpush1.bf16.msra.mxu0 %v8826_v57  ;;  %6075 = vmatprep.subr.bf16.mxu1 %v8837_v59  ;;  %v1290_v57 = vcombine.high %v10662_v28, %v10662_v28  ;;  %v8907_v59 = vld [vmem:[%s10239_s13 + $0x808] ss:$16 sps:$4 sm:$0xff]  }
 0x1ca   : > { %5624 = vmatprep.subr.bf16.mxu0 %v8834_v32  ;;  %v8904_v32 = vld [vmem:[%s10239_s13 + $0xc00] ss:$16 sps:$4 sm:$0xff]  }
 0x1cc   : > { %6076 = vmatpush1.bf16.msra.mxu1 %v8835_v61  ;;  %v8915_v61 = vld [vmem:[%s10239_s13 + $0x82c] ss:$16 sps:$4 sm:$0xff]  }
 0x1cd   : > { %5625 = vmatpush1.bf16.msra.mxu0 %v8832_v60  ;;  %6077 = vmatprep.subr.bf16.mxu1 %v8843_v63  ;;  %v8912_v60 = vld [vmem:[%s10239_s13 + $0xc24] ss:$16 sps:$4 sm:$0xff]   ;;  %v8910_v63 = vld [vmem:[%s10239_s13 + $0xc20] ss:$16 sps:$4 sm:$0xff]  }
 0x1ce   : > { %5626 = vmatprep.subr.bf16.mxu0 %v8840_v62  ;;  %v10619_v5 = vpop.f32.mrb[0].mxu1  ;;  %v10679_v62 = vrot.slane %v1290_v57, %v10307_v50  ;;  %v8990_v57 = vld [vmem:[%s10239_s13 + $0xdc4] ss:$16 sps:$4 sm:$0xff]  }
 0x1cf   : > { %v10621_v6 = vpop.f32.mrb[1].mxu1 }
 0x1d0   : > { %v5449_v7 = vpop.f32.mrb[2].mxu1  ;;  %6078 = vmatpush1.bf16.msra.mxu1 %v8841_v2  ;;  %v8918_v2 = vld [vmem:[%s10239_s13 + $0xc44] ss:$16 sps:$4 sm:$0xff]  }
 0x1d1   : > { %5627 = vmatpush1.bf16.msra.mxu0 %v8838_v0  ;;  %v5450_v10 = vpop.f32.mrb[3].mxu1  ;;  %6079 = vmatprep.subr.bf16.mxu1 %v8849_v4  ;;  %v8913_v0 = vld [vmem:[%s10239_s13 + $0x828] ss:$16 sps:$4 sm:$0xff]   ;;  %v8924_v7 = vld [vmem:[%s10239_s13 + $0xc64] ss:$16 sps:$4 sm:$0xff]  }
 0x1d2   : > { %5628 = vmatprep.subr.bf16.mxu0 %v8846_v3  ;;  %v8921_v3 = vld [vmem:[%s10239_s13 + $0x84c] ss:$16 sps:$4 sm:$0xff]   ;;  %v8919_v4 = vld [vmem:[%s10239_s13 + $0x848] ss:$16 sps:$4 sm:$0xff]  }
 0x1d3   : > { %v8925_v10 = vld [vmem:[%s10239_s13 + $0x868] ss:$16 sps:$4 sm:$0xff]  }
 0x1d4   : > { %6080 = vmatpush1.bf16.msra.mxu1 %v8847_v9  ;;  %v8922_v9 = vld [vmem:[%s10239_s13 + $0xc60] ss:$16 sps:$4 sm:$0xff]  }
 0x1d5   : > { %5629 = vmatpush1.bf16.msra.mxu0 %v8844_v8  ;;  %6081 = vmatprep.subr.bf16.mxu1 %v8855_v14  ;;  %v8927_v8 = vld [vmem:[%s10239_s13 + $0x86c] ss:$16 sps:$4 sm:$0xff]   ;;  %v8928_v14 = vld [vmem:[%s10239_s13 + $0xc80] ss:$16 sps:$4 sm:$0xff]  }
 0x1d6   : > { %5630 = vmatprep.subr.bf16.mxu0 %v8852_v12  ;;  %v8933_v12 = vld [vmem:[%s10239_s13 + $0x88c] ss:$16 sps:$4 sm:$0xff]  }
 0x1d8   : > { %6082 = vmatpush1.bf16.msra.mxu1 %v8853_v16  ;;  %v8936_v16 = vld [vmem:[%s10239_s13 + $0xca4] ss:$16 sps:$4 sm:$0xff]  }
 0x1d9   : > { %5631 = vmatpush1.bf16.msra.mxu0 %v8850_v15  ;;  %6083 = vmatprep.subr.bf16.mxu1 %v8861_v18  ;;  %v8931_v15 = vld [vmem:[%s10239_s13 + $0x888] ss:$16 sps:$4 sm:$0xff]   ;;  %v8934_v18 = vld [vmem:[%s10239_s13 + $0xca0] ss:$16 sps:$4 sm:$0xff]  }
 0x1da   : > { %5632 = vmatprep.subr.bf16.mxu0 %v8858_v17  ;;  %v8939_v17 = vld [vmem:[%s10239_s13 + $0x8ac] ss:$16 sps:$4 sm:$0xff]  }
 0x1dc   : > { %6084 = vmatpush1.bf16.msra.mxu1 %v8859_v21  ;;  %v8942_v21 = vld [vmem:[%s10239_s13 + $0xcc4] ss:$16 sps:$4 sm:$0xff]  }
 0x1dd   : > { %5633 = vmatpush1.bf16.msra.mxu0 %v8856_v20  ;;  %6085 = vmatprep.subr.bf16.mxu1 %v8867_v24  ;;  %v8937_v20 = vld [vmem:[%s10239_s13 + $0x8a8] ss:$16 sps:$4 sm:$0xff]   ;;  %v8940_v24 = vld [vmem:[%s10239_s13 + $0xcc0] ss:$16 sps:$4 sm:$0xff]  }
 0x1de   : > { %5634 = vmatprep.subr.bf16.mxu0 %v8864_v22  ;;  %v8945_v22 = vld [vmem:[%s10239_s13 + $0x8cc] ss:$16 sps:$4 sm:$0xff]  }
 0x1e0   : > { %6086 = vmatpush1.bf16.msra.mxu1 %v8865_v27  ;;  %v8948_v27 = vld [vmem:[%s10239_s13 + $0xce4] ss:$16 sps:$4 sm:$0xff]  }
 0x1e1   : > { %5635 = vmatpush1.bf16.msra.mxu0 %v8862_v26  ;;  %6087 = vmatprep.subr.bf16.mxu1 %v8873_v30  ;;  %v8943_v26 = vld [vmem:[%s10239_s13 + $0x8c8] ss:$16 sps:$4 sm:$0xff]   ;;  %v8946_v30 = vld [vmem:[%s10239_s13 + $0xce0] ss:$16 sps:$4 sm:$0xff]  }
 0x1e2   : > { %5636 = vmatprep.subr.bf16.mxu0 %v8870_v29  ;;  %v8951_v29 = vld [vmem:[%s10239_s13 + $0x8ec] ss:$16 sps:$4 sm:$0xff]  }
 0x1e4   : > { %6088 = vmatpush1.bf16.msra.mxu1 %v8871_v33  ;;  %v8954_v33 = vld [vmem:[%s10239_s13 + $0xd04] ss:$16 sps:$4 sm:$0xff]  }
 0x1e5   : > { %5637 = vmatpush1.bf16.msra.mxu0 %v8868_v11  ;;  %6089 = vmatprep.subr.bf16.mxu1 %v8879_v35  ;;  %v8949_v11 = vld [vmem:[%s10239_s13 + $0x8e8] ss:$16 sps:$4 sm:$0xff]   ;;  %v8952_v35 = vld [vmem:[%s10239_s13 + $0xd00] ss:$16 sps:$4 sm:$0xff]  }
 0x1e6   : > { %5638 = vmatprep.subr.bf16.mxu0 %v8876_v34  ;;  %v8957_v34 = vld [vmem:[%s10239_s13 + $0x90c] ss:$16 sps:$4 sm:$0xff]  }
 0x1e8   : > { %6090 = vmatpush1.bf16.msra.mxu1 %v8877_v13  ;;  %v8960_v13 = vld [vmem:[%s10239_s13 + $0xd24] ss:$16 sps:$4 sm:$0xff]  }
 0x1e9   : > { %5639 = vmatpush1.bf16.msra.mxu0 %v8874_v36  ;;  %6091 = vmatprep.subr.bf16.mxu1 %v8885_v39  ;;  %v8955_v36 = vld [vmem:[%s10239_s13 + $0x908] ss:$16 sps:$4 sm:$0xff]   ;;  %v8958_v39 = vld [vmem:[%s10239_s13 + $0xd20] ss:$16 sps:$4 sm:$0xff]  }
 0x1ea   : > { %5640 = vmatprep.subr.bf16.mxu0 %v8882_v38  ;;  %v8963_v38 = vld [vmem:[%s10239_s13 + $0x92c] ss:$16 sps:$4 sm:$0xff]  }
 0x1ec   : > { %6092 = vmatpush1.bf16.msra.mxu1 %v8883_v41  ;;  %v8966_v41 = vld [vmem:[%s10239_s13 + $0xd44] ss:$16 sps:$4 sm:$0xff]  }
 0x1ed   : > { %5641 = vmatpush1.bf16.msra.mxu0 %v8880_v40  ;;  %6093 = vmatprep.subr.bf16.mxu1 %v8891_v44  ;;  %v8961_v40 = vld [vmem:[%s10239_s13 + $0x928] ss:$16 sps:$4 sm:$0xff]   ;;  %v8964_v44 = vld [vmem:[%s10239_s13 + $0xd40] ss:$16 sps:$4 sm:$0xff]  }
 0x1ee   : > { %5642 = vmatprep.subr.bf16.mxu0 %v8888_v42  ;;  %v8969_v42 = vld [vmem:[%s10239_s13 + $0x94c] ss:$16 sps:$4 sm:$0xff]  }
 0x1f0   : > { %6094 = vmatpush1.bf16.msra.mxu1 %v8889_v46  ;;  %v8972_v46 = vld [vmem:[%s10239_s13 + $0xd64] ss:$16 sps:$4 sm:$0xff]  }
 0x1f1   : > { %5643 = vmatpush1.bf16.msra.mxu0 %v8886_v45  ;;  %6095 = vmatprep.subr.bf16.mxu1 %v8897_v48  ;;  %v8967_v45 = vld [vmem:[%s10239_s13 + $0x948] ss:$16 sps:$4 sm:$0xff]   ;;  %v8970_v48 = vld [vmem:[%s10239_s13 + $0xd60] ss:$16 sps:$4 sm:$0xff]  }
 0x1f2   : > { %5644 = vmatprep.subr.bf16.mxu0 %v8894_v47  ;;  %v8975_v47 = vld [vmem:[%s10239_s13 + $0x96c] ss:$16 sps:$4 sm:$0xff]  }
 0x1f4   : > { %6096 = vmatpush1.bf16.msra.mxu1 %v8895_v23  ;;  %v8981_v23 = vld [vmem:[%s10239_s13 + $0x98c] ss:$16 sps:$4 sm:$0xff]  }
 0x1f5   : > { %5645 = vmatpush1.bf16.msra.mxu0 %v8892_v31  ;;  %6097 = vmatprep.subr.bf16.mxu1 %v8903_v53  ;;  %v8978_v31 = vld [vmem:[%s10239_s13 + $0xd84] ss:$16 sps:$4 sm:$0xff]   ;;  %v8979_v53 = vld [vmem:[%s10239_s13 + $0x988] ss:$16 sps:$4 sm:$0xff]  }
 0x1f6   : > { %5646 = vmatprep.subr.bf16.mxu0 %v8900_v52  ;;  %v8976_v52 = vld [vmem:[%s10239_s13 + $0xd80] ss:$16 sps:$4 sm:$0xff]  }
 0x1f8   : > { %6098 = vmatpush1.bf16.msra.mxu1 %v8901_v54  ;;  %v8987_v54 = vld [vmem:[%s10239_s13 + $0x9ac] ss:$16 sps:$4 sm:$0xff]  }
 0x1f9   : > { %5647 = vmatpush1.bf16.msra.mxu0 %v8898_v25  ;;  %6108 = vmatprep.subr.bf16.mxu1 %v8909_v56  ;;  %v8984_v25 = vld [vmem:[%s10239_s13 + $0xda4] ss:$16 sps:$4 sm:$0xff]   ;;  %v8985_v56 = vld [vmem:[%s10239_s13 + $0x9a8] ss:$16 sps:$4 sm:$0xff]  }
 0x1fa   : > { %5657 = vmatprep.subr.bf16.mxu0 %v8906_v55  ;;  %v8982_v55 = vld [vmem:[%s10239_s13 + $0xda0] ss:$16 sps:$4 sm:$0xff]  }
 0x1fb   : > { %6100 = vmatmul.mubr.bf16.vlgmr.msra.gmra.mrb[4].mxu1 %v10511_v37  ;;  %v8916_v37 = vld [vmem:[%s10239_s13 + $0xc40] ss:$16 sps:$4 sm:$0xff]  }
 0x1fc   : > { %5649 = vmatmul.mubr.bf16.vlgmr.msra.gmra.mrb[0].mxu0 %v10672_v58  ;;  %6109 = vmatpush1.bf16.msra.mxu1 %v8907_v59  ;;  %v8988_v59 = vld [vmem:[%s10239_s13 + $0xdc0] ss:$16 sps:$4 sm:$0xff]  }
 0x1fd   : > { %5658 = vmatpush1.bf16.msra.mxu0 %v8904_v32  ;;  %6110 = vmatprep.subr.bf16.mxu1 %v8915_v61  ;;  %v8993_v32 = vld [vmem:[%s10239_s13 + $0x9cc] ss:$16 sps:$4 sm:$0xff]   ;;  %v8996_v61 = vld [vmem:[%s10239_s13 + $0xde4] ss:$16 sps:$4 sm:$0xff]  }
 0x1fe   : > { %5659 = vmatprep.subr.bf16.mxu0 %v8912_v60  ;;  %5689 = vmatprep.mubr.bf16.mxu0 %v10679_v62  ;;  %v8991_v60 = vld [vmem:[%s10239_s13 + $0x9c8] ss:$16 sps:$4 sm:$0xff]  }
 0x1ff   : > { %6140 = vmatprep.mubr.bf16.mxu1 %v10517_v1  ;;  %v8930_v1 = vld [vmem:[%s10239_s13 + $0xc84] ss:$16 sps:$4 sm:$0xff]  }
 0x200   : > { %6111 = vmatpush1.bf16.msra.mxu1 %v8913_v0  ;;  %v8994_v0 = vld [vmem:[%s10239_s13 + $0xde0] ss:$16 sps:$4 sm:$0xff]  }
 0x201   : > { %5660 = vmatpush1.bf16.msra.mxu0 %v8910_v63  ;;  %6112 = vmatprep.subr.bf16.mxu1 %v8921_v3  ;;  %v8999_v63 = vld [vmem:[%s10239_s13 + $0x9ec] ss:$16 sps:$4 sm:$0xff]   ;;  %v9003_v3 = vld [vmem:[%s10239_s13 + $0xe04] ss:$16 sps:$4 sm:$0xff]  }
 0x202   : > { %5661 = vmatprep.subr.bf16.mxu0 %v8918_v2  ;;  %v8997_v2 = vld [vmem:[%s10239_s13 + $0x9e8] ss:$16 sps:$4 sm:$0xff]  }
 0x204   : > { %6113 = vmatpush1.bf16.msra.mxu1 %v8919_v4  ;;  %v10747_v4 = vrot.slane %v10662_v28, %v10307_v50  ;;  %v9007_v28 = vld [vmem:[%s10239_s13 + $0xe20] ss:$16 sps:$4 sm:$0xff]  }
 0x205   : > { %5662 = vmatpush1.bf16.msra.mxu0 %v8916_v37  ;;  %6114 = vmatprep.subr.bf16.mxu1 %v8927_v8  ;;  %v9006_v37 = vld [vmem:[%s10239_s13 + $0xa0c] ss:$16 sps:$4 sm:$0xff]   ;;  %v9004_v8 = vld [vmem:[%s10239_s13 + $0xa08] ss:$16 sps:$4 sm:$0xff]  }
 0x206   : > { %5663 = vmatprep.subr.bf16.mxu0 %v8924_v7  ;;  %v9001_v7 = vld [vmem:[%s10239_s13 + $0xe00] ss:$16 sps:$4 sm:$0xff]  }
 0x208   : > { %6115 = vmatpush1.bf16.msra.mxu1 %v8925_v10  ;;  %v9012_v10 = vld [vmem:[%s10239_s13 + $0xa2c] ss:$16 sps:$4 sm:$0xff]  }
 0x209   : > { %5664 = vmatpush1.bf16.msra.mxu0 %v8922_v9  ;;  %6116 = vmatprep.subr.bf16.mxu1 %v8933_v12  ;;  %v9009_v9 = vld [vmem:[%s10239_s13 + $0xe24] ss:$16 sps:$4 sm:$0xff]   ;;  %v9010_v12 = vld [vmem:[%s10239_s13 + $0xa28] ss:$16 sps:$4 sm:$0xff]  }
 0x20a   : > { %5665 = vmatprep.subr.bf16.mxu0 %v8930_v1  ;;  %v10755_v1 = vcombine.high %v10679_v62, %v10679_v62 }
 0x20c   : > { %6117 = vmatpush1.bf16.msra.mxu1 %v8931_v15  ;;  %v9018_v15 = vld [vmem:[%s10239_s13 + $0xa4c] ss:$16 sps:$4 sm:$0xff]  }
 0x20d   : > { %5666 = vmatpush1.bf16.msra.mxu0 %v8928_v14  ;;  %6118 = vmatprep.subr.bf16.mxu1 %v8939_v17  ;;  %v9015_v14 = vld [vmem:[%s10239_s13 + $0xe44] ss:$16 sps:$4 sm:$0xff]  }
 0x20e   : > { %5667 = vmatprep.subr.bf16.mxu0 %v8936_v16  ;;  %v9016_v16 = vld [vmem:[%s10239_s13 + $0xa48] ss:$16 sps:$4 sm:$0xff]   ;;  %v9021_v17 = vld [vmem:[%s10239_s13 + $0xe64] ss:$16 sps:$4 sm:$0xff]  }
 0x210   : > { %6119 = vmatpush1.bf16.msra.mxu1 %v8937_v20  ;;  %v9019_v20 = vld [vmem:[%s10239_s13 + $0xe60] ss:$16 sps:$4 sm:$0xff]  }
 0x211   : > { %5668 = vmatpush1.bf16.msra.mxu0 %v8934_v18  ;;  %6120 = vmatprep.subr.bf16.mxu1 %v8945_v22  ;;  %v9024_v18 = vld [vmem:[%s10239_s13 + $0xa6c] ss:$16 sps:$4 sm:$0xff]  }
 0x212   : > { %5669 = vmatprep.subr.bf16.mxu0 %v8942_v21  ;;  %v9022_v21 = vld [vmem:[%s10239_s13 + $0xa68] ss:$16 sps:$4 sm:$0xff]   ;;  %v9030_v22 = vld [vmem:[%s10239_s13 + $0xa8c] ss:$16 sps:$4 sm:$0xff]  }
 0x214   : > { %6121 = vmatpush1.bf16.msra.mxu1 %v8943_v26  ;;  %v9028_v26 = vld [vmem:[%s10239_s13 + $0xa88] ss:$16 sps:$4 sm:$0xff]  }
 0x215   : > { %5670 = vmatpush1.bf16.msra.mxu0 %v8940_v24  ;;  %6122 = vmatprep.subr.bf16.mxu1 %v8951_v29  ;;  %v9025_v24 = vld [vmem:[%s10239_s13 + $0xe80] ss:$16 sps:$4 sm:$0xff]   ;;  %v9036_v29 = vld [vmem:[%s10239_s13 + $0xaac] ss:$16 sps:$4 sm:$0xff]  }
 0x216   : > { %5671 = vmatprep.subr.bf16.mxu0 %v8948_v27  ;;  %v9033_v27 = vld [vmem:[%s10239_s13 + $0xea4] ss:$16 sps:$4 sm:$0xff]  }
 0x218   : > { %6123 = vmatpush1.bf16.msra.mxu1 %v8949_v11  ;;  %v9034_v11 = vld [vmem:[%s10239_s13 + $0xaa8] ss:$16 sps:$4 sm:$0xff]  }
 0x219   : > { %5672 = vmatpush1.bf16.msra.mxu0 %v8946_v30  ;;  %6124 = vmatprep.subr.bf16.mxu1 %v8957_v34  ;;  %v9031_v30 = vld [vmem:[%s10239_s13 + $0xea0] ss:$16 sps:$4 sm:$0xff]   ;;  %v9042_v34 = vld [vmem:[%s10239_s13 + $0xacc] ss:$16 sps:$4 sm:$0xff]  }
 0x21a   : > { %5673 = vmatprep.subr.bf16.mxu0 %v8954_v33  ;;  %v9039_v33 = vld [vmem:[%s10239_s13 + $0xec4] ss:$16 sps:$4 sm:$0xff]  }
 0x21c   : > { %6125 = vmatpush1.bf16.msra.mxu1 %v8955_v36  ;;  %v9040_v36 = vld [vmem:[%s10239_s13 + $0xac8] ss:$16 sps:$4 sm:$0xff]  }
 0x21d   : > { %5674 = vmatpush1.bf16.msra.mxu0 %v8952_v35  ;;  %6126 = vmatprep.subr.bf16.mxu1 %v8963_v38  ;;  %v9037_v35 = vld [vmem:[%s10239_s13 + $0xec0] ss:$16 sps:$4 sm:$0xff]   ;;  %v9048_v38 = vld [vmem:[%s10239_s13 + $0xaec] ss:$16 sps:$4 sm:$0xff]  }
 0x21e   : > { %5675 = vmatprep.subr.bf16.mxu0 %v8960_v13  ;;  %v9045_v13 = vld [vmem:[%s10239_s13 + $0xee4] ss:$16 sps:$4 sm:$0xff]  }
 0x220   : > { %6127 = vmatpush1.bf16.msra.mxu1 %v8961_v40  ;;  %v9046_v40 = vld [vmem:[%s10239_s13 + $0xae8] ss:$16 sps:$4 sm:$0xff]  }
 0x221   : > { %5676 = vmatpush1.bf16.msra.mxu0 %v8958_v39  ;;  %6128 = vmatprep.subr.bf16.mxu1 %v8969_v42  ;;  %v9043_v39 = vld [vmem:[%s10239_s13 + $0xee0] ss:$16 sps:$4 sm:$0xff]   ;;  %v9054_v42 = vld [vmem:[%s10239_s13 + $0xb0c] ss:$16 sps:$4 sm:$0xff]  }
 0x222   : > { %5677 = vmatprep.subr.bf16.mxu0 %v8966_v41  ;;  %v9051_v41 = vld [vmem:[%s10239_s13 + $0xf04] ss:$16 sps:$4 sm:$0xff]  }
 0x224   : > { %6129 = vmatpush1.bf16.msra.mxu1 %v8967_v45  ;;  %v9052_v45 = vld [vmem:[%s10239_s13 + $0xb08] ss:$16 sps:$4 sm:$0xff]  }
 0x225   : > { %5678 = vmatpush1.bf16.msra.mxu0 %v8964_v44  ;;  %6130 = vmatprep.subr.bf16.mxu1 %v8975_v47  ;;  %v9049_v44 = vld [vmem:[%s10239_s13 + $0xf00] ss:$16 sps:$4 sm:$0xff]   ;;  %v9060_v47 = vld [vmem:[%s10239_s13 + $0xb2c] ss:$16 sps:$4 sm:$0xff]  }
 0x226   : > { %5679 = vmatprep.subr.bf16.mxu0 %v8972_v46  ;;  %v9057_v46 = vld [vmem:[%s10239_s13 + $0xf24] ss:$16 sps:$4 sm:$0xff]  }
 0x228   : > { %6131 = vmatpush1.bf16.msra.mxu1 %v8973_v49  ;;  %v9058_v49 = vld [vmem:[%s10239_s13 + $0xb28] ss:$16 sps:$4 sm:$0xff]  }
 0x229   : > { %5680 = vmatpush1.bf16.msra.mxu0 %v8970_v48  ;;  %6132 = vmatprep.subr.bf16.mxu1 %v8981_v23  ;;  %v9055_v48 = vld [vmem:[%s10239_s13 + $0xf20] ss:$16 sps:$4 sm:$0xff]   ;;  %v9066_v23 = vld [vmem:[%s10239_s13 + $0xb4c] ss:$16 sps:$4 sm:$0xff]  }
 0x22a   : > { %5681 = vmatprep.subr.bf16.mxu0 %v8978_v31  ;;  %v9063_v31 = vld [vmem:[%s10239_s13 + $0xf44] ss:$16 sps:$4 sm:$0xff]  }
 0x22c   : > { %6133 = vmatpush1.bf16.msra.mxu1 %v8979_v53  ;;  %v9064_v53 = vld [vmem:[%s10239_s13 + $0xb48] ss:$16 sps:$4 sm:$0xff]  }
 0x22d   : > { %5682 = vmatpush1.bf16.msra.mxu0 %v8976_v52  ;;  %6134 = vmatprep.subr.bf16.mxu1 %v8987_v54  ;;  %v9061_v52 = vld [vmem:[%s10239_s13 + $0xf40] ss:$16 sps:$4 sm:$0xff]   ;;  %v9072_v54 = vld [vmem:[%s10239_s13 + $0xb6c] ss:$16 sps:$4 sm:$0xff]  }
 0x22e   : > { %5683 = vmatprep.subr.bf16.mxu0 %v8984_v25  ;;  %v9069_v25 = vld [vmem:[%s10239_s13 + $0xf64] ss:$16 sps:$4 sm:$0xff]  }
 0x230   : > { %6135 = vmatpush1.bf16.msra.mxu1 %v8985_v56  ;;  %v9070_v56 = vld [vmem:[%s10239_s13 + $0xb68] ss:$16 sps:$4 sm:$0xff]  }
 0x231   : > { %5684 = vmatpush1.bf16.msra.mxu0 %v8982_v55  ;;  %6136 = vmatprep.subr.bf16.mxu1 %v8993_v32  ;;  %v9067_v55 = vld [vmem:[%s10239_s13 + $0xf60] ss:$16 sps:$4 sm:$0xff]   ;;  %v9078_v32 = vld [vmem:[%s10239_s13 + $0xb8c] ss:$16 sps:$4 sm:$0xff]  }
 0x232   : > { %5685 = vmatprep.subr.bf16.mxu0 %v8990_v57  ;;  %v9075_v57 = vld [vmem:[%s10239_s13 + $0xf84] ss:$16 sps:$4 sm:$0xff]  }
 0x234   : > { %6137 = vmatpush1.bf16.msra.mxu1 %v8991_v60  ;;  %v9076_v60 = vld [vmem:[%s10239_s13 + $0xb88] ss:$16 sps:$4 sm:$0xff]  }
 0x235   : > { %5686 = vmatpush1.bf16.msra.mxu0 %v8988_v59  ;;  %6138 = vmatprep.subr.bf16.mxu1 %v8999_v63  ;;  %v9073_v59 = vld [vmem:[%s10239_s13 + $0xf80] ss:$16 sps:$4 sm:$0xff]   ;;  %v9084_v63 = vld [vmem:[%s10239_s13 + $0xbac] ss:$16 sps:$4 sm:$0xff]  }
 0x236   : > { %5687 = vmatprep.subr.bf16.mxu0 %v8996_v61  ;;  %v9081_v61 = vld [vmem:[%s10239_s13 + $0xfa4] ss:$16 sps:$4 sm:$0xff]  }
 0x238   : > { %6139 = vmatpush1.bf16.msra.mxu1 %v8997_v2  ;;  %v9082_v2 = vld [vmem:[%s10239_s13 + $0xba8] ss:$16 sps:$4 sm:$0xff]  }
 0x239   : > { %5688 = vmatpush1.bf16.msra.mxu0 %v8994_v0  ;;  %6149 = vmatprep.subr.bf16.mxu1 %v9006_v37  ;;  %v9079_v0 = vld [vmem:[%s10239_s13 + $0xfa0] ss:$16 sps:$4 sm:$0xff]   ;;  %v9090_v37 = vld [vmem:[%s10239_s13 + $0xbcc] ss:$16 sps:$4 sm:$0xff]  }
 0x23a   : > { %5698 = vmatprep.subr.bf16.mxu0 %v9003_v3  ;;  %v9087_v3 = vld [vmem:[%s10239_s13 + $0xfc4] ss:$16 sps:$4 sm:$0xff]  }
 0x23b   : > { %6141 = vmatmul.mubr.bf16.vlgmr.msra.gmra.mrb[4].mxu1 %v10586_v19  ;;  %v9013_v19 = vld [vmem:[%s10239_s13 + $0xe40] ss:$16 sps:$4 sm:$0xff]  }
 0x23c   : > { %5690 = vmatmul.mubr.bf16.vlgmr.msra.gmra.mrb[0].mxu0 %v10747_v4  ;;  %6150 = vmatpush1.bf16.msra.mxu1 %v9004_v8  ;;  %v9085_v8 = vld [vmem:[%s10239_s13 + $0xfc0] ss:$16 sps:$4 sm:$0xff]  }
 0x23d   : > { %5699 = vmatpush1.bf16.msra.mxu0 %v9001_v7  ;;  %6151 = vmatprep.subr.bf16.mxu1 %v9012_v10  ;;  %v10816_v7 = vld [vmem:[%s11426_s0 + $0x10] sm:$0xff]  ;;  %v9093_v10 = vld [vmem:[%s10239_s13 + $0xfe4] ss:$16 sps:$4 sm:$0xff]  }
 0x23e   : > { %5700 = vmatprep.subr.bf16.mxu0 %v9009_v9  ;;  %5730 = vmatprep.mubr.bf16.mxu0 %v10755_v1  ;;  %v9088_v9 = vld [vmem:[%s10239_s13 + $0xbc8] ss:$16 sps:$4 sm:$0xff]  }
 0x23f   : > { %6181 = vmatprep.mubr.bf16.mxu1 %v10593_v51  ;;  %v9027_v51 = vld [vmem:[%s10239_s13 + $0xe84] ss:$16 sps:$4 sm:$0xff]  }
 0x240   : > { %6152 = vmatpush1.bf16.msra.mxu1 %v9010_v12  ;;  %v10824_v12 = vrot.slane %v10816_v7, %v10307_v50 }
 0x241   : > { %5701 = vmatpush1.bf16.msra.mxu0 %v9007_v28  ;;  %6153 = vmatprep.subr.bf16.mxu1 %v9018_v15  ;;  %v9096_v28 = vld [vmem:[%s10239_s13 + $0xbec] ss:$16 sps:$4 sm:$0xff]   ;;  %v9094_v15 = vld [vmem:[%s10239_s13 + $0xbe8] ss:$16 sps:$4 sm:$0xff]  }
 0x242   : > { %5702 = vmatprep.subr.bf16.mxu0 %v9015_v14  ;;  %v9091_v14 = vld [vmem:[%s10239_s13 + $0xfe0] ss:$16 sps:$4 sm:$0xff]  }
 0x244   : > { %6154 = vmatpush1.bf16.msra.mxu1 %v9016_v16  ;;  %v9102_v16 = vld [vmem:[%s10239_s13 + $0xc0c] ss:$16 sps:$4 sm:$0xff]  }
 0x245   : > { %5703 = vmatpush1.bf16.msra.mxu0 %v9013_v19  ;;  %6155 = vmatprep.subr.bf16.mxu1 %v9024_v18  ;;  %v9099_v19 = vld [vmem:[%s10239_s13 + $0x1004] ss:$16 sps:$4 sm:$0xff]   ;;  %v10834_v18 = vcombine.high %v10747_v4, %v10747_v4 }
 0x246   : > { %5704 = vmatprep.subr.bf16.mxu0 %v9021_v17  ;;  %v1338_v17 = vcombine.high %v10824_v12, %v10824_v12 }
 0x248   : > { %6156 = vmatpush1.bf16.msra.mxu1 %v9022_v21  ;;  %v9100_v21 = vld [vmem:[%s10239_s13 + $0xc08] ss:$16 sps:$4 sm:$0xff]  }
 0x249   : > { %5705 = vmatpush1.bf16.msra.mxu0 %v9019_v20  ;;  %6157 = vmatprep.subr.bf16.mxu1 %v9030_v22  ;;  %v9097_v20 = vld [vmem:[%s10239_s13 + $0x1000] ss:$16 sps:$4 sm:$0xff]   ;;  %v9108_v22 = vld [vmem:[%s10239_s13 + $0xc2c] ss:$16 sps:$4 sm:$0xff]  }
 0x24a   : > { %5706 = vmatprep.subr.bf16.mxu0 %v9027_v51  ;;  %v9105_v51 = vld [vmem:[%s10239_s13 + $0x1024] ss:$16 sps:$4 sm:$0xff]  }
 0x24c   : > { %6158 = vmatpush1.bf16.msra.mxu1 %v9028_v26  ;;  %v9103_v26 = vld [vmem:[%s10239_s13 + $0x1020] ss:$16 sps:$4 sm:$0xff]  }
 0x24d   : > { %5707 = vmatpush1.bf16.msra.mxu0 %v9025_v24  ;;  %6159 = vmatprep.subr.bf16.mxu1 %v9036_v29  ;;  %v10841_v24 = vrot.slane %v1338_v17, %v10307_v50  ;;  %v9111_v29 = vld [vmem:[%s10239_s13 + $0x1044] ss:$16 sps:$4 sm:$0xff]   ;;  %v9178_v17 = vld [vmem:[%s10239_s13 + $0xda8] ss:$16 sps:$4 sm:$0xff]  }
 0x24e   : > { %5708 = vmatprep.subr.bf16.mxu0 %v9033_v27  ;;  %v9106_v27 = vld [vmem:[%s10239_s13 + $0xc28] ss:$16 sps:$4 sm:$0xff]  }
 0x250   : > { %6160 = vmatpush1.bf16.msra.mxu1 %v9034_v11  ;;  %v9112_v11 = vld [vmem:[%s10239_s13 + $0xc48] ss:$16 sps:$4 sm:$0xff]  }
 0x251   : > { %5709 = vmatpush1.bf16.msra.mxu0 %v9031_v30  ;;  %6161 = vmatprep.subr.bf16.mxu1 %v9042_v34  ;;  %v9114_v30 = vld [vmem:[%s10239_s13 + $0xc4c] ss:$16 sps:$4 sm:$0xff]  }
 0x252   : > { %5710 = vmatprep.subr.bf16.mxu0 %v9039_v33  ;;  %v9117_v33 = vld [vmem:[%s10239_s13 + $0x1064] ss:$16 sps:$4 sm:$0xff]   ;;  %v9120_v34 = vld [vmem:[%s10239_s13 + $0xc6c] ss:$16 sps:$4 sm:$0xff]  }
 0x254   : > { %6162 = vmatpush1.bf16.msra.mxu1 %v9040_v36  ;;  %v9118_v36 = vld [vmem:[%s10239_s13 + $0xc68] ss:$16 sps:$4 sm:$0xff]  }
 0x255   : > { %5711 = vmatpush1.bf16.msra.mxu0 %v9037_v35  ;;  %6163 = vmatprep.subr.bf16.mxu1 %v9048_v38  ;;  %v9115_v35 = vld [vmem:[%s10239_s13 + $0x1060] ss:$16 sps:$4 sm:$0xff]  }
 0x256   : > { %5712 = vmatprep.subr.bf16.mxu0 %v9045_v13  ;;  %v9126_v13 = vld [vmem:[%s10239_s13 + $0xc8c] ss:$16 sps:$4 sm:$0xff]   ;;  %v9121_v38 = vld [vmem:[%s10239_s13 + $0x1080] ss:$16 sps:$4 sm:$0xff]  }
 0x258   : > { %6164 = vmatpush1.bf16.msra.mxu1 %v9046_v40  ;;  %v9129_v40 = vld [vmem:[%s10239_s13 + $0x10a4] ss:$16 sps:$4 sm:$0xff]  }
 0x259   : > { %5713 = vmatpush1.bf16.msra.mxu0 %v9043_v39  ;;  %6165 = vmatprep.subr.bf16.mxu1 %v9054_v42  ;;  %v9124_v39 = vld [vmem:[%s10239_s13 + $0xc88] ss:$16 sps:$4 sm:$0xff]   ;;  %v9127_v42 = vld [vmem:[%s10239_s13 + $0x10a0] ss:$16 sps:$4 sm:$0xff]  }
 0x25a   : > { %5714 = vmatprep.subr.bf16.mxu0 %v9051_v41  ;;  %v9132_v41 = vld [vmem:[%s10239_s13 + $0xcac] ss:$16 sps:$4 sm:$0xff]  }
 0x25c   : > { %6166 = vmatpush1.bf16.msra.mxu1 %v9052_v45  ;;  %v9135_v45 = vld [vmem:[%s10239_s13 + $0x10c4] ss:$16 sps:$4 sm:$0xff]  }
 0x25d   : > { %5715 = vmatpush1.bf16.msra.mxu0 %v9049_v44  ;;  %6167 = vmatprep.subr.bf16.mxu1 %v9060_v47  ;;  %v9130_v44 = vld [vmem:[%s10239_s13 + $0xca8] ss:$16 sps:$4 sm:$0xff]   ;;  %v9133_v47 = vld [vmem:[%s10239_s13 + $0x10c0] ss:$16 sps:$4 sm:$0xff]  }
 0x25e   : > { %5716 = vmatprep.subr.bf16.mxu0 %v9057_v46  ;;  %v9138_v46 = vld [vmem:[%s10239_s13 + $0xccc] ss:$16 sps:$4 sm:$0xff]  }
 0x260   : > { %6168 = vmatpush1.bf16.msra.mxu1 %v9058_v49  ;;  %v9141_v49 = vld [vmem:[%s10239_s13 + $0x10e4] ss:$16 sps:$4 sm:$0xff]  }
 0x261   : > { %5717 = vmatpush1.bf16.msra.mxu0 %v9055_v48  ;;  %6169 = vmatprep.subr.bf16.mxu1 %v9066_v23  ;;  %v9136_v48 = vld [vmem:[%s10239_s13 + $0xcc8] ss:$16 sps:$4 sm:$0xff]   ;;  %v9139_v23 = vld [vmem:[%s10239_s13 + $0x10e0] ss:$16 sps:$4 sm:$0xff]  }
 0x262   : > { %5718 = vmatprep.subr.bf16.mxu0 %v9063_v31  ;;  %v9144_v31 = vld [vmem:[%s10239_s13 + $0xcec] ss:$16 sps:$4 sm:$0xff]  }
 0x264   : > { %6170 = vmatpush1.bf16.msra.mxu1 %v9064_v53  ;;  %v9147_v53 = vld [vmem:[%s10239_s13 + $0x1104] ss:$16 sps:$4 sm:$0xff]  }
 0x265   : > { %5719 = vmatpush1.bf16.msra.mxu0 %v9061_v52  ;;  %6171 = vmatprep.subr.bf16.mxu1 %v9072_v54  ;;  %v9142_v52 = vld [vmem:[%s10239_s13 + $0xce8] ss:$16 sps:$4 sm:$0xff]   ;;  %v9145_v54 = vld [vmem:[%s10239_s13 + $0x1100] ss:$16 sps:$4 sm:$0xff]  }
 0x266   : > { %5720 = vmatprep.subr.bf16.mxu0 %v9069_v25  ;;  %v9150_v25 = vld [vmem:[%s10239_s13 + $0xd0c] ss:$16 sps:$4 sm:$0xff]  }
 0x268   : > { %6172 = vmatpush1.bf16.msra.mxu1 %v9070_v56  ;;  %v9153_v56 = vld [vmem:[%s10239_s13 + $0x1124] ss:$16 sps:$4 sm:$0xff]  }
 0x269   : > { %5721 = vmatpush1.bf16.msra.mxu0 %v9067_v55  ;;  %6173 = vmatprep.subr.bf16.mxu1 %v9078_v32  ;;  %v9148_v55 = vld [vmem:[%s10239_s13 + $0xd08] ss:$16 sps:$4 sm:$0xff]   ;;  %v9151_v32 = vld [vmem:[%s10239_s13 + $0x1120] ss:$16 sps:$4 sm:$0xff]  }
 0x26a   : > { %5722 = vmatprep.subr.bf16.mxu0 %v9075_v57  ;;  %v9156_v57 = vld [vmem:[%s10239_s13 + $0xd2c] ss:$16 sps:$4 sm:$0xff]  }
 0x26c   : > { %6174 = vmatpush1.bf16.msra.mxu1 %v9076_v60  ;;  %v9159_v60 = vld [vmem:[%s10239_s13 + $0x1144] ss:$16 sps:$4 sm:$0xff]  }
 0x26d   : > { %5723 = vmatpush1.bf16.msra.mxu0 %v9073_v59  ;;  %6175 = vmatprep.subr.bf16.mxu1 %v9084_v63  ;;  %v9154_v59 = vld [vmem:[%s10239_s13 + $0xd28] ss:$16 sps:$4 sm:$0xff]   ;;  %v9157_v63 = vld [vmem:[%s10239_s13 + $0x1140] ss:$16 sps:$4 sm:$0xff]  }
 0x26e   : > { %5724 = vmatprep.subr.bf16.mxu0 %v9081_v61  ;;  %v9162_v61 = vld [vmem:[%s10239_s13 + $0xd4c] ss:$16 sps:$4 sm:$0xff]  }
 0x270   : > { %6176 = vmatpush1.bf16.msra.mxu1 %v9082_v2  ;;  %v9165_v2 = vld [vmem:[%s10239_s13 + $0x1164] ss:$16 sps:$4 sm:$0xff]  }
 0x271   : > { %5725 = vmatpush1.bf16.msra.mxu0 %v9079_v0  ;;  %6177 = vmatprep.subr.bf16.mxu1 %v9090_v37  ;;  %v9160_v0 = vld [vmem:[%s10239_s13 + $0xd48] ss:$16 sps:$4 sm:$0xff]   ;;  %v9163_v37 = vld [vmem:[%s10239_s13 + $0x1160] ss:$16 sps:$4 sm:$0xff]  }
 0x272   : > { %5726 = vmatprep.subr.bf16.mxu0 %v9087_v3  ;;  %v9168_v3 = vld [vmem:[%s10239_s13 + $0xd6c] ss:$16 sps:$4 sm:$0xff]  }
 0x274   : > { %6178 = vmatpush1.bf16.msra.mxu1 %v9088_v9  ;;  %v9171_v9 = vld [vmem:[%s10239_s13 + $0x1184] ss:$16 sps:$4 sm:$0xff]  }
 0x275   : > { %5727 = vmatpush1.bf16.msra.mxu0 %v9085_v8  ;;  %6179 = vmatprep.subr.bf16.mxu1 %v9096_v28  ;;  %v9166_v8 = vld [vmem:[%s10239_s13 + $0xd68] ss:$16 sps:$4 sm:$0xff]   ;;  %v9169_v28 = vld [vmem:[%s10239_s13 + $0x1180] ss:$16 sps:$4 sm:$0xff]  }
 0x276   : > { %5728 = vmatprep.subr.bf16.mxu0 %v9093_v10  ;;  %v9174_v10 = vld [vmem:[%s10239_s13 + $0xd8c] ss:$16 sps:$4 sm:$0xff]  }
 0x278   : > { %6180 = vmatpush1.bf16.msra.mxu1 %v9094_v15  ;;  %v9177_v15 = vld [vmem:[%s10239_s13 + $0x11a4] ss:$16 sps:$4 sm:$0xff]  }
 0x279   : > { %5729 = vmatpush1.bf16.msra.mxu0 %v9091_v14  ;;  %6190 = vmatprep.subr.bf16.mxu1 %v9102_v16  ;;  %v9172_v14 = vld [vmem:[%s10239_s13 + $0xd88] ss:$16 sps:$4 sm:$0xff]   ;;  %v9175_v16 = vld [vmem:[%s10239_s13 + $0x11a0] ss:$16 sps:$4 sm:$0xff]  }
 0x27a   : > { %5739 = vmatprep.subr.bf16.mxu0 %v9099_v19  ;;  %v9180_v19 = vld [vmem:[%s10239_s13 + $0xdac] ss:$16 sps:$4 sm:$0xff]  }
 0x27b   : > { %6182 = vmatmul.mubr.bf16.vlgmr.msra.gmra.mrb[4].mxu1 %v10672_v58  ;;  %v9109_v58 = vld [vmem:[%s10239_s13 + $0x1040] ss:$16 sps:$4 sm:$0xff]  }
 0x27c   : > { %5731 = vmatmul.mubr.bf16.vlgmr.msra.gmra.mrb[0].mxu0 %v10834_v18  ;;  %6191 = vmatpush1.bf16.msra.mxu1 %v9100_v21  ;;  %v9186_v21 = vld [vmem:[%s10239_s13 + $0xdcc] ss:$16 sps:$4 sm:$0xff]  }
 0x27d   : > { %5740 = vmatpush1.bf16.msra.mxu0 %v9097_v20  ;;  %6192 = vmatprep.subr.bf16.mxu1 %v9108_v22  ;;  %v9183_v20 = vld [vmem:[%s10239_s13 + $0x11c4] ss:$16 sps:$4 sm:$0xff]   ;;  %v9184_v22 = vld [vmem:[%s10239_s13 + $0xdc8] ss:$16 sps:$4 sm:$0xff]  }
 0x27e   : > { %5741 = vmatprep.subr.bf16.mxu0 %v9105_v51  ;;  %5771 = vmatprep.mubr.bf16.mxu0 %v10841_v24  ;;  %v9181_v51 = vld [vmem:[%s10239_s13 + $0x11c0] ss:$16 sps:$4 sm:$0xff]  }
 0x27f   : > { %6222 = vmatprep.mubr.bf16.mxu1 %v10679_v62  ;;  %v9123_v62 = vld [vmem:[%s10239_s13 + $0x1084] ss:$16 sps:$4 sm:$0xff]  }
 0x280   : > { %6193 = vmatpush1.bf16.msra.mxu1 %v9106_v27  ;;  %v9192_v27 = vld [vmem:[%s10239_s13 + $0xdec] ss:$16 sps:$4 sm:$0xff]  }
 0x281   : > { %5742 = vmatpush1.bf16.msra.mxu0 %v9103_v26  ;;  %6194 = vmatprep.subr.bf16.mxu1 %v9114_v30  ;;  %v9189_v26 = vld [vmem:[%s10239_s13 + $0x11e4] ss:$16 sps:$4 sm:$0xff]   ;;  %v9190_v30 = vld [vmem:[%s10239_s13 + $0xde8] ss:$16 sps:$4 sm:$0xff]  }
 0x282   : > { %5743 = vmatprep.subr.bf16.mxu0 %v9111_v29  ;;  %v9187_v29 = vld [vmem:[%s10239_s13 + $0x11e0] ss:$16 sps:$4 sm:$0xff]  }
 0x284   : > { %6195 = vmatpush1.bf16.msra.mxu1 %v9112_v11  ;;  %v9198_v11 = vld [vmem:[%s10239_s13 + $0xe0c] ss:$16 sps:$4 sm:$0xff]  }
 0x285   : > { %5744 = vmatpush1.bf16.msra.mxu0 %v9109_v58  ;;  %6196 = vmatprep.subr.bf16.mxu1 %v9120_v34  ;;  %v9195_v58 = vld [vmem:[%s10239_s13 + $0x1204] ss:$16 sps:$4 sm:$0xff]   ;;  %v9193_v34 = vld [vmem:[%s10239_s13 + $0x1200] ss:$16 sps:$4 sm:$0xff]  }
 0x286   : > { %5745 = vmatprep.subr.bf16.mxu0 %v9117_v33  ;;  %v10909_v33 = vrot.slane %v10824_v12, %v10307_v50  ;;  %v9199_v12 = vld [vmem:[%s10239_s13 + $0x1220] ss:$16 sps:$4 sm:$0xff]  }
 0x288   : > { %6197 = vmatpush1.bf16.msra.mxu1 %v9118_v36  ;;  %v9201_v36 = vld [vmem:[%s10239_s13 + $0x1224] ss:$16 sps:$4 sm:$0xff]  }
 0x289   : > { %5746 = vmatpush1.bf16.msra.mxu0 %v9115_v35  ;;  %6198 = vmatprep.subr.bf16.mxu1 %v9126_v13  ;;  %v9196_v35 = vld [vmem:[%s10239_s13 + $0xe08] ss:$16 sps:$4 sm:$0xff]   ;;  %v10917_v13 = vcombine.high %v10841_v24, %v10841_v24 }
 0x28a   : > { %5747 = vmatprep.subr.bf16.mxu0 %v9123_v62  ;;  %v9204_v62 = vld [vmem:[%s10239_s13 + $0xe2c] ss:$16 sps:$4 sm:$0xff]  }
 0x28c   : > { %6199 = vmatpush1.bf16.msra.mxu1 %v9124_v39  ;;  %v9207_v39 = vld [vmem:[%s10239_s13 + $0x1244] ss:$16 sps:$4 sm:$0xff]  }
 0x28d   : > { %5748 = vmatpush1.bf16.msra.mxu0 %v9121_v38  ;;  %6200 = vmatprep.subr.bf16.mxu1 %v9132_v41  ;;  %v9202_v38 = vld [vmem:[%s10239_s13 + $0xe28] ss:$16 sps:$4 sm:$0xff]  }
 0x28e   : > { %5749 = vmatprep.subr.bf16.mxu0 %v9129_v40  ;;  %v9210_v40 = vld [vmem:[%s10239_s13 + $0xe4c] ss:$16 sps:$4 sm:$0xff]   ;;  %v9208_v41 = vld [vmem:[%s10239_s13 + $0xe48] ss:$16 sps:$4 sm:$0xff]  }
 0x290   : > { %6201 = vmatpush1.bf16.msra.mxu1 %v9130_v44  ;;  %v9216_v44 = vld [vmem:[%s10239_s13 + $0xe6c] ss:$16 sps:$4 sm:$0xff]  }
 0x291   : > { %5750 = vmatpush1.bf16.msra.mxu0 %v9127_v42  ;;  %6202 = vmatprep.subr.bf16.mxu1 %v9138_v46  ;;  %v9213_v42 = vld [vmem:[%s10239_s13 + $0x1264] ss:$16 sps:$4 sm:$0xff]   ;;  %v9214_v46 = vld [vmem:[%s10239_s13 + $0xe68] ss:$16 sps:$4 sm:$0xff]  }
 0x292   : > { %5751 = vmatprep.subr.bf16.mxu0 %v9135_v45  ;;  %v9211_v45 = vld [vmem:[%s10239_s13 + $0x1260] ss:$16 sps:$4 sm:$0xff]  }
 0x294   : > { %6203 = vmatpush1.bf16.msra.mxu1 %v9136_v48  ;;  %v9217_v48 = vld [vmem:[%s10239_s13 + $0x1280] ss:$16 sps:$4 sm:$0xff]  }
 0x295   : > { %5752 = vmatpush1.bf16.msra.mxu0 %v9133_v47  ;;  %6204 = vmatprep.subr.bf16.mxu1 %v9144_v31  ;;  %v9222_v47 = vld [vmem:[%s10239_s13 + $0xe8c] ss:$16 sps:$4 sm:$0xff]   ;;  %v9225_v31 = vld [vmem:[%s10239_s13 + $0x12a4] ss:$16 sps:$4 sm:$0xff]  }
 0x296   : > { %5753 = vmatprep.subr.bf16.mxu0 %v9141_v49  ;;  %v9220_v49 = vld [vmem:[%s10239_s13 + $0xe88] ss:$16 sps:$4 sm:$0xff]  }
 0x298   : > { %6205 = vmatpush1.bf16.msra.mxu1 %v9142_v52  ;;  %v9223_v52 = vld [vmem:[%s10239_s13 + $0x12a0] ss:$16 sps:$4 sm:$0xff]  }
 0x299   : > { %5754 = vmatpush1.bf16.msra.mxu0 %v9139_v23  ;;  %6206 = vmatprep.subr.bf16.mxu1 %v9150_v25  ;;  %v9228_v23 = vld [vmem:[%s10239_s13 + $0xeac] ss:$16 sps:$4 sm:$0xff]   ;;  %v9231_v25 = vld [vmem:[%s10239_s13 + $0x12c4] ss:$16 sps:$4 sm:$0xff]  }
 0x29a   : > { %5755 = vmatprep.subr.bf16.mxu0 %v9147_v53  ;;  %v9226_v53 = vld [vmem:[%s10239_s13 + $0xea8] ss:$16 sps:$4 sm:$0xff]  }
 0x29c   : > { %6207 = vmatpush1.bf16.msra.mxu1 %v9148_v55  ;;  %v9229_v55 = vld [vmem:[%s10239_s13 + $0x12c0] ss:$16 sps:$4 sm:$0xff]  }
 0x29d   : > { %5756 = vmatpush1.bf16.msra.mxu0 %v9145_v54  ;;  %6208 = vmatprep.subr.bf16.mxu1 %v9156_v57  ;;  %v9234_v54 = vld [vmem:[%s10239_s13 + $0xecc] ss:$16 sps:$4 sm:$0xff]   ;;  %v9237_v57 = vld [vmem:[%s10239_s13 + $0x12e4] ss:$16 sps:$4 sm:$0xff]  }
 0x29e   : > { %5757 = vmatprep.subr.bf16.mxu0 %v9153_v56  ;;  %v9232_v56 = vld [vmem:[%s10239_s13 + $0xec8] ss:$16 sps:$4 sm:$0xff]  }
 0x2a0   : > { %6209 = vmatpush1.bf16.msra.mxu1 %v9154_v59  ;;  %v9235_v59 = vld [vmem:[%s10239_s13 + $0x12e0] ss:$16 sps:$4 sm:$0xff]  }
 0x2a1   : > { %5758 = vmatpush1.bf16.msra.mxu0 %v9151_v32  ;;  %6210 = vmatprep.subr.bf16.mxu1 %v9162_v61  ;;  %v9240_v32 = vld [vmem:[%s10239_s13 + $0xeec] ss:$16 sps:$4 sm:$0xff]   ;;  %v9243_v61 = vld [vmem:[%s10239_s13 + $0x1304] ss:$16 sps:$4 sm:$0xff]  }
 0x2a2   : > { %5759 = vmatprep.subr.bf16.mxu0 %v9159_v60  ;;  %v9238_v60 = vld [vmem:[%s10239_s13 + $0xee8] ss:$16 sps:$4 sm:$0xff]  }
 0x2a4   : > { %6211 = vmatpush1.bf16.msra.mxu1 %v9160_v0  ;;  %v9241_v0 = vld [vmem:[%s10239_s13 + $0x1300] ss:$16 sps:$4 sm:$0xff]  }
 0x2a5   : > { %5760 = vmatpush1.bf16.msra.mxu0 %v9157_v63  ;;  %6212 = vmatprep.subr.bf16.mxu1 %v9168_v3  ;;  %v9246_v63 = vld [vmem:[%s10239_s13 + $0xf0c] ss:$16 sps:$4 sm:$0xff]   ;;  %v9249_v3 = vld [vmem:[%s10239_s13 + $0x1324] ss:$16 sps:$4 sm:$0xff]  }
 0x2a6   : > { %5761 = vmatprep.subr.bf16.mxu0 %v9165_v2  ;;  %v9244_v2 = vld [vmem:[%s10239_s13 + $0xf08] ss:$16 sps:$4 sm:$0xff]  }
 0x2a8   : > { %6213 = vmatpush1.bf16.msra.mxu1 %v9166_v8  ;;  %v9247_v8 = vld [vmem:[%s10239_s13 + $0x1320] ss:$16 sps:$4 sm:$0xff]  }
 0x2a9   : > { %5762 = vmatpush1.bf16.msra.mxu0 %v9163_v37  ;;  %6214 = vmatprep.subr.bf16.mxu1 %v9174_v10  ;;  %v9252_v37 = vld [vmem:[%s10239_s13 + $0xf2c] ss:$16 sps:$4 sm:$0xff]   ;;  %v9255_v10 = vld [vmem:[%s10239_s13 + $0x1344] ss:$16 sps:$4 sm:$0xff]  }
 0x2aa   : > { %5763 = vmatprep.subr.bf16.mxu0 %v9171_v9  ;;  %v9250_v9 = vld [vmem:[%s10239_s13 + $0xf28] ss:$16 sps:$4 sm:$0xff]  }
 0x2ac   : > { %6215 = vmatpush1.bf16.msra.mxu1 %v9172_v14  ;;  %v9253_v14 = vld [vmem:[%s10239_s13 + $0x1340] ss:$16 sps:$4 sm:$0xff]  }
 0x2ad   : > { %5764 = vmatpush1.bf16.msra.mxu0 %v9169_v28  ;;  %6216 = vmatprep.subr.bf16.mxu1 %v9180_v19  ;;  %v9258_v28 = vld [vmem:[%s10239_s13 + $0xf4c] ss:$16 sps:$4 sm:$0xff]   ;;  %v9261_v19 = vld [vmem:[%s10239_s13 + $0x1364] ss:$16 sps:$4 sm:$0xff]  }
 0x2ae   : > { %5765 = vmatprep.subr.bf16.mxu0 %v9177_v15  ;;  %v9256_v15 = vld [vmem:[%s10239_s13 + $0xf48] ss:$16 sps:$4 sm:$0xff]  }
 0x2b0   : > { %6217 = vmatpush1.bf16.msra.mxu1 %v9178_v17  ;;  %v9259_v17 = vld [vmem:[%s10239_s13 + $0x1360] ss:$16 sps:$4 sm:$0xff]  }
 0x2b1   : > { %5766 = vmatpush1.bf16.msra.mxu0 %v9175_v16  ;;  %6218 = vmatprep.subr.bf16.mxu1 %v9186_v21  ;;  %v9264_v16 = vld [vmem:[%s10239_s13 + $0xf6c] ss:$16 sps:$4 sm:$0xff]   ;;  %v9267_v21 = vld [vmem:[%s10239_s13 + $0x1384] ss:$16 sps:$4 sm:$0xff]  }
 0x2b2   : > { %5767 = vmatprep.subr.bf16.mxu0 %v9183_v20  ;;  %v9262_v20 = vld [vmem:[%s10239_s13 + $0xf68] ss:$16 sps:$4 sm:$0xff]  }
 0x2b4   : > { %6219 = vmatpush1.bf16.msra.mxu1 %v9184_v22  ;;  %v9265_v22 = vld [vmem:[%s10239_s13 + $0x1380] ss:$16 sps:$4 sm:$0xff]  }
 0x2b5   : > { %5768 = vmatpush1.bf16.msra.mxu0 %v9181_v51  ;;  %6220 = vmatprep.subr.bf16.mxu1 %v9192_v27  ;;  %v9270_v51 = vld [vmem:[%s10239_s13 + $0xf8c] ss:$16 sps:$4 sm:$0xff]   ;;  %v9273_v27 = vld [vmem:[%s10239_s13 + $0x13a4] ss:$16 sps:$4 sm:$0xff]  }
 0x2b6   : > { %5769 = vmatprep.subr.bf16.mxu0 %v9189_v26  ;;  %v9268_v26 = vld [vmem:[%s10239_s13 + $0xf88] ss:$16 sps:$4 sm:$0xff]  }
 0x2b8   : > { %6221 = vmatpush1.bf16.msra.mxu1 %v9190_v30  ;;  %v9271_v30 = vld [vmem:[%s10239_s13 + $0x13a0] ss:$16 sps:$4 sm:$0xff]  }
 0x2b9   : > { %5770 = vmatpush1.bf16.msra.mxu0 %v9187_v29  ;;  %6231 = vmatprep.subr.bf16.mxu1 %v9198_v11  ;;  %v9276_v29 = vld [vmem:[%s10239_s13 + $0xfac] ss:$16 sps:$4 sm:$0xff]   ;;  %v9279_v11 = vld [vmem:[%s10239_s13 + $0x13c4] ss:$16 sps:$4 sm:$0xff]  }
 0x2ba   : > { %5780 = vmatprep.subr.bf16.mxu0 %v9195_v58  ;;  %v9274_v58 = vld [vmem:[%s10239_s13 + $0xfa8] ss:$16 sps:$4 sm:$0xff]  }
 0x2bb   : > { %6223 = vmatmul.mubr.bf16.vlgmr.msra.gmra.mrb[4].mxu1 %v10747_v4  ;;  %v9205_v4 = vld [vmem:[%s10239_s13 + $0x1240] ss:$16 sps:$4 sm:$0xff]  }
 0x2bc   : > { %5772 = vmatmul.mubr.bf16.vlgmr.msra.gmra.mrb[0].mxu0 %v10909_v33  ;;  %6232 = vmatpush1.bf16.msra.mxu1 %v9196_v35  ;;  %v1323_v35 = vcombine.high %v10816_v7, %v10816_v7  ;;  %v9283_v7 = vld [vmem:[%s10239_s13 + $0x13e0] ss:$16 sps:$4 sm:$0xff]  }
 0x2bd   : > { %5781 = vmatpush1.bf16.msra.mxu0 %v9193_v34  ;;  %6233 = vmatprep.subr.bf16.mxu1 %v9204_v62  ;;  %v9282_v34 = vld [vmem:[%s10239_s13 + $0xfcc] ss:$16 sps:$4 sm:$0xff]   ;;  %v9280_v62 = vld [vmem:[%s10239_s13 + $0xfc8] ss:$16 sps:$4 sm:$0xff]  }
 0x2be   : > { %5782 = vmatprep.subr.bf16.mxu0 %v9201_v36  ;;  %5812 = vmatprep.mubr.bf16.mxu0 %v10917_v13  ;;  %v9277_v36 = vld [vmem:[%s10239_s13 + $0x13c0] ss:$16 sps:$4 sm:$0xff]  }
 0x2bf   : > { %6263 = vmatprep.mubr.bf16.mxu1 %v10755_v1  ;;  %v9219_v1 = vld [vmem:[%s10239_s13 + $0x1284] ss:$16 sps:$4 sm:$0xff]  }
 0x2c0   : > { %6234 = vmatpush1.bf16.msra.mxu1 %v9202_v38  ;;  %v9288_v38 = vld [vmem:[%s10239_s13 + $0xfec] ss:$16 sps:$4 sm:$0xff]  }
 0x2c1   : > { %5783 = vmatpush1.bf16.msra.mxu0 %v9199_v12  ;;  %6235 = vmatprep.subr.bf16.mxu1 %v9210_v40  ;;  %v9285_v12 = vld [vmem:[%s10239_s13 + $0x13e4] ss:$16 sps:$4 sm:$0xff]   ;;  %v9286_v40 = vld [vmem:[%s10239_s13 + $0xfe8] ss:$16 sps:$4 sm:$0xff]  }
 0x2c2   : > { %5784 = vmatprep.subr.bf16.mxu0 %v9207_v39  ;;  %v10982_v39 = vrot.slane %v1323_v35, %v10307_v50  ;;  %v9358_v35 = vld [vmem:[%s10239_s13 + $0x1168] ss:$16 sps:$4 sm:$0xff]  }
 0x2c4   : > { %6236 = vmatpush1.bf16.msra.mxu1 %v9208_v41  ;;  %v9294_v41 = vld [vmem:[%s10239_s13 + $0x100c] ss:$16 sps:$4 sm:$0xff]  }
 0x2c5   : > { %5785 = vmatpush1.bf16.msra.mxu0 %v9205_v4  ;;  %6237 = vmatprep.subr.bf16.mxu1 %v9216_v44  ;;  %v9291_v4 = vld [vmem:[%s10239_s13 + $0x1404] ss:$16 sps:$4 sm:$0xff]   ;;  %v10992_v44 = vcombine.high %v10909_v33, %v10909_v33 }
 0x2c6   : > { %5786 = vmatprep.subr.bf16.mxu0 %v9213_v42  ;;  %v1339_v42 = vcombine.high %v10982_v39, %v10982_v39 }
 0x2c8   : > { %6238 = vmatpush1.bf16.msra.mxu1 %v9214_v46  ;;  %v9292_v46 = vld [vmem:[%s10239_s13 + $0x1008] ss:$16 sps:$4 sm:$0xff]  }
 0x2c9   : > { %5787 = vmatpush1.bf16.msra.mxu0 %v9211_v45  ;;  %6239 = vmatprep.subr.bf16.mxu1 %v9222_v47  ;;  %v9289_v45 = vld [vmem:[%s10239_s13 + $0x1400] ss:$16 sps:$4 sm:$0xff]   ;;  %v9300_v47 = vld [vmem:[%s10239_s13 + $0x102c] ss:$16 sps:$4 sm:$0xff]  }
 0x2ca   : > { %5788 = vmatprep.subr.bf16.mxu0 %v9219_v1  ;;  %v9297_v1 = vld [vmem:[%s10239_s13 + $0x1424] ss:$16 sps:$4 sm:$0xff]  }
 0x2cc   : > { %6240 = vmatpush1.bf16.msra.mxu1 %v9220_v49  ;;  %v9295_v49 = vld [vmem:[%s10239_s13 + $0x1420] ss:$16 sps:$4 sm:$0xff]  }
 0x2cd   : > { %5789 = vmatpush1.bf16.msra.mxu0 %v9217_v48  ;;  %6241 = vmatprep.subr.bf16.mxu1 %v9228_v23  ;;  %v10999_v48 = vrot.slane %v1339_v42, %v10307_v50  ;;  %v9303_v23 = vld [vmem:[%s10239_s13 + $0x1444] ss:$16 sps:$4 sm:$0xff]  }
 0x2ce   : > { %5790 = vmatprep.subr.bf16.mxu0 %v9225_v31  ;;  %v9298_v31 = vld [vmem:[%s10239_s13 + $0x1028] ss:$16 sps:$4 sm:$0xff]   ;;  %v9375_v42 = vld [vmem:[%s10239_s13 + $0x15c4] ss:$16 sps:$4 sm:$0xff]  }
 0x2d0   : > { %6242 = vmatpush1.bf16.msra.mxu1 %v9226_v53  ;;  %v9304_v53 = vld [vmem:[%s10239_s13 + $0x1048] ss:$16 sps:$4 sm:$0xff]  }
 0x2d1   : > { %5791 = vmatpush1.bf16.msra.mxu0 %v9223_v52  ;;  %6243 = vmatprep.subr.bf16.mxu1 %v9234_v54  ;;  %v9306_v52 = vld [vmem:[%s10239_s13 + $0x104c] ss:$16 sps:$4 sm:$0xff]  }
 0x2d2   : > { %5792 = vmatprep.subr.bf16.mxu0 %v9231_v25  ;;  %v9309_v25 = vld [vmem:[%s10239_s13 + $0x1464] ss:$16 sps:$4 sm:$0xff]   ;;  %v9312_v54 = vld [vmem:[%s10239_s13 + $0x106c] ss:$16 sps:$4 sm:$0xff]  }
 0x2d4   : > { %6244 = vmatpush1.bf16.msra.mxu1 %v9232_v56  ;;  %v9310_v56 = vld [vmem:[%s10239_s13 + $0x1068] ss:$16 sps:$4 sm:$0xff]  }
 0x2d5   : > { %5793 = vmatpush1.bf16.msra.mxu0 %v9229_v55  ;;  %6245 = vmatprep.subr.bf16.mxu1 %v9240_v32  ;;  %v9307_v55 = vld [vmem:[%s10239_s13 + $0x1460] ss:$16 sps:$4 sm:$0xff]  }
 0x2d6   : > { %5794 = vmatprep.subr.bf16.mxu0 %v9237_v57  ;;  %v9318_v57 = vld [vmem:[%s10239_s13 + $0x108c] ss:$16 sps:$4 sm:$0xff]   ;;  %v9313_v32 = vld [vmem:[%s10239_s13 + $0x1480] ss:$16 sps:$4 sm:$0xff]  }
 0x2d8   : > { %6246 = vmatpush1.bf16.msra.mxu1 %v9238_v60  ;;  %v9321_v60 = vld [vmem:[%s10239_s13 + $0x14a4] ss:$16 sps:$4 sm:$0xff]  }
 0x2d9   : > { %5795 = vmatpush1.bf16.msra.mxu0 %v9235_v59  ;;  %6247 = vmatprep.subr.bf16.mxu1 %v9246_v63  ;;  %v9316_v59 = vld [vmem:[%s10239_s13 + $0x1088] ss:$16 sps:$4 sm:$0xff]   ;;  %v9319_v63 = vld [vmem:[%s10239_s13 + $0x14a0] ss:$16 sps:$4 sm:$0xff]  }
 0x2da   : > { %5796 = vmatprep.subr.bf16.mxu0 %v9243_v61  ;;  %v9324_v61 = vld [vmem:[%s10239_s13 + $0x10ac] ss:$16 sps:$4 sm:$0xff]  }
 0x2dc   : > { %6248 = vmatpush1.bf16.msra.mxu1 %v9244_v2  ;;  %v9327_v2 = vld [vmem:[%s10239_s13 + $0x14c4] ss:$16 sps:$4 sm:$0xff]  }
 0x2dd   : > { %5797 = vmatpush1.bf16.msra.mxu0 %v9241_v0  ;;  %6249 = vmatprep.subr.bf16.mxu1 %v9252_v37  ;;  %v9322_v0 = vld [vmem:[%s10239_s13 + $0x10a8] ss:$16 sps:$4 sm:$0xff]   ;;  %v9325_v37 = vld [vmem:[%s10239_s13 + $0x14c0] ss:$16 sps:$4 sm:$0xff]  }
 0x2de   : > { %5798 = vmatprep.subr.bf16.mxu0 %v9249_v3  ;;  %v9330_v3 = vld [vmem:[%s10239_s13 + $0x10cc] ss:$16 sps:$4 sm:$0xff]  }
 0x2e0   : > { %6250 = vmatpush1.bf16.msra.mxu1 %v9250_v9  ;;  %v9333_v9 = vld [vmem:[%s10239_s13 + $0x14e4] ss:$16 sps:$4 sm:$0xff]  }
 0x2e1   : > { %5799 = vmatpush1.bf16.msra.mxu0 %v9247_v8  ;;  %6251 = vmatprep.subr.bf16.mxu1 %v9258_v28  ;;  %v9328_v8 = vld [vmem:[%s10239_s13 + $0x10c8] ss:$16 sps:$4 sm:$0xff]   ;;  %v9331_v28 = vld [vmem:[%s10239_s13 + $0x14e0] ss:$16 sps:$4 sm:$0xff]  }
 0x2e2   : > { %5800 = vmatprep.subr.bf16.mxu0 %v9255_v10  ;;  %v9336_v10 = vld [vmem:[%s10239_s13 + $0x10ec] ss:$16 sps:$4 sm:$0xff]  }
 0x2e4   : > { %6252 = vmatpush1.bf16.msra.mxu1 %v9256_v15  ;;  %v9339_v15 = vld [vmem:[%s10239_s13 + $0x1504] ss:$16 sps:$4 sm:$0xff]  }
 0x2e5   : > { %5801 = vmatpush1.bf16.msra.mxu0 %v9253_v14  ;;  %6253 = vmatprep.subr.bf16.mxu1 %v9264_v16  ;;  %v9334_v14 = vld [vmem:[%s10239_s13 + $0x10e8] ss:$16 sps:$4 sm:$0xff]   ;;  %v9337_v16 = vld [vmem:[%s10239_s13 + $0x1500] ss:$16 sps:$4 sm:$0xff]  }
 0x2e6   : > { %5802 = vmatprep.subr.bf16.mxu0 %v9261_v19  ;;  %v9342_v19 = vld [vmem:[%s10239_s13 + $0x110c] ss:$16 sps:$4 sm:$0xff]  }
 0x2e8   : > { %6254 = vmatpush1.bf16.msra.mxu1 %v9262_v20  ;;  %v9345_v20 = vld [vmem:[%s10239_s13 + $0x1524] ss:$16 sps:$4 sm:$0xff]  }
 0x2e9   : > { %5803 = vmatpush1.bf16.msra.mxu0 %v9259_v17  ;;  %6255 = vmatprep.subr.bf16.mxu1 %v9270_v51  ;;  %v9340_v17 = vld [vmem:[%s10239_s13 + $0x1108] ss:$16 sps:$4 sm:$0xff]   ;;  %v9343_v51 = vld [vmem:[%s10239_s13 + $0x1520] ss:$16 sps:$4 sm:$0xff]  }
 0x2ea   : > { %5804 = vmatprep.subr.bf16.mxu0 %v9267_v21  ;;  %v9348_v21 = vld [vmem:[%s10239_s13 + $0x112c] ss:$16 sps:$4 sm:$0xff]  }
 0x2ec   : > { %6256 = vmatpush1.bf16.msra.mxu1 %v9268_v26  ;;  %v9351_v26 = vld [vmem:[%s10239_s13 + $0x1544] ss:$16 sps:$4 sm:$0xff]  }
 0x2ed   : > { %5805 = vmatpush1.bf16.msra.mxu0 %v9265_v22  ;;  %6257 = vmatprep.subr.bf16.mxu1 %v9276_v29  ;;  %v9346_v22 = vld [vmem:[%s10239_s13 + $0x1128] ss:$16 sps:$4 sm:$0xff]   ;;  %v9349_v29 = vld [vmem:[%s10239_s13 + $0x1540] ss:$16 sps:$4 sm:$0xff]  }
 0x2ee   : > { %5806 = vmatprep.subr.bf16.mxu0 %v9273_v27  ;;  %v9354_v27 = vld [vmem:[%s10239_s13 + $0x114c] ss:$16 sps:$4 sm:$0xff]  }
 0x2f0   : > { %6258 = vmatpush1.bf16.msra.mxu1 %v9274_v58  ;;  %v9357_v58 = vld [vmem:[%s10239_s13 + $0x1564] ss:$16 sps:$4 sm:$0xff]  }
 0x2f1   : > { %5807 = vmatpush1.bf16.msra.mxu0 %v9271_v30  ;;  %6259 = vmatprep.subr.bf16.mxu1 %v9282_v34  ;;  %v9352_v30 = vld [vmem:[%s10239_s13 + $0x1148] ss:$16 sps:$4 sm:$0xff]   ;;  %v9355_v34 = vld [vmem:[%s10239_s13 + $0x1560] ss:$16 sps:$4 sm:$0xff]  }
 0x2f2   : > { %5808 = vmatprep.subr.bf16.mxu0 %v9279_v11  ;;  %v9360_v11 = vld [vmem:[%s10239_s13 + $0x116c] ss:$16 sps:$4 sm:$0xff]  }
 0x2f4   : > { %6260 = vmatpush1.bf16.msra.mxu1 %v9280_v62  ;;  %v9366_v62 = vld [vmem:[%s10239_s13 + $0x118c] ss:$16 sps:$4 sm:$0xff]  }
 0x2f5   : > { %5809 = vmatpush1.bf16.msra.mxu0 %v9277_v36  ;;  %6261 = vmatprep.subr.bf16.mxu1 %v9288_v38  ;;  %v9363_v36 = vld [vmem:[%s10239_s13 + $0x1584] ss:$16 sps:$4 sm:$0xff]   ;;  %v9364_v38 = vld [vmem:[%s10239_s13 + $0x1188] ss:$16 sps:$4 sm:$0xff]  }
 0x2f6   : > { %5810 = vmatprep.subr.bf16.mxu0 %v9285_v12  ;;  %v9361_v12 = vld [vmem:[%s10239_s13 + $0x1580] ss:$16 sps:$4 sm:$0xff]  }
 0x2f8   : > { %6262 = vmatpush1.bf16.msra.mxu1 %v9286_v40  ;;  %v9372_v40 = vld [vmem:[%s10239_s13 + $0x11ac] ss:$16 sps:$4 sm:$0xff]  }
 0x2f9   : > { %5811 = vmatpush1.bf16.msra.mxu0 %v9283_v7  ;;  %6272 = vmatprep.subr.bf16.mxu1 %v9294_v41  ;;  %v9369_v7 = vld [vmem:[%s10239_s13 + $0x15a4] ss:$16 sps:$4 sm:$0xff]   ;;  %v9370_v41 = vld [vmem:[%s10239_s13 + $0x11a8] ss:$16 sps:$4 sm:$0xff]  }
 0x2fa   : > { %5821 = vmatprep.subr.bf16.mxu0 %v9291_v4  ;;  %v9367_v4 = vld [vmem:[%s10239_s13 + $0x15a0] ss:$16 sps:$4 sm:$0xff]  }
 0x2fb   : > { %6264 = vmatmul.mubr.bf16.vlgmr.msra.gmra.mrb[4].mxu1 %v10834_v18  ;;  %v9301_v18 = vld [vmem:[%s10239_s13 + $0x1440] ss:$16 sps:$4 sm:$0xff]  }
 0x2fc   : > { %5813 = vmatmul.mubr.bf16.vlgmr.msra.gmra.mrb[0].mxu0 %v10992_v44  ;;  %6273 = vmatpush1.bf16.msra.mxu1 %v9292_v46  ;;  %v9373_v46 = vld [vmem:[%s10239_s13 + $0x15c0] ss:$16 sps:$4 sm:$0xff]  }
 0x2fd   : > { %5822 = vmatpush1.bf16.msra.mxu0 %v9289_v45  ;;  %6274 = vmatprep.subr.bf16.mxu1 %v9300_v47  ;;  %v9378_v45 = vld [vmem:[%s10239_s13 + $0x11cc] ss:$16 sps:$4 sm:$0xff]   ;;  %v9381_v47 = vld [vmem:[%s10239_s13 + $0x15e4] ss:$16 sps:$4 sm:$0xff]  }
 0x2fe   : > { %5823 = vmatprep.subr.bf16.mxu0 %v9297_v1  ;;  %5853 = vmatprep.mubr.bf16.mxu0 %v10999_v48  ;;  %v9376_v1 = vld [vmem:[%s10239_s13 + $0x11c8] ss:$16 sps:$4 sm:$0xff]  }
 0x2ff   : > { %6304 = vmatprep.mubr.bf16.mxu1 %v10841_v24  ;;  %v9315_v24 = vld [vmem:[%s10239_s13 + $0x1484] ss:$16 sps:$4 sm:$0xff]  }
 0x300   : > { %6275 = vmatpush1.bf16.msra.mxu1 %v9298_v31  ;;  %v9379_v31 = vld [vmem:[%s10239_s13 + $0x15e0] ss:$16 sps:$4 sm:$0xff]  }
 0x301   : > { %5824 = vmatpush1.bf16.msra.mxu0 %v9295_v49  ;;  %6276 = vmatprep.subr.bf16.mxu1 %v9306_v52  ;;  %v9384_v49 = vld [vmem:[%s10239_s13 + $0x11ec] ss:$16 sps:$4 sm:$0xff]   ;;  %v9388_v52 = vld [vmem:[%s10239_s13 + $0x1604] ss:$16 sps:$4 sm:$0xff]  }
 0x302   : > { %5825 = vmatprep.subr.bf16.mxu0 %v9303_v23  ;;  %v9382_v23 = vld [vmem:[%s10239_s13 + $0x11e8] ss:$16 sps:$4 sm:$0xff]  }
 0x304   : > { %6277 = vmatpush1.bf16.msra.mxu1 %v9304_v53  ;;  %v11067_v53 = vrot.slane %v10982_v39, %v10307_v50  ;;  %v9392_v39 = vld [vmem:[%s10239_s13 + $0x1620] ss:$16 sps:$4 sm:$0xff]  }
 0x305   : > { %5826 = vmatpush1.bf16.msra.mxu0 %v9301_v18  ;;  %6278 = vmatprep.subr.bf16.mxu1 %v9312_v54  ;;  %v9391_v18 = vld [vmem:[%s10239_s13 + $0x120c] ss:$16 sps:$4 sm:$0xff]   ;;  %v9389_v54 = vld [vmem:[%s10239_s13 + $0x1208] ss:$16 sps:$4 sm:$0xff]  }
 0x306   : > { %5827 = vmatprep.subr.bf16.mxu0 %v9309_v25  ;;  %v9386_v25 = vld [vmem:[%s10239_s13 + $0x1600] ss:$16 sps:$4 sm:$0xff]  }
 0x308   : > { %6279 = vmatpush1.bf16.msra.mxu1 %v9310_v56  ;;  %v9397_v56 = vld [vmem:[%s10239_s13 + $0x122c] ss:$16 sps:$4 sm:$0xff]  }
 0x309   : > { %5828 = vmatpush1.bf16.msra.mxu0 %v9307_v55  ;;  %6280 = vmatprep.subr.bf16.mxu1 %v9318_v57  ;;  %v9394_v55 = vld [vmem:[%s10239_s13 + $0x1624] ss:$16 sps:$4 sm:$0xff]   ;;  %v9395_v57 = vld [vmem:[%s10239_s13 + $0x1228] ss:$16 sps:$4 sm:$0xff]  }
 0x30a   : > { %5829 = vmatprep.subr.bf16.mxu0 %v9315_v24  ;;  %v11075_v24 = vcombine.high %v10999_v48, %v10999_v48 }
 0x30c   : > { %6281 = vmatpush1.bf16.msra.mxu1 %v9316_v59  ;;  %v9403_v59 = vld [vmem:[%s10239_s13 + $0x124c] ss:$16 sps:$4 sm:$0xff]  }
 0x30d   : > { %5830 = vmatpush1.bf16.msra.mxu0 %v9313_v32  ;;  %6282 = vmatprep.subr.bf16.mxu1 %v9324_v61  ;;  %v9400_v32 = vld [vmem:[%s10239_s13 + $0x1644] ss:$16 sps:$4 sm:$0xff]  }
 0x30e   : > { %5831 = vmatprep.subr.bf16.mxu0 %v9321_v60  ;;  %v9401_v60 = vld [vmem:[%s10239_s13 + $0x1248] ss:$16 sps:$4 sm:$0xff]   ;;  %v9406_v61 = vld [vmem:[%s10239_s13 + $0x1664] ss:$16 sps:$4 sm:$0xff]  }
 0x310   : > { %6283 = vmatpush1.bf16.msra.mxu1 %v9322_v0  ;;  %v9404_v0 = vld [vmem:[%s10239_s13 + $0x1660] ss:$16 sps:$4 sm:$0xff]  }
 0x311   : > { %5832 = vmatpush1.bf16.msra.mxu0 %v9319_v63  ;;  %6284 = vmatprep.subr.bf16.mxu1 %v9330_v3  ;;  %v9409_v63 = vld [vmem:[%s10239_s13 + $0x126c] ss:$16 sps:$4 sm:$0xff]  }
 0x312   : > { %5833 = vmatprep.subr.bf16.mxu0 %v9327_v2  ;;  %v9407_v2 = vld [vmem:[%s10239_s13 + $0x1268] ss:$16 sps:$4 sm:$0xff]   ;;  %v9415_v3 = vld [vmem:[%s10239_s13 + $0x128c] ss:$16 sps:$4 sm:$0xff]  }
 0x314   : > { %6285 = vmatpush1.bf16.msra.mxu1 %v9328_v8  ;;  %v9413_v8 = vld [vmem:[%s10239_s13 + $0x1288] ss:$16 sps:$4 sm:$0xff]  }
 0x315   : > { %5834 = vmatpush1.bf16.msra.mxu0 %v9325_v37  ;;  %6286 = vmatprep.subr.bf16.mxu1 %v9336_v10  ;;  %v9410_v37 = vld [vmem:[%s10239_s13 + $0x1680] ss:$16 sps:$4 sm:$0xff]   ;;  %v9421_v10 = vld [vmem:[%s10239_s13 + $0x12ac] ss:$16 sps:$4 sm:$0xff]  }
 0x316   : > { %5835 = vmatprep.subr.bf16.mxu0 %v9333_v9  ;;  %v9418_v9 = vld [vmem:[%s10239_s13 + $0x16a4] ss:$16 sps:$4 sm:$0xff]  }
 0x318   : > { %6287 = vmatpush1.bf16.msra.mxu1 %v9334_v14  ;;  %v9419_v14 = vld [vmem:[%s10239_s13 + $0x12a8] ss:$16 sps:$4 sm:$0xff]  }
 0x319   : > { %5836 = vmatpush1.bf16.msra.mxu0 %v9331_v28  ;;  %6288 = vmatprep.subr.bf16.mxu1 %v9342_v19  ;;  %v9416_v28 = vld [vmem:[%s10239_s13 + $0x16a0] ss:$16 sps:$4 sm:$0xff]   ;;  %v9427_v19 = vld [vmem:[%s10239_s13 + $0x12cc] ss:$16 sps:$4 sm:$0xff]  }
 0x31a   : > { %5837 = vmatprep.subr.bf16.mxu0 %v9339_v15  ;;  %v9424_v15 = vld [vmem:[%s10239_s13 + $0x16c4] ss:$16 sps:$4 sm:$0xff]  }
 0x31c   : > { %6289 = vmatpush1.bf16.msra.mxu1 %v9340_v17  ;;  %v9425_v17 = vld [vmem:[%s10239_s13 + $0x12c8] ss:$16 sps:$4 sm:$0xff]  }
 0x31d   : > { %5838 = vmatpush1.bf16.msra.mxu0 %v9337_v16  ;;  %6290 = vmatprep.subr.bf16.mxu1 %v9348_v21  ;;  %v9422_v16 = vld [vmem:[%s10239_s13 + $0x16c0] ss:$16 sps:$4 sm:$0xff]   ;;  %v9433_v21 = vld [vmem:[%s10239_s13 + $0x12ec] ss:$16 sps:$4 sm:$0xff]  }
 0x31e   : > { %5839 = vmatprep.subr.bf16.mxu0 %v9345_v20  ;;  %v9430_v20 = vld [vmem:[%s10239_s13 + $0x16e4] ss:$16 sps:$4 sm:$0xff]  }
 0x320   : > { %6291 = vmatpush1.bf16.msra.mxu1 %v9346_v22  ;;  %v9431_v22 = vld [vmem:[%s10239_s13 + $0x12e8] ss:$16 sps:$4 sm:$0xff]  }
 0x321   : > { %5840 = vmatpush1.bf16.msra.mxu0 %v9343_v51  ;;  %6292 = vmatprep.subr.bf16.mxu1 %v9354_v27  ;;  %v9428_v51 = vld [vmem:[%s10239_s13 + $0x16e0] ss:$16 sps:$4 sm:$0xff]   ;;  %v9439_v27 = vld [vmem:[%s10239_s13 + $0x130c] ss:$16 sps:$4 sm:$0xff]  }
 0x322   : > { %5841 = vmatprep.subr.bf16.mxu0 %v9351_v26  ;;  %v9436_v26 = vld [vmem:[%s10239_s13 + $0x1704] ss:$16 sps:$4 sm:$0xff]  }
 0x324   : > { %6293 = vmatpush1.bf16.msra.mxu1 %v9352_v30  ;;  %v9437_v30 = vld [vmem:[%s10239_s13 + $0x1308] ss:$16 sps:$4 sm:$0xff]  }
 0x325   : > { %5842 = vmatpush1.bf16.msra.mxu0 %v9349_v29  ;;  %6294 = vmatprep.subr.bf16.mxu1 %v9360_v11  ;;  %v9434_v29 = vld [vmem:[%s10239_s13 + $0x1700] ss:$16 sps:$4 sm:$0xff]   ;;  %v9445_v11 = vld [vmem:[%s10239_s13 + $0x132c] ss:$16 sps:$4 sm:$0xff]  }
 0x326   : > { %5843 = vmatprep.subr.bf16.mxu0 %v9357_v58  ;;  %v9442_v58 = vld [vmem:[%s10239_s13 + $0x1724] ss:$16 sps:$4 sm:$0xff]  }
 0x328   : > { %6295 = vmatpush1.bf16.msra.mxu1 %v9358_v35  ;;  %v9443_v35 = vld [vmem:[%s10239_s13 + $0x1328] ss:$16 sps:$4 sm:$0xff]  }
 0x329   : > { %5844 = vmatpush1.bf16.msra.mxu0 %v9355_v34  ;;  %6296 = vmatprep.subr.bf16.mxu1 %v9366_v62  ;;  %v9440_v34 = vld [vmem:[%s10239_s13 + $0x1720] ss:$16 sps:$4 sm:$0xff]   ;;  %v9451_v62 = vld [vmem:[%s10239_s13 + $0x134c] ss:$16 sps:$4 sm:$0xff]  }
 0x32a   : > { %5845 = vmatprep.subr.bf16.mxu0 %v9363_v36  ;;  %v9448_v36 = vld [vmem:[%s10239_s13 + $0x1744] ss:$16 sps:$4 sm:$0xff]  }
 0x32c   : > { %6297 = vmatpush1.bf16.msra.mxu1 %v9364_v38  ;;  %v9449_v38 = vld [vmem:[%s10239_s13 + $0x1348] ss:$16 sps:$4 sm:$0xff]  }
 0x32d   : > { %5846 = vmatpush1.bf16.msra.mxu0 %v9361_v12  ;;  %6298 = vmatprep.subr.bf16.mxu1 %v9372_v40  ;;  %v9446_v12 = vld [vmem:[%s10239_s13 + $0x1740] ss:$16 sps:$4 sm:$0xff]   ;;  %v9457_v40 = vld [vmem:[%s10239_s13 + $0x136c] ss:$16 sps:$4 sm:$0xff]  }
 0x32e   : > { %5847 = vmatprep.subr.bf16.mxu0 %v9369_v7  ;;  %v9454_v7 = vld [vmem:[%s10239_s13 + $0x1764] ss:$16 sps:$4 sm:$0xff]  }
 0x330   : > { %6299 = vmatpush1.bf16.msra.mxu1 %v9370_v41  ;;  %v9455_v41 = vld [vmem:[%s10239_s13 + $0x1368] ss:$16 sps:$4 sm:$0xff]  }
 0x331   : > { %5848 = vmatpush1.bf16.msra.mxu0 %v9367_v4  ;;  %6300 = vmatprep.subr.bf16.mxu1 %v9378_v45  ;;  %v9452_v4 = vld [vmem:[%s10239_s13 + $0x1760] ss:$16 sps:$4 sm:$0xff]   ;;  %v9463_v45 = vld [vmem:[%s10239_s13 + $0x138c] ss:$16 sps:$4 sm:$0xff]  }
 0x332   : > { %5849 = vmatprep.subr.bf16.mxu0 %v9375_v42  ;;  %v9460_v42 = vld [vmem:[%s10239_s13 + $0x1784] ss:$16 sps:$4 sm:$0xff]  }
 0x334   : > { %6301 = vmatpush1.bf16.msra.mxu1 %v9376_v1  ;;  %v9461_v1 = vld [vmem:[%s10239_s13 + $0x1388] ss:$16 sps:$4 sm:$0xff]  }
 0x335   : > { %5850 = vmatpush1.bf16.msra.mxu0 %v9373_v46  ;;  %6302 = vmatprep.subr.bf16.mxu1 %v9384_v49  ;;  %v9458_v46 = vld [vmem:[%s10239_s13 + $0x1780] ss:$16 sps:$4 sm:$0xff]   ;;  %v9469_v49 = vld [vmem:[%s10239_s13 + $0x13ac] ss:$16 sps:$4 sm:$0xff]  }
 0x336   : > { %5851 = vmatprep.subr.bf16.mxu0 %v9381_v47  ;;  %v9466_v47 = vld [vmem:[%s10239_s13 + $0x17a4] ss:$16 sps:$4 sm:$0xff]  }
 0x338   : > { %6303 = vmatpush1.bf16.msra.mxu1 %v9382_v23  ;;  %v9467_v23 = vld [vmem:[%s10239_s13 + $0x13a8] ss:$16 sps:$4 sm:$0xff]  }
 0x339   : > { %5852 = vmatpush1.bf16.msra.mxu0 %v9379_v31  ;;  %6313 = vmatprep.subr.bf16.mxu1 %v9391_v18  ;;  %v9464_v31 = vld [vmem:[%s10239_s13 + $0x17a0] ss:$16 sps:$4 sm:$0xff]   ;;  %v9475_v18 = vld [vmem:[%s10239_s13 + $0x13cc] ss:$16 sps:$4 sm:$0xff]  }
 0x33a   : > { %5862 = vmatprep.subr.bf16.mxu0 %v9388_v52  ;;  %v9472_v52 = vld [vmem:[%s10239_s13 + $0x17c4] ss:$16 sps:$4 sm:$0xff]  }
 0x33b   : > { %6305 = vmatmul.mubr.bf16.vlgmr.msra.gmra.mrb[4].mxu1 %v10909_v33  ;;  %v9398_v33 = vld [vmem:[%s10239_s13 + $0x1640] ss:$16 sps:$4 sm:$0xff]  }
 0x33c   : > { %5854 = vmatmul.mubr.bf16.vlgmr.msra.gmra.mrb[0].mxu0 %v11067_v53  ;;  %6314 = vmatpush1.bf16.msra.mxu1 %v9389_v54  ;;  %v9473_v54 = vld [vmem:[%s10239_s13 + $0x13c8] ss:$16 sps:$4 sm:$0xff]  }
 0x33d   : > { %5863 = vmatpush1.bf16.msra.mxu0 %v9386_v25  ;;  %6315 = vmatprep.subr.bf16.mxu1 %v9397_v56  ;;  %v9470_v25 = vld [vmem:[%s10239_s13 + $0x17c0] ss:$16 sps:$4 sm:$0xff]   ;;  %v9481_v56 = vld [vmem:[%s10239_s13 + $0x13ec] ss:$16 sps:$4 sm:$0xff]  }
 0x33e   : > { %5864 = vmatprep.subr.bf16.mxu0 %v9394_v55  ;;  %5894 = vmatprep.mubr.bf16.mxu0 %v11075_v24  ;;  %v9478_v55 = vld [vmem:[%s10239_s13 + $0x17e4] ss:$16 sps:$4 sm:$0xff]  }
 0x33f   : > { %6345 = vmatprep.mubr.bf16.mxu1 %v10917_v13  ;;  %v9412_v13 = vld [vmem:[%s10239_s13 + $0x1684] ss:$16 sps:$4 sm:$0xff]  }
 0x340   : > { %6316 = vmatpush1.bf16.msra.mxu1 %v9395_v57  ;;  %v9479_v57 = vld [vmem:[%s10239_s13 + $0x13e8] ss:$16 sps:$4 sm:$0xff]  }
 0x341   : > { %5865 = vmatpush1.bf16.msra.mxu0 %v9392_v39  ;;  %6317 = vmatprep.subr.bf16.mxu1 %v9403_v59  ;;  %v9476_v39 = vld [vmem:[%s10239_s13 + $0x17e0] ss:$16 sps:$4 sm:$0xff]   ;;  %v9487_v59 = vld [vmem:[%s10239_s13 + $0x140c] ss:$16 sps:$4 sm:$0xff]  }
 0x342   : > { %5866 = vmatprep.subr.bf16.mxu0 %v9400_v32  ;;  %v9484_v32 = vld [vmem:[%s10239_s13 + $0x1804] ss:$16 sps:$4 sm:$0xff]  }
 0x344   : > { %6318 = vmatpush1.bf16.msra.mxu1 %v9401_v60  ;;  %v9482_v60 = vld [vmem:[%s10239_s13 + $0x1800] ss:$16 sps:$4 sm:$0xff]  }
 0x345   : > { %5867 = vmatpush1.bf16.msra.mxu0 %v9398_v33  ;;  %6319 = vmatprep.subr.bf16.mxu1 %v9409_v63  ;;  %v11143_v33 = vcombine.high %v11067_v53, %v11067_v53  ;;  %v9490_v63 = vld [vmem:[%s10239_s13 + $0x1824] ss:$16 sps:$4 sm:$0xff]  }
 0x346   : > { %5868 = vmatprep.subr.bf16.mxu0 %v9406_v61  ;;  %v9485_v61 = vld [vmem:[%s10239_s13 + $0x1408] ss:$16 sps:$4 sm:$0xff]  }
 0x348   : > { %6320 = vmatpush1.bf16.msra.mxu1 %v9407_v2  ;;  %v9488_v2 = vld [vmem:[%s10239_s13 + $0x1820] ss:$16 sps:$4 sm:$0xff]  }
 0x349   : > { %5869 = vmatpush1.bf16.msra.mxu0 %v9404_v0  ;;  %6321 = vmatprep.subr.bf16.mxu1 %v9415_v3  ;;  %v9493_v0 = vld [vmem:[%s10239_s13 + $0x142c] ss:$16 sps:$4 sm:$0xff]   ;;  %v9496_v3 = vld [vmem:[%s10239_s13 + $0x1844] ss:$16 sps:$4 sm:$0xff]  }
 0x34a   : > { %5870 = vmatprep.subr.bf16.mxu0 %v9412_v13  ;;  %v9491_v13 = vld [vmem:[%s10239_s13 + $0x1428] ss:$16 sps:$4 sm:$0xff]  }
 0x34c   : > { %6322 = vmatpush1.bf16.msra.mxu1 %v9413_v8  ;;  %v9970_v8 = vmov 0  }
 0x34d   : > { %5871 = vmatpush1.bf16.msra.mxu0 %v9410_v37  ;;  %6323 = vmatprep.subr.bf16.mxu1 %v9421_v10  ;;  %v9499_v37 = vld [vmem:[%s10239_s13 + $0x144c] ss:$16 sps:$4 sm:$0xff]   ;;  %v9502_v10 = vld [vmem:[%s10239_s13 + $0x1864] ss:$16 sps:$4 sm:$0xff]  }
 0x34e   : > { %5872 = vmatprep.subr.bf16.mxu0 %v9418_v9  ;;  %v9497_v9 = vld [vmem:[%s10239_s13 + $0x1448] ss:$16 sps:$4 sm:$0xff]  }
 0x350   : > { %6324 = vmatpush1.bf16.msra.mxu1 %v9419_v14  ;;  %v9500_v14 = vld [vmem:[%s10239_s13 + $0x1860] ss:$16 sps:$4 sm:$0xff]  }
 0x351   : > { %5873 = vmatpush1.bf16.msra.mxu0 %v9416_v28  ;;  %6325 = vmatprep.subr.bf16.mxu1 %v9427_v19  ;;  %v9505_v28 = vld [vmem:[%s10239_s13 + $0x146c] ss:$16 sps:$4 sm:$0xff]  }
 0x352   : > { %5874 = vmatprep.subr.bf16.mxu0 %v9424_v15  ;;  %v9503_v15 = vld [vmem:[%s10239_s13 + $0x1468] ss:$16 sps:$4 sm:$0xff]   ;;  %v9511_v19 = vld [vmem:[%s10239_s13 + $0x148c] ss:$16 sps:$4 sm:$0xff]  }
 0x354   : > { %6326 = vmatpush1.bf16.msra.mxu1 %v9425_v17  ;;  %v9509_v17 = vld [vmem:[%s10239_s13 + $0x1488] ss:$16 sps:$4 sm:$0xff]  }
 0x355   : > { %5875 = vmatpush1.bf16.msra.mxu0 %v9422_v16  ;;  %6327 = vmatprep.subr.bf16.mxu1 %v9433_v21  ;;  %v9506_v16 = vld [vmem:[%s10239_s13 + $0x1880] ss:$16 sps:$4 sm:$0xff]   ;;  %v9517_v21 = vld [vmem:[%s10239_s13 + $0x14ac] ss:$16 sps:$4 sm:$0xff]  }
 0x356   : > { %5876 = vmatprep.subr.bf16.mxu0 %v9430_v20  ;;  %v9514_v20 = vld [vmem:[%s10239_s13 + $0x18a4] ss:$16 sps:$4 sm:$0xff]  }
 0x358   : > { %6328 = vmatpush1.bf16.msra.mxu1 %v9431_v22  ;;  %v9515_v22 = vld [vmem:[%s10239_s13 + $0x14a8] ss:$16 sps:$4 sm:$0xff]  }
 0x359   : > { %5877 = vmatpush1.bf16.msra.mxu0 %v9428_v51  ;;  %6329 = vmatprep.subr.bf16.mxu1 %v9439_v27  ;;  %v9512_v51 = vld [vmem:[%s10239_s13 + $0x18a0] ss:$16 sps:$4 sm:$0xff]   ;;  %v9523_v27 = vld [vmem:[%s10239_s13 + $0x14cc] ss:$16 sps:$4 sm:$0xff]  }
 0x35a   : > { %5878 = vmatprep.subr.bf16.mxu0 %v9436_v26  ;;  %v9520_v26 = vld [vmem:[%s10239_s13 + $0x18c4] ss:$16 sps:$4 sm:$0xff]  }
 0x35c   : > { %6330 = vmatpush1.bf16.msra.mxu1 %v9437_v30  ;;  %v9521_v30 = vld [vmem:[%s10239_s13 + $0x14c8] ss:$16 sps:$4 sm:$0xff]  }
 0x35d   : > { %5879 = vmatpush1.bf16.msra.mxu0 %v9434_v29  ;;  %6331 = vmatprep.subr.bf16.mxu1 %v9445_v11  ;;  %v9518_v29 = vld [vmem:[%s10239_s13 + $0x18c0] ss:$16 sps:$4 sm:$0xff]   ;;  %v9529_v11 = vld [vmem:[%s10239_s13 + $0x14ec] ss:$16 sps:$4 sm:$0xff]  }
 0x35e   : > { %5880 = vmatprep.subr.bf16.mxu0 %v9442_v58  ;;  %v9526_v58 = vld [vmem:[%s10239_s13 + $0x18e4] ss:$16 sps:$4 sm:$0xff]  }
 0x360   : > { %6332 = vmatpush1.bf16.msra.mxu1 %v9443_v35  ;;  %v9527_v35 = vld [vmem:[%s10239_s13 + $0x14e8] ss:$16 sps:$4 sm:$0xff]  }
 0x361   : > { %5881 = vmatpush1.bf16.msra.mxu0 %v9440_v34  ;;  %6333 = vmatprep.subr.bf16.mxu1 %v9451_v62  ;;  %v9524_v34 = vld [vmem:[%s10239_s13 + $0x18e0] ss:$16 sps:$4 sm:$0xff]   ;;  %v9532_v62 = vld [vmem:[%s10239_s13 + $0x150c] ss:$16 sps:$4 sm:$0xff]  }
 0x362   : > { %5882 = vmatprep.subr.bf16.mxu0 %v9448_v36  ;;  %v7320_v36 = vld.sshfl [vmem:[%s11426_s0 + $0x18] sm:$0x1 pattern:$0x75316420] }
 0x364   : > { %6334 = vmatpush1.bf16.msra.mxu1 %v9449_v38  ;;  %v9530_v38 = vld [vmem:[%s10239_s13 + $0x1508] ss:$16 sps:$4 sm:$0xff]  }
 0x365   : > { %5883 = vmatpush1.bf16.msra.mxu0 %v9446_v12  ;;  %6335 = vmatprep.subr.bf16.mxu1 %v9457_v40  ;;  %v11184_v12 = vrot.slane %v7320_v36, %v10307_v50  ;;  %v9626_v40 = vld [vmem:[%s10252_s15] ss:$8 sps:$4 sm:$0xff]   ;;  %v9538_v50 = vld [vmem:[%s10239_s13 + $0x154c] ss:$16 sps:$4 sm:$0xff]  }
 0x366   : > { %5884 = vmatprep.subr.bf16.mxu0 %v9454_v7  ;;  %v9535_v7 = vld [vmem:[%s10239_s13 + $0x152c] ss:$16 sps:$4 sm:$0xff]   ;;  %v9572_v36 = vld [vmem:[%s10239_s13 + $0x16c8] ss:$16 sps:$4 sm:$0xff]  }
 0x368   : > { %6336 = vmatpush1.bf16.msra.mxu1 %v9455_v41  ;;  %v9533_v41 = vld [vmem:[%s10239_s13 + $0x1528] ss:$16 sps:$4 sm:$0xff]  }
 0x369   : > { %5885 = vmatpush1.bf16.msra.mxu0 %v9452_v4  ;;  %6337 = vmatprep.subr.bf16.mxu1 %v9463_v45  ;;  %v9628_v4 = vld [vmem:[%s10252_s15 + $0x4] ss:$8 sps:$4 sm:$0xff]   ;;  %v9629_v45 = vld [vmem:[%s10252_s15 + $0x10] ss:$8 sps:$4 sm:$0xff]  }
 0x36a   : > { %5886 = vmatprep.subr.bf16.mxu0 %v9460_v42  ;;  %v9631_v42 = vld [vmem:[%s10252_s15 + $0x14] ss:$8 sps:$4 sm:$0xff]  }
 0x36c   : > { %6338 = vmatpush1.bf16.msra.mxu1 %v9461_v1  ;;  %v9536_v1 = vld [vmem:[%s10239_s13 + $0x1548] ss:$16 sps:$4 sm:$0xff]  }
 0x36d   : > { %5887 = vmatpush1.bf16.msra.mxu0 %v9458_v46  ;;  %6339 = vmatprep.subr.bf16.mxu1 %v9469_v49  ;;  %v9634_v46 = vld [vmem:[%s10252_s15 + $0x24] ss:$8 sps:$4 sm:$0xff]   ;;  %v9632_v49 = vld [vmem:[%s10252_s15 + $0x20] ss:$8 sps:$4 sm:$0xff]  }
 0x36e   : > { %5888 = vmatprep.subr.bf16.mxu0 %v9466_v47  ;;  %v9541_v47 = vld [vmem:[%s10239_s13 + $0x156c] ss:$16 sps:$4 sm:$0xff]  }
 0x370   : > { %6340 = vmatpush1.bf16.msra.mxu1 %v9467_v23  ;;  %v9539_v23 = vld [vmem:[%s10239_s13 + $0x1568] ss:$16 sps:$4 sm:$0xff]  }
 0x371   : > { %5889 = vmatpush1.bf16.msra.mxu0 %v9464_v31  ;;  %6341 = vmatprep.subr.bf16.mxu1 %v9475_v18  ;;  %v9637_v31 = vld [vmem:[%s10252_s15 + $0x34] ss:$8 sps:$4 sm:$0xff]   ;;  %v9635_v18 = vld [vmem:[%s10252_s15 + $0x30] ss:$8 sps:$4 sm:$0xff]  }
 0x372   : > { %5890 = vmatprep.subr.bf16.mxu0 %v9472_v52  ;;  %v9544_v52 = vld [vmem:[%s10239_s13 + $0x158c] ss:$16 sps:$4 sm:$0xff]  }
 0x374   : > { %6342 = vmatpush1.bf16.msra.mxu1 %v9473_v54  ;;  %v9542_v54 = vld [vmem:[%s10239_s13 + $0x1588] ss:$16 sps:$4 sm:$0xff]  }
 0x375   : > { %5891 = vmatpush1.bf16.msra.mxu0 %v9470_v25  ;;  %6343 = vmatprep.subr.bf16.mxu1 %v9481_v56  ;;  %v9640_v25 = vld [vmem:[%s10252_s15 + $0x44] ss:$8 sps:$4 sm:$0xff]   ;;  %v9638_v56 = vld [vmem:[%s10252_s15 + $0x40] ss:$8 sps:$4 sm:$0xff]  }
 0x376   : > { %5892 = vmatprep.subr.bf16.mxu0 %v9478_v55  ;;  %v9547_v55 = vld [vmem:[%s10239_s13 + $0x15ac] ss:$16 sps:$4 sm:$0xff]  }
 0x378   : > { %6344 = vmatpush1.bf16.msra.mxu1 %v9479_v57  ;;  %v9545_v57 = vld [vmem:[%s10239_s13 + $0x15a8] ss:$16 sps:$4 sm:$0xff]  }
 0x379   : > { %5893 = vmatpush1.bf16.msra.mxu0 %v9476_v39  ;;  %6354 = vmatprep.subr.bf16.mxu1 %v9487_v59  ;;  %v9643_v39 = vld [vmem:[%s10252_s15 + $0x54] ss:$8 sps:$4 sm:$0xff]   ;;  %v9641_v59 = vld [vmem:[%s10252_s15 + $0x50] ss:$8 sps:$4 sm:$0xff]  }
 0x37a   : > { %5903 = vmatprep.subr.bf16.mxu0 %v9484_v32  ;;  %v9550_v32 = vld [vmem:[%s10239_s13 + $0x15cc] ss:$16 sps:$4 sm:$0xff]  }
 0x37b   : > { %6346 = vmatmul.mubr.bf16.vlgmr.msra.gmra.mrb[4].mxu1 %v10992_v44  ;;  %v9494_v44 = vld [vmem:[%s10239_s13 + $0x1840] ss:$16 sps:$4 sm:$0xff]  }
 0x37c   : > { %5895 = vmatmul.mubr.bf16.vlgmr.msra.gmra.mrb[0].mxu0 %v11143_v33  ;;  %6355 = vmatpush1.bf16.msra.mxu1 %v9485_v61  ;;  %v9548_v61 = vld [vmem:[%s10239_s13 + $0x15c8] ss:$16 sps:$4 sm:$0xff]  }
 0x37d   : > { %5904 = vmatpush1.bf16.msra.mxu0 %v9482_v60  ;;  %6356 = vmatprep.subr.bf16.mxu1 %v9493_v0  ;;  %v9646_v60 = vld [vmem:[%s10252_s15 + $0x64] ss:$8 sps:$4 sm:$0xff]   ;;  %v9644_v0 = vld [vmem:[%s10252_s15 + $0x60] ss:$8 sps:$4 sm:$0xff]  }
 0x37e   : > { %5905 = vmatprep.subr.bf16.mxu0 %v9490_v63  ;;  %5935 = vmatprep.mubr.bf16.mxu0 %v9970_v8  ;;  %v9553_v63 = vld [vmem:[%s10239_s13 + $0x15ec] ss:$16 sps:$4 sm:$0xff]  }
 0x37f   : > { %6386 = vmatprep.mubr.bf16.mxu1 %v10999_v48  ;;  %v9508_v48 = vld [vmem:[%s10239_s13 + $0x1884] ss:$16 sps:$4 sm:$0xff]  }
 0x380   : > { %6357 = vmatpush1.bf16.msra.mxu1 %v9491_v13  ;;  %v9551_v13 = vld [vmem:[%s10239_s13 + $0x15e8] ss:$16 sps:$4 sm:$0xff]  }
 0x381   : > { %5906 = vmatpush1.bf16.msra.mxu0 %v9488_v2  ;;  %6358 = vmatprep.subr.bf16.mxu1 %v9499_v37  ;;  %v9649_v2 = vld [vmem:[%s10252_s15 + $0x74] ss:$8 sps:$4 sm:$0xff]   ;;  %v9647_v37 = vld [vmem:[%s10252_s15 + $0x70] ss:$8 sps:$4 sm:$0xff]  }
 0x382   : > { %5907 = vmatprep.subr.bf16.mxu0 %v9496_v3  ;;  %v9556_v3 = vld [vmem:[%s10239_s13 + $0x160c] ss:$16 sps:$4 sm:$0xff]  }
 0x384   : > { %6359 = vmatpush1.bf16.msra.mxu1 %v9497_v9  ;;  %v9554_v9 = vld [vmem:[%s10239_s13 + $0x1608] ss:$16 sps:$4 sm:$0xff]  }
 0x385   : > { %5908 = vmatpush1.bf16.msra.mxu0 %v9494_v44  ;;  %6360 = vmatprep.subr.bf16.mxu1 %v9505_v28  ;;  %v9652_v44 = vld [vmem:[%s10252_s15 + $0x84] ss:$8 sps:$4 sm:$0xff]   ;;  %v9650_v28 = vld [vmem:[%s10252_s15 + $0x80] ss:$8 sps:$4 sm:$0xff]  }
 0x386   : > { %5909 = vmatprep.subr.bf16.mxu0 %v9502_v10  ;;  %v9559_v10 = vld [vmem:[%s10239_s13 + $0x162c] ss:$16 sps:$4 sm:$0xff]  }
 0x388   : > { %6361 = vmatpush1.bf16.msra.mxu1 %v9503_v15  ;;  %v9557_v15 = vld [vmem:[%s10239_s13 + $0x1628] ss:$16 sps:$4 sm:$0xff]  }
 0x389   : > { %5910 = vmatpush1.bf16.msra.mxu0 %v9500_v14  ;;  %6362 = vmatprep.subr.bf16.mxu1 %v9511_v19  ;;  %v9655_v14 = vld [vmem:[%s10252_s15 + $0x94] ss:$8 sps:$4 sm:$0xff]   ;;  %v9653_v19 = vld [vmem:[%s10252_s15 + $0x90] ss:$8 sps:$4 sm:$0xff]  }
 0x38a   : > { %5911 = vmatprep.subr.bf16.mxu0 %v9508_v48  ;;  %v9562_v48 = vld [vmem:[%s10239_s13 + $0x164c] ss:$16 sps:$4 sm:$0xff]  }
 0x38c   : > { %6363 = vmatpush1.bf16.msra.mxu1 %v9509_v17  ;;  %v9565_v17 = vld [vmem:[%s10239_s13 + $0x166c] ss:$16 sps:$4 sm:$0xff]  }
 0x38d   : > { %5912 = vmatpush1.bf16.msra.mxu0 %v9506_v16  ;;  %6364 = vmatprep.subr.bf16.mxu1 %v9517_v21  ;;  %v9658_v16 = vld [vmem:[%s10252_s15 + $0xa4] ss:$8 sps:$4 sm:$0xff]   ;;  %v9563_v21 = vld [vmem:[%s10239_s13 + $0x1668] ss:$16 sps:$4 sm:$0xff]  }
 0x38e   : > { %5913 = vmatprep.subr.bf16.mxu0 %v9514_v20  ;;  %v9656_v20 = vld [vmem:[%s10252_s15 + $0xa0] ss:$8 sps:$4 sm:$0xff]  }
 0x390   : > { %6365 = vmatpush1.bf16.msra.mxu1 %v9515_v22  ;;  %v9659_v22 = vld [vmem:[%s10252_s15 + $0xb0] ss:$8 sps:$4 sm:$0xff]  }
 0x391   : > { %5914 = vmatpush1.bf16.msra.mxu0 %v9512_v51  ;;  %6366 = vmatprep.subr.bf16.mxu1 %v9523_v27  ;;  %v9568_v51 = vld [vmem:[%s10239_s13 + $0x168c] ss:$16 sps:$4 sm:$0xff]   ;;  %v9566_v27 = vld [vmem:[%s10239_s13 + $0x1688] ss:$16 sps:$4 sm:$0xff]  }
 0x392   : > { %5915 = vmatprep.subr.bf16.mxu0 %v9520_v26  ;;  %v9664_v26 = vld [vmem:[%s10252_s15 + $0xc4] ss:$8 sps:$4 sm:$0xff]  }
 0x394   : > { %6367 = vmatpush1.bf16.msra.mxu1 %v9521_v30  ;;  %v9662_v30 = vld [vmem:[%s10252_s15 + $0xc0] ss:$8 sps:$4 sm:$0xff]  }
 0x395   : > { %5916 = vmatpush1.bf16.msra.mxu0 %v9518_v29  ;;  %6368 = vmatprep.subr.bf16.mxu1 %v9529_v11  ;;  %v9571_v29 = vld [vmem:[%s10239_s13 + $0x16ac] ss:$16 sps:$4 sm:$0xff]   ;;  %v9569_v11 = vld [vmem:[%s10239_s13 + $0x16a8] ss:$16 sps:$4 sm:$0xff]  }
 0x396   : > { %5917 = vmatprep.subr.bf16.mxu0 %v9526_v58  ;;  %v9667_v58 = vld [vmem:[%s10252_s15 + $0xd4] ss:$8 sps:$4 sm:$0xff]  }
 0x398   : > { %6369 = vmatpush1.bf16.msra.mxu1 %v9527_v35  ;;  %v9665_v35 = vld [vmem:[%s10252_s15 + $0xd0] ss:$8 sps:$4 sm:$0xff]  }
 0x399   : > { %5918 = vmatpush1.bf16.msra.mxu0 %v9524_v34  ;;  %6370 = vmatprep.subr.bf16.mxu1 %v9532_v62  ;;  %v9574_v34 = vld [vmem:[%s10239_s13 + $0x16cc] ss:$16 sps:$4 sm:$0xff]  }
 0x39a   : > { %6870 = vmatprep.subr.bf16.mxu0 %v9628_v4  ;;  %v9577_v62 = vld [vmem:[%s10239_s13 + $0x16ec] ss:$16 sps:$4 sm:$0xff]  }
 0x39b   : > { %v9583_v4 = vld [vmem:[%s10239_s13 + $0x172c] ss:$16 sps:$4 sm:$0xff]  }
 0x39c   : > { %5936 = vmatmul.mubr.bf16.vlgmr.msra.gmra.mrb[0].mxu0 %v11184_v12  ;;  %6371 = vmatpush1.bf16.msra.mxu1 %v9530_v38  ;;  %v9575_v38 = vld [vmem:[%s10239_s13 + $0x16e8] ss:$16 sps:$4 sm:$0xff]  }
 0x39d   : > { %6372 = vmatprep.subr.bf16.mxu1 %v9535_v7  ;;  %6871 = vmatpush1.bf16.msra.mxu0 %v9626_v40  ;;  %v9580_v7 = vld [vmem:[%s10239_s13 + $0x170c] ss:$16 sps:$4 sm:$0xff]   ;;  %v9578_v40 = vld [vmem:[%s10239_s13 + $0x1708] ss:$16 sps:$4 sm:$0xff]  }
 0x39e   : > { %6872 = vmatprep.subr.bf16.mxu0 %v9631_v42  ;;  %v9586_v42 = vld [vmem:[%s10239_s13 + $0x174c] ss:$16 sps:$4 sm:$0xff]  }
 0x3a0   : > { %6373 = vmatpush1.bf16.msra.mxu1 %v9533_v41  ;;  %v9581_v41 = vld [vmem:[%s10239_s13 + $0x1728] ss:$16 sps:$4 sm:$0xff]  }
 0x3a1   : > { %6374 = vmatprep.subr.bf16.mxu1 %v9538_v50  ;;  %6873 = vmatpush1.bf16.msra.mxu0 %v9629_v45  ;;  %v9584_v50 = vld [vmem:[%s10239_s13 + $0x1748] ss:$16 sps:$4 sm:$0xff]   ;;  %v9589_v45 = vld [vmem:[%s10239_s13 + $0x176c] ss:$16 sps:$4 sm:$0xff]  }
 0x3a2   : > { %6874 = vmatprep.subr.bf16.mxu0 %v9634_v46  ;;  %v9587_v46 = vld [vmem:[%s10239_s13 + $0x1768] ss:$16 sps:$4 sm:$0xff]  }
 0x3a4   : > { %6375 = vmatpush1.bf16.msra.mxu1 %v9536_v1  ;;  %v9592_v1 = vld [vmem:[%s10239_s13 + $0x178c] ss:$16 sps:$4 sm:$0xff]  }
 0x3a5   : > { %6376 = vmatprep.subr.bf16.mxu1 %v9541_v47  ;;  %6875 = vmatpush1.bf16.msra.mxu0 %v9632_v49  ;;  %v9590_v47 = vld [vmem:[%s10239_s13 + $0x1788] ss:$16 sps:$4 sm:$0xff]   ;;  %v9595_v49 = vld [vmem:[%s10239_s13 + $0x17ac] ss:$16 sps:$4 sm:$0xff]  }
 0x3a6   : > { %6876 = vmatprep.subr.bf16.mxu0 %v9637_v31  ;;  %v9593_v31 = vld [vmem:[%s10239_s13 + $0x17a8] ss:$16 sps:$4 sm:$0xff]  }
 0x3a8   : > { %6377 = vmatpush1.bf16.msra.mxu1 %v9539_v23  ;;  %v9598_v23 = vld [vmem:[%s10239_s13 + $0x17cc] ss:$16 sps:$4 sm:$0xff]  }
 0x3a9   : > { %6378 = vmatprep.subr.bf16.mxu1 %v9544_v52  ;;  %6877 = vmatpush1.bf16.msra.mxu0 %v9635_v18  ;;  %v9670_v52 = vld [vmem:[%s10252_s15 + $0xe4] ss:$8 sps:$4 sm:$0xff]   ;;  %v9668_v18 = vld [vmem:[%s10252_s15 + $0xe0] ss:$8 sps:$4 sm:$0xff]  }
 0x3aa   : > { %6878 = vmatprep.subr.bf16.mxu0 %v9640_v25  ;;  %v9596_v25 = vld [vmem:[%s10239_s13 + $0x17c8] ss:$16 sps:$4 sm:$0xff]  }
 0x3ac   : > { %6379 = vmatpush1.bf16.msra.mxu1 %v9542_v54  ;;  %v9601_v54 = vld [vmem:[%s10239_s13 + $0x17ec] ss:$16 sps:$4 sm:$0xff]  }
 0x3ad   : > { %6380 = vmatprep.subr.bf16.mxu1 %v9547_v55  ;;  %6879 = vmatpush1.bf16.msra.mxu0 %v9638_v56  ;;  %v9673_v55 = vld [vmem:[%s10252_s15 + $0xf4] ss:$8 sps:$4 sm:$0xff]   ;;  %v9671_v56 = vld [vmem:[%s10252_s15 + $0xf0] ss:$8 sps:$4 sm:$0xff]  }
 0x3ae   : > { %6880 = vmatprep.subr.bf16.mxu0 %v9643_v39  ;;  %v9599_v39 = vld [vmem:[%s10239_s13 + $0x17e8] ss:$16 sps:$4 sm:$0xff]  }
 0x3b0   : > { %6381 = vmatpush1.bf16.msra.mxu1 %v9545_v57  ;;  %v9604_v57 = vld [vmem:[%s10239_s13 + $0x180c] ss:$16 sps:$4 sm:$0xff]  }
 0x3b1   : > { %6382 = vmatprep.subr.bf16.mxu1 %v9550_v32  ;;  %6881 = vmatpush1.bf16.msra.mxu0 %v9641_v59  ;;  %v9676_v32 = vld [vmem:[%s10252_s15 + $0x104] ss:$8 sps:$4 sm:$0xff]   ;;  %v9602_v59 = vld [vmem:[%s10239_s13 + $0x1808] ss:$16 sps:$4 sm:$0xff]  }
 0x3b2   : > { %6882 = vmatprep.subr.bf16.mxu0 %v9646_v60  ;;  %v9607_v60 = vld [vmem:[%s10239_s13 + $0x182c] ss:$16 sps:$4 sm:$0xff]  }
 0x3b4   : > { %6383 = vmatpush1.bf16.msra.mxu1 %v9548_v61  ;;  %v9605_v61 = vld [vmem:[%s10239_s13 + $0x1828] ss:$16 sps:$4 sm:$0xff]  }
 0x3b5   : > { %6384 = vmatprep.subr.bf16.mxu1 %v9553_v63  ;;  %6883 = vmatpush1.bf16.msra.mxu0 %v9644_v0  ;;  %v9610_v63 = vld [vmem:[%s10239_s13 + $0x184c] ss:$16 sps:$4 sm:$0xff]   ;;  %v9608_v0 = vld [vmem:[%s10239_s13 + $0x1848] ss:$16 sps:$4 sm:$0xff]  }
 0x3b6   : > { %6884 = vmatprep.subr.bf16.mxu0 %v9649_v2  ;;  %v9613_v2 = vld [vmem:[%s10239_s13 + $0x186c] ss:$16 sps:$4 sm:$0xff]  }
 0x3b8   : > { %6385 = vmatpush1.bf16.msra.mxu1 %v9551_v13  ;;  %v9611_v13 = vld [vmem:[%s10239_s13 + $0x1868] ss:$16 sps:$4 sm:$0xff]  }
 0x3b9   : > { %6395 = vmatprep.subr.bf16.mxu1 %v9556_v3  ;;  %6885 = vmatpush1.bf16.msra.mxu0 %v9647_v37  ;;  %v9614_v3 = vld [vmem:[%s10239_s13 + $0x1888] ss:$16 sps:$4 sm:$0xff]  }
 0x3ba   : > { %6886 = vmatprep.subr.bf16.mxu0 %v9652_v44  ;;  %v9617_v37 = vld [vmem:[%s10239_s13 + $0x18a8] ss:$16 sps:$4 sm:$0xff]   ;;  %v9622_v44 = vld [vmem:[%s10239_s13 + $0x18cc] ss:$16 sps:$4 sm:$0xff]  }
 0x3bb   : > { %6387 = vmatmul.mubr.bf16.vlgmr.msra.gmra.mrb[4].mxu1 %v11067_v53  ;;  %v9560_v53 = vld [vmem:[%s10239_s13 + $0x1648] ss:$16 sps:$4 sm:$0xff]  }
 0x3bc   : > { %6396 = vmatpush1.bf16.msra.mxu1 %v9554_v9  ;;  %6427 = vmatprep.mubr.bf16.mxu1 %v11075_v24  ;;  %v9661_v24 = vld [vmem:[%s10252_s15 + $0xb4] ss:$8 sps:$4 sm:$0xff]   ;;  %v9620_v9 = vld [vmem:[%s10239_s13 + $0x18c8] ss:$16 sps:$4 sm:$0xff]  }
 0x3bd   : > { %6397 = vmatprep.subr.bf16.mxu1 %v9559_v10  ;;  %6887 = vmatpush1.bf16.msra.mxu0 %v9650_v28  ;;  %v9625_v10 = vld [vmem:[%s10239_s13 + $0x18ec] ss:$16 sps:$4 sm:$0xff]   ;;  %v9623_v28 = vld [vmem:[%s10239_s13 + $0x18e8] ss:$16 sps:$4 sm:$0xff]  }
 0x3be   : > { %6888 = vmatprep.subr.bf16.mxu0 %v9655_v14  ;;  %v1203_v14 = vsub.s32 0, %v10299_v43 }
 0x3c0   : > { %6398 = vmatpush1.bf16.msra.mxu1 %v9557_v15  ;;  %v11290_v15 = vld [vmem:[%s10246_s4] sm:$0xf] }
 0x3c1   : > { %6399 = vmatprep.subr.bf16.mxu1 %v9562_v48  ;;  %6889 = vmatpush1.bf16.msra.mxu0 %v9653_v19  ;;  %v1207_v48 = vsub.s32 1, %v10299_v43  ;;  %v1204_v19 = vrot.slane %v11290_v15, %v1203_v14 }
 0x3c2   : > { %6890 = vmatprep.subr.bf16.mxu0 %v9658_v16 }
 0x3c3   : > { %v1208_v16 = vrot.slane %v11290_v15, %v1207_v48 }
 0x3c4   : > { %6400 = vmatpush1.bf16.msra.mxu1 %v9560_v53  ;;  %v5446_v53 = vadd.f32 %v10619_v5, %v1204_v19  ;;  %v9679_v5 = vld [vmem:[%s10252_s15 + $0x114] ss:$8 sps:$4 sm:$0xff]  }
 0x3c5   : > { %6401 = vmatprep.subr.bf16.mxu1 %v9565_v17  ;;  %6891 = vmatpush1.bf16.msra.mxu0 %v9656_v20 }
 0x3c6   : > { %6892 = vmatprep.subr.bf16.mxu0 %v9661_v24 }
 0x3c8   : > { %6402 = vmatpush1.bf16.msra.mxu1 %v9563_v21 }
 0x3c9   : > { %6403 = vmatprep.subr.bf16.mxu1 %v9568_v51  ;;  %6893 = vmatpush1.bf16.msra.mxu0 %v9659_v22 }
 0x3ca   : > { %6894 = vmatprep.subr.bf16.mxu0 %v9664_v26 }
 0x3cc   : > { %6404 = vmatpush1.bf16.msra.mxu1 %v9566_v27 }
 0x3cd   : > { %6405 = vmatprep.subr.bf16.mxu1 %v9571_v29  ;;  %6895 = vmatpush1.bf16.msra.mxu0 %v9662_v30  ;;  %v9674_v30 = vld [vmem:[%s10252_s15 + $0x100] ss:$8 sps:$4 sm:$0xff]  }
 0x3ce   : > { %6896 = vmatprep.subr.bf16.mxu0 %v9667_v58 }
 0x3d0   : > { %6406 = vmatpush1.bf16.msra.mxu1 %v9569_v11  ;;  %v9682_v11 = vld [vmem:[%s10252_s15 + $0x124] ss:$8 sps:$4 sm:$0xff]  }
 0x3d1   : > { %6407 = vmatprep.subr.bf16.mxu1 %v9574_v34  ;;  %6897 = vmatpush1.bf16.msra.mxu0 %v9665_v35  ;;  %v9680_v34 = vld [vmem:[%s10252_s15 + $0x120] ss:$8 sps:$4 sm:$0xff]   ;;  %v9685_v35 = vld [vmem:[%s10252_s15 + $0x134] ss:$8 sps:$4 sm:$0xff]  }
 0x3d2   : > { %6898 = vmatprep.subr.bf16.mxu0 %v9670_v52  ;;  %v9707_v52 = vld [vmem:[%s10252_s15 + $0x1b0] ss:$8 sps:$4 sm:$0xff]  }
 0x3d4   : > { %6408 = vmatpush1.bf16.msra.mxu1 %v9572_v36  ;;  %v9683_v36 = vld [vmem:[%s10252_s15 + $0x130] ss:$8 sps:$4 sm:$0xff]  }
 0x3d5   : > { %6409 = vmatprep.subr.bf16.mxu1 %v9577_v62  ;;  %6899 = vmatpush1.bf16.msra.mxu0 %v9668_v18  ;;  %v9688_v62 = vld [vmem:[%s10252_s15 + $0x144] ss:$8 sps:$4 sm:$0xff]  }
 0x3d6   : > { %6900 = vmatprep.subr.bf16.mxu0 %v9673_v55  ;;  %v9712_v18 = vld [vmem:[%s10252_s15 + $0x1c4] ss:$8 sps:$4 sm:$0xff]   ;;  %v9713_v55 = vld [vmem:[%s10252_s15 + $0x1d0] ss:$8 sps:$4 sm:$0xff]  }
 0x3d8   : > { %6410 = vmatpush1.bf16.msra.mxu1 %v9575_v38  ;;  %v9686_v38 = vld [vmem:[%s10252_s15 + $0x140] ss:$8 sps:$4 sm:$0xff]  }
 0x3d9   : > { %6411 = vmatprep.subr.bf16.mxu1 %v9580_v7  ;;  %6901 = vmatpush1.bf16.msra.mxu0 %v9671_v56  ;;  %v9691_v7 = vld [vmem:[%s10252_s15 + $0x154] ss:$8 sps:$4 sm:$0xff]   ;;  %v9718_v56 = vld [vmem:[%s10252_s15 + $0x1e4] ss:$8 sps:$4 sm:$0xff]  }
 0x3da   : > { %6911 = vmatprep.subr.bf16.mxu0 %v9676_v32  ;;  %v9719_v32 = vld [vmem:[%s10252_s15 + $0x1f0] ss:$8 sps:$4 sm:$0xff]  }
 0x3dc   : > { %6412 = vmatpush1.bf16.msra.mxu1 %v9578_v40  ;;  %v9689_v40 = vld [vmem:[%s10252_s15 + $0x150] ss:$8 sps:$4 sm:$0xff]  }
 0x3dd   : > { %6413 = vmatprep.subr.bf16.mxu1 %v9583_v4  ;;  %v9694_v4 = vld [vmem:[%s10252_s15 + $0x164] ss:$8 sps:$4 sm:$0xff]  }
 0x3e0   : > { %6414 = vmatpush1.bf16.msra.mxu1 %v9581_v41  ;;  %v9692_v41 = vld [vmem:[%s10252_s15 + $0x160] ss:$8 sps:$4 sm:$0xff]  }
 0x3e1   : > { %6415 = vmatprep.subr.bf16.mxu1 %v9586_v42  ;;  %v9697_v42 = vld [vmem:[%s10252_s15 + $0x174] ss:$8 sps:$4 sm:$0xff]  }
 0x3e4   : > { %6416 = vmatpush1.bf16.msra.mxu1 %v9584_v50  ;;  %v9695_v50 = vld [vmem:[%s10252_s15 + $0x170] ss:$8 sps:$4 sm:$0xff]  }
 0x3e5   : > { %6417 = vmatprep.subr.bf16.mxu1 %v9589_v45  ;;  %v9700_v45 = vld [vmem:[%s10252_s15 + $0x184] ss:$8 sps:$4 sm:$0xff]  }
 0x3e8   : > { %6418 = vmatpush1.bf16.msra.mxu1 %v9587_v46  ;;  %v9698_v46 = vld [vmem:[%s10252_s15 + $0x180] ss:$8 sps:$4 sm:$0xff]  }
 0x3e9   : > { %6419 = vmatprep.subr.bf16.mxu1 %v9592_v1  ;;  %v9703_v1 = vld [vmem:[%s10252_s15 + $0x194] ss:$8 sps:$4 sm:$0xff]  }
 0x3ec   : > { %6420 = vmatpush1.bf16.msra.mxu1 %v9590_v47  ;;  %v9701_v47 = vld [vmem:[%s10252_s15 + $0x190] ss:$8 sps:$4 sm:$0xff]  }
 0x3ed   : > { %6421 = vmatprep.subr.bf16.mxu1 %v9595_v49  ;;  %v9706_v49 = vld [vmem:[%s10252_s15 + $0x1a4] ss:$8 sps:$4 sm:$0xff]  }
 0x3f0   : > { %6422 = vmatpush1.bf16.msra.mxu1 %v9593_v31  ;;  %v9704_v31 = vld [vmem:[%s10252_s15 + $0x1a0] ss:$8 sps:$4 sm:$0xff]  }
 0x3f1   : > { %6423 = vmatprep.subr.bf16.mxu1 %v9598_v23  ;;  %v9709_v23 = vld [vmem:[%s10252_s15 + $0x1b4] ss:$8 sps:$4 sm:$0xff]  }
 0x3f4   : > { %6424 = vmatpush1.bf16.msra.mxu1 %v9596_v25  ;;  %v9710_v25 = vld [vmem:[%s10252_s15 + $0x1c0] ss:$8 sps:$4 sm:$0xff]  }
 0x3f5   : > { %6425 = vmatprep.subr.bf16.mxu1 %v9601_v54  ;;  %v9715_v54 = vld [vmem:[%s10252_s15 + $0x1d4] ss:$8 sps:$4 sm:$0xff]  }
 0x3f8   : > { %6426 = vmatpush1.bf16.msra.mxu1 %v9599_v39  ;;  %v9716_v39 = vld [vmem:[%s10252_s15 + $0x1e0] ss:$8 sps:$4 sm:$0xff]  }
 0x3f9   : > { %6436 = vmatprep.subr.bf16.mxu1 %v9604_v57  ;;  %v9721_v57 = vld [vmem:[%s10252_s15 + $0x1f4] ss:$8 sps:$4 sm:$0xff]  }
 0x3fb   : > { %6428 = vmatmul.mubr.bf16.vlgmr.msra.gmra.mrb[4].mxu1 %v11143_v33  ;;  %v9616_v33 = vld [vmem:[%s10239_s13 + $0x188c] ss:$16 sps:$4 sm:$0xff]  }
 0x3fc   : > { %6437 = vmatpush1.bf16.msra.mxu1 %v9602_v59  ;;  %6468 = vmatprep.mubr.bf16.mxu1 %v9970_v8  ;;  %v9619_v8 = vld [vmem:[%s10239_s13 + $0x18ac] ss:$16 sps:$4 sm:$0xff]   ;;  %v1211_v59 = vsub.s32 2, %v10299_v43 }
 0x3fd   : > { %6438 = vmatprep.subr.bf16.mxu1 %v9607_v60  ;;  %v1215_v60 = vsub.s32 3, %v10299_v43 }
 0x400   : > { %6439 = vmatpush1.bf16.msra.mxu1 %v9605_v61  ;;  %v1212_v61 = vrot.slane %v11290_v15, %v1211_v59 }
 0x401   : > { %6440 = vmatprep.subr.bf16.mxu1 %v9610_v63  ;;  %v1216_v63 = vrot.slane %v11290_v15, %v1215_v60 }
 0x404   : > { %6441 = vmatpush1.bf16.msra.mxu1 %v9608_v0 }
 0x405   : > { %6442 = vmatprep.subr.bf16.mxu1 %v9613_v2 }
 0x408   : > { %6443 = vmatpush1.bf16.msra.mxu1 %v9611_v13 }
 0x409   : > { %6444 = vmatprep.subr.bf16.mxu1 %v9616_v33 }
 0x40c   : > { %6445 = vmatpush1.bf16.msra.mxu1 %v9614_v3 }
 0x40d   : > { %6446 = vmatprep.subr.bf16.mxu1 %v9619_v8 }
 0x410   : > { %6447 = vmatpush1.bf16.msra.mxu1 %v9617_v37 }
 0x411   : > { %6448 = vmatprep.subr.bf16.mxu1 %v9622_v44 }
 0x414   : > { %6449 = vmatpush1.bf16.msra.mxu1 %v9620_v9 }
 0x415   : > { %6450 = vmatprep.subr.bf16.mxu1 %v9625_v10 }
 0x418   : > { %6451 = vmatpush1.bf16.msra.mxu1 %v9623_v28  ;;  %v9971_v28 = vmov 1983009808  }
 0x419   : > { %v6956_v19 = vunpack.c.l.s4 %v9971_v28 }
 0x41b   : > { %6469 = vmatmul.mubr.bf16.vlgmr.msra.gmra.mrb[4].mxu1 %v11184_v12  ;;  %v5448_v12 = vadd.f32 %v10621_v6, %v1208_v16  ;;  %v9677_v6 = vld [vmem:[%s10252_s15 + $0x110] ss:$8 sps:$4 sm:$0xff]   ;;  %v6957_v16 = vunpack.c.0.s8 %v6956_v19 }
 0x46f   : > { %v5937_v17 = vpop.f32.mrb[0].mxu0 }
 0x470   : > { %v8234_v20 = vadd.f32 %v5937_v17, %v5446_v53  ;;  %v5939_v24 = vpop.f32.mrb[1].mxu0 }
 0x471   : > { %v8236_v21 = vadd.f32 %v5939_v24, %v5448_v12  ;;  %v5941_v51 = vpop.f32.mrb[2].mxu0  ;;  %v6960_v12 = vsub.s32 %v6957_v16, %v10299_v43  ;;  %v6485_v24 = vld [vmem:[#allocation2] sm:$0xf] }
 0x472   : > { %v6477_v22 = vmax.f32 %v8234_v20, 0.0  ;;  %v5942_v26 = vpop.f32.mrb[3].mxu0 }
 0x473   : > { %v6478_v27 = vmax.f32 %v8236_v21, 0.0  ;;  %v9722_v26 = vld [vmem:[%s11431_s5 + $0x40] sm:$0xff] (!%p8185_p7)  }
 0x474   : > { %v6481_v58 = vpack.c.bf16 %v6477_v22, %v6477_v22 }
 0x475   : > { %v6482_v29 = vpack.c.bf16 %v6478_v27, %v6478_v27  ;;  %v9723_v27 = vld [vmem:[%s11431_s5] sm:$0xff] (!%p8185_p7)  }
 0x477   : > { %6902 = vmatprep.mubr.bf16.mxu0 %v6482_v29  ;;  %v9724_v29 = vld [vmem:[%s11431_s5 + $0x48] sm:$0xff] (!%p8185_p7)  }
 0x478   : > { %6903 = vmatmul.mubr.bf16.vlgmr.msra.gmra.mrb[4].mxu0 %v6481_v58  ;;  %v9726_v58 = vld [vmem:[%s11431_s5 + $0x50] sm:$0xff] (!%p8185_p7)  }
 0x479   : > { %6912 = vmatpush1.bf16.msra.mxu0 %v9674_v30  ;;  %v9725_v30 = vld [vmem:[%s11431_s5 + $0x8] sm:$0xff] (!%p8185_p7)  }
 0x47a   : > { %6913 = vmatprep.subr.bf16.mxu0 %v9679_v5  ;;  %v9727_v5 = vld [vmem:[%s11431_s5 + $0x10] sm:$0xff] (!%p8185_p7)  }
 0x47d   : > { %6914 = vmatpush1.bf16.msra.mxu0 %v9677_v6  ;;  %v9728_v6 = vld [vmem:[%s11431_s5 + $0x58] sm:$0xff] (!%p8185_p7)  }
 0x47e   : > { %6915 = vmatprep.subr.bf16.mxu0 %v9682_v11  ;;  %v9729_v11 = vld [vmem:[%s11431_s5 + $0x18] sm:$0xff] (!%p8185_p7)  }
 0x481   : > { %6916 = vmatpush1.bf16.msra.mxu0 %v9680_v34  ;;  %v9730_v34 = vld [vmem:[%s11431_s5 + $0x60] sm:$0xff] (!%p8185_p7)  }
 0x482   : > { %6917 = vmatprep.subr.bf16.mxu0 %v9685_v35  ;;  %v9731_v35 = vld [vmem:[%s11431_s5 + $0x20] sm:$0xff] (!%p8185_p7)  }
 0x485   : > { %6918 = vmatpush1.bf16.msra.mxu0 %v9683_v36  ;;  %v9732_v36 = vld [vmem:[%s11431_s5 + $0x68] sm:$0xff] (!%p8185_p7)  }
 0x486   : > { %6919 = vmatprep.subr.bf16.mxu0 %v9688_v62  ;;  %v6970_v62 = vld [vmem:[#allocation9] sm:$0x3] (!%p8185_p7) }
 0x489   : > { %6920 = vmatpush1.bf16.msra.mxu0 %v9686_v38  ;;  %v6975_v38 = vrot.slane (!%p8185_p7), %v6970_v62, %v1203_v14  ;;  %v9735_v14 = vld [vmem:[%s11431_s5 + $0x30] sm:$0xff] (!%p8185_p7)  }
 0x48a   : > { %6921 = vmatprep.subr.bf16.mxu0 %v9691_v7  ;;  %v6979_v7 = vrot.slane (!%p8185_p7), %v6970_v62, %v1207_v48  ;;  %v9736_v48 = vld [vmem:[%s11431_s5 + $0x78] sm:$0xff] (!%p8185_p7)  }
 0x48d   : > { %6922 = vmatpush1.bf16.msra.mxu0 %v9689_v40  ;;  %v9733_v40 = vld [vmem:[%s11431_s5 + $0x28] sm:$0xff] (!%p8185_p7)  }
 0x48e   : > { %6923 = vmatprep.subr.bf16.mxu0 %v9694_v4  ;;  %v6980_v4 = vcombine.low (!%p8185_p7), %v6975_v38, %v6979_v7 }
 0x491   : > { %6924 = vmatpush1.bf16.msra.mxu0 %v9692_v41  ;;  %v9734_v41 = vld [vmem:[%s11431_s5 + $0x70] sm:$0xff] (!%p8185_p7)  }
 0x492   : > { %6925 = vmatprep.subr.bf16.mxu0 %v9697_v42 }
 0x495   : > { %6926 = vmatpush1.bf16.msra.mxu0 %v9695_v50  ;;  %v6987_v50 = vrot.slane (!%p8185_p7), %v6980_v4, %v6960_v12 }
 0x496   : > { %6927 = vmatprep.subr.bf16.mxu0 %v9700_v45 }
 0x499   : > { %6928 = vmatpush1.bf16.msra.mxu0 %v9698_v46  ;;  %v9737_v46 = vld [vmem:[%s11431_s5 + $0x38] sm:$0xff] (!%p8185_p7)  }
 0x49a   : > { %6929 = vmatprep.subr.bf16.mxu0 %v9703_v1 }
 0x49d   : > { %6930 = vmatpush1.bf16.msra.mxu0 %v9701_v47 }
 0x49e   : > { %6931 = vmatprep.subr.bf16.mxu0 %v9706_v49 }
 0x4a1   : > { %6932 = vmatpush1.bf16.msra.mxu0 %v9704_v31 }
 0x4a2   : > { %6933 = vmatprep.subr.bf16.mxu0 %v9709_v23 }
 0x4a5   : > { %6934 = vmatpush1.bf16.msra.mxu0 %v9707_v52  ;;  %v8186_v52 = vld [vmem:[#allocation11] ss:$0 sm:$0xff] (!%p8185_p7) }
 0x4a6   : > { %6935 = vmatprep.subr.bf16.mxu0 %v9712_v18 }
 0x4a9   : > { %6936 = vmatpush1.bf16.msra.mxu0 %v9710_v25 }
 0x4aa   : > { %6937 = vmatprep.subr.bf16.mxu0 %v9715_v54 }
 0x4ad   : > { %6938 = vmatpush1.bf16.msra.mxu0 %v9713_v55 }
 0x4ae   : > { %6939 = vmatprep.subr.bf16.mxu0 %v9718_v56 }
 0x4b1   : > { %6940 = vmatpush1.bf16.msra.mxu0 %v9716_v39 }
 0x4b2   : > { %6941 = vmatprep.subr.bf16.mxu0 %v9721_v57 }
 0x4b5   : > { %6942 = vmatpush1.bf16.msra.mxu0 %v9719_v32 }
 0x4b6   : > { %8211 = vmatprep.subr.bf16.mxu0 (!%p8185_p7), %v9722_v26 }
 0x4ee   : > { %v6470_v0 = vpop.f32.mrb[4].mxu1 }
 0x4ef   : > { %v8237_v2 = vadd.f32 %v6470_v0, %v1212_v61  ;;  %v6472_v13 = vpop.f32.mrb[5].mxu1 }
 0x4f0   : > { %v8238_v33 = vadd.f32 %v6472_v13, %v1216_v63  ;;  %v6474_v3 = vpop.f32.mrb[6].mxu1 }
 0x4f1   : > { %v6479_v8 = vmax.f32 %v8237_v2, 0.0  ;;  %v6475_v37 = vpop.f32.mrb[7].mxu1 }
 0x4f2   : > { %v6480_v44 = vmax.f32 %v8238_v33, 0.0 }
 0x4f3   : > { %v6483_v10 = vpack.c.bf16 %v6479_v8, %v6479_v8 }
 0x4f4   : > { %v6484_v9 = vpack.c.bf16 %v6480_v44, %v6480_v44 }
 0x4f6   : > { %6943 = vmatprep.mubr.bf16.mxu0 %v6484_v9 }
 0x4f7   : > { %6944 = vmatmul.mubr.bf16.vlgmr.msra.gmra.mrb[4].mxu0 %v6483_v10 }
 0x4f8   : > { %8212 = vmatpush3.bf16.msra.mxu0 (!%p8185_p7), %v9723_v27 }
 0x4f9   : > { %8213 = vmatprep.subr.bf16.mxu0 (!%p8185_p7), %v9724_v29 }
 0x4fc   : > { %8214 = vmatpush3.bf16.msra.mxu0 (!%p8185_p7), %v9725_v30 }
 0x4fd   : > { %8215 = vmatprep.subr.bf16.mxu0 (!%p8185_p7), %v9726_v58 }
 0x500   : > { %8216 = vmatpush3.bf16.msra.mxu0 (!%p8185_p7), %v9727_v5 }
 0x501   : > { %8217 = vmatprep.subr.bf16.mxu0 (!%p8185_p7), %v9728_v6 }
 0x504   : > { %8218 = vmatpush3.bf16.msra.mxu0 (!%p8185_p7), %v9729_v11 }
 0x505   : > { %8219 = vmatprep.subr.bf16.mxu0 (!%p8185_p7), %v9730_v34 }
 0x508   : > { %8220 = vmatpush3.bf16.msra.mxu0 (!%p8185_p7), %v9731_v35 }
 0x509   : > { %8221 = vmatprep.subr.bf16.mxu0 (!%p8185_p7), %v9732_v36 }
 0x50c   : > { %8222 = vmatpush3.bf16.msra.mxu0 (!%p8185_p7), %v9733_v40 }
 0x50d   : > { %8223 = vmatprep.subr.bf16.mxu0 (!%p8185_p7), %v9734_v41 }
 0x510   : > { %8224 = vmatpush3.bf16.msra.mxu0 (!%p8185_p7), %v9735_v14 }
 0x511   : > { %8225 = vmatprep.subr.bf16.mxu0 (!%p8185_p7), %v9736_v48 }
 0x514   : > { %8226 = vmatpush3.bf16.msra.mxu0 (!%p8185_p7), %v9737_v46 }
 0x5ca   : > { %v6945_v53 = vpop.f32.mrb[4].mxu0 }
 0x5cb   : > { %v6947_v17 = vpop.f32.mrb[5].mxu0 }
 0x5cc   : > { %v6954_v15 = vcombine.low %v6945_v53, %v6947_v17  ;;  %v6949_v20 = vpop.f32.mrb[6].mxu0  ;;  %6968 = sbr.rel (%p8185_p7) target bundleno = 1727 (0x6bf), region = 76 }
 0x5cd   : > { %v6950_v21 = vpop.f32.mrb[7].mxu0 }
 0x5ce   : > { %v6961_v51 = vrot.slane %v6954_v15, %v6960_v12 }
 0x5d0   : > { %v6963_v22 = vadd.f32 %v6961_v51, %v6485_v24 }
 0x5d2   : > { %6964 = vst [vmem:[#allocation2] sm:$0xf] %v6963_v22 }
 0x5d9   : > { %v6969_v42 = vld [vmem:[#allocation2] sm:$0xf] }
 0x5da   : > { %v6989_v43 = vadd.f32 %v6987_v50, %v6969_v42 }
 0x5dc   : > { %v6990_v45 = vmax.f32 %v6989_v43, 0.0 }
 0x5de   : > { %v6998_v1 = vrot.slane %v6990_v45, %v6960_v12 }
 0x5e0   : > { %v6999_v47 = vcombine.high %v6998_v1, %v6998_v1  ;;  %v7002_v49 = vpack.c.bf16 %v6998_v1, %v6998_v1 }
 0x5e2   : > { %v7003_v31 = vpack.c.bf16 %v6999_v47, %v6999_v47 }
 0x5e4   : > { %7171 = vmatprep.mubr.bf16.mxu0 %v7003_v31 }
 0x5e5   : > { %7172 = vmatmul.mubr.bf16.vlgmr.msra.gmra.mrb[0].mxu0 %v7002_v49 }
 0x6b8   : > { %v8227_v23 = vpop.f32.mrb[0].mxu0 }
 0x6b9   : > { %v8228_v18 = vpop.f32.mrb[1].mxu0 }
 0x6ba   : > { %v8229_v25 = vadd.f32 %v8228_v18, %v8227_v23  ;;  %v8230_v54 = vpop.f32.mrb[2].mxu0 }
 0x6bb   : > { %v8231_v55 = vpop.f32.mrb[3].mxu0 }
 0x6bc   : > { %v7174_v56 = vadd.f32 %v8229_v25, %v8186_v52 }
 0x6be   : > { %7180 = vst.msk [vmem:[#allocation12] sm:$0x3] %vm7179_vm0, %v7174_v56 }
 0x6bf PF: > { %p8377_p2 = scmp.eq.s32.totalorder %s10032_s28, 3  ;;  %s9972_s30 = smov [#allocation12]  }
 0x6c0   : > { %s7188_s15 = sshll.u32 %s9972_s30, 4  ;;  %s7189_s15 = int_to_ptr.vmem [resolvable:$true] %s7188_s15 }
 0x6c1   : > { %s9884_s29 = scalar_lea.vmem %s7189_s15, 32  ;;  %p9891_p1 = scmp.lt.s32.totalorder %s7189_s15, %s7189_s15 }
 0x6c2   : > { %p9885_p10 = scmp.ne.s32.totalorder %s7189_s15, %s9884_s29  ;;  %p9892_p5 = scmp.lt.s32.totalorder %s9884_s29, %s9884_s29 }
 0x6c4   : > { %p9886_p8 = pnand %p9885_p10, %p8377_p2  ;;  %p9893_p9 = por %p9892_p5, %p9891_p1 }
 0x6c6   : > { %p9887_p4 = pneg %p9886_p8 }
 0x6c8   : > { %p9894_p11 = pnand %p9893_p9, %p9887_p4 }
 0x6ca   : > { %9897 = shalt.err (!%p9894_p11)
}
 0x6cb   : > { %s9898_s11 = scalar_lea.hbm %s11433_s7, 32 }
 0x6cc   : > { %p9899_p13 = scmp.ne.s32.totalorder %s11433_s7, %s9898_s11  ;;  %p9904_p0 = scmp.lt.u32.totalorder %s9898_s11, %s11433_s7 }
 0x6ce   : > { %p9900_p6 = pnand %p9899_p13, %p8377_p2 }
 0x6d0   : > { %p9901_p12 = pneg %p9900_p6 }
 0x6d2   : > { %p9906_p3 = pnand %p9904_p0, %p9901_p12 }
 0x6d4   : > { %9909 = shalt.err (!%p9906_p3)
}
 0x6d5   : > { %8352 = dma.vmem_to_hbm [thread:$0]  (%p8377_p2), %s7189_s15, 32, %s11433_s7, [#allocation5]  }
 0x6d6   : > { %9939 = dma.done.wait (%p8377_p2), [#allocation5], 32  }
 0x6d7   : > { %9941 = vsyncadd (%p8377_p2), [#allocation5], 4294967264 }
 0x6d8 PF: > { %p22_p7 = scmp.ge.s32.totalorder %s10052_s10, 6   ;;  %s11470_s24 = smov %s9948_s25 }
 0x6d9   : > { %s11471_s25 = smov %s9952_s26  ;;  %s11472_s26 = smov %s10094_s8 }
 0x6da   : > { %s11473_s27 = smov %s10052_s10  ;;  %24 = sbr.rel (!%p22_p7) target bundleno = 11 (0xb), region = 125 }
 0x6e1   :  { %7201 = vsyncpa [#allocation4], 1 }
 0x6e2   :  { %7203 = vsyncpa [#allocation4 + $0x1], 1 }
 0x6e3   :  { %7204 = vsyncpa [#allocation7], 1 }
 0x6e4   :  { %7206 = vsyncpa [#allocation7 + $0x1], 1 }
 0x6e5   :  { %7207 = vsyncpa [#allocation10], 1 }
 0x6e6   :  { %7208 = vsyncpa [#allocation5], 1 }
 0x6e7   :  { %7210 = vsyncpa [#allocation5 + $0x1], 1 }

</bundles_post_ra>
